<compile_context>
chip_gen: v7x
topology: tpu7x:2x2x1
jax: 0.10.0
libtpu: 0.0.40
codegen_flags: <defaults>
</compile_context>

<pallas_src>
import functools

import numpy as np
import jax
import jax.numpy as jnp
from jax.experimental import pallas as pl
from jax.experimental.pallas import tpu as pltpu


KERNEL = 5
STRIDE = 2


def _round_up(x, m):
    return (x + m - 1) // m * m


def _conv_out(n, k=KERNEL, s=STRIDE):
    return (n - k) // s + 1


def _pick_block_batch(n):
    """Images per grid step: batch for MXU M-efficiency, but keep >= 2 grid
    steps when possible so v7x's 2 TensorCores (parallel axis) both get work."""
    for nb in (8, 4, 2):
        if n % nb == 0 and n // nb >= 2:
            return nb
    return 1


# ----------------------------------------------------------------------------
# One-time parameter preparation (outside the hot path).
# ----------------------------------------------------------------------------
def prepare_qcn_params(params, state_shape, eps=1e-5):
    """Fold BatchNorm into conv weights/biases and reorder for the fused kernel."""
    chans, width, height = state_shape
    k = KERNEL
    prep = {}

    def bn_fold(p):
        sc = p["gamma"] / jnp.sqrt(p["var"] + eps)   # BN scale
        sh = p["beta"] - p["mean"] * sc              # BN shift
        return sc, sh

    # conv1: im2col weight. Row order matches the wrapper patch layout
    # (kh, kw, c); rows lane-padded to a multiple of 128.
    p = params["conv1"]
    oc, ic, _, _ = p["w"].shape
    sc, sh = bn_fold(p)
    w1 = jnp.transpose(p["w"], (2, 3, 1, 0)).reshape(k * k * ic, oc) * sc[None, :]
    kp = _round_up(k * k * ic, 128)
    prep["w1"] = jnp.zeros((kp, oc), jnp.float32).at[: k * k * ic, :].set(w1)
    prep["b1"] = (p["b"] * sc + sh).reshape(1, oc).astype(jnp.float32)

    # conv2 / conv3: kw folded into the contraction -> (kh, kw*ic, oc) weights.
    for l in (2, 3):
        p = params[f"conv{l}"]
        oc, ic, _, _ = p["w"].shape
        sc, sh = bn_fold(p)
        w = jnp.transpose(p["w"], (2, 3, 1, 0)).reshape(k, k * ic, oc)
        prep[f"w{l}"] = (w * sc[None, None, :]).astype(jnp.float32)
        prep[f"b{l}"] = (p["b"] * sc + sh).reshape(1, oc).astype(jnp.float32)

    # fc1: permute rows from PyTorch's NCHW flatten order (c, h, w) to the
    # kernel's gather order (h, w, c) -> one (H3*W3*C3, hidden) matrix.
    h, w = width, height
    for _ in range(3):
        h, w = _conv_out(h), _conv_out(w)
    c3 = params["conv3"]["w"].shape[0]
    fc1w = params["fc1"]["w"]                        # (c3*h*w, hidden)
    hidden = fc1w.shape[1]
    prep["fc1w"] = (fc1w.reshape(c3, h * w, hidden)
                        .transpose(1, 0, 2)
                        .reshape(h * w * c3, hidden).astype(jnp.float32))
    prep["fc1b"] = params["fc1"]["b"].reshape(1, hidden).astype(jnp.float32)

    # fc2: output lanes padded to a multiple of 128 (lane-dense store).
    fc2w = params["fc2"]["w"]                        # (hidden, action_size)
    a = fc2w.shape[1]
    a_pad = _round_up(a, 128)
    prep["fc2w"] = jnp.zeros((fc2w.shape[0], a_pad), jnp.float32).at[:, :a].set(fc2w)
    prep["fc2b"] = jnp.zeros((1, a_pad), jnp.float32).at[0, :a].set(params["fc2"]["b"])
    return prep


# ----------------------------------------------------------------------------
# Fused forward pass: one pallas_call for the whole network.
# ----------------------------------------------------------------------------
@functools.partial(jax.jit, static_argnames=("action_size",))
def qcn_apply(prep, state_nchw, *, action_size):
    N, C0, H0, W0 = state_nchw.shape
    k, s = KERNEL, STRIDE

    # Static layer geometry.
    H1, W1 = _conv_out(H0), _conv_out(W0)
    H2, W2 = _conv_out(H1), _conv_out(W1)
    H3, W3 = _conv_out(H2), _conv_out(W2)

    KP, C1 = prep["w1"].shape
    C2 = prep["w2"].shape[2]
    C3 = prep["w3"].shape[2]
    hidden = prep["fc1w"].shape[1]
    a_pad = prep["fc2w"].shape[1]

    # Conv output widths padded to multiples of 8 so every in-kernel reshape is
    # sublane-layout trivial.  Scratch widths are wide enough for the
    # consumer's padded strided reads.
    W1p, W2p, W3p = _round_up(W1, 8), _round_up(W2, 8), _round_up(W3, 8)
    W1s = _round_up(max(W1p, (k - 1) + s * (W2p - 1) + 1), 8)
    W2s = _round_up(max(W2p, (k - 1) + s * (W3p - 1) + 1), 8)

    assert KP >= k * k * C0 and KP % 128 == 0
    assert prep["w2"].shape == (k, k * C1, C2)
    assert prep["w3"].shape == (k, k * C2, C3)
    assert prep["fc1w"].shape[0] == H3 * W3 * C3
    # Padding-safety invariant: valid output columns only read valid input
    # columns, so padded activation columns only ever feed padded outputs.
    assert (k - 1) + s * (W2 - 1) <= W1 - 1
    assert (k - 1) + s * (W3 - 1) <= W2 - 1

    Nb = _pick_block_batch(N)
    grid = (N // Nb,)

    # ---- conv1 im2col, fused with the NCHW->NHWC transpose (plain XLA) ------
    # patch[n, oh, ow, (kh*k + kw)*C0 + c] = x[n, c, s*oh + kh, s*ow + kw]
    x_nhwc = jnp.transpose(state_nchw, (0, 2, 3, 1)).astype(jnp.float32)
    cols = []
    for kh in range(k):
        for kw in range(k):
            cols.append(x_nhwc[:, kh:kh + s * (H1 - 1) + 1:s,
                               kw:kw + s * (W1 - 1) + 1:s, :])
    patches = jnp.concatenate(cols, axis=-1)                 # (N, H1, W1, k*k*C0)
    patches = jnp.pad(patches, ((0, 0), (0, 0),
                                (0, W1p - W1), (0, KP - k * k * C0)))

    def kernel(patch_ref, w1_ref, b1_ref, w2_ref, b2_ref, w3_ref, b3_ref,
               fc1w_ref, fc1b_ref, fc2w_ref, fc2b_ref, out_ref,
               a1_scr, a2_scr):

        # Targeted fills: only the padding columns that downstream *padded*
        # output columns read (valid columns are fully overwritten each step).
        if W1s > W1p:
            a1_scr[:, :, W1p:W1s, :] = jnp.zeros((Nb, H1, W1s - W1p, C1),
                                                 jnp.float32)
        if W2s > W2p:
            a2_scr[:, :, W2p:W2s, :] = jnp.zeros((Nb, H2, W2s - W2p, C2),
                                                 jnp.float32)

        def conv_kfold(in_ref, w_ref, b_ref, oh, owp):
            """relu(conv + folded-BN bias): kw folded into the contraction
            (K = k*cin), one MXU dot per kh, pairwise-tree partial sums."""
            cin = in_ref.shape[3]
            m = Nb * oh * owp
            parts = []
            for kh in range(k):
                patch = jnp.concatenate(
                    [in_ref[:, pl.ds(kh, oh, stride=s),
                            pl.ds(kw, owp, stride=s), :] for kw in range(k)],
                    axis=-1)                                   # (Nb, oh, owp, k*cin)
                parts.append(jnp.dot(patch.reshape(m, k * cin), w_ref[kh],
                                     preferred_element_type=jnp.float32))
            while len(parts) > 1:                              # tree-sum partials
                nxt = [parts[i] + parts[i + 1]
                       for i in range(0, len(parts) - 1, 2)]
                if len(parts) % 2:
                    nxt.append(parts[-1])
                parts = nxt
            return jnp.maximum(parts[0] + b_ref[...], 0.0)     # (m, cout)

        # conv1 + bn1 + relu: ONE im2col matmul (K = k*k*C0, lane-padded).
        m1 = Nb * H1 * W1p
        y1 = jnp.dot(patch_ref[...].reshape(m1, KP), w1_ref[...],
                     preferred_element_type=jnp.float32)
        y1 = jnp.maximum(y1 + b1_ref[...], 0.0)
        a1_scr[:, :, 0:W1p, :] = y1.reshape(Nb, H1, W1p, C1)

        # conv2 + bn2 + relu (5 dots of K = 640).
        y2 = conv_kfold(a1_scr, w2_ref, b2_ref, H2, W2p)
        a2_scr[:, :, 0:W2p, :] = y2.reshape(Nb, H2, W2p, C2)

        # conv3 + bn3 + relu (5 dots of K = 640).
        y3 = conv_kfold(a2_scr, w3_ref, b3_ref, H3, W3p).reshape(Nb, H3, W3p, C3)

        # fc1: gather the H3*W3 valid positions into H3*W3*C3 lanes -> one dot.
        h_in = jnp.concatenate(
            [y3[:, oh, ow, :] for oh in range(H3) for ow in range(W3)],
            axis=-1)                                           # (Nb, H3*W3*C3)
        hid = jnp.dot(h_in, fc1w_ref[...], preferred_element_type=jnp.float32)
        hid = jnp.maximum(hid + fc1b_ref[...], 0.0)

        # fc2 (output lanes padded to 128 for a lane-dense store).
        q = jnp.dot(hid, fc2w_ref[...], preferred_element_type=jnp.float32)
        out_ref[...] = (q + fc2b_ref[...]).reshape(Nb, 1, a_pad)

    out = pl.pallas_call(
        kernel,
        out_shape=jax.ShapeDtypeStruct((N, 1, a_pad), jnp.float32),
        grid_spec=pltpu.PrefetchScalarGridSpec(
            num_scalar_prefetch=0,
            grid=grid,
            in_specs=[
                pl.BlockSpec((Nb, H1, W1p, KP), lambda i: (i, 0, 0, 0)),
                pl.BlockSpec(prep["w1"].shape, lambda i: (0, 0)),
                pl.BlockSpec(prep["b1"].shape, lambda i: (0, 0)),
                pl.BlockSpec(prep["w2"].shape, lambda i: (0, 0, 0)),
                pl.BlockSpec(prep["b2"].shape, lambda i: (0, 0)),
                pl.BlockSpec(prep["w3"].shape, lambda i: (0, 0, 0)),
                pl.BlockSpec(prep["b3"].shape, lambda i: (0, 0)),
                pl.BlockSpec(prep["fc1w"].shape, lambda i: (0, 0)),
                pl.BlockSpec(prep["fc1b"].shape, lambda i: (0, 0)),
                pl.BlockSpec(prep["fc2w"].shape, lambda i: (0, 0)),
                pl.BlockSpec(prep["fc2b"].shape, lambda i: (0, 0)),
            ],
            out_specs=pl.BlockSpec((Nb, 1, a_pad), lambda i: (i, 0, 0)),
            scratch_shapes=[
                pltpu.VMEM((Nb, H1, W1s, C1), jnp.float32),   # conv1 activation
                pltpu.VMEM((Nb, H2, W2s, C2), jnp.float32),   # conv2 activation
            ],
        ),
        compiler_params=pltpu.CompilerParams(
            dimension_semantics=("parallel",),
            vmem_limit_bytes=32 * 1024 * 1024,   # sized under v7x's 64 MiB VMEM
        ),
    )(patches, prep["w1"], prep["b1"], prep["w2"], prep["b2"],
      prep["w3"], prep["b3"], prep["fc1w"], prep["fc1b"],
      prep["fc2w"], prep["fc2b"])

    return out[:, 0, :action_size]


# ----------------------------------------------------------------------------
# Deterministic parameter init (shapes per QCNNetwork.__init__)
# ----------------------------------------------------------------------------
def init_params(key, chans, width, height, action_size):
    outs = [128, 128, 128]
    kernels = [5, 5, 5]
    strides = [2, 2, 2]
    ins = [chans, outs[0], outs[1]]
    params = {}
    fc = np.array([width, height])
    for idx, (oc, ic, k, s) in enumerate(zip(outs, ins, kernels, strides)):
        key, k1, k2, k3, k4, k5, k6 = jax.random.split(key, 7)
        params[f"conv{idx + 1}"] = dict(
            w=0.05 * jax.random.normal(k1, (oc, ic, k, k), jnp.float32),
            b=0.05 * jax.random.normal(k2, (oc,), jnp.float32),
            gamma=1.0 + 0.1 * jax.random.normal(k3, (oc,), jnp.float32),
            beta=0.1 * jax.random.normal(k4, (oc,), jnp.float32),
            mean=0.1 * jax.random.normal(k5, (oc,), jnp.float32),
            var=0.5 + jax.random.uniform(k6, (oc,), jnp.float32),
        )
        fc = (fc - (k - 1) - 1) // s + 1
    fc_in = outs[-1] * int(fc[0]) * int(fc[1])
    key, k1, k2, k3, k4 = jax.random.split(key, 5)
    params["fc1"] = dict(
        w=0.02 * jax.random.normal(k1, (fc_in, 512), jnp.float32),
        b=0.02 * jax.random.normal(k2, (512,), jnp.float32),
    )
    params["fc2"] = dict(
        w=0.02 * jax.random.normal(k3, (512, action_size), jnp.float32),
        b=0.02 * jax.random.normal(k4, (action_size,), jnp.float32),
    )
    return params


# ----------------------------------------------------------------------------
# Pure-JAX reference (for correctness check)
# ----------------------------------------------------------------------------
def reference_forward(params, state_nchw, eps=1e-5):
    x = state_nchw
    for l in (1, 2, 3):
        p = params[f"conv{l}"]
        x = jax.lax.conv_general_dilated(
            x, p["w"], (2, 2), "VALID",
            dimension_numbers=("NCHW", "OIHW", "NCHW"))
        x = x + p["b"][None, :, None, None]
        s = p["gamma"] / jnp.sqrt(p["var"] + eps)
        t = p["beta"] - p["mean"] * s
        x = x * s[None, :, None, None] + t[None, :, None, None]
        x = jnp.maximum(x, 0.0)
    x = x.reshape(x.shape[0], -1)
    x = jnp.maximum(x @ params["fc1"]["w"] + params["fc1"]["b"], 0.0)
    x = x @ params["fc2"]["w"] + params["fc2"]["b"]
    return x


if __name__ == "__main__":
    batch, chans, width, height = 2, 4, 40, 40   # 40 -> 18 -> 7 -> 2 spatial; fc_in = 512
    action_size = 4

    key = jax.random.PRNGKey(0)
    key, pkey, xkey = jax.random.split(key, 3)
    params = init_params(pkey, chans, width, height, action_size)
    state = jax.random.normal(xkey, (batch, chans, width, height), jnp.float32)

    prep = prepare_qcn_params(params, (chans, width, height))   # one-time weight prep
    q_values = jax.block_until_ready(
        qcn_apply(prep, state, action_size=action_size))
    assert q_values.shape == (batch, action_size), q_values.shape

    ref = jax.block_until_ready(reference_forward(params, state))
    np.testing.assert_allclose(np.asarray(q_values), np.asarray(ref),
                               rtol=1e-4, atol=1e-4)

    print("KERNEL_OK")
</pallas_src>

<mosaic_0001>
module attributes {stable_mosaic.version = 11 : i64} {
  func.func @kernel(%arg0: i32, %arg1: memref<1x18x24x128xf32, #tpu.memory_space<vmem>>, %arg2: memref<128x128xf32, #tpu.memory_space<vmem>>, %arg3: memref<1x128xf32, #tpu.memory_space<vmem>>, %arg4: memref<5x640x128xf32, #tpu.memory_space<vmem>>, %arg5: memref<1x128xf32, #tpu.memory_space<vmem>>, %arg6: memref<5x640x128xf32, #tpu.memory_space<vmem>>, %arg7: memref<1x128xf32, #tpu.memory_space<vmem>>, %arg8: memref<512x512xf32, #tpu.memory_space<vmem>>, %arg9: memref<1x512xf32, #tpu.memory_space<vmem>>, %arg10: memref<512x128xf32, #tpu.memory_space<vmem>>, %arg11: memref<1x128xf32, #tpu.memory_space<vmem>>, %arg12: memref<1x1x128xf32, #tpu.memory_space<vmem>>, %arg13: memref<1x18x24x128xf32, #tpu.memory_space<vmem>>, %arg14: memref<1x7x24x128xf32, #tpu.memory_space<vmem>>) attributes {dimension_semantics = [#tpu.dimension_semantics<parallel>], iteration_bounds = array<i64: 2>, scalar_prefetch = 0 : i64, scratch_operands = 2 : i64, tpu.core_type = #tpu.core_type<tc>, window_params = [{transform_indices = @transform_0, window_bounds = array<i64: 1, 18, 24, 128>}, {pipeline_mode = #tpu.pipeline_mode<synchronous>, transform_indices = @transform_1, window_bounds = array<i64: 128, 128>}, {pipeline_mode = #tpu.pipeline_mode<synchronous>, transform_indices = @transform_2, window_bounds = array<i64: 1, 128>}, {pipeline_mode = #tpu.pipeline_mode<synchronous>, transform_indices = @transform_3, window_bounds = array<i64: 5, 640, 128>}, {pipeline_mode = #tpu.pipeline_mode<synchronous>, transform_indices = @transform_4, window_bounds = array<i64: 1, 128>}, {pipeline_mode = #tpu.pipeline_mode<synchronous>, transform_indices = @transform_5, window_bounds = array<i64: 5, 640, 128>}, {pipeline_mode = #tpu.pipeline_mode<synchronous>, transform_indices = @transform_6, window_bounds = array<i64: 1, 128>}, {pipeline_mode = #tpu.pipeline_mode<synchronous>, transform_indices = @transform_7, window_bounds = array<i64: 512, 512>}, {pipeline_mode = #tpu.pipeline_mode<synchronous>, transform_indices = @transform_8, window_bounds = array<i64: 1, 512>}, {pipeline_mode = #tpu.pipeline_mode<synchronous>, transform_indices = @transform_9, window_bounds = array<i64: 512, 128>}, {pipeline_mode = #tpu.pipeline_mode<synchronous>, transform_indices = @transform_10, window_bounds = array<i64: 1, 128>}, {transform_indices = @transform_11, window_bounds = array<i64: 1, 1, 128>}]} {
    %cst = arith.constant 0.000000e+00 : f32
    %0 = vector.broadcast %cst : f32 to vector<1x7x16x128xf32>
    %c0 = arith.constant 0 : index
    %c0_0 = arith.constant 0 : index
    %c8 = arith.constant 8 : index
    %c0_1 = arith.constant 0 : index
    %1 = vector.load %arg14[%c0, %c0_0, %c8, %c0_1] : memref<1x7x24x128xf32, #tpu.memory_space<vmem>>, vector<1x7x16x128xf32>
    tpu.vector_store %arg14[%c0, %c0_0, %c8, %c0_1], %0 {strides = array<i32>} : memref<1x7x24x128xf32, #tpu.memory_space<vmem>>, vector<1x7x16x128xf32>,
    %c0_2 = arith.constant 0 : index
    %c0_3 = arith.constant 0 : index
    %c0_4 = arith.constant 0 : index
    %c0_5 = arith.constant 0 : index
    %2 = vector.load %arg1[%c0_2, %c0_3, %c0_4, %c0_5] : memref<1x18x24x128xf32, #tpu.memory_space<vmem>>, vector<1x18x24x128xf32>
    %3 = vector.shape_cast %2 : vector<1x18x24x128xf32> to vector<432x128xf32>
    %c0_6 = arith.constant 0 : index
    %c0_7 = arith.constant 0 : index
    %4 = vector.load %arg2[%c0_6, %c0_7] : memref<128x128xf32, #tpu.memory_space<vmem>>, vector<128x128xf32>
    %cst_8 = arith.constant dense<0.000000e+00> : vector<432x128xf32>
    %5 = tpu.matmul %3, %4, %cst_8 {dimension_numbers = #tpu.dot_dimension_numbers<[1], [0], [0], [1], [0, 0, 1, 1], [], []>} : vector<432x128xf32>, vector<128x128xf32>, vector<432x128xf32> -> vector<432x128xf32>
    %c0_9 = arith.constant 0 : index
    %c0_10 = arith.constant 0 : index
    %6 = vector.load %arg3[%c0_9, %c0_10] : memref<1x128xf32, #tpu.memory_space<vmem>>, vector<1x128xf32>
    %7 = vector.broadcast %6 : vector<1x128xf32> to vector<432x128xf32>
    %8 = arith.addf %5, %7 : vector<432x128xf32>
    %cst_11 = arith.constant 0.000000e+00 : f32
    %9 = vector.broadcast %cst_11 : f32 to vector<432x128xf32>
    %10 = arith.maximumf %8, %9 : vector<432x128xf32>
    %11 = vector.shape_cast %10 : vector<432x128xf32> to vector<1x18x24x128xf32>
    %c0_12 = arith.constant 0 : index
    %c0_13 = arith.constant 0 : index
    %c0_14 = arith.constant 0 : index
    %c0_15 = arith.constant 0 : index
    %12 = vector.load %arg13[%c0_12, %c0_13, %c0_14, %c0_15] : memref<1x18x24x128xf32, #tpu.memory_space<vmem>>, vector<1x18x24x128xf32>
    tpu.vector_store %arg13[%c0_12, %c0_13, %c0_14, %c0_15], %11 {strides = array<i32>} : memref<1x18x24x128xf32, #tpu.memory_space<vmem>>, vector<1x18x24x128xf32>,
    %c0_16 = arith.constant 0 : index
    %c0_17 = arith.constant 0 : index
    %c0_18 = arith.constant 0 : index
    %c0_19 = arith.constant 0 : index
    %13 = tpu.strided_load %arg13[%c0_16, %c0_17, %c0_18, %c0_19] {strides = array<i32: 1, 2, 2, 1>} : memref<1x18x24x128xf32, #tpu.memory_space<vmem>>, vector<1x7x8x128xf32>
    %c0_20 = arith.constant 0 : index
    %c0_21 = arith.constant 0 : index
    %c1 = arith.constant 1 : index
    %c0_22 = arith.constant 0 : index
    %14 = tpu.strided_load %arg13[%c0_20, %c0_21, %c1, %c0_22] {strides = array<i32: 1, 2, 2, 1>} : memref<1x18x24x128xf32, #tpu.memory_space<vmem>>, vector<1x7x8x128xf32>
    %c0_23 = arith.constant 0 : index
    %c0_24 = arith.constant 0 : index
    %c2 = arith.constant 2 : index
    %c0_25 = arith.constant 0 : index
    %15 = tpu.strided_load %arg13[%c0_23, %c0_24, %c2, %c0_25] {strides = array<i32: 1, 2, 2, 1>} : memref<1x18x24x128xf32, #tpu.memory_space<vmem>>, vector<1x7x8x128xf32>
    %c0_26 = arith.constant 0 : index
    %c0_27 = arith.constant 0 : index
    %c3 = arith.constant 3 : index
    %c0_28 = arith.constant 0 : index
    %16 = tpu.strided_load %arg13[%c0_26, %c0_27, %c3, %c0_28] {strides = array<i32: 1, 2, 2, 1>} : memref<1x18x24x128xf32, #tpu.memory_space<vmem>>, vector<1x7x8x128xf32>
    %c0_29 = arith.constant 0 : index
    %c0_30 = arith.constant 0 : index
    %c4 = arith.constant 4 : index
    %c0_31 = arith.constant 0 : index
    %17 = tpu.strided_load %arg13[%c0_29, %c0_30, %c4, %c0_31] {strides = array<i32: 1, 2, 2, 1>} : memref<1x18x24x128xf32, #tpu.memory_space<vmem>>, vector<1x7x8x128xf32>
    %18 = tpu.concatenate %13, %14, %15, %16, %17 in 3 : vector<1x7x8x128xf32>, vector<1x7x8x128xf32>, vector<1x7x8x128xf32>, vector<1x7x8x128xf32>, vector<1x7x8x128xf32> -> vector<1x7x8x640xf32>
    %19 = vector.shape_cast %18 : vector<1x7x8x640xf32> to vector<56x640xf32>
    %c0_32 = arith.constant 0 : index
    %c0_33 = arith.constant 0 : index
    %c0_34 = arith.constant 0 : index
    %20 = vector.load %arg4[%c0_32, %c0_33, %c0_34] : memref<5x640x128xf32, #tpu.memory_space<vmem>>, vector<1x640x128xf32>
    %21 = vector.shape_cast %20 : vector<1x640x128xf32> to vector<640x128xf32>
    %cst_35 = arith.constant dense<0.000000e+00> : vector<56x128xf32>
    %22 = tpu.matmul %19, %21, %cst_35 {dimension_numbers = #tpu.dot_dimension_numbers<[1], [0], [0], [1], [0, 0, 1, 1], [], []>} : vector<56x640xf32>, vector<640x128xf32>, vector<56x128xf32> -> vector<56x128xf32>
    %c0_36 = arith.constant 0 : index
    %c1_37 = arith.constant 1 : index
    %c0_38 = arith.constant 0 : index
    %c0_39 = arith.constant 0 : index
    %23 = tpu.strided_load %arg13[%c0_36, %c1_37, %c0_38, %c0_39] {strides = array<i32: 1, 2, 2, 1>} : memref<1x18x24x128xf32, #tpu.memory_space<vmem>>, vector<1x7x8x128xf32>
    %c0_40 = arith.constant 0 : index
    %c1_41 = arith.constant 1 : index
    %c1_42 = arith.constant 1 : index
    %c0_43 = arith.constant 0 : index
    %24 = tpu.strided_load %arg13[%c0_40, %c1_41, %c1_42, %c0_43] {strides = array<i32: 1, 2, 2, 1>} : memref<1x18x24x128xf32, #tpu.memory_space<vmem>>, vector<1x7x8x128xf32>
    %c0_44 = arith.constant 0 : index
    %c1_45 = arith.constant 1 : index
    %c2_46 = arith.constant 2 : index
    %c0_47 = arith.constant 0 : index
    %25 = tpu.strided_load %arg13[%c0_44, %c1_45, %c2_46, %c0_47] {strides = array<i32: 1, 2, 2, 1>} : memref<1x18x24x128xf32, #tpu.memory_space<vmem>>, vector<1x7x8x128xf32>
    %c0_48 = arith.constant 0 : index
    %c1_49 = arith.constant 1 : index
    %c3_50 = arith.constant 3 : index
    %c0_51 = arith.constant 0 : index
    %26 = tpu.strided_load %arg13[%c0_48, %c1_49, %c3_50, %c0_51] {strides = array<i32: 1, 2, 2, 1>} : memref<1x18x24x128xf32, #tpu.memory_space<vmem>>, vector<1x7x8x128xf32>
    %c0_52 = arith.constant 0 : index
    %c1_53 = arith.constant 1 : index
    %c4_54 = arith.constant 4 : index
    %c0_55 = arith.constant 0 : index
    %27 = tpu.strided_load %arg13[%c0_52, %c1_53, %c4_54, %c0_55] {strides = array<i32: 1, 2, 2, 1>} : memref<1x18x24x128xf32, #tpu.memory_space<vmem>>, vector<1x7x8x128xf32>
    %28 = tpu.concatenate %23, %24, %25, %26, %27 in 3 : vector<1x7x8x128xf32>, vector<1x7x8x128xf32>, vector<1x7x8x128xf32>, vector<1x7x8x128xf32>, vector<1x7x8x128xf32> -> vector<1x7x8x640xf32>
    %29 = vector.shape_cast %28 : vector<1x7x8x640xf32> to vector<56x640xf32>
    %c1_56 = arith.constant 1 : index
    %c0_57 = arith.constant 0 : index
    %c0_58 = arith.constant 0 : index
    %30 = vector.load %arg4[%c1_56, %c0_57, %c0_58] : memref<5x640x128xf32, #tpu.memory_space<vmem>>, vector<1x640x128xf32>
    %31 = vector.shape_cast %30 : vector<1x640x128xf32> to vector<640x128xf32>
    %cst_59 = arith.constant dense<0.000000e+00> : vector<56x128xf32>
    %32 = tpu.matmul %29, %31, %cst_59 {dimension_numbers = #tpu.dot_dimension_numbers<[1], [0], [0], [1], [0, 0, 1, 1], [], []>} : vector<56x640xf32>, vector<640x128xf32>, vector<56x128xf32> -> vector<56x128xf32>
    %c0_60 = arith.constant 0 : index
    %c2_61 = arith.constant 2 : index
    %c0_62 = arith.constant 0 : index
    %c0_63 = arith.constant 0 : index
    %33 = tpu.strided_load %arg13[%c0_60, %c2_61, %c0_62, %c0_63] {strides = array<i32: 1, 2, 2, 1>} : memref<1x18x24x128xf32, #tpu.memory_space<vmem>>, vector<1x7x8x128xf32>
    %c0_64 = arith.constant 0 : index
    %c2_65 = arith.constant 2 : index
    %c1_66 = arith.constant 1 : index
    %c0_67 = arith.constant 0 : index
    %34 = tpu.strided_load %arg13[%c0_64, %c2_65, %c1_66, %c0_67] {strides = array<i32: 1, 2, 2, 1>} : memref<1x18x24x128xf32, #tpu.memory_space<vmem>>, vector<1x7x8x128xf32>
    %c0_68 = arith.constant 0 : index
    %c2_69 = arith.constant 2 : index
    %c2_70 = arith.constant 2 : index
    %c0_71 = arith.constant 0 : index
    %35 = tpu.strided_load %arg13[%c0_68, %c2_69, %c2_70, %c0_71] {strides = array<i32: 1, 2, 2, 1>} : memref<1x18x24x128xf32, #tpu.memory_space<vmem>>, vector<1x7x8x128xf32>
    %c0_72 = arith.constant 0 : index
    %c2_73 = arith.constant 2 : index
    %c3_74 = arith.constant 3 : index
    %c0_75 = arith.constant 0 : index
    %36 = tpu.strided_load %arg13[%c0_72, %c2_73, %c3_74, %c0_75] {strides = array<i32: 1, 2, 2, 1>} : memref<1x18x24x128xf32, #tpu.memory_space<vmem>>, vector<1x7x8x128xf32>
    %c0_76 = arith.constant 0 : index
    %c2_77 = arith.constant 2 : index
    %c4_78 = arith.constant 4 : index
    %c0_79 = arith.constant 0 : index
    %37 = tpu.strided_load %arg13[%c0_76, %c2_77, %c4_78, %c0_79] {strides = array<i32: 1, 2, 2, 1>} : memref<1x18x24x128xf32, #tpu.memory_space<vmem>>, vector<1x7x8x128xf32>
    %38 = tpu.concatenate %33, %34, %35, %36, %37 in 3 : vector<1x7x8x128xf32>, vector<1x7x8x128xf32>, vector<1x7x8x128xf32>, vector<1x7x8x128xf32>, vector<1x7x8x128xf32> -> vector<1x7x8x640xf32>
    %39 = vector.shape_cast %38 : vector<1x7x8x640xf32> to vector<56x640xf32>
    %c2_80 = arith.constant 2 : index
    %c0_81 = arith.constant 0 : index
    %c0_82 = arith.constant 0 : index
    %40 = vector.load %arg4[%c2_80, %c0_81, %c0_82] : memref<5x640x128xf32, #tpu.memory_space<vmem>>, vector<1x640x128xf32>
    %41 = vector.shape_cast %40 : vector<1x640x128xf32> to vector<640x128xf32>
    %cst_83 = arith.constant dense<0.000000e+00> : vector<56x128xf32>
    %42 = tpu.matmul %39, %41, %cst_83 {dimension_numbers = #tpu.dot_dimension_numbers<[1], [0], [0], [1], [0, 0, 1, 1], [], []>} : vector<56x640xf32>, vector<640x128xf32>, vector<56x128xf32> -> vector<56x128xf32>
    %c0_84 = arith.constant 0 : index
    %c3_85 = arith.constant 3 : index
    %c0_86 = arith.constant 0 : index
    %c0_87 = arith.constant 0 : index
    %43 = tpu.strided_load %arg13[%c0_84, %c3_85, %c0_86, %c0_87] {strides = array<i32: 1, 2, 2, 1>} : memref<1x18x24x128xf32, #tpu.memory_space<vmem>>, vector<1x7x8x128xf32>
    %c0_88 = arith.constant 0 : index
    %c3_89 = arith.constant 3 : index
    %c1_90 = arith.constant 1 : index
    %c0_91 = arith.constant 0 : index
    %44 = tpu.strided_load %arg13[%c0_88, %c3_89, %c1_90, %c0_91] {strides = array<i32: 1, 2, 2, 1>} : memref<1x18x24x128xf32, #tpu.memory_space<vmem>>, vector<1x7x8x128xf32>
    %c0_92 = arith.constant 0 : index
    %c3_93 = arith.constant 3 : index
    %c2_94 = arith.constant 2 : index
    %c0_95 = arith.constant 0 : index
    %45 = tpu.strided_load %arg13[%c0_92, %c3_93, %c2_94, %c0_95] {strides = array<i32: 1, 2, 2, 1>} : memref<1x18x24x128xf32, #tpu.memory_space<vmem>>, vector<1x7x8x128xf32>
    %c0_96 = arith.constant 0 : index
    %c3_97 = arith.constant 3 : index
    %c3_98 = arith.constant 3 : index
    %c0_99 = arith.constant 0 : index
    %46 = tpu.strided_load %arg13[%c0_96, %c3_97, %c3_98, %c0_99] {strides = array<i32: 1, 2, 2, 1>} : memref<1x18x24x128xf32, #tpu.memory_space<vmem>>, vector<1x7x8x128xf32>
    %c0_100 = arith.constant 0 : index
    %c3_101 = arith.constant 3 : index
    %c4_102 = arith.constant 4 : index
    %c0_103 = arith.constant 0 : index
    %47 = tpu.strided_load %arg13[%c0_100, %c3_101, %c4_102, %c0_103] {strides = array<i32: 1, 2, 2, 1>} : memref<1x18x24x128xf32, #tpu.memory_space<vmem>>, vector<1x7x8x128xf32>
    %48 = tpu.concatenate %43, %44, %45, %46, %47 in 3 : vector<1x7x8x128xf32>, vector<1x7x8x128xf32>, vector<1x7x8x128xf32>, vector<1x7x8x128xf32>, vector<1x7x8x128xf32> -> vector<1x7x8x640xf32>
    %49 = vector.shape_cast %48 : vector<1x7x8x640xf32> to vector<56x640xf32>
    %c3_104 = arith.constant 3 : index
    %c0_105 = arith.constant 0 : index
    %c0_106 = arith.constant 0 : index
    %50 = vector.load %arg4[%c3_104, %c0_105, %c0_106] : memref<5x640x128xf32, #tpu.memory_space<vmem>>, vector<1x640x128xf32>
    %51 = vector.shape_cast %50 : vector<1x640x128xf32> to vector<640x128xf32>
    %cst_107 = arith.constant dense<0.000000e+00> : vector<56x128xf32>
    %52 = tpu.matmul %49, %51, %cst_107 {dimension_numbers = #tpu.dot_dimension_numbers<[1], [0], [0], [1], [0, 0, 1, 1], [], []>} : vector<56x640xf32>, vector<640x128xf32>, vector<56x128xf32> -> vector<56x128xf32>
    %c0_108 = arith.constant 0 : index
    %c4_109 = arith.constant 4 : index
    %c0_110 = arith.constant 0 : index
    %c0_111 = arith.constant 0 : index
    %53 = tpu.strided_load %arg13[%c0_108, %c4_109, %c0_110, %c0_111] {strides = array<i32: 1, 2, 2, 1>} : memref<1x18x24x128xf32, #tpu.memory_space<vmem>>, vector<1x7x8x128xf32>
    %c0_112 = arith.constant 0 : index
    %c4_113 = arith.constant 4 : index
    %c1_114 = arith.constant 1 : index
    %c0_115 = arith.constant 0 : index
    %54 = tpu.strided_load %arg13[%c0_112, %c4_113, %c1_114, %c0_115] {strides = array<i32: 1, 2, 2, 1>} : memref<1x18x24x128xf32, #tpu.memory_space<vmem>>, vector<1x7x8x128xf32>
    %c0_116 = arith.constant 0 : index
    %c4_117 = arith.constant 4 : index
    %c2_118 = arith.constant 2 : index
    %c0_119 = arith.constant 0 : index
    %55 = tpu.strided_load %arg13[%c0_116, %c4_117, %c2_118, %c0_119] {strides = array<i32: 1, 2, 2, 1>} : memref<1x18x24x128xf32, #tpu.memory_space<vmem>>, vector<1x7x8x128xf32>
    %c0_120 = arith.constant 0 : index
    %c4_121 = arith.constant 4 : index
    %c3_122 = arith.constant 3 : index
    %c0_123 = arith.constant 0 : index
    %56 = tpu.strided_load %arg13[%c0_120, %c4_121, %c3_122, %c0_123] {strides = array<i32: 1, 2, 2, 1>} : memref<1x18x24x128xf32, #tpu.memory_space<vmem>>, vector<1x7x8x128xf32>
    %c0_124 = arith.constant 0 : index
    %c4_125 = arith.constant 4 : index
    %c4_126 = arith.constant 4 : index
    %c0_127 = arith.constant 0 : index
    %57 = tpu.strided_load %arg13[%c0_124, %c4_125, %c4_126, %c0_127] {strides = array<i32: 1, 2, 2, 1>} : memref<1x18x24x128xf32, #tpu.memory_space<vmem>>, vector<1x7x8x128xf32>
    %58 = tpu.concatenate %53, %54, %55, %56, %57 in 3 : vector<1x7x8x128xf32>, vector<1x7x8x128xf32>, vector<1x7x8x128xf32>, vector<1x7x8x128xf32>, vector<1x7x8x128xf32> -> vector<1x7x8x640xf32>
    %59 = vector.shape_cast %58 : vector<1x7x8x640xf32> to vector<56x640xf32>
    %c4_128 = arith.constant 4 : index
    %c0_129 = arith.constant 0 : index
    %c0_130 = arith.constant 0 : index
    %60 = vector.load %arg4[%c4_128, %c0_129, %c0_130] : memref<5x640x128xf32, #tpu.memory_space<vmem>>, vector<1x640x128xf32>
    %61 = vector.shape_cast %60 : vector<1x640x128xf32> to vector<640x128xf32>
    %cst_131 = arith.constant dense<0.000000e+00> : vector<56x128xf32>
    %62 = tpu.matmul %59, %61, %cst_131 {dimension_numbers = #tpu.dot_dimension_numbers<[1], [0], [0], [1], [0, 0, 1, 1], [], []>} : vector<56x640xf32>, vector<640x128xf32>, vector<56x128xf32> -> vector<56x128xf32>
    %63 = arith.addf %22, %32 : vector<56x128xf32>
    %64 = arith.addf %42, %52 : vector<56x128xf32>
    %65 = arith.addf %63, %64 : vector<56x128xf32>
    %66 = arith.addf %65, %62 : vector<56x128xf32>
    %c0_132 = arith.constant 0 : index
    %c0_133 = arith.constant 0 : index
    %67 = vector.load %arg5[%c0_132, %c0_133] : memref<1x128xf32, #tpu.memory_space<vmem>>, vector<1x128xf32>
    %68 = vector.broadcast %67 : vector<1x128xf32> to vector<56x128xf32>
    %69 = arith.addf %66, %68 : vector<56x128xf32>
    %cst_134 = arith.constant 0.000000e+00 : f32
    %70 = vector.broadcast %cst_134 : f32 to vector<56x128xf32>
    %71 = arith.maximumf %69, %70 : vector<56x128xf32>
    %72 = vector.shape_cast %71 : vector<56x128xf32> to vector<1x7x8x128xf32>
    %c0_135 = arith.constant 0 : index
    %c0_136 = arith.constant 0 : index
    %c0_137 = arith.constant 0 : index
    %c0_138 = arith.constant 0 : index
    %73 = vector.load %arg14[%c0_135, %c0_136, %c0_137, %c0_138] : memref<1x7x24x128xf32, #tpu.memory_space<vmem>>, vector<1x7x8x128xf32>
    tpu.vector_store %arg14[%c0_135, %c0_136, %c0_137, %c0_138], %72 {strides = array<i32>} : memref<1x7x24x128xf32, #tpu.memory_space<vmem>>, vector<1x7x8x128xf32>,
    %c0_139 = arith.constant 0 : index
    %c0_140 = arith.constant 0 : index
    %c0_141 = arith.constant 0 : index
    %c0_142 = arith.constant 0 : index
    %74 = tpu.strided_load %arg14[%c0_139, %c0_140, %c0_141, %c0_142] {strides = array<i32: 1, 2, 2, 1>} : memref<1x7x24x128xf32, #tpu.memory_space<vmem>>, vector<1x2x8x128xf32>
    %c0_143 = arith.constant 0 : index
    %c0_144 = arith.constant 0 : index
    %c1_145 = arith.constant 1 : index
    %c0_146 = arith.constant 0 : index
    %75 = tpu.strided_load %arg14[%c0_143, %c0_144, %c1_145, %c0_146] {strides = array<i32: 1, 2, 2, 1>} : memref<1x7x24x128xf32, #tpu.memory_space<vmem>>, vector<1x2x8x128xf32>
    %c0_147 = arith.constant 0 : index
    %c0_148 = arith.constant 0 : index
    %c2_149 = arith.constant 2 : index
    %c0_150 = arith.constant 0 : index
    %76 = tpu.strided_load %arg14[%c0_147, %c0_148, %c2_149, %c0_150] {strides = array<i32: 1, 2, 2, 1>} : memref<1x7x24x128xf32, #tpu.memory_space<vmem>>, vector<1x2x8x128xf32>
    %c0_151 = arith.constant 0 : index
    %c0_152 = arith.constant 0 : index
    %c3_153 = arith.constant 3 : index
    %c0_154 = arith.constant 0 : index
    %77 = tpu.strided_load %arg14[%c0_151, %c0_152, %c3_153, %c0_154] {strides = array<i32: 1, 2, 2, 1>} : memref<1x7x24x128xf32, #tpu.memory_space<vmem>>, vector<1x2x8x128xf32>
    %c0_155 = arith.constant 0 : index
    %c0_156 = arith.constant 0 : index
    %c4_157 = arith.constant 4 : index
    %c0_158 = arith.constant 0 : index
    %78 = tpu.strided_load %arg14[%c0_155, %c0_156, %c4_157, %c0_158] {strides = array<i32: 1, 2, 2, 1>} : memref<1x7x24x128xf32, #tpu.memory_space<vmem>>, vector<1x2x8x128xf32>
    %79 = tpu.concatenate %74, %75, %76, %77, %78 in 3 : vector<1x2x8x128xf32>, vector<1x2x8x128xf32>, vector<1x2x8x128xf32>, vector<1x2x8x128xf32>, vector<1x2x8x128xf32> -> vector<1x2x8x640xf32>
    %80 = vector.shape_cast %79 : vector<1x2x8x640xf32> to vector<16x640xf32>
    %c0_159 = arith.constant 0 : index
    %c0_160 = arith.constant 0 : index
    %c0_161 = arith.constant 0 : index
    %81 = vector.load %arg6[%c0_159, %c0_160, %c0_161] : memref<5x640x128xf32, #tpu.memory_space<vmem>>, vector<1x640x128xf32>
    %82 = vector.shape_cast %81 : vector<1x640x128xf32> to vector<640x128xf32>
    %cst_162 = arith.constant dense<0.000000e+00> : vector<16x128xf32>
    %83 = tpu.matmul %80, %82, %cst_162 {dimension_numbers = #tpu.dot_dimension_numbers<[1], [0], [0], [1], [0, 0, 1, 1], [], []>} : vector<16x640xf32>, vector<640x128xf32>, vector<16x128xf32> -> vector<16x128xf32>
    %c0_163 = arith.constant 0 : index
    %c1_164 = arith.constant 1 : index
    %c0_165 = arith.constant 0 : index
    %c0_166 = arith.constant 0 : index
    %84 = tpu.strided_load %arg14[%c0_163, %c1_164, %c0_165, %c0_166] {strides = array<i32: 1, 2, 2, 1>} : memref<1x7x24x128xf32, #tpu.memory_space<vmem>>, vector<1x2x8x128xf32>
    %c0_167 = arith.constant 0 : index
    %c1_168 = arith.constant 1 : index
    %c1_169 = arith.constant 1 : index
    %c0_170 = arith.constant 0 : index
    %85 = tpu.strided_load %arg14[%c0_167, %c1_168, %c1_169, %c0_170] {strides = array<i32: 1, 2, 2, 1>} : memref<1x7x24x128xf32, #tpu.memory_space<vmem>>, vector<1x2x8x128xf32>
    %c0_171 = arith.constant 0 : index
    %c1_172 = arith.constant 1 : index
    %c2_173 = arith.constant 2 : index
    %c0_174 = arith.constant 0 : index
    %86 = tpu.strided_load %arg14[%c0_171, %c1_172, %c2_173, %c0_174] {strides = array<i32: 1, 2, 2, 1>} : memref<1x7x24x128xf32, #tpu.memory_space<vmem>>, vector<1x2x8x128xf32>
    %c0_175 = arith.constant 0 : index
    %c1_176 = arith.constant 1 : index
    %c3_177 = arith.constant 3 : index
    %c0_178 = arith.constant 0 : index
    %87 = tpu.strided_load %arg14[%c0_175, %c1_176, %c3_177, %c0_178] {strides = array<i32: 1, 2, 2, 1>} : memref<1x7x24x128xf32, #tpu.memory_space<vmem>>, vector<1x2x8x128xf32>
    %c0_179 = arith.constant 0 : index
    %c1_180 = arith.constant 1 : index
    %c4_181 = arith.constant 4 : index
    %c0_182 = arith.constant 0 : index
    %88 = tpu.strided_load %arg14[%c0_179, %c1_180, %c4_181, %c0_182] {strides = array<i32: 1, 2, 2, 1>} : memref<1x7x24x128xf32, #tpu.memory_space<vmem>>, vector<1x2x8x128xf32>
    %89 = tpu.concatenate %84, %85, %86, %87, %88 in 3 : vector<1x2x8x128xf32>, vector<1x2x8x128xf32>, vector<1x2x8x128xf32>, vector<1x2x8x128xf32>, vector<1x2x8x128xf32> -> vector<1x2x8x640xf32>
    %90 = vector.shape_cast %89 : vector<1x2x8x640xf32> to vector<16x640xf32>
    %c1_183 = arith.constant 1 : index
    %c0_184 = arith.constant 0 : index
    %c0_185 = arith.constant 0 : index
    %91 = vector.load %arg6[%c1_183, %c0_184, %c0_185] : memref<5x640x128xf32, #tpu.memory_space<vmem>>, vector<1x640x128xf32>
    %92 = vector.shape_cast %91 : vector<1x640x128xf32> to vector<640x128xf32>
    %cst_186 = arith.constant dense<0.000000e+00> : vector<16x128xf32>
    %93 = tpu.matmul %90, %92, %cst_186 {dimension_numbers = #tpu.dot_dimension_numbers<[1], [0], [0], [1], [0, 0, 1, 1], [], []>} : vector<16x640xf32>, vector<640x128xf32>, vector<16x128xf32> -> vector<16x128xf32>
    %c0_187 = arith.constant 0 : index
    %c2_188 = arith.constant 2 : index
    %c0_189 = arith.constant 0 : index
    %c0_190 = arith.constant 0 : index
    %94 = tpu.strided_load %arg14[%c0_187, %c2_188, %c0_189, %c0_190] {strides = array<i32: 1, 2, 2, 1>} : memref<1x7x24x128xf32, #tpu.memory_space<vmem>>, vector<1x2x8x128xf32>
    %c0_191 = arith.constant 0 : index
    %c2_192 = arith.constant 2 : index
    %c1_193 = arith.constant 1 : index
    %c0_194 = arith.constant 0 : index
    %95 = tpu.strided_load %arg14[%c0_191, %c2_192, %c1_193, %c0_194] {strides = array<i32: 1, 2, 2, 1>} : memref<1x7x24x128xf32, #tpu.memory_space<vmem>>, vector<1x2x8x128xf32>
    %c0_195 = arith.constant 0 : index
    %c2_196 = arith.constant 2 : index
    %c2_197 = arith.constant 2 : index
    %c0_198 = arith.constant 0 : index
    %96 = tpu.strided_load %arg14[%c0_195, %c2_196, %c2_197, %c0_198] {strides = array<i32: 1, 2, 2, 1>} : memref<1x7x24x128xf32, #tpu.memory_space<vmem>>, vector<1x2x8x128xf32>
    %c0_199 = arith.constant 0 : index
    %c2_200 = arith.constant 2 : index
    %c3_201 = arith.constant 3 : index
    %c0_202 = arith.constant 0 : index
    %97 = tpu.strided_load %arg14[%c0_199, %c2_200, %c3_201, %c0_202] {strides = array<i32: 1, 2, 2, 1>} : memref<1x7x24x128xf32, #tpu.memory_space<vmem>>, vector<1x2x8x128xf32>
    %c0_203 = arith.constant 0 : index
    %c2_204 = arith.constant 2 : index
    %c4_205 = arith.constant 4 : index
    %c0_206 = arith.constant 0 : index
    %98 = tpu.strided_load %arg14[%c0_203, %c2_204, %c4_205, %c0_206] {strides = array<i32: 1, 2, 2, 1>} : memref<1x7x24x128xf32, #tpu.memory_space<vmem>>, vector<1x2x8x128xf32>
    %99 = tpu.concatenate %94, %95, %96, %97, %98 in 3 : vector<1x2x8x128xf32>, vector<1x2x8x128xf32>, vector<1x2x8x128xf32>, vector<1x2x8x128xf32>, vector<1x2x8x128xf32> -> vector<1x2x8x640xf32>
    %100 = vector.shape_cast %99 : vector<1x2x8x640xf32> to vector<16x640xf32>
    %c2_207 = arith.constant 2 : index
    %c0_208 = arith.constant 0 : index
    %c0_209 = arith.constant 0 : index
    %101 = vector.load %arg6[%c2_207, %c0_208, %c0_209] : memref<5x640x128xf32, #tpu.memory_space<vmem>>, vector<1x640x128xf32>
    %102 = vector.shape_cast %101 : vector<1x640x128xf32> to vector<640x128xf32>
    %cst_210 = arith.constant dense<0.000000e+00> : vector<16x128xf32>
    %103 = tpu.matmul %100, %102, %cst_210 {dimension_numbers = #tpu.dot_dimension_numbers<[1], [0], [0], [1], [0, 0, 1, 1], [], []>} : vector<16x640xf32>, vector<640x128xf32>, vector<16x128xf32> -> vector<16x128xf32>
    %c0_211 = arith.constant 0 : index
    %c3_212 = arith.constant 3 : index
    %c0_213 = arith.constant 0 : index
    %c0_214 = arith.constant 0 : index
    %104 = tpu.strided_load %arg14[%c0_211, %c3_212, %c0_213, %c0_214] {strides = array<i32: 1, 2, 2, 1>} : memref<1x7x24x128xf32, #tpu.memory_space<vmem>>, vector<1x2x8x128xf32>
    %c0_215 = arith.constant 0 : index
    %c3_216 = arith.constant 3 : index
    %c1_217 = arith.constant 1 : index
    %c0_218 = arith.constant 0 : index
    %105 = tpu.strided_load %arg14[%c0_215, %c3_216, %c1_217, %c0_218] {strides = array<i32: 1, 2, 2, 1>} : memref<1x7x24x128xf32, #tpu.memory_space<vmem>>, vector<1x2x8x128xf32>
    %c0_219 = arith.constant 0 : index
    %c3_220 = arith.constant 3 : index
    %c2_221 = arith.constant 2 : index
    %c0_222 = arith.constant 0 : index
    %106 = tpu.strided_load %arg14[%c0_219, %c3_220, %c2_221, %c0_222] {strides = array<i32: 1, 2, 2, 1>} : memref<1x7x24x128xf32, #tpu.memory_space<vmem>>, vector<1x2x8x128xf32>
    %c0_223 = arith.constant 0 : index
    %c3_224 = arith.constant 3 : index
    %c3_225 = arith.constant 3 : index
    %c0_226 = arith.constant 0 : index
    %107 = tpu.strided_load %arg14[%c0_223, %c3_224, %c3_225, %c0_226] {strides = array<i32: 1, 2, 2, 1>} : memref<1x7x24x128xf32, #tpu.memory_space<vmem>>, vector<1x2x8x128xf32>
    %c0_227 = arith.constant 0 : index
    %c3_228 = arith.constant 3 : index
    %c4_229 = arith.constant 4 : index
    %c0_230 = arith.constant 0 : index
    %108 = tpu.strided_load %arg14[%c0_227, %c3_228, %c4_229, %c0_230] {strides = array<i32: 1, 2, 2, 1>} : memref<1x7x24x128xf32, #tpu.memory_space<vmem>>, vector<1x2x8x128xf32>
    %109 = tpu.concatenate %104, %105, %106, %107, %108 in 3 : vector<1x2x8x128xf32>, vector<1x2x8x128xf32>, vector<1x2x8x128xf32>, vector<1x2x8x128xf32>, vector<1x2x8x128xf32> -> vector<1x2x8x640xf32>
    %110 = vector.shape_cast %109 : vector<1x2x8x640xf32> to vector<16x640xf32>
    %c3_231 = arith.constant 3 : index
    %c0_232 = arith.constant 0 : index
    %c0_233 = arith.constant 0 : index
    %111 = vector.load %arg6[%c3_231, %c0_232, %c0_233] : memref<5x640x128xf32, #tpu.memory_space<vmem>>, vector<1x640x128xf32>
    %112 = vector.shape_cast %111 : vector<1x640x128xf32> to vector<640x128xf32>
    %cst_234 = arith.constant dense<0.000000e+00> : vector<16x128xf32>
    %113 = tpu.matmul %110, %112, %cst_234 {dimension_numbers = #tpu.dot_dimension_numbers<[1], [0], [0], [1], [0, 0, 1, 1], [], []>} : vector<16x640xf32>, vector<640x128xf32>, vector<16x128xf32> -> vector<16x128xf32>
    %c0_235 = arith.constant 0 : index
    %c4_236 = arith.constant 4 : index
    %c0_237 = arith.constant 0 : index
    %c0_238 = arith.constant 0 : index
    %114 = tpu.strided_load %arg14[%c0_235, %c4_236, %c0_237, %c0_238] {strides = array<i32: 1, 2, 2, 1>} : memref<1x7x24x128xf32, #tpu.memory_space<vmem>>, vector<1x2x8x128xf32>
    %c0_239 = arith.constant 0 : index
    %c4_240 = arith.constant 4 : index
    %c1_241 = arith.constant 1 : index
    %c0_242 = arith.constant 0 : index
    %115 = tpu.strided_load %arg14[%c0_239, %c4_240, %c1_241, %c0_242] {strides = array<i32: 1, 2, 2, 1>} : memref<1x7x24x128xf32, #tpu.memory_space<vmem>>, vector<1x2x8x128xf32>
    %c0_243 = arith.constant 0 : index
    %c4_244 = arith.constant 4 : index
    %c2_245 = arith.constant 2 : index
    %c0_246 = arith.constant 0 : index
    %116 = tpu.strided_load %arg14[%c0_243, %c4_244, %c2_245, %c0_246] {strides = array<i32: 1, 2, 2, 1>} : memref<1x7x24x128xf32, #tpu.memory_space<vmem>>, vector<1x2x8x128xf32>
    %c0_247 = arith.constant 0 : index
    %c4_248 = arith.constant 4 : index
    %c3_249 = arith.constant 3 : index
    %c0_250 = arith.constant 0 : index
    %117 = tpu.strided_load %arg14[%c0_247, %c4_248, %c3_249, %c0_250] {strides = array<i32: 1, 2, 2, 1>} : memref<1x7x24x128xf32, #tpu.memory_space<vmem>>, vector<1x2x8x128xf32>
    %c0_251 = arith.constant 0 : index
    %c4_252 = arith.constant 4 : index
    %c4_253 = arith.constant 4 : index
    %c0_254 = arith.constant 0 : index
    %118 = tpu.strided_load %arg14[%c0_251, %c4_252, %c4_253, %c0_254] {strides = array<i32: 1, 2, 2, 1>} : memref<1x7x24x128xf32, #tpu.memory_space<vmem>>, vector<1x2x8x128xf32>
    %119 = tpu.concatenate %114, %115, %116, %117, %118 in 3 : vector<1x2x8x128xf32>, vector<1x2x8x128xf32>, vector<1x2x8x128xf32>, vector<1x2x8x128xf32>, vector<1x2x8x128xf32> -> vector<1x2x8x640xf32>
    %120 = vector.shape_cast %119 : vector<1x2x8x640xf32> to vector<16x640xf32>
    %c4_255 = arith.constant 4 : index
    %c0_256 = arith.constant 0 : index
    %c0_257 = arith.constant 0 : index
    %121 = vector.load %arg6[%c4_255, %c0_256, %c0_257] : memref<5x640x128xf32, #tpu.memory_space<vmem>>, vector<1x640x128xf32>
    %122 = vector.shape_cast %121 : vector<1x640x128xf32> to vector<640x128xf32>
    %cst_258 = arith.constant dense<0.000000e+00> : vector<16x128xf32>
    %123 = tpu.matmul %120, %122, %cst_258 {dimension_numbers = #tpu.dot_dimension_numbers<[1], [0], [0], [1], [0, 0, 1, 1], [], []>} : vector<16x640xf32>, vector<640x128xf32>, vector<16x128xf32> -> vector<16x128xf32>
    %124 = arith.addf %83, %93 : vector<16x128xf32>
    %125 = arith.addf %103, %113 : vector<16x128xf32>
    %126 = arith.addf %124, %125 : vector<16x128xf32>
    %127 = arith.addf %126, %123 : vector<16x128xf32>
    %c0_259 = arith.constant 0 : index
    %c0_260 = arith.constant 0 : index
    %128 = vector.load %arg7[%c0_259, %c0_260] : memref<1x128xf32, #tpu.memory_space<vmem>>, vector<1x128xf32>
    %129 = vector.broadcast %128 : vector<1x128xf32> to vector<16x128xf32>
    %130 = arith.addf %127, %129 : vector<16x128xf32>
    %cst_261 = arith.constant 0.000000e+00 : f32
    %131 = vector.broadcast %cst_261 : f32 to vector<16x128xf32>
    %132 = arith.maximumf %130, %131 : vector<16x128xf32>
    %133 = vector.shape_cast %132 : vector<16x128xf32> to vector<1x2x8x128xf32>
    %134 = vector.extract_strided_slice %133 {offsets = [0, 0, 0, 0], sizes = [1, 1, 1, 128], strides = [1, 1, 1, 1]} : vector<1x2x8x128xf32> to vector<1x1x1x128xf32>
    %135 = vector.shape_cast %134 : vector<1x1x1x128xf32> to vector<1x128xf32>
    %136 = vector.extract_strided_slice %133 {offsets = [0, 0, 1, 0], sizes = [1, 1, 1, 128], strides = [1, 1, 1, 1]} : vector<1x2x8x128xf32> to vector<1x1x1x128xf32>
    %137 = vector.shape_cast %136 : vector<1x1x1x128xf32> to vector<1x128xf32>
    %138 = vector.extract_strided_slice %133 {offsets = [0, 1, 0, 0], sizes = [1, 1, 1, 128], strides = [1, 1, 1, 1]} : vector<1x2x8x128xf32> to vector<1x1x1x128xf32>
    %139 = vector.shape_cast %138 : vector<1x1x1x128xf32> to vector<1x128xf32>
    %140 = vector.extract_strided_slice %133 {offsets = [0, 1, 1, 0], sizes = [1, 1, 1, 128], strides = [1, 1, 1, 1]} : vector<1x2x8x128xf32> to vector<1x1x1x128xf32>
    %141 = vector.shape_cast %140 : vector<1x1x1x128xf32> to vector<1x128xf32>
    %142 = tpu.concatenate %135, %137, %139, %141 in 1 : vector<1x128xf32>, vector<1x128xf32>, vector<1x128xf32>, vector<1x128xf32> -> vector<1x512xf32>
    %c0_262 = arith.constant 0 : index
    %c0_263 = arith.constant 0 : index
    %143 = vector.load %arg8[%c0_262, %c0_263] : memref<512x512xf32, #tpu.memory_space<vmem>>, vector<512x512xf32>
    %cst_264 = arith.constant dense<0.000000e+00> : vector<1x512xf32>
    %144 = tpu.matmul %142, %143, %cst_264 {dimension_numbers = #tpu.dot_dimension_numbers<[1], [0], [0], [1], [0, 0, 1, 1], [], []>} : vector<1x512xf32>, vector<512x512xf32>, vector<1x512xf32> -> vector<1x512xf32>
    %c0_265 = arith.constant 0 : index
    %c0_266 = arith.constant 0 : index
    %145 = vector.load %arg9[%c0_265, %c0_266] : memref<1x512xf32, #tpu.memory_space<vmem>>, vector<1x512xf32>
    %146 = arith.addf %144, %145 : vector<1x512xf32>
    %cst_267 = arith.constant 0.000000e+00 : f32
    %147 = vector.broadcast %cst_267 : f32 to vector<1x512xf32>
    %148 = arith.maximumf %146, %147 : vector<1x512xf32>
    %c0_268 = arith.constant 0 : index
    %c0_269 = arith.constant 0 : index
    %149 = vector.load %arg10[%c0_268, %c0_269] : memref<512x128xf32, #tpu.memory_space<vmem>>, vector<512x128xf32>
    %cst_270 = arith.constant dense<0.000000e+00> : vector<1x128xf32>
    %150 = tpu.matmul %148, %149, %cst_270 {dimension_numbers = #tpu.dot_dimension_numbers<[1], [0], [0], [1], [0, 0, 1, 1], [], []>} : vector<1x512xf32>, vector<512x128xf32>, vector<1x128xf32> -> vector<1x128xf32>
    %c0_271 = arith.constant 0 : index
    %c0_272 = arith.constant 0 : index
    %151 = vector.load %arg11[%c0_271, %c0_272] : memref<1x128xf32, #tpu.memory_space<vmem>>, vector<1x128xf32>
    %152 = arith.addf %150, %151 : vector<1x128xf32>
    %153 = vector.shape_cast %152 : vector<1x128xf32> to vector<1x1x128xf32>
    %c0_273 = arith.constant 0 : index
    %c0_274 = arith.constant 0 : index
    %c0_275 = arith.constant 0 : index
    %154 = vector.load %arg12[%c0_273, %c0_274, %c0_275] : memref<1x1x128xf32, #tpu.memory_space<vmem>>, vector<1x1x128xf32>
    tpu.vector_store %arg12[%c0_273, %c0_274, %c0_275], %153 {strides = array<i32>} : memref<1x1x128xf32, #tpu.memory_space<vmem>>, vector<1x1x128xf32>,
    return
  }
  func.func @transform_0(%arg0: i32) -> (i32, i32, i32, i32) {
    %c0_i32 = arith.constant 0 : i32
    %c0_i32_0 = arith.constant 0 : i32
    %c0_i32_1 = arith.constant 0 : i32
    %c0_i32_2 = arith.constant 0 : i32
    return %arg0, %c0_i32, %c0_i32_0, %c0_i32_1 : i32, i32, i32, i32
  }
  func.func @transform_1(%arg0: i32) -> (i32, i32) {
    %c0_i32 = arith.constant 0 : i32
    %c0_i32_0 = arith.constant 0 : i32
    %c0_i32_1 = arith.constant 0 : i32
    return %c0_i32, %c0_i32_0 : i32, i32
  }
  func.func @transform_2(%arg0: i32) -> (i32, i32) {
    %c0_i32 = arith.constant 0 : i32
    %c0_i32_0 = arith.constant 0 : i32
    %c0_i32_1 = arith.constant 0 : i32
    return %c0_i32, %c0_i32_0 : i32, i32
  }
  func.func @transform_3(%arg0: i32) -> (i32, i32, i32) {
    %c0_i32 = arith.constant 0 : i32
    %c0_i32_0 = arith.constant 0 : i32
    %c0_i32_1 = arith.constant 0 : i32
    %c0_i32_2 = arith.constant 0 : i32
    return %c0_i32, %c0_i32_0, %c0_i32_1 : i32, i32, i32
  }
  func.func @transform_4(%arg0: i32) -> (i32, i32) {
    %c0_i32 = arith.constant 0 : i32
    %c0_i32_0 = arith.constant 0 : i32
    %c0_i32_1 = arith.constant 0 : i32
    return %c0_i32, %c0_i32_0 : i32, i32
  }
  func.func @transform_5(%arg0: i32) -> (i32, i32, i32) {
    %c0_i32 = arith.constant 0 : i32
    %c0_i32_0 = arith.constant 0 : i32
    %c0_i32_1 = arith.constant 0 : i32
    %c0_i32_2 = arith.constant 0 : i32
    return %c0_i32, %c0_i32_0, %c0_i32_1 : i32, i32, i32
  }
  func.func @transform_6(%arg0: i32) -> (i32, i32) {
    %c0_i32 = arith.constant 0 : i32
    %c0_i32_0 = arith.constant 0 : i32
    %c0_i32_1 = arith.constant 0 : i32
    return %c0_i32, %c0_i32_0 : i32, i32
  }
  func.func @transform_7(%arg0: i32) -> (i32, i32) {
    %c0_i32 = arith.constant 0 : i32
    %c0_i32_0 = arith.constant 0 : i32
    %c0_i32_1 = arith.constant 0 : i32
    return %c0_i32, %c0_i32_0 : i32, i32
  }
  func.func @transform_8(%arg0: i32) -> (i32, i32) {
    %c0_i32 = arith.constant 0 : i32
    %c0_i32_0 = arith.constant 0 : i32
    %c0_i32_1 = arith.constant 0 : i32
    return %c0_i32, %c0_i32_0 : i32, i32
  }
  func.func @transform_9(%arg0: i32) -> (i32, i32) {
    %c0_i32 = arith.constant 0 : i32
    %c0_i32_0 = arith.constant 0 : i32
    %c0_i32_1 = arith.constant 0 : i32
    return %c0_i32, %c0_i32_0 : i32, i32
  }
  func.func @transform_10(%arg0: i32) -> (i32, i32) {
    %c0_i32 = arith.constant 0 : i32
    %c0_i32_0 = arith.constant 0 : i32
    %c0_i32_1 = arith.constant 0 : i32
    return %c0_i32, %c0_i32_0 : i32, i32
  }
  func.func @transform_11(%arg0: i32) -> (i32, i32, i32) {
    %c0_i32 = arith.constant 0 : i32
    %c0_i32_0 = arith.constant 0 : i32
    %c0_i32_1 = arith.constant 0 : i32
    return %arg0, %c0_i32, %c0_i32_0 : i32, i32, i32
  }
}

</mosaic_0001>

<bundles_post_ra>
// kernel: qcn_apply.1
= control target key start
LH: loop header
LB: loop body
LE: loop exit
PB: predicated region body
PF: predicated region fallthrough
CT: control target
= control target key end

     0   :  { %s13833_s0 = inlined_call_operand.vmem [shape: f32[2,18,24,128], index: 0, kind: input, shape index: {}]   ;;  %s13834_s1 = inlined_call_operand.vmem [shape: f32[128,128], index: 1, kind: input, shape index: {}]   ;;  %s13835_s2 = inlined_call_operand.vmem [shape: f32[1,128], index: 2, kind: input, shape index: {}]   ;;  %s13836_s3 = inlined_call_operand.vmem [shape: f32[5,640,128], index: 3, kind: input, shape index: {}]   ;;  %s13837_s4 = inlined_call_operand.vmem [shape: f32[1,128], index: 4, kind: input, shape index: {}]   ;;  %s13838_s5 = inlined_call_operand.vmem [shape: f32[5,640,128], index: 5, kind: input, shape index: {}]   ;;  %s13839_s6 = inlined_call_operand.vmem [shape: f32[1,128], index: 6, kind: input, shape index: {}]   ;;  %s13840_s7 = inlined_call_operand.vmem [shape: f32[512,512], index: 7, kind: input, shape index: {}]   ;;  %s13841_s8 = inlined_call_operand.vmem [shape: f32[1,512], index: 8, kind: input, shape index: {}]   ;;  %s13842_s9 = inlined_call_operand.vmem [shape: f32[512,128], index: 9, kind: input, shape index: {}]   ;;  %s13843_s10 = inlined_call_operand.vmem [shape: f32[1,128], index: 10, kind: input, shape index: {}]   ;;  %s13844_s11 = inlined_call_operand.hbm [shape: f32[2,1,128], index: 11, kind: output, shape index: {}]  }
   0x1   :  { %13845 = sst [smem:[#allocation8_spill]] %s13833_s0 }
   0x2   :  { %16 = vsyncpa [#allocation5], 0 }
   0x3   :  { %18 = vsyncpa [#allocation5 + $0x1], 0  ;;  %s9808_s17 = smov 0   ;;  %s9810_s18 = smov 0  }
   0x4   :  { %s9812_s19 = smov 0   ;;  %s9814_s20 = smov 0  }
   0x5 LB: > { %s9829_s21 = sadd.s32 4294967295, %s9742_s20   ;;  %s5874_s22 = sadd.s32 4294967294, %s9742_s20   ;;  %s9742_s20 = sphi %s9814_s20, %s13854_s20   ;;  %s9738_s19 = sphi %s9812_s19, %s13853_s19   ;;  %s9734_s18 = sphi %s9810_s18, %s13852_s18   ;;  %s9730_s17 = sphi %s9808_s17, %s13851_s17  }
   0x6   : > { %s9833_s23 = sadd.s32 1, %s9742_s20   ;;  %s267_s24 = sadd.s32 1, %s9738_s19 }
   0x7   : > { %s264_s25 = ssub.s32 %s9742_s20, %s9833_s23  ;;  %p277_p0 = scmp.ne.s32.totalorder %s9738_s19, %s9734_s18 }
   0x8   : > { %p265_p1 = scmp.eq.s32.totalorder %s264_s25, 0  ;;  %p278_p2 = scmp.eq.s32.totalorder %s9829_s21, 1 }
   0x9   : > { %p283_p3 = scmp.ne.s32.totalorder %s9734_s18, %s9730_s17  ;;  %p284_p4 = scmp.eq.s32.totalorder %s5874_s22, 1 }
   0xa   : > { %s9844_s26 = scalar_select %p265_p1, %s9738_s19, %s267_s24  }
   0xb   : > { %p9846_p5 = por %p278_p2, %p277_p0  ;;  %p9850_p6 = por %p284_p4, %p283_p3 }
   0xc   : > { %13846 = sst [smem:[#allocation7_spill]] %s9844_s26  ;;  %p5877_p7 = scmp.ge.s32.totalorder %s9742_s20, 1 }
   0xd   : > { %p340_p8 = scmp.lt.s32.totalorder %s9742_s20, 3 }
   0xf   : > { %p341_p9 = pnand %p5877_p7, %p340_p8 }
  0x10   : > { %v452_v0 = vld [vmem:[%s13834_s1] sm:$0xff] (!%p341_p9)  ;;  %v453_v1 = vld [vmem:[%s13834_s1 + $0x8] sm:$0xff] (!%p341_p9)  ;;  %v454_v2 = vld [vmem:[%s13834_s1 + $0x10] sm:$0xff] (!%p341_p9)  ;;  %p379_p10 = scmp.lt.s32.totalorder (!%p341_p9), %s9829_s21, 1  ;;  %s13849_s0 = sld [smem:[#allocation8_spill]] (!%p341_p9)  ;;  %vm9746_vm0 = vmmov (!%p341_p9), 0  }
  0x11   : > { %344 = sbr.rel (%p341_p9) target bundleno = 1789 (0x6fd), region = 64  ;;  %v8333_v3 = vpack.c.bf16 (!%p341_p9), %v453_v1, %v452_v0  ;;  %v455_v4 = vld [vmem:[%s13834_s1 + $0x18] sm:$0xff] (!%p341_p9)  ;;  %v456_v6 = vld [vmem:[%s13834_s1 + $0x20] sm:$0xff] (!%p341_p9)  ;;  %v457_v7 = vld [vmem:[%s13834_s1 + $0x28] sm:$0xff] (!%p341_p9)  ;;  %s377_s22 = sand.u32 (!%p341_p9), 1, %s9734_s18  }
  0x12   : > { %v8337_v5 = vpack.c.bf16 (!%p341_p9), %v455_v4, %v454_v2  ;;  %v8341_v8 = vpack.c.bf16 (!%p341_p9), %v457_v7, %v456_v6  ;;  %v458_v9 = vld [vmem:[%s13834_s1 + $0x30] sm:$0xff] (!%p341_p9)  ;;  %v459_v10 = vld [vmem:[%s13834_s1 + $0x38] sm:$0xff] (!%p341_p9)  ;;  %v460_v13 = vld [vmem:[%s13834_s1 + $0x40] sm:$0xff] (!%p341_p9)  ;;  %s6522_s29 = sshll.u32 (!%p341_p9), %s9829_s21, 4  ;;  %s5635_s15 = scalar_lea.sflag (!%p341_p9), [#allocation5], %s377_s22 }
  0x13   : > { %8334 = vmatprep.subr.bf16.mxu0 (!%p341_p9), %v8333_v3  ;;  %v8345_v12 = vpack.c.bf16 (!%p341_p9), %v459_v10, %v458_v9  ;;  %v461_v14 = vld [vmem:[%s13834_s1 + $0x48] sm:$0xff] (!%p341_p9)  ;;  %v462_v16 = vld [vmem:[%s13834_s1 + $0x50] sm:$0xff] (!%p341_p9)  ;;  %v463_v17 = vld [vmem:[%s13834_s1 + $0x58] sm:$0xff] (!%p341_p9)  ;;  %s13791_s14 = scalar_lea.hbm (!%p341_p9), %s13844_s11, %s6522_s29 }
  0x14   : > { %8336 = vmatpush3.bf16.msra.mxu0 (!%p341_p9), %v8333_v3  ;;  %v8349_v15 = vpack.c.bf16 (!%p341_p9), %v461_v14, %v460_v13  ;;  %v8353_v18 = vpack.c.bf16 (!%p341_p9), %v463_v17, %v462_v16  ;;  %v464_v19 = vld [vmem:[%s13834_s1 + $0x60] sm:$0xff] (!%p341_p9)  ;;  %v465_v20 = vld [vmem:[%s13834_s1 + $0x68] sm:$0xff] (!%p341_p9)  ;;  %v466_v22 = vld [vmem:[%s13834_s1 + $0x70] sm:$0xff] (!%p341_p9) }
  0x15   : > { %8338 = vmatprep.subr.bf16.mxu0 (!%p341_p9), %v8337_v5  ;;  %v8357_v21 = vpack.c.bf16 (!%p341_p9), %v465_v20, %v464_v19  ;;  %v467_v23 = vld [vmem:[%s13834_s1 + $0x78] sm:$0xff] (!%p341_p9)  ;;  %v5896_v24 = vld [vmem:[%s13836_s3 + $0x300] sm:$0xff] (!%p341_p9)  ;;  %v5897_v25 = vld [vmem:[%s13836_s3 + $0x308] sm:$0xff] (!%p341_p9) }
  0x16   : > { %v8361_v26 = vpack.c.bf16 (!%p341_p9), %v467_v23, %v466_v22  ;;  %v8365_v27 = vpack.c.bf16 (!%p341_p9), %v5897_v25, %v5896_v24  ;;  %v5880_v28 = vld [vmem:[%s13836_s3 + $0x280] sm:$0xff] (!%p341_p9)  ;;  %v5881_v29 = vld [vmem:[%s13836_s3 + $0x288] sm:$0xff] (!%p341_p9)  ;;  %v5898_v30 = vld [vmem:[%s13836_s3 + $0x310] sm:$0xff] (!%p341_p9) }
  0x17   : > { %v8367_v31 = vpack.c.bf16 (!%p341_p9), %v5881_v29, %v5880_v28  ;;  %v5899_v32 = vld [vmem:[%s13836_s3 + $0x318] sm:$0xff] (!%p341_p9)  ;;  %v5882_v33 = vld [vmem:[%s13836_s3 + $0x290] sm:$0xff] (!%p341_p9)  ;;  %v5900_v36 = vld [vmem:[%s13836_s3 + $0x320] sm:$0xff] (!%p341_p9) }
  0x18   : > { %s380_s12 = scalar_select %p379_p10, %s9829_s21, 1  ;;  %8340 = vmatpush3.bf16.msra.mxu0 %v8337_v5  ;;  %v5883_v34 = vld [vmem:[%s13836_s3 + $0x298] sm:$0xff]  ;;  %8366 = vmatprep.subr.bf16.mxu1 %v8365_v27  ;;  %v8369_v35 = vpack.c.bf16 %v5899_v32, %v5898_v30  ;;  %v5901_v37 = vld [vmem:[%s13836_s3 + $0x328] sm:$0xff]  ;;  %v5902_v24 = vld [vmem:[%s13836_s3 + $0x330] sm:$0xff] }
  0x19   : > { %8342 = vmatprep.subr.bf16.mxu0 %v8341_v8  ;;  %8368 = vmatpush3.bf16.msra.mxu1 %v8367_v31  ;;  %v8371_v38 = vpack.c.bf16 %v5883_v34, %v5882_v33  ;;  %v8373_v39 = vpack.c.bf16 %v5901_v37, %v5900_v36  ;;  %v5885_v19 = vld [vmem:[%s13836_s3 + $0x2a8] sm:$0xff]  ;;  %v5903_v25 = vld [vmem:[%s13836_s3 + $0x338] sm:$0xff]  ;;  %v6088_v27 = vld [vmem:[%s13836_s3 + $0x900] sm:$0xff]  ;;  %s9747_s21 = smov [#allocation4]  }
  0x1a   : > { %s9635_s13 = smul.u32 432, %s380_s12  ;;  %8370 = vmatprep.subr.bf16.mxu1 %v8369_v35  ;;  %v6089_v28 = vld [vmem:[%s13836_s3 + $0x908] sm:$0xff]  ;;  %v5886_v29 = vld [vmem:[%s13836_s3 + $0x2b0] sm:$0xff]  ;;  %v5887_v31 = vld [vmem:[%s13836_s3 + $0x2b8] sm:$0xff]  ;;  %s9684_s16 = sshll.u32 %s9747_s21, 4  ;;  %s9685_s16 = int_to_ptr.vmem [resolvable:$false] %s9684_s16 }
  0x1b   : > { %v8485_v30 = vpack.c.bf16 %v6089_v28, %v6088_v27  ;;  %v6072_v32 = vld [vmem:[%s13836_s3 + $0x880] sm:$0xff]  ;;  %v6073_v33 = vld [vmem:[%s13836_s3 + $0x888] sm:$0xff]  ;;  %v8379_v35 = vpack.c.bf16 %v5887_v31, %v5886_v29  ;;  %v6099_v27 = vld [vmem:[%s13836_s3 + $0x958] sm:$0xff]  ;;  %s9686_s24 = scalar_lea.vmem %s9685_s16, 32 }
  0x1c   : > { %s9885_s26 = scalar_lea.vmem %s13849_s0, %s9635_s13  ;;  %8344 = vmatpush3.bf16.msra.mxu0 %v8341_v8  ;;  %v8487_v36 = vpack.c.bf16 %v6073_v33, %v6072_v32  ;;  %v5904_v37 = vld [vmem:[%s13836_s3 + $0x340] sm:$0xff]  ;;  %v6082_v29 = vld [vmem:[%s13836_s3 + $0x8d0] sm:$0xff]  ;;  %v6101_v33 = vld [vmem:[%s13836_s3 + $0x968] sm:$0xff] }
  0x1d   : > { %v398_v11 = vld [vmem:[%s9885_s26] sm:$0xff]  ;;  %8346 = vmatprep.subr.bf16.mxu0 %v8345_v12  ;;  %v399_v40 = vld [vmem:[%s9885_s26 + $0x8] sm:$0xff]  ;;  %8372 = vmatpush3.bf16.msra.mxu1 %v8371_v38  ;;  %v400_v41 = vld [vmem:[%s9885_s26 + $0x10] sm:$0xff] }
  0x1e   : > { %7812 = vmatprep.mubr.f32.mxu0 %v398_v11  ;;  %8374 = vmatprep.subr.bf16.mxu1 %v8373_v39  ;;  %v401_v42 = vld [vmem:[%s9885_s26 + $0x18] sm:$0xff]  ;;  %v402_v43 = vld [vmem:[%s9885_s26 + $0x20] sm:$0xff]  ;;  %v403_v44 = vld [vmem:[%s9885_s26 + $0x28] sm:$0xff] }
  0x1f   : > { %v404_v45 = vld [vmem:[%s9885_s26 + $0x30] sm:$0xff]  ;;  %v405_v46 = vld [vmem:[%s9885_s26 + $0x38] sm:$0xff]  ;;  %v406_v47 = vld [vmem:[%s9885_s26 + $0x40] sm:$0xff] }
  0x20   : > { %8348 = vmatpush3.bf16.msra.mxu0 %v8345_v12  ;;  %v407_v48 = vld [vmem:[%s9885_s26 + $0x48] sm:$0xff]  ;;  %v408_v49 = vld [vmem:[%s9885_s26 + $0x50] sm:$0xff]  ;;  %v409_v50 = vld [vmem:[%s9885_s26 + $0x58] sm:$0xff] }
  0x21   : > { %8350 = vmatprep.subr.bf16.mxu0 %v8349_v15  ;;  %v410_v51 = vld [vmem:[%s9885_s26 + $0x60] sm:$0xff]  ;;  %v411_v52 = vld [vmem:[%s9885_s26 + $0x68] sm:$0xff]  ;;  %v412_v53 = vld [vmem:[%s9885_s26 + $0x70] sm:$0xff] }
  0x22   : > { %v413_v54 = vld [vmem:[%s9885_s26 + $0x78] sm:$0xff]  ;;  %v414_v55 = vld [vmem:[%s9885_s26 + $0x80] sm:$0xff]  ;;  %v415_v56 = vld [vmem:[%s9885_s26 + $0x88] sm:$0xff] }
  0x23   : > { %v416_v57 = vld [vmem:[%s9885_s26 + $0x90] sm:$0xff]  ;;  %v417_v58 = vld [vmem:[%s9885_s26 + $0x98] sm:$0xff]  ;;  %v418_v59 = vld [vmem:[%s9885_s26 + $0xa0] sm:$0xff] }
  0x24   : > { %8352 = vmatpush3.bf16.msra.mxu0 %v8349_v15  ;;  %v419_v60 = vld [vmem:[%s9885_s26 + $0xa8] sm:$0xff]  ;;  %v420_v61 = vld [vmem:[%s9885_s26 + $0xb0] sm:$0xff]  ;;  %v421_v62 = vld [vmem:[%s9885_s26 + $0xb8] sm:$0xff] }
  0x25   : > { %8354 = vmatprep.subr.bf16.mxu0 %v8353_v18  ;;  %v422_v63 = vld [vmem:[%s9885_s26 + $0xc0] sm:$0xff]  ;;  %v423_v0 = vld [vmem:[%s9885_s26 + $0xc8] sm:$0xff]  ;;  %v424_v1 = vld [vmem:[%s9885_s26 + $0xd0] sm:$0xff] }
  0x26   : > { %v425_v2 = vld [vmem:[%s9885_s26 + $0xd8] sm:$0xff]  ;;  %v426_v3 = vld [vmem:[%s9885_s26 + $0xe0] sm:$0xff]  ;;  %v427_v4 = vld [vmem:[%s9885_s26 + $0xe8] sm:$0xff] }
  0x27   : > { %v428_v5 = vld [vmem:[%s9885_s26 + $0xf0] sm:$0xff]  ;;  %v429_v6 = vld [vmem:[%s9885_s26 + $0xf8] sm:$0xff]  ;;  %v430_v7 = vld [vmem:[%s9885_s26 + $0x100] sm:$0xff] }
  0x28   : > { %8356 = vmatpush3.bf16.msra.mxu0 %v8353_v18  ;;  %v431_v8 = vld [vmem:[%s9885_s26 + $0x108] sm:$0xff]  ;;  %v432_v9 = vld [vmem:[%s9885_s26 + $0x110] sm:$0xff]  ;;  %v433_v10 = vld [vmem:[%s9885_s26 + $0x118] sm:$0xff] }
  0x29   : > { %8358 = vmatprep.subr.bf16.mxu0 %v8357_v21  ;;  %v434_v11 = vld [vmem:[%s9885_s26 + $0x120] sm:$0xff]  ;;  %v435_v12 = vld [vmem:[%s9885_s26 + $0x128] sm:$0xff]  ;;  %v436_v13 = vld [vmem:[%s9885_s26 + $0x130] sm:$0xff] }
  0x2a   : > { %v437_v14 = vld [vmem:[%s9885_s26 + $0x138] sm:$0xff]  ;;  %v438_v15 = vld [vmem:[%s9885_s26 + $0x140] sm:$0xff]  ;;  %v439_v16 = vld [vmem:[%s9885_s26 + $0x148] sm:$0xff] }
  0x2b   : > { %v440_v17 = vld [vmem:[%s9885_s26 + $0x150] sm:$0xff]  ;;  %v5884_v18 = vld [vmem:[%s13836_s3 + $0x2a0] sm:$0xff]  ;;  %v441_v20 = vld [vmem:[%s9885_s26 + $0x158] sm:$0xff] }
  0x2c   : > { %8360 = vmatpush3.bf16.msra.mxu0 %v8357_v21  ;;  %v8375_v21 = vpack.c.bf16 %v5885_v19, %v5884_v18  ;;  %v442_v22 = vld [vmem:[%s9885_s26 + $0x160] sm:$0xff]  ;;  %v443_v23 = vld [vmem:[%s9885_s26 + $0x168] sm:$0xff]  ;;  %v444_v34 = vld [vmem:[%s9885_s26 + $0x170] sm:$0xff] }
  0x2d   : > { %8362 = vmatprep.subr.bf16.mxu0 %v8361_v26  ;;  %v5905_v38 = vld [vmem:[%s13836_s3 + $0x348] sm:$0xff]  ;;  %v6090_v39 = vld [vmem:[%s13836_s3 + $0x910] sm:$0xff]  ;;  %v6100_v32 = vld [vmem:[%s13836_s3 + $0x960] sm:$0xff] }
  0x2e   : > { %8376 = vmatpush3.bf16.msra.mxu1 %v8375_v21  ;;  %v6097_v18 = vld [vmem:[%s13836_s3 + $0x948] sm:$0xff]  ;;  %v5894_v19 = vld [vmem:[%s13836_s3 + $0x2f0] sm:$0xff] }
  0x30   : > { %8364 = vmatpush3.bf16.msra.mxu0 %v8361_v26  ;;  %v8377_v26 = vpack.c.bf16 %v5903_v25, %v5902_v24  ;;  %v6081_v24 = vld [vmem:[%s13836_s3 + $0x8c8] sm:$0xff] }
  0x31   : > { %8486 = vmatprep.subr.bf16.mxu0 %v8485_v30  ;;  %v6083_v30 = vld [vmem:[%s13836_s3 + $0x8d8] sm:$0xff] }
  0x32   : > { %8378 = vmatprep.subr.bf16.mxu1 %v8377_v26  ;;  %v6098_v26 = vld [vmem:[%s13836_s3 + $0x950] sm:$0xff]  ;;  %v8507_v31 = vpack.c.bf16 %v6083_v30, %v6082_v29 }
  0x33   : > { %7813 = vmatmul.mubr.f32.vlgmr.msra.gmra.mrb[0].mxu0 %v399_v40  ;;  %8380 = vmatpush3.bf16.msra.mxu1 %v8379_v35  ;;  %v8381_v40 = vpack.c.bf16 %v5905_v38, %v5904_v37  ;;  %v8505_v28 = vpack.c.bf16 %v6099_v27, %v6098_v26  ;;  %v6084_v35 = vld [vmem:[%s13836_s3 + $0x8e0] sm:$0xff]  ;;  %v6102_v38 = vld [vmem:[%s13836_s3 + $0x970] sm:$0xff] }
  0x34   : > { %7815 = vmatprep.mubr.f32.mxu0 %v400_v41  ;;  %v6091_v41 = vld [vmem:[%s13836_s3 + $0x918] sm:$0xff]  ;;  %8488 = vmatpush3.bf16.msra.mxu0 %v8487_v36  ;;  %v6085_v36 = vld [vmem:[%s13836_s3 + $0x8e8] sm:$0xff]  ;;  %v5914_v26 = vld [vmem:[%s13836_s3 + $0x390] sm:$0xff] }
  0x35   : > { %8382 = vmatprep.subr.bf16.mxu1 %v8381_v40  ;;  %v8511_v37 = vpack.c.bf16 %v6085_v36, %v6084_v35  ;;  %v450_v40 = vld [vmem:[%s9885_s26 + $0x1a0] sm:$0xff]  ;;  %v5933_v35 = vld [vmem:[%s13836_s3 + $0x428] sm:$0xff] }
  0x37   : > { %7816 = vmatmul.mubr.f32.gmra.mrb[2].mxu0 %v401_v42  ;;  %v5888_v42 = vld [vmem:[%s13836_s3 + $0x2c0] sm:$0xff] }
  0x38   : > { %7818 = vmatprep.mubr.f32.mxu0 %v402_v43  ;;  %v5889_v43 = vld [vmem:[%s13836_s3 + $0x2c8] sm:$0xff] }
  0x3b   : > { %7819 = vmatmul.mubr.f32.gmra.mrb[4].mxu0 %v403_v44  ;;  %v445_v44 = vld [vmem:[%s9885_s26 + $0x178] sm:$0xff] }
  0x3c   : > { %7821 = vmatprep.mubr.f32.mxu0 %v404_v45  ;;  %v8489_v45 = vpack.c.bf16 %v6091_v41, %v6090_v39  ;;  %v6103_v39 = vld [vmem:[%s13836_s3 + $0x978] sm:$0xff] }
  0x3d   : > { %v8513_v41 = vpack.c.bf16 %v6103_v39, %v6102_v38 }
  0x3e   : > { %8490 = vmatprep.subr.bf16.mxu0 %v8489_v45 }
  0x3f   : > { %7822 = vmatmul.mubr.f32.gmra.mrb[6].mxu0 %v405_v46  ;;  %v8383_v46 = vpack.c.bf16 %v5889_v43, %v5888_v42  ;;  %v6086_v42 = vld [vmem:[%s13836_s3 + $0x8f0] sm:$0xff]  ;;  %v6087_v43 = vld [vmem:[%s13836_s3 + $0x8f8] sm:$0xff] }
  0x40   : > { %7824 = vmatprep.mubr.f32.mxu0 %v406_v47  ;;  %v6074_v47 = vld [vmem:[%s13836_s3 + $0x890] sm:$0xff]  ;;  %v8515_v45 = vpack.c.bf16 %v6087_v43, %v6086_v42  ;;  %v5916_v43 = vld [vmem:[%s13836_s3 + $0x3a0] sm:$0xff] }
  0x41   : > { %8384 = vmatpush3.bf16.msra.mxu1 %v8383_v46  ;;  %v5928_v46 = vld [vmem:[%s13836_s3 + $0x400] sm:$0xff] }
  0x43   : > { %7825 = vmatmul.mubr.f32.gmra.mrb[8].mxu0 %v407_v48  ;;  %v6075_v48 = vld [vmem:[%s13836_s3 + $0x898] sm:$0xff] }
  0x44   : > { %7827 = vmatprep.mubr.f32.mxu0 %v408_v49  ;;  %v446_v49 = vld [vmem:[%s9885_s26 + $0x180] sm:$0xff] }
  0x47   : > { %7828 = vmatmul.mubr.f32.gmra.mrb[10].mxu0 %v409_v50  ;;  %v8491_v50 = vpack.c.bf16 %v6075_v48, %v6074_v47  ;;  %v5929_v47 = vld [vmem:[%s13836_s3 + $0x408] sm:$0xff] }
  0x48   : > { %7830 = vmatprep.mubr.f32.mxu0 %v410_v51  ;;  %v5906_v51 = vld [vmem:[%s13836_s3 + $0x350] sm:$0xff]  ;;  %v8397_v48 = vpack.c.bf16 %v5929_v47, %v5928_v46  ;;  %v5935_v47 = vld [vmem:[%s13836_s3 + $0x438] sm:$0xff] }
  0x49   : > { %8492 = vmatpush3.bf16.msra.mxu0 %v8491_v50  ;;  %v6137_v50 = vld [vmem:[%s13836_s3 + $0xa88] sm:$0xff]  ;;  %v5934_v46 = vld [vmem:[%s13836_s3 + $0x430] sm:$0xff] }
  0x4b   : > { %7831 = vmatmul.mubr.f32.gmra.mrb[12].mxu0 %v411_v52  ;;  %v5907_v52 = vld [vmem:[%s13836_s3 + $0x358] sm:$0xff] }
  0x4c   : > { %7833 = vmatprep.mubr.f32.mxu0 %v412_v53  ;;  %v6092_v53 = vld [vmem:[%s13836_s3 + $0x920] sm:$0xff] }
  0x4f   : > { %7834 = vmatmul.mubr.f32.gmra.mrb[14].mxu0 %v413_v54  ;;  %v8385_v54 = vpack.c.bf16 %v5907_v52, %v5906_v51  ;;  %v10172_v52 = vld [vmem:[%s13835_s2] ss:$0 sm:$0xff] }
  0x50   : > { %7836 = vmatprep.mubr.f32.mxu0 %v414_v55  ;;  %v6093_v55 = vld [vmem:[%s13836_s3 + $0x928] sm:$0xff] }
  0x51   : > { %8386 = vmatprep.subr.bf16.mxu1 %v8385_v54 }
  0x53   : > { %7837 = vmatmul.mubr.f32.gmra.mrb[16].mxu0 %v415_v56  ;;  %v5890_v56 = vld [vmem:[%s13836_s3 + $0x2d0] sm:$0xff] }
  0x54   : > { %7839 = vmatprep.mubr.f32.mxu0 %v416_v57  ;;  %v5891_v57 = vld [vmem:[%s13836_s3 + $0x2d8] sm:$0xff] }
  0x57   : > { %7840 = vmatmul.mubr.f32.gmra.mrb[18].mxu0 %v417_v58  ;;  %v447_v58 = vld [vmem:[%s9885_s26 + $0x188] sm:$0xff] }
  0x58   : > { %7842 = vmatprep.mubr.f32.mxu0 %v418_v59  ;;  %v8493_v59 = vpack.c.bf16 %v6093_v55, %v6092_v53 }
  0x5a   : > { %8494 = vmatprep.subr.bf16.mxu0 %v8493_v59 }
  0x5b   : > { %7843 = vmatmul.mubr.f32.gmra.mrb[20].mxu0 %v419_v60  ;;  %v8387_v60 = vpack.c.bf16 %v5891_v57, %v5890_v56  ;;  %v9744_v56 = vmov 0.0  }
  0x5c   : > { %7845 = vmatprep.mubr.f32.mxu0 %v420_v61  ;;  %v6076_v61 = vld [vmem:[%s13836_s3 + $0x8a0] sm:$0xff]  ;;  %384 = vst [vmem:[#allocation3 + $0x8] sm:$0xff] %v9744_v56  ;;  %385 = vst [vmem:[#allocation3 + $0x10] sm:$0xff] %v9744_v56 }
  0x5d   : > { %8388 = vmatpush3.bf16.msra.mxu1 %v8387_v60  ;;  %386 = vst [vmem:[#allocation3 + $0x20] sm:$0xff] %v9744_v56  ;;  %387 = vst [vmem:[#allocation3 + $0x28] sm:$0xff] %v9744_v56 }
  0x5e   : > { %388 = vst [vmem:[#allocation3 + $0x38] sm:$0xff] %v9744_v56  ;;  %389 = vst [vmem:[#allocation3 + $0x40] sm:$0xff] %v9744_v56 }
  0x5f   : > { %7846 = vmatmul.mubr.f32.gmra.mrb[22].mxu0 %v421_v62  ;;  %v6077_v62 = vld [vmem:[%s13836_s3 + $0x8a8] sm:$0xff]  ;;  %390 = vst [vmem:[#allocation3 + $0x50] sm:$0xff] %v9744_v56  ;;  %391 = vst [vmem:[#allocation3 + $0x58] sm:$0xff] %v9744_v56 }
  0x60   : > { %7848 = vmatprep.mubr.f32.mxu0 %v422_v63  ;;  %v448_v63 = vld [vmem:[%s9885_s26 + $0x190] sm:$0xff]  ;;  %392 = vst [vmem:[#allocation3 + $0x68] sm:$0xff] %v9744_v56  ;;  %393 = vst [vmem:[#allocation3 + $0x70] sm:$0xff] %v9744_v56 }
  0x61   : > { %394 = vst [vmem:[#allocation3 + $0x80] sm:$0xff] %v9744_v56  ;;  %395 = vst [vmem:[#allocation3 + $0x88] sm:$0xff] %v9744_v56 }
  0x62   : > { %396 = vst [vmem:[#allocation3 + $0x98] sm:$0xff] %v9744_v56  ;;  %397 = vst [vmem:[#allocation3 + $0xa0] sm:$0xff] %v9744_v56 }
  0x63   : > { %7849 = vmatmul.mubr.f32.gmra.mrb[24].mxu0 %v423_v0  ;;  %v8495_v0 = vpack.c.bf16 %v6077_v62, %v6076_v61 }
  0x64   : > { %7851 = vmatprep.mubr.f32.mxu0 %v424_v1  ;;  %v5908_v1 = vld [vmem:[%s13836_s3 + $0x360] sm:$0xff] }
  0x65   : > { %8496 = vmatpush3.bf16.msra.mxu0 %v8495_v0 }
  0x67   : > { %7852 = vmatmul.mubr.f32.gmra.mrb[26].mxu0 %v425_v2  ;;  %v5909_v2 = vld [vmem:[%s13836_s3 + $0x368] sm:$0xff] }
  0x68   : > { %7854 = vmatprep.mubr.f32.mxu0 %v426_v3  ;;  %v6094_v3 = vld [vmem:[%s13836_s3 + $0x930] sm:$0xff] }
  0x6b   : > { %7855 = vmatmul.mubr.f32.gmra.mrb[28].mxu0 %v427_v4  ;;  %v8389_v4 = vpack.c.bf16 %v5909_v2, %v5908_v1 }
  0x6c   : > { %7857 = vmatprep.mubr.f32.mxu0 %v428_v5  ;;  %v6095_v5 = vld [vmem:[%s13836_s3 + $0x938] sm:$0xff] }
  0x6d   : > { %8390 = vmatprep.subr.bf16.mxu1 %v8389_v4 }
  0x6f   : > { %7858 = vmatmul.mubr.f32.gmra.mrb[30].mxu0 %v429_v6  ;;  %v5892_v6 = vld [vmem:[%s13836_s3 + $0x2e0] sm:$0xff] }
  0x70   : > { %7860 = vmatprep.mubr.f32.mxu0 %v430_v7  ;;  %v5893_v7 = vld [vmem:[%s13836_s3 + $0x2e8] sm:$0xff] }
  0x73   : > { %7861 = vmatmul.mubr.f32.gmra.mrb[32].mxu0 %v431_v8  ;;  %v449_v8 = vld [vmem:[%s9885_s26 + $0x198] sm:$0xff] }
  0x74   : > { %7863 = vmatprep.mubr.f32.mxu0 %v432_v9  ;;  %v8497_v9 = vpack.c.bf16 %v6095_v5, %v6094_v3 }
  0x76   : > { %8498 = vmatprep.subr.bf16.mxu0 %v8497_v9 }
  0x77   : > { %7864 = vmatmul.mubr.f32.gmra.mrb[34].mxu0 %v433_v10  ;;  %v8391_v10 = vpack.c.bf16 %v5893_v7, %v5892_v6 }
  0x78   : > { %7866 = vmatprep.mubr.f32.mxu0 %v434_v11  ;;  %v6078_v11 = vld [vmem:[%s13836_s3 + $0x8b0] sm:$0xff] }
  0x79   : > { %8392 = vmatpush3.bf16.msra.mxu1 %v8391_v10 }
  0x7b   : > { %7867 = vmatmul.mubr.f32.gmra.mrb[36].mxu0 %v435_v12  ;;  %v6079_v12 = vld [vmem:[%s13836_s3 + $0x8b8] sm:$0xff] }
  0x7c   : > { %7869 = vmatprep.mubr.f32.mxu0 %v436_v13  ;;  %v8499_v13 = vpack.c.bf16 %v6079_v12, %v6078_v11 }
  0x7e   : > { %8500 = vmatpush3.bf16.msra.mxu0 %v8499_v13 }
  0x7f   : > { %7870 = vmatmul.mubr.f32.gmra.mrb[38].mxu0 %v437_v14  ;;  %v5910_v14 = vld [vmem:[%s13836_s3 + $0x370] sm:$0xff] }
  0x80   : > { %7872 = vmatprep.mubr.f32.mxu0 %v438_v15  ;;  %v5911_v15 = vld [vmem:[%s13836_s3 + $0x378] sm:$0xff] }
  0x83   : > { %7873 = vmatmul.mubr.f32.gmra.mrb[40].mxu0 %v439_v16  ;;  %v6096_v16 = vld [vmem:[%s13836_s3 + $0x940] sm:$0xff] }
  0x84   : > { %7875 = vmatprep.mubr.f32.mxu0 %v440_v17  ;;  %v8393_v17 = vpack.c.bf16 %v5911_v15, %v5910_v14  ;;  %v8501_v21 = vpack.c.bf16 %v6097_v18, %v6096_v16  ;;  %v5913_v18 = vld [vmem:[%s13836_s3 + $0x388] sm:$0xff] }
  0x86   : > { %8394 = vmatprep.subr.bf16.mxu1 %v8393_v17  ;;  %8502 = vmatprep.subr.bf16.mxu0 %v8501_v21  ;;  %v5912_v17 = vld [vmem:[%s13836_s3 + $0x380] sm:$0xff]  ;;  %v5931_v21 = vld [vmem:[%s13836_s3 + $0x418] sm:$0xff] }
  0x87   : > { %7876 = vmatmul.mubr.f32.gmra.mrb[42].mxu0 %v441_v20  ;;  %v5895_v20 = vld [vmem:[%s13836_s3 + $0x2f8] sm:$0xff] }
  0x88   : > { %7878 = vmatprep.mubr.f32.mxu0 %v442_v22  ;;  %v8395_v22 = vpack.c.bf16 %v5895_v20, %v5894_v19  ;;  %v5930_v20 = vld [vmem:[%s13836_s3 + $0x410] sm:$0xff] }
  0x8a   : > { %8396 = vmatpush3.bf16.msra.mxu1 %v8395_v22 }
  0x8b   : > { %7879 = vmatmul.mubr.f32.gmra.mrb[44].mxu0 %v443_v23  ;;  %v6080_v23 = vld [vmem:[%s13836_s3 + $0x8c0] sm:$0xff]  ;;  %8398 = vmatprep.subr.bf16.mxu1 %v8397_v48 }
  0x8c   : > { %7881 = vmatprep.mubr.f32.mxu0 %v444_v34  ;;  %v8503_v25 = vpack.c.bf16 %v6081_v24, %v6080_v23  ;;  %v8509_v34 = vpack.c.bf16 %v6101_v33, %v6100_v32  ;;  %v5915_v32 = vld [vmem:[%s13836_s3 + $0x398] sm:$0xff] }
  0x8d   : > { %v8403_v39 = vpack.c.bf16 %v5915_v32, %v5914_v26 }
  0x8e   : > { %8504 = vmatpush3.bf16.msra.mxu0 %v8503_v25  ;;  %v8399_v25 = vpack.c.bf16 %v5913_v18, %v5912_v17  ;;  %v6140_v18 = vld [vmem:[%s13836_s3 + $0xaa0] sm:$0xff] }
  0x8f   : > { %7882 = vmatmul.mubr.f32.gmra.mrb[46].mxu0 %v445_v44  ;;  %8506 = vmatprep.subr.bf16.mxu0 %v8505_v28  ;;  %v451_v44 = vld [vmem:[%s9885_s26 + $0x1a8] sm:$0xff]  ;;  %s378_s26 = scalar_lea.vmem [#allocation4], %s377_s22 }
  0x90   : > { %7884 = vmatprep.mubr.f32.mxu0 %v446_v49  ;;  %v6136_v49 = vld [vmem:[%s13836_s3 + $0xa80] sm:$0xff]  ;;  %s5647_s30 = sshll.u32 %s378_s26, 4  ;;  %s13793_s30 = int_to_ptr.vmem [resolvable:$true] %s5647_s30 }
  0x91   : > { %v8541_v51 = vpack.c.bf16 %v6137_v50, %v6136_v49  ;;  %s9680_s13 = scalar_lea.vmem %s13793_s30, 16  ;;  %p9687_p0 = scmp.lt.s32.totalorder %s13793_s30, %s9685_s16 }
  0x92   : > { %8508 = vmatpush3.bf16.msra.mxu0 %v8507_v31  ;;  %v8401_v31 = vpack.c.bf16 %v5931_v21, %v5930_v20  ;;  %p9681_p11 = scmp.ne.s32.totalorder %s13793_s30, %s9680_s13  ;;  %p9688_p1 = scmp.lt.s32.totalorder %s9686_s24, %s9680_s13 }
  0x93   : > { %7885 = vmatmul.mubr.f32.gmra.mrb[48].mxu0 %v447_v58  ;;  %8510 = vmatprep.subr.bf16.mxu0 %v8509_v34  ;;  %v5932_v34 = vld [vmem:[%s13836_s3 + $0x420] sm:$0xff] }
  0x94   : > { %7887 = vmatprep.mubr.f32.mxu0 %v448_v63  ;;  %v8405_v42 = vpack.c.bf16 %v5933_v35, %v5932_v34  ;;  %v6124_v34 = vld [vmem:[%s13836_s3 + $0xa20] sm:$0xff]  ;;  %v6125_v35 = vld [vmem:[%s13836_s3 + $0xa28] sm:$0xff]  ;;  %p9682_p12 = pnand %p9681_p11, %p9846_p5  ;;  %p9689_p2 = por %p9688_p1, %p9687_p0 }
  0x96   : > { %8512 = vmatpush3.bf16.msra.mxu0 %v8511_v37  ;;  %p9683_p13 = pneg %p9682_p12 }
  0x97   : > { %7888 = vmatmul.mubr.f32.gmra.mrb[50].mxu0 %v449_v8  ;;  %8514 = vmatprep.subr.bf16.mxu0 %v8513_v41 }
  0x98   : > { %7890 = vmatprep.mubr.f32.mxu0 %v450_v40  ;;  %p9690_p3 = pnand %p9689_p2, %p9683_p13 }
  0x9a   : > { %8516 = vmatpush3.bf16.msra.mxu0 %v8515_v45 }
  0x9b   : > { %7891 = vmatmul.mubr.f32.gmra.mrb[52].mxu0 %v451_v44  ;;  %8542 = vmatprep.subr.bf16.mxu0 %v8541_v51  ;;  %v5917_v44 = vld [vmem:[%s13836_s3 + $0x3a8] sm:$0xff] }
  0x9c   : > { %v8407_v51 = vpack.c.bf16 %v5917_v44, %v5916_v43 }
 0x106   : > { %v7814_v53 = vpop.f32.mrb[0].mxu0 }
 0x107   : > { %v547_v54 = vadd.f32 %v7814_v53, %v10172_v52  ;;  %v541_v55 = vpop.f32.mrb[1].mxu0  ;;  %v5918_v53 = vld [vmem:[%s13836_s3 + $0x3b0] sm:$0xff] }
 0x108   : > { %v542_v57 = vadd.f32 %v10172_v52, %v541_v55 }
 0x109   : > { %v811_v58 = vmax.f32 %v547_v54, 0.0  ;;  %v5919_v54 = vld [vmem:[%s13836_s3 + $0x3b8] sm:$0xff] }
 0x10a   : > { %v810_v59 = vmax.f32 %v542_v57, 0.0  ;;  %v7817_v60 = vpop.f32.mrb[2].mxu0  ;;  %v8409_v57 = vpack.c.bf16 %v5935_v47, %v5934_v46  ;;  %v5924_v46 = vld [vmem:[%s13836_s3 + $0x3e0] sm:$0xff]  ;;  %v5925_v47 = vld [vmem:[%s13836_s3 + $0x3e8] sm:$0xff] }
 0x10b   : > { %865 = vst [vmem:[#allocation2 + $0x8] sm:$0xff] %v811_v58  ;;  %v557_v61 = vadd.f32 %v7817_v60, %v10172_v52  ;;  %v551_v62 = vpop.f32.mrb[3].mxu0  ;;  %v6120_v58 = vld [vmem:[%s13836_s3 + $0xa00] sm:$0xff] }
 0x10c   : > { %864 = vst [vmem:[#allocation2] sm:$0xff] %v810_v59  ;;  %v552_v63 = vadd.f32 %v10172_v52, %v551_v62  ;;  %v6121_v59 = vld [vmem:[%s13836_s3 + $0xa08] sm:$0xff]  ;;  %v5936_v60 = vld [vmem:[%s13836_s3 + $0x440] sm:$0xff] }
 0x10d   : > { %v813_v0 = vmax.f32 %v557_v61, 0.0  ;;  %v5937_v62 = vld [vmem:[%s13836_s3 + $0x448] sm:$0xff] }
 0x10e   : > { %v812_v1 = vmax.f32 %v552_v63, 0.0  ;;  %v7820_v2 = vpop.f32.mrb[4].mxu0  ;;  %v6138_v63 = vld [vmem:[%s13836_s3 + $0xa90] sm:$0xff] }
 0x10f   : > { %867 = vst [vmem:[#allocation2 + $0x18] sm:$0xff] %v813_v0  ;;  %v567_v3 = vadd.f32 %v7820_v2, %v10172_v52  ;;  %v561_v4 = vpop.f32.mrb[5].mxu0  ;;  %v6139_v0 = vld [vmem:[%s13836_s3 + $0xa98] sm:$0xff]  ;;  %v5920_v2 = vld [vmem:[%s13836_s3 + $0x3c0] sm:$0xff] }
 0x110   : > { %866 = vst [vmem:[#allocation2 + $0x10] sm:$0xff] %v812_v1  ;;  %v562_v5 = vadd.f32 %v10172_v52, %v561_v4  ;;  %v6122_v4 = vld [vmem:[%s13836_s3 + $0xa10] sm:$0xff]  ;;  %v8545_v17 = vpack.c.bf16 %v6139_v0, %v6138_v63  ;;  %v8423_v0 = vpack.c.bf16 %v5925_v47, %v5924_v46 }
 0x111   : > { %v815_v6 = vmax.f32 %v567_v3, 0.0  ;;  %v5921_v3 = vld [vmem:[%s13836_s3 + $0x3c8] sm:$0xff]  ;;  %v6134_v46 = vld [vmem:[%s13836_s3 + $0xa70] sm:$0xff] }
 0x112   : > { %v814_v7 = vmax.f32 %v562_v5, 0.0  ;;  %v7823_v8 = vpop.f32.mrb[6].mxu0  ;;  %v8415_v26 = vpack.c.bf16 %v5921_v3, %v5920_v2  ;;  %v5927_v2 = vld [vmem:[%s13836_s3 + $0x3f8] sm:$0xff]  ;;  %v6128_v3 = vld [vmem:[%s13836_s3 + $0xa40] sm:$0xff] }
 0x113   : > { %869 = vst [vmem:[#allocation2 + $0x28] sm:$0xff] %v815_v6  ;;  %v577_v9 = vadd.f32 %v7823_v8, %v10172_v52  ;;  %v571_v10 = vpop.f32.mrb[7].mxu0  ;;  %v8543_v8 = vpack.c.bf16 %v6121_v59, %v6120_v58  ;;  %v6144_v58 = vld [vmem:[%s13836_s3 + $0xac0] sm:$0xff]  ;;  %v6145_v59 = vld [vmem:[%s13836_s3 + $0xac8] sm:$0xff] }
 0x114   : > { %868 = vst [vmem:[#allocation2 + $0x20] sm:$0xff] %v814_v7  ;;  %v572_v11 = vadd.f32 %v10172_v52, %v571_v10  ;;  %v8411_v7 = vpack.c.bf16 %v5919_v54, %v5918_v53  ;;  %v5938_v10 = vld [vmem:[%s13836_s3 + $0x450] sm:$0xff]  ;;  %v6127_v54 = vld [vmem:[%s13836_s3 + $0xa38] sm:$0xff] }
 0x115   : > { %v817_v12 = vmax.f32 %v577_v9, 0.0  ;;  %v6123_v9 = vld [vmem:[%s13836_s3 + $0xa18] sm:$0xff]  ;;  %v6126_v53 = vld [vmem:[%s13836_s3 + $0xa30] sm:$0xff] }
 0x116   : > { %v816_v13 = vmax.f32 %v572_v11, 0.0  ;;  %v7826_v14 = vpop.f32.mrb[8].mxu0  ;;  %v5939_v11 = vld [vmem:[%s13836_s3 + $0x458] sm:$0xff] }
 0x117   : > { %871 = vst [vmem:[#allocation2 + $0x38] sm:$0xff] %v817_v12  ;;  %v587_v15 = vadd.f32 %v7826_v14, %v10172_v52  ;;  %v581_v16 = vpop.f32.mrb[9].mxu0  ;;  %v8417_v32 = vpack.c.bf16 %v5939_v11, %v5938_v10  ;;  %v8557_v10 = vpack.c.bf16 %v6145_v59, %v6144_v58  ;;  %v6146_v11 = vld [vmem:[%s13836_s3 + $0xad0] sm:$0xff] }
 0x118   : > { %870 = vst [vmem:[#allocation2 + $0x30] sm:$0xff] %v816_v13  ;;  %v582_v19 = vadd.f32 %v10172_v52, %v581_v16  ;;  %v8413_v16 = vpack.c.bf16 %v5937_v62, %v5936_v60 }
 0x119   : > { %v819_v22 = vmax.f32 %v587_v15, 0.0 }
 0x11a   : > { %v818_v23 = vmax.f32 %v582_v19, 0.0  ;;  %v7829_v24 = vpop.f32.mrb[10].mxu0 }
 0x11b   : > { %873 = vst [vmem:[#allocation2 + $0x48] sm:$0xff] %v819_v22  ;;  %v597_v27 = vadd.f32 %v7829_v24, %v10172_v52  ;;  %v591_v28 = vpop.f32.mrb[11].mxu0  ;;  %v1082_v29 = vld [vmem:[#allocation2 + $0x19] ss:$2 sm:$0xff]  ;;  %v1068_v30 = vld [vmem:[#allocation2 + $0x18] ss:$2 sm:$0xff] }
 0x11c   : > { %872 = vst [vmem:[#allocation2 + $0x40] sm:$0xff] %v818_v23  ;;  %v592_v33 = vadd.f32 %v10172_v52, %v591_v28  ;;  %1282 = vmatprep.mubr.f32.mxu1 %v1082_v29  ;;  %v6141_v22 = vld [vmem:[%s13836_s3 + $0xaa8] sm:$0xff]  ;;  %v5922_v28 = vld [vmem:[%s13836_s3 + $0x3d0] sm:$0xff]  ;;  %v5923_v29 = vld [vmem:[%s13836_s3 + $0x3d8] sm:$0xff] }
 0x11d   : > { %v821_v36 = vmax.f32 %v597_v27, 0.0  ;;  %1283 = vmatmul.mubr.f32.vlgmr.msra.gmra.mrb[0].mxu1 %v1068_v30  ;;  %v8547_v27 = vpack.c.bf16 %v6123_v9, %v6122_v4  ;;  %v8419_v44 = vpack.c.bf16 %v5923_v29, %v5922_v28  ;;  %v6129_v4 = vld [vmem:[%s13836_s3 + $0xa48] sm:$0xff] }
 0x11e   : > { %v820_v37 = vmax.f32 %v592_v33, 0.0  ;;  %v7832_v38 = vpop.f32.mrb[12].mxu0  ;;  %8400 = vmatpush3.bf16.msra.mxu1 %v8399_v25  ;;  %v8549_v33 = vpack.c.bf16 %v6141_v22, %v6140_v18  ;;  %v6149_v28 = vld [vmem:[%s13836_s3 + $0xae8] sm:$0xff] }
 0x11f   : > { %875 = vst [vmem:[#allocation2 + $0x58] sm:$0xff] %v821_v36  ;;  %v607_v40 = vadd.f32 %v7832_v38, %v10172_v52  ;;  %v601_v41 = vpop.f32.mrb[13].mxu0  ;;  %8402 = vmatprep.subr.bf16.mxu1 %v8401_v31  ;;  %v5940_v36 = vld [vmem:[%s13836_s3 + $0x460] sm:$0xff]  ;;  %v5941_v38 = vld [vmem:[%s13836_s3 + $0x468] sm:$0xff] }
 0x120   : > { %874 = vst [vmem:[#allocation2 + $0x50] sm:$0xff] %v820_v37  ;;  %v602_v45 = vadd.f32 %v10172_v52, %v601_v41 }
 0x121   : > { %v823_v48 = vmax.f32 %v607_v40, 0.0  ;;  %v6143_v40 = vld [vmem:[%s13836_s3 + $0xab8] sm:$0xff] }
 0x122   : > { %v822_v49 = vmax.f32 %v602_v45, 0.0  ;;  %v7835_v50 = vpop.f32.mrb[14].mxu0  ;;  %8404 = vmatpush3.bf16.msra.mxu1 %v8403_v39  ;;  %v6142_v39 = vld [vmem:[%s13836_s3 + $0xab0] sm:$0xff]  ;;  %v8551_v45 = vpack.c.bf16 %v6125_v35, %v6124_v34  ;;  %v9745_v35 = vmov 0.0|0.0  }
 0x123   : > { %877 = vst [vmem:[#allocation2 + $0x68] sm:$0xff] %v823_v48  ;;  %v617_v55 = vadd.f32 %v7835_v50, %v10172_v52  ;;  %v611_v56 = vpop.f32.mrb[15].mxu0  ;;  %8406 = vmatprep.subr.bf16.mxu1 %v8405_v42  ;;  %v8421_v50 = vpack.c.bf16 %v5941_v38, %v5940_v36  ;;  %v6133_v38 = vld [vmem:[%s13836_s3 + $0xa68] sm:$0xff] }
 0x124   : > { %876 = vst [vmem:[#allocation2 + $0x60] sm:$0xff] %v822_v49  ;;  %v612_v61 = vadd.f32 %v10172_v52, %v611_v56 }
 0x125   : > { %v825_v1 = vmax.f32 %v617_v55, 0.0  ;;  %v5942_v55 = vld [vmem:[%s13836_s3 + $0x470] sm:$0xff] }
 0x126   : > { %v824_v5 = vmax.f32 %v612_v61, 0.0  ;;  %v7838_v6 = vpop.f32.mrb[16].mxu0  ;;  %8408 = vmatpush3.bf16.msra.mxu1 %v8407_v51  ;;  %v8553_v51 = vpack.c.bf16 %v6143_v40, %v6142_v39  ;;  %v5926_v61 = vld [vmem:[%s13836_s3 + $0x3f0] sm:$0xff] }
 0x127   : > { %879 = vst [vmem:[#allocation2 + $0x78] sm:$0xff] %v825_v1  ;;  %v627_v12 = vadd.f32 %v7838_v6, %v10172_v52  ;;  %v621_v13 = vpop.f32.mrb[17].mxu0  ;;  %v1084_v14 = vld [vmem:[#allocation2 + $0x49] ss:$2 sm:$0xff]  ;;  %8410 = vmatprep.subr.bf16.mxu1 %v8409_v57  ;;  %v1070_v20 = vld [vmem:[#allocation2 + $0x48] ss:$2 sm:$0xff]  ;;  %v8555_v1 = vpack.c.bf16 %v6127_v54, %v6126_v53 }
 0x128   : > { %v1712_v15 = vld [vmem:[#allocation2 + $0x4b] ss:$2 sm:$0xff]  ;;  %878 = vst [vmem:[#allocation2 + $0x70] sm:$0xff] %v824_v5  ;;  %v622_v19 = vadd.f32 %v10172_v52, %v621_v13  ;;  %1287 = vmatprep.mubr.f32.mxu1 %v1084_v14  ;;  %v1698_v21 = vld [vmem:[#allocation2 + $0x4a] ss:$2 sm:$0xff] }
 0x129   : > { %1984 = vmatprep.mubr.f32.mxu0 %v1712_v15  ;;  %v827_v23 = vmax.f32 %v627_v12, 0.0  ;;  %1288 = vmatmul.mubr.f32.gmra.mrb[2].mxu1 %v1070_v20  ;;  %v5943_v57 = vld [vmem:[%s13836_s3 + $0x478] sm:$0xff]  ;;  %v8559_v20 = vpack.c.bf16 %v6129_v4, %v6128_v3  ;;  %v6150_v40 = vld [vmem:[%s13836_s3 + $0xaf0] sm:$0xff] }
 0x12a   : > { %1985 = vmatmul.mubr.f32.vlgmr.msra.gmra.mrb[54].mxu0 %v1698_v21  ;;  %v826_v24 = vmax.f32 %v622_v19, 0.0  ;;  %v7841_v25 = vpop.f32.mrb[18].mxu0  ;;  %8412 = vmatpush3.bf16.msra.mxu1 %v8411_v7  ;;  %v8425_v9 = vpack.c.bf16 %v5943_v57, %v5942_v55  ;;  %v6147_v15 = vld [vmem:[%s13836_s3 + $0xad8] sm:$0xff]  ;;  %v8427_v19 = vpack.c.bf16 %v5927_v2, %v5926_v61 }
 0x12b   : > { %8544 = vmatpush3.bf16.msra.mxu0 %v8543_v8  ;;  %881 = vst [vmem:[#allocation2 + $0x88] sm:$0xff] %v827_v23  ;;  %v637_v30 = vadd.f32 %v7841_v25, %v10172_v52  ;;  %v631_v31 = vpop.f32.mrb[19].mxu0  ;;  %8414 = vmatprep.subr.bf16.mxu1 %v8413_v16  ;;  %v8561_v23 = vpack.c.bf16 %v6147_v15, %v6146_v11  ;;  %v6131_v25 = vld [vmem:[%s13836_s3 + $0xa58] sm:$0xff] }
 0x12c   : > { %8546 = vmatprep.subr.bf16.mxu0 %v8545_v17  ;;  %880 = vst [vmem:[#allocation2 + $0x80] sm:$0xff] %v826_v24  ;;  %v632_v37 = vadd.f32 %v10172_v52, %v631_v31  ;;  %v6130_v24 = vld [vmem:[%s13836_s3 + $0xa50] sm:$0xff]  ;;  %v6135_v53 = vld [vmem:[%s13836_s3 + $0xa78] sm:$0xff] }
 0x12d   : > { %v829_v41 = vmax.f32 %v637_v30, 0.0 }
 0x12e   : > { %v828_v42 = vmax.f32 %v632_v37, 0.0  ;;  %v7844_v43 = vpop.f32.mrb[20].mxu0  ;;  %8416 = vmatpush3.bf16.msra.mxu1 %v8415_v26  ;;  %v6132_v37 = vld [vmem:[%s13836_s3 + $0xa60] sm:$0xff] }
 0x12f   : > { %8548 = vmatpush3.bf16.msra.mxu0 %v8547_v27  ;;  %883 = vst [vmem:[#allocation2 + $0x98] sm:$0xff] %v829_v41  ;;  %v647_v48 = vadd.f32 %v7844_v43, %v10172_v52  ;;  %v641_v49 = vpop.f32.mrb[21].mxu0  ;;  %8418 = vmatprep.subr.bf16.mxu1 %v8417_v32  ;;  %v6148_v27 = vld [vmem:[%s13836_s3 + $0xae0] sm:$0xff]  ;;  %v8563_v32 = vpack.c.bf16 %v6131_v25, %v6130_v24  ;;  %v6151_v41 = vld [vmem:[%s13836_s3 + $0xaf8] sm:$0xff] }
 0x130   : > { %8550 = vmatprep.subr.bf16.mxu0 %v8549_v33  ;;  %882 = vst [vmem:[#allocation2 + $0x90] sm:$0xff] %v828_v42  ;;  %v642_v56 = vadd.f32 %v10172_v52, %v641_v49  ;;  %v8565_v36 = vpack.c.bf16 %v6149_v28, %v6148_v27 }
 0x131   : > { %v831_v60 = vmax.f32 %v647_v48, 0.0 }
 0x132   : > { %v830_v62 = vmax.f32 %v642_v56, 0.0  ;;  %v7847_v63 = vpop.f32.mrb[22].mxu0  ;;  %8420 = vmatpush3.bf16.msra.mxu1 %v8419_v44 }
 0x133   : > { %8552 = vmatpush3.bf16.msra.mxu0 %v8551_v45  ;;  %885 = vst [vmem:[#allocation2 + $0xa8] sm:$0xff] %v831_v60  ;;  %v657_v5 = vadd.f32 %v7847_v63, %v10172_v52  ;;  %v651_v6 = vpop.f32.mrb[23].mxu0  ;;  %v1086_v7 = vld [vmem:[#allocation2 + $0x79] ss:$2 sm:$0xff]  ;;  %8422 = vmatprep.subr.bf16.mxu1 %v8421_v50  ;;  %v1072_v13 = vld [vmem:[#allocation2 + $0x78] ss:$2 sm:$0xff]  ;;  %v8567_v45 = vpack.c.bf16 %v6133_v38, %v6132_v37 }
 0x134   : > { %v1714_v8 = vld [vmem:[#allocation2 + $0x7b] ss:$2 sm:$0xff]  ;;  %8554 = vmatprep.subr.bf16.mxu0 %v8553_v51  ;;  %884 = vst [vmem:[#allocation2 + $0xa0] sm:$0xff] %v830_v62  ;;  %v652_v12 = vadd.f32 %v10172_v52, %v651_v6  ;;  %1292 = vmatprep.mubr.f32.mxu1 %v1086_v7  ;;  %v1700_v14 = vld [vmem:[#allocation2 + $0x7a] ss:$2 sm:$0xff]  ;;  %v8569_v51 = vpack.c.bf16 %v6151_v41, %v6150_v40 }
 0x135   : > { %1989 = vmatprep.mubr.f32.mxu0 %v1714_v8  ;;  %v833_v16 = vmax.f32 %v657_v5, 0.0  ;;  %1293 = vmatmul.mubr.f32.gmra.mrb[4].mxu1 %v1072_v13  ;;  %v8571_v60 = vpack.c.bf16 %v6135_v53, %v6134_v46 }
 0x136   : > { %1990 = vmatmul.mubr.f32.gmra.mrb[56].mxu0 %v1700_v14  ;;  %v832_v17 = vmax.f32 %v652_v12, 0.0  ;;  %v7850_v18 = vpop.f32.mrb[24].mxu0  ;;  %8424 = vmatpush3.bf16.msra.mxu1 %v8423_v0 }
 0x137   : > { %8556 = vmatpush3.bf16.msra.mxu0 %v8555_v1  ;;  %887 = vst [vmem:[#allocation2 + $0xb8] sm:$0xff] %v833_v16  ;;  %v667_v21 = vadd.f32 %v7850_v18, %v10172_v52  ;;  %v661_v22 = vpop.f32.mrb[25].mxu0  ;;  %8426 = vmatprep.subr.bf16.mxu1 %v8425_v9 }
 0x138   : > { %8558 = vmatprep.subr.bf16.mxu0 %v8557_v10  ;;  %886 = vst [vmem:[#allocation2 + $0xb0] sm:$0xff] %v832_v17  ;;  %v662_v26 = vadd.f32 %v10172_v52, %v661_v22 }
 0x139   : > { %v835_v29 = vmax.f32 %v667_v21, 0.0 }
 0x13a   : > { %v834_v30 = vmax.f32 %v662_v26, 0.0  ;;  %v7853_v31 = vpop.f32.mrb[26].mxu0  ;;  %8428 = vmatpush3.bf16.msra.mxu1 %v8427_v19 }
 0x13b   : > { %8560 = vmatpush3.bf16.msra.mxu0 %v8559_v20  ;;  %889 = vst [vmem:[#allocation2 + $0xc8] sm:$0xff] %v835_v29  ;;  %v677_v33 = vadd.f32 %v7853_v31, %v10172_v52  ;;  %v671_v34 = vpop.f32.mrb[27].mxu0  ;;  %8429 = vmatprep.subr.bf16.mxu1 %v9745_v35 }
 0x13c   : > { %8562 = vmatprep.subr.bf16.mxu0 %v8561_v23  ;;  %888 = vst [vmem:[#allocation2 + $0xc0] sm:$0xff] %v834_v30  ;;  %v672_v39 = vadd.f32 %v10172_v52, %v671_v34 }
 0x13d   : > { %v837_v42 = vmax.f32 %v677_v33, 0.0 }
 0x13e   : > { %v836_v43 = vmax.f32 %v672_v39, 0.0  ;;  %v7856_v44 = vpop.f32.mrb[28].mxu0 }
 0x13f   : > { %8564 = vmatpush3.bf16.msra.mxu0 %v8563_v32  ;;  %891 = vst [vmem:[#allocation2 + $0xd8] sm:$0xff] %v837_v42  ;;  %v687_v47 = vadd.f32 %v7856_v44, %v10172_v52  ;;  %v681_v48 = vpop.f32.mrb[29].mxu0  ;;  %v1088_v49 = vld [vmem:[#allocation2 + $0xa9] ss:$2 sm:$0xff]  ;;  %v1074_v55 = vld [vmem:[#allocation2 + $0xa8] ss:$2 sm:$0xff] }
 0x140   : > { %v1716_v50 = vld [vmem:[#allocation2 + $0xab] ss:$2 sm:$0xff]  ;;  %8566 = vmatprep.subr.bf16.mxu0 %v8565_v36  ;;  %890 = vst [vmem:[#allocation2 + $0xd0] sm:$0xff] %v836_v43  ;;  %v682_v54 = vadd.f32 %v10172_v52, %v681_v48  ;;  %1297 = vmatprep.mubr.f32.mxu1 %v1088_v49  ;;  %v1702_v56 = vld [vmem:[#allocation2 + $0xaa] ss:$2 sm:$0xff] }
 0x141   : > { %1994 = vmatprep.mubr.f32.mxu0 %v1716_v50  ;;  %v839_v57 = vmax.f32 %v687_v47, 0.0  ;;  %1298 = vmatmul.mubr.f32.gmra.mrb[6].mxu1 %v1074_v55  ;;  %v5944_v55 = vld [vmem:[%s13836_s3 + $0x480] sm:$0xff] }
 0x142   : > { %1995 = vmatmul.mubr.f32.gmra.mrb[58].mxu0 %v1702_v56  ;;  %v838_v58 = vmax.f32 %v682_v54, 0.0  ;;  %v7859_v59 = vpop.f32.mrb[30].mxu0 }
 0x143   : > { %8568 = vmatpush3.bf16.msra.mxu0 %v8567_v45  ;;  %893 = vst [vmem:[#allocation2 + $0xe8] sm:$0xff] %v839_v57  ;;  %v697_v61 = vadd.f32 %v7859_v59, %v10172_v52  ;;  %v691_v62 = vpop.f32.mrb[31].mxu0 }
 0x144   : > { %8570 = vmatprep.subr.bf16.mxu0 %v8569_v51  ;;  %892 = vst [vmem:[#allocation2 + $0xe0] sm:$0xff] %v838_v58  ;;  %v692_v63 = vadd.f32 %v10172_v52, %v691_v62 }
 0x145   : > { %v841_v0 = vmax.f32 %v697_v61, 0.0 }
 0x146   : > { %v840_v1 = vmax.f32 %v692_v63, 0.0  ;;  %v7862_v2 = vpop.f32.mrb[32].mxu0 }
 0x147   : > { %8572 = vmatpush3.bf16.msra.mxu0 %v8571_v60  ;;  %895 = vst [vmem:[#allocation2 + $0xf8] sm:$0xff] %v841_v0  ;;  %v707_v3 = vadd.f32 %v7862_v2, %v10172_v52  ;;  %v701_v4 = vpop.f32.mrb[33].mxu0  ;;  %v5945_v60 = vld [vmem:[%s13836_s3 + $0x488] sm:$0xff] }
 0x148   : > { %8605 = vmatprep.subr.bf16.mxu0 %v9745_v35  ;;  %894 = vst [vmem:[#allocation2 + $0xf0] sm:$0xff] %v840_v1  ;;  %v702_v5 = vadd.f32 %v10172_v52, %v701_v4  ;;  %v1110_v1 = vld [vmem:[#allocation2 + $0x1b] ss:$2 sm:$0xff] }
 0x149   : > { %v843_v6 = vmax.f32 %v707_v3, 0.0  ;;  %v8430_v3 = vpack.c.bf16 %v5945_v60, %v5944_v55 }
 0x14a   : > { %v842_v7 = vmax.f32 %v702_v5, 0.0  ;;  %v7865_v8 = vpop.f32.mrb[34].mxu0  ;;  %v5946_v5 = vld [vmem:[%s13836_s3 + $0x490] sm:$0xff] }
 0x14b   : > { %897 = vst [vmem:[#allocation2 + $0x108] sm:$0xff] %v843_v6  ;;  %v717_v9 = vadd.f32 %v7865_v8, %v10172_v52  ;;  %v711_v10 = vpop.f32.mrb[35].mxu0  ;;  %v1090_v11 = vld [vmem:[#allocation2 + $0xd9] ss:$2 sm:$0xff]  ;;  %v1076_v14 = vld [vmem:[#allocation2 + $0xd8] ss:$2 sm:$0xff] }
 0x14c   : > { %v1718_v12 = vld [vmem:[#allocation2 + $0xdb] ss:$2 sm:$0xff]  ;;  %896 = vst [vmem:[#allocation2 + $0x100] sm:$0xff] %v842_v7  ;;  %v712_v13 = vadd.f32 %v10172_v52, %v711_v10  ;;  %1302 = vmatprep.mubr.f32.mxu1 %v1090_v11  ;;  %v1704_v15 = vld [vmem:[#allocation2 + $0xda] ss:$2 sm:$0xff] }
 0x14d   : > { %1999 = vmatprep.mubr.f32.mxu0 %v1718_v12  ;;  %v845_v16 = vmax.f32 %v717_v9, 0.0  ;;  %1303 = vmatmul.mubr.f32.gmra.mrb[8].mxu1 %v1076_v14  ;;  %v5947_v6 = vld [vmem:[%s13836_s3 + $0x498] sm:$0xff] }
 0x14e   : > { %2000 = vmatmul.mubr.f32.gmra.mrb[60].mxu0 %v1704_v15  ;;  %v844_v17 = vmax.f32 %v712_v13, 0.0  ;;  %v7868_v18 = vpop.f32.mrb[36].mxu0  ;;  %v1096_v9 = vld [vmem:[#allocation2 + $0x1a] ss:$2 sm:$0xff]  ;;  %v1112_v11 = vld [vmem:[#allocation2 + $0x4b] ss:$2 sm:$0xff]  ;;  %v8433_v13 = vpack.c.bf16 %v5947_v6, %v5946_v5 }
 0x14f   : > { %899 = vst [vmem:[#allocation2 + $0x118] sm:$0xff] %v845_v16  ;;  %v727_v19 = vadd.f32 %v7868_v18, %v10172_v52  ;;  %v721_v20 = vpop.f32.mrb[37].mxu0  ;;  %v5948_v16 = vld [vmem:[%s13836_s3 + $0x4a0] sm:$0xff]  ;;  %v5959_v5 = vld [vmem:[%s13836_s3 + $0x4f8] sm:$0xff] }
 0x150   : > { %898 = vst [vmem:[#allocation2 + $0x110] sm:$0xff] %v844_v17  ;;  %v722_v21 = vadd.f32 %v10172_v52, %v721_v20  ;;  %v5949_v17 = vld [vmem:[%s13836_s3 + $0x4a8] sm:$0xff]  ;;  %v6192_v6 = vld [vmem:[%s13836_s3 + $0xc40] sm:$0xff] }
 0x151   : > { %v847_v22 = vmax.f32 %v727_v19, 0.0  ;;  %v1098_v19 = vld [vmem:[#allocation2 + $0x4a] ss:$2 sm:$0xff] }
 0x152   : > { %v846_v23 = vmax.f32 %v722_v21, 0.0  ;;  %v7871_v24 = vpop.f32.mrb[38].mxu0  ;;  %v1114_v21 = vld [vmem:[#allocation2 + $0x7b] ss:$2 sm:$0xff] }
 0x153   : > { %901 = vst [vmem:[#allocation2 + $0x128] sm:$0xff] %v847_v22  ;;  %v737_v25 = vadd.f32 %v7871_v24, %v10172_v52  ;;  %v731_v26 = vpop.f32.mrb[39].mxu0  ;;  %v8436_v22 = vpack.c.bf16 %v5949_v17, %v5948_v16  ;;  %v5951_v24 = vld [vmem:[%s13836_s3 + $0x4b8] sm:$0xff]  ;;  %v6041_v17 = vld [vmem:[%s13836_s3 + $0x788] sm:$0xff] }
 0x154   : > { %900 = vst [vmem:[#allocation2 + $0x120] sm:$0xff] %v846_v23  ;;  %v732_v27 = vadd.f32 %v10172_v52, %v731_v26  ;;  %v5950_v23 = vld [vmem:[%s13836_s3 + $0x4b0] sm:$0xff] }
 0x155   : > { %v849_v28 = vmax.f32 %v737_v25, 0.0  ;;  %v6184_v25 = vld [vmem:[%s13836_s3 + $0xc00] sm:$0xff] }
 0x156   : > { %v848_v29 = vmax.f32 %v732_v27, 0.0  ;;  %v7874_v30 = vpop.f32.mrb[40].mxu0 }
 0x157   : > { %903 = vst [vmem:[#allocation2 + $0x138] sm:$0xff] %v849_v28  ;;  %v747_v31 = vadd.f32 %v7874_v30, %v10172_v52  ;;  %v741_v32 = vpop.f32.mrb[41].mxu0  ;;  %v1092_v33 = vld [vmem:[#allocation2 + $0x109] ss:$2 sm:$0xff]  ;;  %v1078_v37 = vld [vmem:[#allocation2 + $0x108] ss:$2 sm:$0xff] }
 0x158   : > { %v1720_v34 = vld [vmem:[#allocation2 + $0x10b] ss:$2 sm:$0xff]  ;;  %902 = vst [vmem:[#allocation2 + $0x130] sm:$0xff] %v848_v29  ;;  %v742_v36 = vadd.f32 %v10172_v52, %v741_v32  ;;  %1307 = vmatprep.mubr.f32.mxu1 %v1092_v33  ;;  %v1706_v38 = vld [vmem:[#allocation2 + $0x10a] ss:$2 sm:$0xff]  ;;  %v8439_v32 = vpack.c.bf16 %v5951_v24, %v5950_v23 }
 0x159   : > { %2004 = vmatprep.mubr.f32.mxu0 %v1720_v34  ;;  %v851_v39 = vmax.f32 %v747_v31, 0.0  ;;  %1308 = vmatmul.mubr.f32.gmra.mrb[10].mxu1 %v1078_v37  ;;  %v6185_v28 = vld [vmem:[%s13836_s3 + $0xc08] sm:$0xff]  ;;  %v5952_v34 = vld [vmem:[%s13836_s3 + $0x4c0] sm:$0xff]  ;;  %v6186_v37 = vld [vmem:[%s13836_s3 + $0xc10] sm:$0xff] }
 0x15a   : > { %2005 = vmatmul.mubr.f32.gmra.mrb[62].mxu0 %v1706_v38  ;;  %v850_v40 = vmax.f32 %v742_v36, 0.0  ;;  %v7877_v41 = vpop.f32.mrb[42].mxu0  ;;  %v1100_v29 = vld [vmem:[#allocation2 + $0x7a] ss:$2 sm:$0xff]  ;;  %v1116_v30 = vld [vmem:[#allocation2 + $0xab] ss:$2 sm:$0xff]  ;;  %v8606_v33 = vpack.c.bf16 %v6185_v28, %v6184_v25 }
 0x15b   : > { %905 = vst [vmem:[#allocation2 + $0x148] sm:$0xff] %v851_v39  ;;  %v757_v42 = vadd.f32 %v7877_v41, %v10172_v52  ;;  %v751_v43 = vpop.f32.mrb[43].mxu0  ;;  %v2135_v31 = vld [vmem:[#allocation2 + $0x61] ss:$2 sm:$0xff]  ;;  %v6187_v38 = vld [vmem:[%s13836_s3 + $0xc18] sm:$0xff] }
 0x15c   : > { %904 = vst [vmem:[#allocation2 + $0x140] sm:$0xff] %v850_v40  ;;  %v752_v44 = vadd.f32 %v10172_v52, %v751_v43  ;;  %v5953_v36 = vld [vmem:[%s13836_s3 + $0x4c8] sm:$0xff]  ;;  %v6059_v23 = vld [vmem:[%s13836_s3 + $0x818] sm:$0xff] }
 0x15d   : > { %v853_v45 = vmax.f32 %v757_v42, 0.0  ;;  %v1102_v39 = vld [vmem:[#allocation2 + $0xaa] ss:$2 sm:$0xff]  ;;  %v1118_v41 = vld [vmem:[#allocation2 + $0xdb] ss:$2 sm:$0xff]  ;;  %v8442_v43 = vpack.c.bf16 %v5953_v36, %v5952_v34 }
 0x15e   : > { %v852_v46 = vmax.f32 %v752_v44, 0.0  ;;  %v7880_v47 = vpop.f32.mrb[44].mxu0  ;;  %v2121_v40 = vld [vmem:[#allocation2 + $0x60] ss:$2 sm:$0xff]  ;;  %v2137_v42 = vld [vmem:[#allocation2 + $0x91] ss:$2 sm:$0xff]  ;;  %v8609_v44 = vpack.c.bf16 %v6187_v38, %v6186_v37 }
 0x15f   : > { %907 = vst [vmem:[#allocation2 + $0x158] sm:$0xff] %v853_v45  ;;  %v767_v48 = vadd.f32 %v7880_v47, %v10172_v52  ;;  %v761_v49 = vpop.f32.mrb[45].mxu0  ;;  %v5954_v45 = vld [vmem:[%s13836_s3 + $0x4d0] sm:$0xff]  ;;  %v6188_v47 = vld [vmem:[%s13836_s3 + $0xc20] sm:$0xff]  ;;  %v6061_v34 = vld [vmem:[%s13836_s3 + $0x828] sm:$0xff] }
 0x160   : > { %906 = vst [vmem:[#allocation2 + $0x150] sm:$0xff] %v852_v46  ;;  %v762_v50 = vadd.f32 %v10172_v52, %v761_v49  ;;  %v5955_v46 = vld [vmem:[%s13836_s3 + $0x4d8] sm:$0xff] }
 0x161   : > { %v855_v51 = vmax.f32 %v767_v48, 0.0  ;;  %v6189_v48 = vld [vmem:[%s13836_s3 + $0xc28] sm:$0xff] }
 0x162   : > { %v854_v53 = vmax.f32 %v762_v50, 0.0  ;;  %v7883_v54 = vpop.f32.mrb[46].mxu0  ;;  %v1104_v49 = vld [vmem:[#allocation2 + $0xda] ss:$2 sm:$0xff]  ;;  %v8612_v55 = vpack.c.bf16 %v6189_v48, %v6188_v47  ;;  %v1106_v60 = vld [vmem:[#allocation2 + $0x10a] ss:$2 sm:$0xff] }
 0x163   : > { %909 = vst [vmem:[#allocation2 + $0x168] sm:$0xff] %v855_v51  ;;  %v777_v56 = vadd.f32 %v7883_v54, %v10172_v52  ;;  %v771_v57 = vpop.f32.mrb[47].mxu0  ;;  %v1094_v58 = vld [vmem:[#allocation2 + $0x139] ss:$2 sm:$0xff]  ;;  %v1080_v62 = vld [vmem:[#allocation2 + $0x138] ss:$2 sm:$0xff]  ;;  %v8445_v54 = vpack.c.bf16 %v5955_v46, %v5954_v45 }
 0x164   : > { %v1722_v59 = vld [vmem:[#allocation2 + $0x13b] ss:$2 sm:$0xff]  ;;  %908 = vst [vmem:[#allocation2 + $0x160] sm:$0xff] %v854_v53  ;;  %v772_v61 = vadd.f32 %v10172_v52, %v771_v57  ;;  %1312 = vmatprep.mubr.f32.mxu1 %v1094_v58  ;;  %v1708_v63 = vld [vmem:[#allocation2 + $0x13a] ss:$2 sm:$0xff]  ;;  %v6190_v58 = vld [vmem:[%s13836_s3 + $0xc30] sm:$0xff] }
 0x165   : > { %2009 = vmatprep.mubr.f32.mxu0 %v1722_v59  ;;  %v857_v0 = vmax.f32 %v777_v56, 0.0  ;;  %1313 = vmatmul.mubr.f32.gmra.mrb[12].mxu1 %v1080_v62  ;;  %v2123_v50 = vld [vmem:[#allocation2 + $0x90] ss:$2 sm:$0xff]  ;;  %v1120_v51 = vld [vmem:[#allocation2 + $0x10b] ss:$2 sm:$0xff]  ;;  %v5956_v56 = vld [vmem:[%s13836_s3 + $0x4e0] sm:$0xff] }
 0x166   : > { %2010 = vmatmul.mubr.f32.gmra.mrb[64].mxu0 %v1708_v63  ;;  %v856_v2 = vmax.f32 %v772_v61, 0.0  ;;  %1382 = vmatprep.mubr.f32.mxu1 %v1110_v1  ;;  %v7886_v4 = vpop.f32.mrb[48].mxu0  ;;  %v2139_v53 = vld [vmem:[#allocation2 + $0xc1] ss:$2 sm:$0xff]  ;;  %v6191_v59 = vld [vmem:[%s13836_s3 + $0xc38] sm:$0xff]  ;;  %v5958_v63 = vld [vmem:[%s13836_s3 + $0x4f0] sm:$0xff] }
 0x167   : > { %911 = vst [vmem:[#allocation2 + $0x178] sm:$0xff] %v857_v0  ;;  %v787_v7 = vadd.f32 %v7886_v4, %v10172_v52  ;;  %v781_v8 = vpop.f32.mrb[49].mxu0  ;;  %v5957_v57 = vld [vmem:[%s13836_s3 + $0x4e8] sm:$0xff]  ;;  %v8615_v4 = vpack.c.bf16 %v6191_v59, %v6190_v58  ;;  %v2145_v24 = vld [vmem:[#allocation2 + $0x151] ss:$2 sm:$0xff]  ;;  %v1035_v48 = vld [vmem:[%s13836_s3 + $0x180] sm:$0xff] }
 0x168   : > { %910 = vst [vmem:[#allocation2 + $0x170] sm:$0xff] %v856_v2  ;;  %v782_v10 = vadd.f32 %v10172_v52, %v781_v8  ;;  %v2125_v61 = vld [vmem:[#allocation2 + $0xc0] ss:$2 sm:$0xff]  ;;  %v1122_v1 = vld [vmem:[#allocation2 + $0x13b] ss:$2 sm:$0xff]  ;;  %v6062_v46 = vld [vmem:[%s13836_s3 + $0x830] sm:$0xff] }
 0x169   : > { %1383 = vmatmul.mubr.f32.vlgmr.msra.gmra.mrb[14].mxu1 %v1096_v9  ;;  %v859_v12 = vmax.f32 %v787_v7, 0.0  ;;  %v2141_v2 = vld [vmem:[#allocation2 + $0xf1] ss:$2 sm:$0xff]  ;;  %v6193_v7 = vld [vmem:[%s13836_s3 + $0xc48] sm:$0xff]  ;;  %v6056_v8 = vld [vmem:[%s13836_s3 + $0x800] sm:$0xff] }
 0x16a   : > { %8431 = vmatpush3.bf16.msra.mxu1 %v8430_v3  ;;  %1387 = vmatprep.mubr.f32.mxu1 %v1112_v11  ;;  %v858_v14 = vmax.f32 %v782_v10, 0.0  ;;  %v7889_v15 = vpop.f32.mrb[50].mxu0  ;;  %v8448_v3 = vpack.c.bf16 %v5957_v57, %v5956_v56  ;;  %v1108_v9 = vld [vmem:[#allocation2 + $0x13a] ss:$2 sm:$0xff] }
 0x16b   : > { %8432 = vmatprep.subr.bf16.mxu1 %v9745_v35  ;;  %913 = vst [vmem:[#allocation2 + $0x188] sm:$0xff] %v859_v12  ;;  %v791_v18 = vpop.f32.mrb[51].mxu0  ;;  %v2127_v10 = vld [vmem:[#allocation2 + $0xf0] ss:$2 sm:$0xff]  ;;  %v6057_v11 = vld [vmem:[%s13836_s3 + $0x808] sm:$0xff]  ;;  %v6040_v15 = vld [vmem:[%s13836_s3 + $0x780] sm:$0xff] }
 0x16c   : > { %912 = vst [vmem:[#allocation2 + $0x180] sm:$0xff] %v858_v14  ;;  %v792_v20 = vadd.f32 %v10172_v52, %v791_v18  ;;  %v2143_v12 = vld [vmem:[#allocation2 + $0x121] ss:$2 sm:$0xff]  ;;  %v8618_v14 = vpack.c.bf16 %v6193_v7, %v6192_v6  ;;  %v8453_v16 = vpack.c.bf16 %v6057_v11, %v6056_v8  ;;  %v6194_v18 = vld [vmem:[%s13836_s3 + $0xc50] sm:$0xff]  ;;  %v8455_v25 = vpack.c.bf16 %v6041_v17, %v6040_v15  ;;  %v6063_v47 = vld [vmem:[%s13836_s3 + $0x838] sm:$0xff] }
 0x16d   : > { %1388 = vmatmul.mubr.f32.gmra.mrb[16].mxu1 %v1098_v19  ;;  %v6195_v19 = vld [vmem:[%s13836_s3 + $0xc58] sm:$0xff]  ;;  %v1019_v56 = vld [vmem:[%s13836_s3 + $0x100] sm:$0xff]  ;;  %v1020_v57 = vld [vmem:[%s13836_s3 + $0x108] sm:$0xff] }
 0x16e   : > { %8434 = vmatpush3.bf16.msra.mxu1 %v8433_v13  ;;  %1392 = vmatprep.mubr.f32.mxu1 %v1114_v21  ;;  %v860_v26 = vmax.f32 %v792_v20, 0.0  ;;  %v7892_v62 = vpop.f32.mrb[52].mxu0  ;;  %v8451_v13 = vpack.c.bf16 %v5959_v5, %v5958_v63  ;;  %v2129_v20 = vld [vmem:[#allocation2 + $0x120] ss:$2 sm:$0xff]  ;;  %v10514_v21 = vld [vmem:[#allocation3 + $0x8] sm:$0xff] }
 0x16f   : > { %8435 = vmatprep.subr.bf16.mxu1 %v9745_v35  ;;  %v1724_v52 = vld [vmem:[#allocation2 + $0x16b] ss:$2 sm:$0xff]  ;;  %v1710_v27 = vld [vmem:[#allocation2 + $0x16a] ss:$2 sm:$0xff]  ;;  %v801_v0 = vpop.f32.mrb[53].mxu0 }
 0x170   : > { %2014 = vmatprep.mubr.f32.mxu0 %v1724_v52  ;;  %914 = vst [vmem:[#allocation2 + $0x190] sm:$0xff] %v860_v26  ;;  %v8621_v26 = vpack.c.bf16 %v6195_v19, %v6194_v18  ;;  %v2131_v52 = vld [vmem:[#allocation2 + $0x150] ss:$2 sm:$0xff]  ;;  %v1023_v18 = vld [vmem:[%s13836_s3 + $0x120] sm:$0xff]  ;;  %v1024_v19 = vld [vmem:[%s13836_s3 + $0x128] sm:$0xff] }
 0x171   : > { %1393 = vmatmul.mubr.f32.gmra.mrb[18].mxu1 %v1100_v29  ;;  %2015 = vmatmul.mubr.f32.gmra.mrb[66].mxu0 %v1710_v27  ;;  %v6042_v27 = vld [vmem:[%s13836_s3 + $0x790] sm:$0xff]  ;;  %v6043_v29 = vld [vmem:[%s13836_s3 + $0x798] sm:$0xff] }
 0x172   : > { %8437 = vmatpush3.bf16.msra.mxu1 %v8436_v22  ;;  %1397 = vmatprep.mubr.f32.mxu1 %v1116_v30  ;;  %v6058_v22 = vld [vmem:[%s13836_s3 + $0x810] sm:$0xff]  ;;  %v6196_v30 = vld [vmem:[%s13836_s3 + $0xc60] sm:$0xff]  ;;  %v8459_v37 = vpack.c.bf16 %v6043_v29, %v6042_v27  ;;  %v1038_v63 = vld [vmem:[%s13836_s3 + $0x198] sm:$0xff]  ;;  %v8671_v29 = vpack.c.bf16 %v1024_v19, %v1023_v18 }
 0x173   : > { %2335 = vmatprep.mubr.f32.mxu0 %v2135_v31  ;;  %8438 = vmatprep.subr.bf16.mxu1 %v9745_v35  ;;  %v8457_v28 = vpack.c.bf16 %v6059_v23, %v6058_v22  ;;  %v6197_v31 = vld [vmem:[%s13836_s3 + $0xc68] sm:$0xff]  ;;  %v1037_v62 = vld [vmem:[%s13836_s3 + $0x190] sm:$0xff]  ;;  %v1022_v5 = vld [vmem:[%s13836_s3 + $0x118] sm:$0xff] }
 0x174   : > { %v2147_v36 = vld [vmem:[#allocation2 + $0x181] ss:$2 sm:$0xff]  ;;  %v8624_v38 = vpack.c.bf16 %v6197_v31, %v6196_v30  ;;  %v1126_v45 = vld [vmem:[#allocation2 + $0x4c] ss:$2 sm:$0xff]  ;;  %v1128_v58 = vld [vmem:[#allocation2 + $0x7c] ss:$2 sm:$0xff] }
 0x175   : > { %1398 = vmatmul.mubr.f32.gmra.mrb[20].mxu1 %v1102_v39  ;;  %2336 = vmatmul.mubr.f32.vlgmr.msra.gmra.mrb[68].mxu0 %v2121_v40  ;;  %v2133_v39 = vld [vmem:[#allocation2 + $0x180] ss:$2 sm:$0xff]  ;;  %v6067_v11 = vld [vmem:[%s13836_s3 + $0x858] sm:$0xff] }
 0x176   : > { %8440 = vmatpush3.bf16.msra.mxu1 %v8439_v32  ;;  %8607 = vmatpush3.bf16.msra.mxu0 %v8606_v33  ;;  %v1124_v32 = vld [vmem:[#allocation2 + $0x1c] ss:$2 sm:$0xff]  ;;  %v1130_v6 = vld [vmem:[#allocation2 + $0xac] ss:$2 sm:$0xff] }
 0x177   : > { %1402 = vmatprep.mubr.f32.mxu1 %v1118_v41  ;;  %2340 = vmatprep.mubr.f32.mxu0 %v2137_v42  ;;  %v6060_v33 = vld [vmem:[%s13836_s3 + $0x820] sm:$0xff]  ;;  %v6045_v42 = vld [vmem:[%s13836_s3 + $0x7a8] sm:$0xff]  ;;  %v6051_v17 = vld [vmem:[%s13836_s3 + $0x7d8] sm:$0xff] }
 0x178   : > { %8441 = vmatprep.subr.bf16.mxu1 %v9745_v35  ;;  %8608 = vmatprep.subr.bf16.mxu0 %v9745_v35  ;;  %v6044_v40 = vld [vmem:[%s13836_s3 + $0x7a0] sm:$0xff]  ;;  %v8461_v41 = vpack.c.bf16 %v6061_v34, %v6060_v33  ;;  %v1042_v27 = vld [vmem:[%s13836_s3 + $0x1b8] sm:$0xff]  ;;  %v6053_v31 = vld [vmem:[%s13836_s3 + $0x7e8] sm:$0xff] }
 0x179   : > { %1403 = vmatmul.mubr.f32.gmra.mrb[22].mxu1 %v1104_v49  ;;  %2341 = vmatmul.mubr.f32.gmra.mrb[70].mxu0 %v2123_v50  ;;  %v1036_v49 = vld [vmem:[%s13836_s3 + $0x188] sm:$0xff]  ;;  %v8463_v50 = vpack.c.bf16 %v6045_v42, %v6044_v40  ;;  %v2179_v22 = vld [vmem:[#allocation2 + $0x94] ss:$2 sm:$0xff] }
 0x17a   : > { %8443 = vmatpush3.bf16.msra.mxu1 %v8442_v43  ;;  %8610 = vmatpush3.bf16.msra.mxu0 %v8609_v44  ;;  %v6198_v43 = vld [vmem:[%s13836_s3 + $0xc70] sm:$0xff]  ;;  %v6199_v44 = vld [vmem:[%s13836_s3 + $0xc78] sm:$0xff]  ;;  %v8661_v59 = vpack.c.bf16 %v1036_v49, %v1035_v48  ;;  %v6052_v30 = vld [vmem:[%s13836_s3 + $0x7e0] sm:$0xff] }
 0x17b   : > { %1407 = vmatprep.mubr.f32.mxu1 %v1120_v51  ;;  %2345 = vmatprep.mubr.f32.mxu0 %v2139_v53  ;;  %v8627_v51 = vpack.c.bf16 %v6199_v44, %v6198_v43  ;;  %v6046_v53 = vld [vmem:[%s13836_s3 + $0x7b0] sm:$0xff]  ;;  %v1026_v33 = vld [vmem:[%s13836_s3 + $0x138] sm:$0xff]  ;;  %v1044_v42 = vld [vmem:[%s13836_s3 + $0x1c8] sm:$0xff]  ;;  %v8479_v43 = vpack.c.bf16 %v6053_v31, %v6052_v30 }
 0x17c   : > { %8444 = vmatprep.subr.bf16.mxu1 %v9745_v35  ;;  %8611 = vmatprep.subr.bf16.mxu0 %v9745_v35  ;;  %v2177_v7 = vld [vmem:[#allocation2 + $0x64] ss:$2 sm:$0xff]  ;;  %v6071_v40 = vld [vmem:[%s13836_s3 + $0x878] sm:$0xff] }
 0x17d   : > { %1408 = vmatmul.mubr.f32.gmra.mrb[24].mxu1 %v1106_v60  ;;  %2346 = vmatmul.mubr.f32.gmra.mrb[72].mxu0 %v2125_v61  ;;  %v6064_v60 = vld [vmem:[%s13836_s3 + $0x840] sm:$0xff]  ;;  %v6065_v61 = vld [vmem:[%s13836_s3 + $0x848] sm:$0xff] }
 0x17e   : > { %8446 = vmatpush3.bf16.msra.mxu1 %v8445_v54  ;;  %8613 = vmatpush3.bf16.msra.mxu0 %v8612_v55  ;;  %v8465_v54 = vpack.c.bf16 %v6063_v47, %v6062_v46  ;;  %v6047_v55 = vld [vmem:[%s13836_s3 + $0x7b8] sm:$0xff]  ;;  %v8469_v8 = vpack.c.bf16 %v6065_v61, %v6064_v60  ;;  %v1027_v47 = vld [vmem:[%s13836_s3 + $0x140] sm:$0xff]  ;;  %v6105_v60 = vld [vmem:[%s13836_s3 + $0x988] sm:$0xff] }
 0x17f   : > { %1412 = vmatprep.mubr.f32.mxu1 %v1122_v1  ;;  %2350 = vmatprep.mubr.f32.mxu0 %v2141_v2  ;;  %v8467_v0 = vpack.c.bf16 %v6047_v55, %v6046_v53  ;;  %v8663_v1 = vpack.c.bf16 %v1020_v57, %v1019_v56  ;;  %v6048_v2 = vld [vmem:[%s13836_s3 + $0x7c0] sm:$0xff]  ;;  %v1134_v34 = vld [vmem:[#allocation2 + $0x10c] ss:$2 sm:$0xff] }
 0x180   : > { %8447 = vmatprep.subr.bf16.mxu1 %v9745_v35  ;;  %8614 = vmatprep.subr.bf16.mxu0 %v9745_v35  ;;  %v6055_v46 = vld [vmem:[%s13836_s3 + $0x7f8] sm:$0xff]  ;;  %v1028_v53 = vld [vmem:[%s13836_s3 + $0x148] sm:$0xff]  ;;  %v1045_v55 = vld [vmem:[%s13836_s3 + $0x1d0] sm:$0xff] }
 0x181   : > { %1413 = vmatmul.mubr.f32.gmra.mrb[26].mxu1 %v1108_v9  ;;  %2351 = vmatmul.mubr.f32.gmra.mrb[74].mxu0 %v2127_v10  ;;  %v8665_v9 = vpack.c.bf16 %v1038_v63, %v1037_v62  ;;  %v6066_v10 = vld [vmem:[%s13836_s3 + $0x850] sm:$0xff]  ;;  %v1136_v48 = vld [vmem:[#allocation2 + $0x13c] ss:$2 sm:$0xff] }
 0x182   : > { %8449 = vmatpush3.bf16.msra.mxu1 %v8448_v3  ;;  %8616 = vmatpush3.bf16.msra.mxu0 %v8615_v4  ;;  %v6049_v3 = vld [vmem:[%s13836_s3 + $0x7c8] sm:$0xff]  ;;  %v1021_v4 = vld [vmem:[%s13836_s3 + $0x110] sm:$0xff]  ;;  %v8473_v23 = vpack.c.bf16 %v6067_v11, %v6066_v10  ;;  %v1046_v56 = vld [vmem:[%s13836_s3 + $0x1d8] sm:$0xff] }
 0x183   : > { %2355 = vmatprep.mubr.f32.mxu0 %v2143_v12  ;;  %8450 = vmatprep.subr.bf16.mxu1 %v9745_v35  ;;  %v1039_v12 = vld [vmem:[%s13836_s3 + $0x1a0] sm:$0xff]  ;;  %v8667_v15 = vpack.c.bf16 %v1022_v5, %v1021_v4  ;;  %v8681_v62 = vpack.c.bf16 %v1046_v56, %v1045_v55  ;;  %v1029_v63 = vld [vmem:[%s13836_s3 + $0x150] sm:$0xff]  ;;  %v1032_v11 = vld [vmem:[%s13836_s3 + $0x168] sm:$0xff] }
 0x184   : > { %8617 = vmatprep.subr.bf16.mxu0 %v9745_v35  ;;  %7925 = vmatprep.mubr.msk.f32.mxu1 %vm9746_vm0, %v10514_v21  ;;  %v2183_v49 = vld [vmem:[#allocation2 + $0xf4] ss:$2 sm:$0xff]  ;;  %v2185_v61 = vld [vmem:[#allocation2 + $0x124] ss:$2 sm:$0xff] }
 0x185   : > { %2356 = vmatmul.mubr.f32.gmra.mrb[76].mxu0 %v2129_v20  ;;  %v1132_v20 = vld [vmem:[#allocation2 + $0xdc] ss:$2 sm:$0xff] }
 0x186   : > { %8452 = vmatpush3.bf16.msra.mxu1 %v8451_v13  ;;  %8619 = vmatpush3.bf16.msra.mxu0 %v8618_v14  ;;  %v1040_v13 = vld [vmem:[%s13836_s3 + $0x1a8] sm:$0xff]  ;;  %v8471_v14 = vpack.c.bf16 %v6049_v3, %v6048_v2  ;;  %v2187_v3 = vld [vmem:[#allocation2 + $0x154] ss:$2 sm:$0xff] }
 0x187   : > { %8454 = vmatprep.subr.bf16.mxu1 %v8453_v16  ;;  %8620 = vmatprep.subr.bf16.mxu0 %v9745_v35  ;;  %v6050_v16 = vld [vmem:[%s13836_s3 + $0x7d0] sm:$0xff]  ;;  %v1048_v2 = vld [vmem:[%s13836_s3 + $0x1e8] sm:$0xff]  ;;  %v1031_v10 = vld [vmem:[%s13836_s3 + $0x160] sm:$0xff] }
 0x188   : > { %2360 = vmatprep.mubr.f32.mxu0 %v2145_v24  ;;  %v8669_v24 = vpack.c.bf16 %v1040_v13, %v1039_v12  ;;  %v1686_v12 = vld [vmem:[#allocation2 + $0x79] ss:$2 sm:$0xff]  ;;  %v1049_v13 = vld [vmem:[%s13836_s3 + $0x1f0] sm:$0xff]  ;;  %v6109_v19 = vld [vmem:[%s13836_s3 + $0x9a8] sm:$0xff] }
 0x189   : > { %7926 = vmatmul.mubr.f32.vlgmr.msra.gmra.mrb[28].mxu1 %v1124_v32  ;;  %2361 = vmatmul.mubr.f32.gmra.mrb[78].mxu0 %v2131_v52  ;;  %v1041_v52 = vld [vmem:[%s13836_s3 + $0x1b0] sm:$0xff]  ;;  %v6108_v18 = vld [vmem:[%s13836_s3 + $0x9a0] sm:$0xff] }
 0x18a   : > { %8456 = vmatpush3.bf16.msra.mxu1 %v8455_v25  ;;  %8622 = vmatpush3.bf16.msra.mxu0 %v8621_v26  ;;  %v6068_v25 = vld [vmem:[%s13836_s3 + $0x860] sm:$0xff]  ;;  %v6069_v26 = vld [vmem:[%s13836_s3 + $0x868] sm:$0xff]  ;;  %v1025_v32 = vld [vmem:[%s13836_s3 + $0x130] sm:$0xff] }
 0x18b   : > { %7928 = vmatprep.mubr.msk.f32.mxu1 %vm9746_vm0, %v10514_v21  ;;  %8458 = vmatprep.subr.bf16.mxu1 %v8457_v28  ;;  %v8475_v28 = vpack.c.bf16 %v6051_v17, %v6050_v16  ;;  %v8675_v44 = vpack.c.bf16 %v1026_v33, %v1025_v32  ;;  %v8687_v17 = vpack.c.bf16 %v1032_v11, %v1031_v10  ;;  %v1674_v30 = vld [vmem:[#allocation2 + $0xa8] ss:$2 sm:$0xff]  ;;  %v6111_v33 = vld [vmem:[%s13836_s3 + $0x9b8] sm:$0xff] }
 0x18c   : > { %8623 = vmatprep.subr.bf16.mxu0 %v9745_v35  ;;  %2365 = vmatprep.mubr.f32.mxu0 %v2147_v36  ;;  %v2181_v36 = vld [vmem:[#allocation2 + $0xc4] ss:$2 sm:$0xff]  ;;  %v966_v10 = vld [vmem:[#allocation2 + $0x93] ss:$2 sm:$0xff] }
 0x18d   : > { %7929 = vmatmul.mubr.f32.gmra.mrb[30].mxu1 %v1126_v45  ;;  %2366 = vmatmul.mubr.f32.gmra.mrb[80].mxu0 %v2133_v39  ;;  %v6070_v39 = vld [vmem:[%s13836_s3 + $0x870] sm:$0xff] }
 0x18e   : > { %8460 = vmatpush3.bf16.msra.mxu1 %v8459_v37  ;;  %8625 = vmatpush3.bf16.msra.mxu0 %v8624_v38  ;;  %v8477_v37 = vpack.c.bf16 %v6069_v26, %v6068_v25  ;;  %v8673_v38 = vpack.c.bf16 %v1042_v27, %v1041_v52  ;;  %v6054_v45 = vld [vmem:[%s13836_s3 + $0x7f0] sm:$0xff]  ;;  %v5976_v26 = vld [vmem:[%s13836_s3 + $0x580] sm:$0xff]  ;;  %v5977_v52 = vld [vmem:[%s13836_s3 + $0x588] sm:$0xff] }
 0x18f   : > { %7931 = vmatprep.mubr.msk.f32.mxu1 %vm9746_vm0, %v10514_v21  ;;  %8462 = vmatprep.subr.bf16.mxu1 %v8461_v41  ;;  %v1043_v41 = vld [vmem:[%s13836_s3 + $0x1c0] sm:$0xff]  ;;  %v8483_v57 = vpack.c.bf16 %v6055_v46, %v6054_v45  ;;  %v1688_v25 = vld [vmem:[#allocation2 + $0xa9] ss:$2 sm:$0xff]  ;;  %v8717_v31 = vpack.c.bf16 %v5977_v52, %v5976_v26  ;;  %v1678_v56 = vld [vmem:[#allocation2 + $0x108] ss:$2 sm:$0xff] }
 0x190   : > { %8626 = vmatprep.subr.bf16.mxu0 %v9745_v35  ;;  %8031 = vmatprep.mubr.msk.f32.mxu0 %vm9746_vm0, %v10514_v21  ;;  %v960_v27 = vld [vmem:[#allocation2 + $0x3] ss:$2 sm:$0xff] }
 0x191   : > { %7932 = vmatmul.mubr.f32.gmra.mrb[32].mxu1 %v1128_v58  ;;  %v8679_v58 = vpack.c.bf16 %v1028_v53, %v1027_v47  ;;  %v6110_v32 = vld [vmem:[%s13836_s3 + $0x9b0] sm:$0xff]  ;;  %v6113_v45 = vld [vmem:[%s13836_s3 + $0x9c8] sm:$0xff]  ;;  %v6168_v26 = vld [vmem:[%s13836_s3 + $0xb80] sm:$0xff] }
 0x192   : > { %8464 = vmatpush3.bf16.msra.mxu1 %v8463_v50  ;;  %8628 = vmatpush3.bf16.msra.mxu0 %v8627_v51  ;;  %v8481_v50 = vpack.c.bf16 %v6071_v40, %v6070_v39  ;;  %v8677_v51 = vpack.c.bf16 %v1044_v42, %v1043_v41  ;;  %v5979_v39 = vld [vmem:[%s13836_s3 + $0x598] sm:$0xff]  ;;  %v946_v40 = vld [vmem:[#allocation2 + $0x2] ss:$2 sm:$0xff]  ;;  %v8527_v41 = vpack.c.bf16 %v6111_v33, %v6110_v32  ;;  %v1692_v46 = vld [vmem:[#allocation2 + $0x109] ss:$2 sm:$0xff] }
 0x193   : > { %7934 = vmatprep.mubr.msk.f32.mxu1 %vm9746_vm0, %v10514_v21  ;;  %8466 = vmatprep.subr.bf16.mxu1 %v8465_v54  ;;  %v1684_v54 = vld [vmem:[#allocation2 + $0x49] ss:$2 sm:$0xff]  ;;  %v1676_v42 = vld [vmem:[#allocation2 + $0xd8] ss:$2 sm:$0xff] }
 0x194   : > { %8662 = vmatprep.subr.bf16.mxu0 %v8661_v59  ;;  %v6104_v59 = vld [vmem:[%s13836_s3 + $0x980] sm:$0xff]  ;;  %v5981_v53 = vld [vmem:[%s13836_s3 + $0x5a8] sm:$0xff] }
 0x195   : > { %7935 = vmatmul.mubr.f32.gmra.mrb[34].mxu1 %v1130_v6  ;;  %8032 = vmatmul.mubr.f32.vlgmr.msra.gmra.mrb[82].mxu0 %v2177_v7  ;;  %v8518_v4 = vpack.c.bf16 %v6105_v60, %v6104_v59  ;;  %v6106_v6 = vld [vmem:[%s13836_s3 + $0x990] sm:$0xff]  ;;  %v6107_v7 = vld [vmem:[%s13836_s3 + $0x998] sm:$0xff]  ;;  %v6169_v52 = vld [vmem:[%s13836_s3 + $0xb88] sm:$0xff] }
 0x196   : > { %8468 = vmatpush3.bf16.msra.mxu1 %v8467_v0  ;;  %8664 = vmatpush3.bf16.msra.mxu0 %v8663_v1  ;;  %v1030_v0 = vld [vmem:[%s13836_s3 + $0x158] sm:$0xff]  ;;  %v1047_v1 = vld [vmem:[%s13836_s3 + $0x1e0] sm:$0xff]  ;;  %v8521_v16 = vpack.c.bf16 %v6107_v7, %v6106_v6  ;;  %v8573_v33 = vpack.c.bf16 %v6169_v52, %v6168_v26  ;;  %v6026_v52 = vld [vmem:[%s13836_s3 + $0x710] sm:$0xff] }
 0x197   : > { %7937 = vmatprep.mubr.msk.f32.mxu1 %vm9746_vm0, %v10514_v21  ;;  %8034 = vmatprep.mubr.msk.f32.mxu0 %vm9746_vm0, %v10514_v21  ;;  %v8683_v5 = vpack.c.bf16 %v1030_v0, %v1029_v63  ;;  %v6115_v59 = vld [vmem:[%s13836_s3 + $0x9d8] sm:$0xff]  ;;  %v5965_v63 = vld [vmem:[%s13836_s3 + $0x528] sm:$0xff] }
 0x198   : > { %8470 = vmatprep.subr.bf16.mxu1 %v8469_v8  ;;  %8666 = vmatprep.subr.bf16.mxu0 %v8665_v9  ;;  %v1670_v8 = vld [vmem:[#allocation2 + $0x48] ss:$2 sm:$0xff]  ;;  %v8685_v9 = vpack.c.bf16 %v1048_v2, %v1047_v1  ;;  %v1694_v60 = vld [vmem:[#allocation2 + $0x139] ss:$2 sm:$0xff]  ;;  %v1680_v6 = vld [vmem:[#allocation2 + $0x138] ss:$2 sm:$0xff] }
 0x199   : > { %7938 = vmatmul.mubr.f32.gmra.mrb[36].mxu1 %v1132_v20  ;;  %8035 = vmatmul.mubr.f32.gmra.mrb[84].mxu0 %v2179_v22  ;;  %v1672_v20 = vld [vmem:[#allocation2 + $0x78] ss:$2 sm:$0xff]  ;;  %v964_v0 = vld [vmem:[#allocation2 + $0x63] ss:$2 sm:$0xff] }
 0x19a   : > { %8472 = vmatpush3.bf16.msra.mxu1 %v8471_v14  ;;  %8668 = vmatpush3.bf16.msra.mxu0 %v8667_v15  ;;  %v1050_v14 = vld [vmem:[%s13836_s3 + $0x1f8] sm:$0xff]  ;;  %v2189_v15 = vld [vmem:[#allocation2 + $0x184] ss:$2 sm:$0xff] }
 0x19b   : > { %7940 = vmatprep.mubr.msk.f32.mxu1 %vm9746_vm0, %v10514_v21  ;;  %8037 = vmatprep.mubr.msk.f32.mxu0 %vm9746_vm0, %v10514_v21  ;;  %v8689_v22 = vpack.c.bf16 %v1050_v14, %v1049_v13  ;;  %v5982_v1 = vld [vmem:[%s13836_s3 + $0x5b0] sm:$0xff]  ;;  %v5983_v2 = vld [vmem:[%s13836_s3 + $0x5b8] sm:$0xff] }
 0x19c   : > { %8474 = vmatprep.subr.bf16.mxu1 %v8473_v23  ;;  %8670 = vmatprep.subr.bf16.mxu0 %v8669_v24  ;;  %v1033_v23 = vld [vmem:[%s13836_s3 + $0x170] sm:$0xff]  ;;  %v1034_v24 = vld [vmem:[%s13836_s3 + $0x178] sm:$0xff]  ;;  %v8729_v11 = vpack.c.bf16 %v5983_v2, %v5982_v1  ;;  %v6157_v1 = vld [vmem:[%s13836_s3 + $0xb28] sm:$0xff] }
 0x19d   : > { %7941 = vmatmul.mubr.f32.gmra.mrb[38].mxu1 %v1134_v34  ;;  %8038 = vmatmul.mubr.f32.gmra.mrb[86].mxu0 %v2181_v36  ;;  %v1690_v34 = vld [vmem:[#allocation2 + $0xd9] ss:$2 sm:$0xff]  ;;  %v1682_v14 = vld [vmem:[#allocation2 + $0x168] ss:$2 sm:$0xff] }
 0x19e   : > { %8476 = vmatpush3.bf16.msra.mxu1 %v8475_v28  ;;  %8672 = vmatpush3.bf16.msra.mxu0 %v8671_v29  ;;  %v8524_v28 = vpack.c.bf16 %v6109_v19, %v6108_v18  ;;  %v8691_v29 = vpack.c.bf16 %v1034_v24, %v1033_v23  ;;  %v5960_v36 = vld [vmem:[%s13836_s3 + $0x500] sm:$0xff]  ;;  %v5967_v13 = vld [vmem:[%s13836_s3 + $0x538] sm:$0xff]  ;;  %v5974_v2 = vld [vmem:[%s13836_s3 + $0x570] sm:$0xff] }
 0x19f   : > { %7943 = vmatprep.mubr.msk.f32.mxu1 %vm9746_vm0, %v10514_v21  ;;  %8040 = vmatprep.mubr.msk.f32.mxu0 %vm9746_vm0, %v10514_v21  ;;  %v5968_v23 = vld [vmem:[%s13836_s3 + $0x540] sm:$0xff] }
 0x1a0   : > { %8478 = vmatprep.subr.bf16.mxu1 %v8477_v37  ;;  %8674 = vmatprep.subr.bf16.mxu0 %v8673_v38  ;;  %v5961_v37 = vld [vmem:[%s13836_s3 + $0x508] sm:$0xff]  ;;  %v5978_v38 = vld [vmem:[%s13836_s3 + $0x590] sm:$0xff] }
 0x1a1   : > { %7944 = vmatmul.mubr.f32.gmra.mrb[40].mxu1 %v1136_v48  ;;  %8041 = vmatmul.mubr.f32.gmra.mrb[88].mxu0 %v2183_v49  ;;  %v8721_v47 = vpack.c.bf16 %v5979_v39, %v5978_v38  ;;  %v5962_v48 = vld [vmem:[%s13836_s3 + $0x510] sm:$0xff]  ;;  %v5963_v49 = vld [vmem:[%s13836_s3 + $0x518] sm:$0xff] }
 0x1a2   : > { %8480 = vmatpush3.bf16.msra.mxu1 %v8479_v43  ;;  %1884 = vmatprep.mubr.f32.mxu1 %v1684_v54  ;;  %v8719_v43 = vpack.c.bf16 %v5961_v37, %v5960_v36  ;;  %v948_v54 = vld [vmem:[#allocation2 + $0x32] ss:$2 sm:$0xff]  ;;  %v6153_v36 = vld [vmem:[%s13836_s3 + $0xb08] sm:$0xff] }
 0x1a3   : > { %8676 = vmatpush3.bf16.msra.mxu0 %v8675_v44  ;;  %8043 = vmatprep.mubr.msk.f32.mxu0 %vm9746_vm0, %v10514_v21  ;;  %v6112_v44 = vld [vmem:[%s13836_s3 + $0x9c0] sm:$0xff]  ;;  %v5970_v37 = vld [vmem:[%s13836_s3 + $0x550] sm:$0xff]  ;;  %v5971_v39 = vld [vmem:[%s13836_s3 + $0x558] sm:$0xff] }
 0x1a4   : > { %8482 = vmatprep.subr.bf16.mxu1 %v8481_v50  ;;  %8678 = vmatprep.subr.bf16.mxu0 %v8677_v51  ;;  %v962_v50 = vld [vmem:[#allocation2 + $0x33] ss:$2 sm:$0xff]  ;;  %v8530_v55 = vpack.c.bf16 %v6113_v45, %v6112_v44  ;;  %v5989_v44 = vld [vmem:[%s13836_s3 + $0x5e8] sm:$0xff] }
 0x1a5   : > { %8044 = vmatmul.mubr.f32.gmra.mrb[90].mxu0 %v2185_v61  ;;  %v5980_v51 = vld [vmem:[%s13836_s3 + $0x5a0] sm:$0xff]  ;;  %v1726_v45 = vld [vmem:[#allocation2 + $0x4c] ss:$2 sm:$0xff] }
 0x1a6   : > { %8484 = vmatpush3.bf16.msra.mxu1 %v8483_v57  ;;  %8046 = vmatprep.mubr.msk.f32.mxu0 %vm9746_vm0, %v10514_v21  ;;  %v8723_v57 = vpack.c.bf16 %v5963_v49, %v5962_v48  ;;  %v8725_v61 = vpack.c.bf16 %v5981_v53, %v5980_v51  ;;  %v8739_v48 = vpack.c.bf16 %v5971_v39, %v5970_v37  ;;  %v6155_v49 = vld [vmem:[%s13836_s3 + $0xb18] sm:$0xff]  ;;  %v5973_v51 = vld [vmem:[%s13836_s3 + $0x568] sm:$0xff]  ;;  %v6028_v39 = vld [vmem:[%s13836_s3 + $0x720] sm:$0xff] }
 0x1a7   : > { %8680 = vmatpush3.bf16.msra.mxu0 %v8679_v58  ;;  %8517 = vmatprep.subr.bf16.mxu1 %v9745_v35  ;;  %v6114_v58 = vld [vmem:[%s13836_s3 + $0x9d0] sm:$0xff] }
 0x1a8   : > { %8682 = vmatprep.subr.bf16.mxu0 %v8681_v62  ;;  %v5964_v62 = vld [vmem:[%s13836_s3 + $0x520] sm:$0xff]  ;;  %v1734_v37 = vld [vmem:[#allocation2 + $0x10c] ss:$2 sm:$0xff] }
 0x1a9   : > { %1885 = vmatmul.mubr.f32.vlgmr.msra.gmra.mrb[42].mxu1 %v1670_v8  ;;  %8047 = vmatmul.mubr.f32.gmra.mrb[92].mxu0 %v2187_v3  ;;  %v950_v3 = vld [vmem:[#allocation2 + $0x62] ss:$2 sm:$0xff]  ;;  %v8727_v7 = vpack.c.bf16 %v5965_v63, %v5964_v62  ;;  %v956_v53 = vld [vmem:[#allocation2 + $0xf2] ss:$2 sm:$0xff] }
 0x1aa   : > { %1889 = vmatprep.mubr.f32.mxu1 %v1686_v12  ;;  %8519 = vmatpush3.bf16.msra.mxu1 %v8518_v4  ;;  %v8533_v4 = vpack.c.bf16 %v6115_v59, %v6114_v58  ;;  %v6116_v8 = vld [vmem:[%s13836_s3 + $0x9e0] sm:$0xff]  ;;  %v5966_v12 = vld [vmem:[%s13836_s3 + $0x530] sm:$0xff] }
 0x1ab   : > { %8684 = vmatpush3.bf16.msra.mxu0 %v8683_v5  ;;  %8049 = vmatprep.mubr.msk.f32.mxu0 %vm9746_vm0, %v10514_v21  ;;  %v1696_v5 = vld [vmem:[#allocation2 + $0x169] ss:$2 sm:$0xff]  ;;  %v8731_v19 = vpack.c.bf16 %v5967_v13, %v5966_v12  ;;  %v6156_v63 = vld [vmem:[%s13836_s3 + $0xb20] sm:$0xff] }
 0x1ac   : > { %8520 = vmatprep.subr.bf16.mxu1 %v9745_v35  ;;  %8686 = vmatprep.subr.bf16.mxu0 %v8685_v9  ;;  %v6117_v9 = vld [vmem:[%s13836_s3 + $0x9e8] sm:$0xff]  ;;  %v5990_v59 = vld [vmem:[%s13836_s3 + $0x5f0] sm:$0xff] }
 0x1ad   : > { %1890 = vmatmul.mubr.f32.gmra.mrb[44].mxu1 %v1672_v20  ;;  %8050 = vmatmul.mubr.f32.gmra.mrb[94].mxu0 %v2189_v15  ;;  %v5984_v15 = vld [vmem:[%s13836_s3 + $0x5c0] sm:$0xff]  ;;  %v8536_v18 = vpack.c.bf16 %v6117_v9, %v6116_v8  ;;  %v6118_v20 = vld [vmem:[%s13836_s3 + $0x9f0] sm:$0xff]  ;;  %v6175_v8 = vld [vmem:[%s13836_s3 + $0xbb8] sm:$0xff] }
 0x1ae   : > { %1894 = vmatprep.mubr.f32.mxu1 %v1688_v25  ;;  %8522 = vmatpush3.bf16.msra.mxu1 %v8521_v16  ;;  %v5985_v16 = vld [vmem:[%s13836_s3 + $0x5c8] sm:$0xff]  ;;  %v1533_v9 = vld [vmem:[#allocation2 + $0x31] ss:$2 sm:$0xff] }
 0x1af   : > { %8688 = vmatpush3.bf16.msra.mxu0 %v8687_v17  ;;  %2735 = vmatprep.mubr.f32.mxu0 %v960_v27  ;;  %v952_v17 = vld [vmem:[#allocation2 + $0x92] ss:$2 sm:$0xff]  ;;  %v8733_v24 = vpack.c.bf16 %v5985_v16, %v5984_v15  ;;  %v5969_v25 = vld [vmem:[%s13836_s3 + $0x548] sm:$0xff] }
 0x1b0   : > { %8523 = vmatprep.subr.bf16.mxu1 %v9745_v35  ;;  %8690 = vmatprep.subr.bf16.mxu0 %v8689_v22  ;;  %v6119_v22 = vld [vmem:[%s13836_s3 + $0x9f8] sm:$0xff]  ;;  %v968_v27 = vld [vmem:[#allocation2 + $0xc3] ss:$2 sm:$0xff]  ;;  %v8735_v32 = vpack.c.bf16 %v5969_v25, %v5968_v23 }
 0x1b1   : > { %1895 = vmatmul.mubr.f32.gmra.mrb[46].mxu1 %v1674_v30  ;;  %v954_v30 = vld [vmem:[#allocation2 + $0xc2] ss:$2 sm:$0xff]  ;;  %v972_v58 = vld [vmem:[#allocation2 + $0x123] ss:$2 sm:$0xff] }
 0x1b2   : > { %1899 = vmatprep.mubr.f32.mxu1 %v1690_v34  ;;  %8525 = vmatpush3.bf16.msra.mxu1 %v8524_v28  ;;  %v5986_v28 = vld [vmem:[%s13836_s3 + $0x5d0] sm:$0xff]  ;;  %v6152_v34 = vld [vmem:[%s13836_s3 + $0xb00] sm:$0xff] }
 0x1b3   : > { %8692 = vmatpush3.bf16.msra.mxu0 %v8691_v29  ;;  %8526 = vmatprep.subr.bf16.mxu1 %v9745_v35  ;;  %v5987_v29 = vld [vmem:[%s13836_s3 + $0x5d8] sm:$0xff]  ;;  %v6158_v13 = vld [vmem:[%s13836_s3 + $0xb30] sm:$0xff]  ;;  %v6024_v16 = vld [vmem:[%s13836_s3 + $0x700] sm:$0xff] }
 0x1b4   : > { %8718 = vmatprep.subr.bf16.mxu0 %v8717_v31  ;;  %v8539_v31 = vpack.c.bf16 %v6119_v22, %v6118_v20  ;;  %v8737_v38 = vpack.c.bf16 %v5987_v29, %v5986_v28  ;;  %v1730_v15 = vld [vmem:[#allocation2 + $0xac] ss:$2 sm:$0xff]  ;;  %v6160_v23 = vld [vmem:[%s13836_s3 + $0xb40] sm:$0xff] }
 0x1b5   : > { %1900 = vmatmul.mubr.f32.gmra.mrb[48].mxu1 %v1676_v42  ;;  %v970_v42 = vld [vmem:[#allocation2 + $0xf3] ss:$2 sm:$0xff]  ;;  %v1732_v25 = vld [vmem:[#allocation2 + $0xdc] ss:$2 sm:$0xff] }
 0x1b6   : > { %2736 = vmatmul.mubr.f32.vlgmr.msra.gmra.mrb[96].mxu0 %v946_v40  ;;  %1904 = vmatprep.mubr.f32.mxu1 %v1692_v46  ;;  %v6170_v40 = vld [vmem:[%s13836_s3 + $0xb90] sm:$0xff]  ;;  %v8575_v46 = vpack.c.bf16 %v6153_v36, %v6152_v34  ;;  %v6163_v36 = vld [vmem:[%s13836_s3 + $0xb58] sm:$0xff] }
 0x1b7   : > { %8528 = vmatpush3.bf16.msra.mxu1 %v8527_v41  ;;  %2740 = vmatprep.mubr.f32.mxu0 %v962_v50  ;;  %v6171_v41 = vld [vmem:[%s13836_s3 + $0xb98] sm:$0xff]  ;;  %v5972_v50 = vld [vmem:[%s13836_s3 + $0x560] sm:$0xff]  ;;  %v6178_v29 = vld [vmem:[%s13836_s3 + $0xbd0] sm:$0xff] }
 0x1b8   : > { %8720 = vmatpush3.bf16.msra.mxu0 %v8719_v43  ;;  %8529 = vmatprep.subr.bf16.mxu1 %v9745_v35  ;;  %v5988_v43 = vld [vmem:[%s13836_s3 + $0x5e0] sm:$0xff]  ;;  %v1519_v28 = vld [vmem:[#allocation2 + $0x30] ss:$2 sm:$0xff] }
 0x1b9   : > { %1905 = vmatmul.mubr.f32.gmra.mrb[50].mxu1 %v1678_v56  ;;  %8722 = vmatprep.subr.bf16.mxu0 %v8721_v47  ;;  %v6154_v47 = vld [vmem:[%s13836_s3 + $0xb10] sm:$0xff]  ;;  %v6172_v56 = vld [vmem:[%s13836_s3 + $0xba0] sm:$0xff] }
 0x1ba   : > { %2741 = vmatmul.mubr.f32.gmra.mrb[98].mxu0 %v948_v54  ;;  %1909 = vmatprep.mubr.f32.mxu1 %v1694_v60  ;;  %v8577_v54 = vpack.c.bf16 %v6171_v41, %v6170_v40  ;;  %v5991_v60 = vld [vmem:[%s13836_s3 + $0x5f8] sm:$0xff]  ;;  %v8579_v62 = vpack.c.bf16 %v6155_v49, %v6154_v47  ;;  %v6162_v34 = vld [vmem:[%s13836_s3 + $0xb50] sm:$0xff]  ;;  %v6029_v40 = vld [vmem:[%s13836_s3 + $0x728] sm:$0xff] }
 0x1bb   : > { %8531 = vmatpush3.bf16.msra.mxu1 %v8530_v55  ;;  %2745 = vmatprep.mubr.f32.mxu0 %v964_v0  ;;  %v8741_v55 = vpack.c.bf16 %v5989_v44, %v5988_v43  ;;  %v8743_v0 = vpack.c.bf16 %v5973_v51, %v5972_v50  ;;  %v1521_v41 = vld [vmem:[#allocation2 + $0x60] ss:$2 sm:$0xff]  ;;  %v1537_v44 = vld [vmem:[#allocation2 + $0x91] ss:$2 sm:$0xff]  ;;  %v1523_v50 = vld [vmem:[#allocation2 + $0x90] ss:$2 sm:$0xff] }
 0x1bc   : > { %8724 = vmatpush3.bf16.msra.mxu0 %v8723_v57  ;;  %8532 = vmatprep.subr.bf16.mxu1 %v9745_v35  ;;  %v6173_v57 = vld [vmem:[%s13836_s3 + $0xba8] sm:$0xff]  ;;  %v6164_v47 = vld [vmem:[%s13836_s3 + $0xb60] sm:$0xff] }
 0x1bd   : > { %1910 = vmatmul.mubr.f32.gmra.mrb[52].mxu1 %v1680_v6  ;;  %8726 = vmatprep.subr.bf16.mxu0 %v8725_v61  ;;  %v1728_v61 = vld [vmem:[#allocation2 + $0x7c] ss:$2 sm:$0xff]  ;;  %v8745_v6 = vpack.c.bf16 %v5991_v60, %v5990_v59  ;;  %v6166_v59 = vld [vmem:[%s13836_s3 + $0xb70] sm:$0xff] }
 0x1be   : > { %2746 = vmatmul.mubr.f32.gmra.mrb[100].mxu0 %v950_v3  ;;  %1914 = vmatprep.mubr.f32.mxu1 %v1696_v5  ;;  %v5975_v3 = vld [vmem:[%s13836_s3 + $0x578] sm:$0xff]  ;;  %v8581_v5 = vpack.c.bf16 %v6173_v57, %v6172_v56  ;;  %v6181_v43 = vld [vmem:[%s13836_s3 + $0xbe8] sm:$0xff] }
 0x1bf   : > { %8534 = vmatpush3.bf16.msra.mxu1 %v8533_v4  ;;  %2750 = vmatprep.mubr.f32.mxu0 %v966_v10  ;;  %v958_v4 = vld [vmem:[#allocation2 + $0x122] ss:$2 sm:$0xff]  ;;  %v8583_v10 = vpack.c.bf16 %v6157_v1, %v6156_v63  ;;  %v6183_v56 = vld [vmem:[%s13836_s3 + $0xbf8] sm:$0xff]  ;;  %v1539_v57 = vld [vmem:[#allocation2 + $0xc1] ss:$2 sm:$0xff] }
 0x1c0   : > { %8728 = vmatpush3.bf16.msra.mxu0 %v8727_v7  ;;  %8535 = vmatprep.subr.bf16.mxu1 %v9745_v35  ;;  %v6174_v7 = vld [vmem:[%s13836_s3 + $0xbb0] sm:$0xff]  ;;  %v1736_v49 = vld [vmem:[#allocation2 + $0x13c] ss:$2 sm:$0xff] }
 0x1c1   : > { %1915 = vmatmul.mubr.f32.gmra.mrb[54].mxu1 %v1682_v14  ;;  %8730 = vmatprep.subr.bf16.mxu0 %v8729_v11  ;;  %v8747_v11 = vpack.c.bf16 %v5975_v3, %v5974_v2  ;;  %v8585_v12 = vpack.c.bf16 %v6175_v8, %v6174_v7  ;;  %v6159_v14 = vld [vmem:[%s13836_s3 + $0xb38] sm:$0xff]  ;;  %v1004_v1 = vld [vmem:[%s13836_s3 + $0x88] sm:$0xff] }
 0x1c2   : > { %2751 = vmatmul.mubr.f32.gmra.mrb[102].mxu0 %v952_v17  ;;  %7978 = vmatprep.mubr.msk.f32.mxu1 %vm9746_vm0, %v10514_v21  ;;  %v6025_v17 = vld [vmem:[%s13836_s3 + $0x708] sm:$0xff]  ;;  %v8587_v20 = vpack.c.bf16 %v6159_v14, %v6158_v13  ;;  %v6167_v60 = vld [vmem:[%s13836_s3 + $0xb78] sm:$0xff]  ;;  %v1005_v14 = vld [vmem:[%s13836_s3 + $0x90] sm:$0xff] }
 0x1c3   : > { %8537 = vmatpush3.bf16.msra.mxu1 %v8536_v18  ;;  %2755 = vmatprep.mubr.f32.mxu0 %v968_v27  ;;  %v6176_v18 = vld [vmem:[%s13836_s3 + $0xbc0] sm:$0xff]  ;;  %v8782_v22 = vpack.c.bf16 %v6025_v17, %v6024_v16  ;;  %v6027_v27 = vld [vmem:[%s13836_s3 + $0x718] sm:$0xff]  ;;  %v6033_v3 = vld [vmem:[%s13836_s3 + $0x748] sm:$0xff] }
 0x1c4   : > { %8732 = vmatpush3.bf16.msra.mxu0 %v8731_v19  ;;  %8538 = vmatprep.subr.bf16.mxu1 %v9745_v35  ;;  %v6177_v19 = vld [vmem:[%s13836_s3 + $0xbc8] sm:$0xff]  ;;  %v1527_v7 = vld [vmem:[#allocation2 + $0xf0] ss:$2 sm:$0xff] }
 0x1c5   : > { %8734 = vmatprep.subr.bf16.mxu0 %v8733_v24  ;;  %v6161_v24 = vld [vmem:[%s13836_s3 + $0xb48] sm:$0xff]  ;;  %v8589_v26 = vpack.c.bf16 %v6177_v19, %v6176_v18  ;;  %v6035_v13 = vld [vmem:[%s13836_s3 + $0x758] sm:$0xff] }
 0x1c6   : > { %2756 = vmatmul.mubr.f32.gmra.mrb[104].mxu0 %v954_v30  ;;  %v6179_v30 = vld [vmem:[%s13836_s3 + $0xbd8] sm:$0xff]  ;;  %v1525_v2 = vld [vmem:[#allocation2 + $0xc0] ss:$2 sm:$0xff]  ;;  %v1543_v16 = vld [vmem:[#allocation2 + $0x121] ss:$2 sm:$0xff] }
 0x1c7   : > { %8540 = vmatpush3.bf16.msra.mxu1 %v8539_v31  ;;  %2760 = vmatprep.mubr.f32.mxu0 %v970_v42  ;;  %v1535_v31 = vld [vmem:[#allocation2 + $0x61] ss:$2 sm:$0xff]  ;;  %v2149_v17 = vld [vmem:[#allocation2 + $0x62] ss:$2 sm:$0xff] }
 0x1c8   : > { %8736 = vmatpush3.bf16.msra.mxu0 %v8735_v32  ;;  %8574 = vmatprep.subr.bf16.mxu1 %v8573_v33  ;;  %v8591_v32 = vpack.c.bf16 %v6161_v24, %v6160_v23  ;;  %v8785_v33 = vpack.c.bf16 %v6027_v27, %v6026_v52  ;;  %v6180_v42 = vld [vmem:[%s13836_s3 + $0xbe0] sm:$0xff]  ;;  %v989_v24 = vld [vmem:[%s13836_s3 + $0x10] sm:$0xff]  ;;  %v6037_v52 = vld [vmem:[%s13836_s3 + $0x768] sm:$0xff] }
 0x1c9   : > { %8738 = vmatprep.subr.bf16.mxu0 %v8737_v38  ;;  %v8593_v38 = vpack.c.bf16 %v6179_v30, %v6178_v29  ;;  %v8597_v51 = vpack.c.bf16 %v6181_v43, %v6180_v42  ;;  %v1529_v18 = vld [vmem:[#allocation2 + $0x120] ss:$2 sm:$0xff]  ;;  %v2165_v19 = vld [vmem:[#allocation2 + $0x93] ss:$2 sm:$0xff] }
 0x1ca   : > { %7979 = vmatmul.mubr.f32.vlgmr.msra.gmra.mrb[56].mxu1 %v1726_v45  ;;  %2761 = vmatmul.mubr.f32.gmra.mrb[106].mxu0 %v956_v53  ;;  %v8595_v45 = vpack.c.bf16 %v6163_v36, %v6162_v34  ;;  %v6030_v53 = vld [vmem:[%s13836_s3 + $0x730] sm:$0xff]  ;;  %v1007_v27 = vld [vmem:[%s13836_s3 + $0xa0] sm:$0xff]  ;;  %v1010_v42 = vld [vmem:[%s13836_s3 + $0xb8] sm:$0xff] }
 0x1cb   : > { %8576 = vmatpush3.bf16.msra.mxu1 %v8575_v46  ;;  %2765 = vmatprep.mubr.f32.mxu0 %v972_v58  ;;  %v8788_v46 = vpack.c.bf16 %v6029_v40, %v6028_v39  ;;  %v1545_v29 = vld [vmem:[#allocation2 + $0x151] ss:$2 sm:$0xff]  ;;  %v2151_v30 = vld [vmem:[#allocation2 + $0x92] ss:$2 sm:$0xff] }
 0x1cc   : > { %8740 = vmatpush3.bf16.msra.mxu0 %v8739_v48  ;;  %7981 = vmatprep.mubr.msk.f32.mxu1 %vm9746_vm0, %v10514_v21  ;;  %v6165_v48 = vld [vmem:[%s13836_s3 + $0xb68] sm:$0xff]  ;;  %v6038_v39 = vld [vmem:[%s13836_s3 + $0x770] sm:$0xff]  ;;  %v6039_v40 = vld [vmem:[%s13836_s3 + $0x778] sm:$0xff] }
 0x1cd   : > { %8578 = vmatprep.subr.bf16.mxu1 %v8577_v54  ;;  %8742 = vmatprep.subr.bf16.mxu0 %v8741_v55  ;;  %v6031_v54 = vld [vmem:[%s13836_s3 + $0x738] sm:$0xff]  ;;  %v6182_v55 = vld [vmem:[%s13836_s3 + $0xbf0] sm:$0xff]  ;;  %v8599_v58 = vpack.c.bf16 %v6165_v48, %v6164_v47  ;;  %v8803_v48 = vpack.c.bf16 %v6039_v40, %v6038_v39 }
 0x1ce   : > { %7982 = vmatmul.mubr.f32.gmra.mrb[58].mxu1 %v1728_v61  ;;  %2766 = vmatmul.mubr.f32.gmra.mrb[108].mxu0 %v958_v4  ;;  %v1738_v61 = vld [vmem:[#allocation2 + $0x16c] ss:$2 sm:$0xff]  ;;  %v8601_v63 = vpack.c.bf16 %v6183_v56, %v6182_v55  ;;  %v2163_v4 = vld [vmem:[#allocation2 + $0x63] ss:$2 sm:$0xff] }
 0x1cf   : > { %8580 = vmatpush3.bf16.msra.mxu1 %v8579_v62  ;;  %2935 = vmatprep.mubr.f32.mxu0 %v1533_v9  ;;  %v8791_v62 = vpack.c.bf16 %v6031_v54, %v6030_v53  ;;  %v2169_v54 = vld [vmem:[#allocation2 + $0xf3] ss:$2 sm:$0xff]  ;;  %v1012_v56 = vld [vmem:[%s13836_s3 + $0xc8] sm:$0xff] }
 0x1d0   : > { %8744 = vmatpush3.bf16.msra.mxu0 %v8743_v0  ;;  %7984 = vmatprep.mubr.msk.f32.mxu1 %vm9746_vm0, %v10514_v21  ;;  %v1003_v0 = vld [vmem:[%s13836_s3 + $0x80] sm:$0xff] }
 0x1d1   : > { %8582 = vmatprep.subr.bf16.mxu1 %v8581_v5  ;;  %8746 = vmatprep.subr.bf16.mxu0 %v8745_v6  ;;  %v1541_v5 = vld [vmem:[#allocation2 + $0xf1] ss:$2 sm:$0xff]  ;;  %v8603_v6 = vpack.c.bf16 %v6167_v60, %v6166_v59  ;;  %v8629_v8 = vpack.c.bf16 %v1004_v1, %v1003_v0  ;;  %v1011_v55 = vld [vmem:[%s13836_s3 + $0xc0] sm:$0xff] }
 0x1d2   : > { %7985 = vmatmul.mubr.f32.gmra.mrb[60].mxu1 %v1730_v15  ;;  %v1006_v15 = vld [vmem:[%s13836_s3 + $0x98] sm:$0xff]  ;;  %v8645_v59 = vpack.c.bf16 %v1012_v56, %v1011_v55  ;;  %v995_v60 = vld [vmem:[%s13836_s3 + $0x40] sm:$0xff]  ;;  %v1056_v55 = vld [vmem:[%s13836_s3 + $0x228] sm:$0xff] }
 0x1d3   : > { %8584 = vmatpush3.bf16.msra.mxu1 %v8583_v10  ;;  %7987 = vmatprep.mubr.msk.f32.mxu1 %vm9746_vm0, %v10514_v21  ;;  %v987_v10 = vld [vmem:[%s13836_s3] sm:$0xff]  ;;  %v8633_v23 = vpack.c.bf16 %v1006_v15, %v1005_v14  ;;  %v1014_v0 = vld [vmem:[%s13836_s3 + $0xd8] sm:$0xff] }
 0x1d4   : > { %8748 = vmatpush3.bf16.msra.mxu0 %v8747_v11  ;;  %8586 = vmatprep.subr.bf16.mxu1 %v8585_v12  ;;  %v988_v11 = vld [vmem:[%s13836_s3 + $0x8] sm:$0xff]  ;;  %v6034_v12 = vld [vmem:[%s13836_s3 + $0x750] sm:$0xff] }
 0x1d5   : > { %8781 = vmatprep.subr.bf16.mxu0 %v9745_v35  ;;  %v1575_v1 = vld [vmem:[#allocation2 + $0x34] ss:$2 sm:$0xff] }
 0x1d6   : > { %7988 = vmatmul.mubr.f32.gmra.mrb[62].mxu1 %v1732_v25  ;;  %v990_v25 = vld [vmem:[%s13836_s3 + $0x18] sm:$0xff] }
 0x1d7   : > { %2936 = vmatmul.mubr.f32.vlgmr.msra.gmra.mrb[110].mxu0 %v1519_v28  ;;  %8588 = vmatpush3.bf16.msra.mxu1 %v8587_v20  ;;  %v8631_v20 = vpack.c.bf16 %v988_v11, %v987_v10  ;;  %v1008_v28 = vld [vmem:[%s13836_s3 + $0xa8] sm:$0xff]  ;;  %v1587_v56 = vld [vmem:[#allocation2 + $0x154] ss:$2 sm:$0xff] }
 0x1d8   : > { %2940 = vmatprep.mubr.f32.mxu0 %v1535_v31  ;;  %8783 = vmatpush3.bf16.msra.mxu0 %v8782_v22  ;;  %v8797_v22 = vpack.c.bf16 %v6035_v13, %v6034_v12  ;;  %v1531_v31 = vld [vmem:[#allocation2 + $0x150] ss:$2 sm:$0xff]  ;;  %v8637_v36 = vpack.c.bf16 %v1008_v28, %v1007_v27 }
 0x1d9   : > { %7990 = vmatprep.mubr.msk.f32.mxu1 %vm9746_vm0, %v10514_v21  ;;  %8590 = vmatprep.subr.bf16.mxu1 %v8589_v26  ;;  %v6036_v26 = vld [vmem:[%s13836_s3 + $0x760] sm:$0xff]  ;;  %v1001_v28 = vld [vmem:[%s13836_s3 + $0x70] sm:$0xff] }
 0x1da   : > { %7991 = vmatmul.mubr.f32.gmra.mrb[64].mxu1 %v1734_v37  ;;  %8784 = vmatprep.subr.bf16.mxu0 %v9745_v35  ;;  %v8800_v34 = vpack.c.bf16 %v6037_v52, %v6036_v26  ;;  %v991_v37 = vld [vmem:[%s13836_s3 + $0x20] sm:$0xff] }
 0x1db   : > { %2941 = vmatmul.mubr.f32.gmra.mrb[112].mxu0 %v1521_v41  ;;  %8592 = vmatpush3.bf16.msra.mxu1 %v8591_v32  ;;  %v2167_v32 = vld [vmem:[#allocation2 + $0xc3] ss:$2 sm:$0xff]  ;;  %v2159_v13 = vld [vmem:[#allocation2 + $0x152] ss:$2 sm:$0xff]  ;;  %v2161_v52 = vld [vmem:[#allocation2 + $0x182] ss:$2 sm:$0xff] }
 0x1dc   : > { %2945 = vmatprep.mubr.f32.mxu0 %v1537_v44  ;;  %8786 = vmatpush3.bf16.msra.mxu0 %v8785_v33  ;;  %v8635_v33 = vpack.c.bf16 %v990_v25, %v989_v24  ;;  %v1009_v41 = vld [vmem:[%s13836_s3 + $0xb0] sm:$0xff]  ;;  %v1018_v24 = vld [vmem:[%s13836_s3 + $0xf8] sm:$0xff] }
 0x1dd   : > { %7993 = vmatprep.mubr.msk.f32.mxu1 %vm9746_vm0, %v10514_v21  ;;  %8594 = vmatprep.subr.bf16.mxu1 %v8593_v38  ;;  %v992_v38 = vld [vmem:[%s13836_s3 + $0x28] sm:$0xff]  ;;  %v1579_v25 = vld [vmem:[#allocation2 + $0x94] ss:$2 sm:$0xff] }
 0x1de   : > { %7994 = vmatmul.mubr.f32.gmra.mrb[66].mxu1 %v1736_v49  ;;  %8787 = vmatprep.subr.bf16.mxu0 %v9745_v35  ;;  %v8639_v44 = vpack.c.bf16 %v992_v38, %v991_v37  ;;  %v8641_v49 = vpack.c.bf16 %v1010_v42, %v1009_v41  ;;  %v918_v42 = vld [vmem:[#allocation2] ss:$2 sm:$0xff] }
 0x1df   : > { %2946 = vmatmul.mubr.f32.gmra.mrb[114].mxu0 %v1523_v50  ;;  %8596 = vmatpush3.bf16.msra.mxu1 %v8595_v45  ;;  %v11098_v45 = vld [vmem:[#allocation3 + $0x8] sm:$0xff]  ;;  %v993_v50 = vld [vmem:[%s13836_s3 + $0x30] sm:$0xff] }
 0x1e0   : > { %2950 = vmatprep.mubr.f32.mxu0 %v1539_v57  ;;  %8789 = vmatpush3.bf16.msra.mxu0 %v8788_v46  ;;  %v2153_v46 = vld [vmem:[#allocation2 + $0xc2] ss:$2 sm:$0xff] }
 0x1e1   : > { %7996 = vmatprep.mubr.msk.f32.mxu1 %vm9746_vm0, %v10514_v21  ;;  %8598 = vmatprep.subr.bf16.mxu1 %v8597_v51  ;;  %v6032_v21 = vld [vmem:[%s13836_s3 + $0x740] sm:$0xff]  ;;  %v994_v51 = vld [vmem:[%s13836_s3 + $0x38] sm:$0xff] }
 0x1e2   : > { %7997 = vmatmul.mubr.f32.gmra.mrb[68].mxu1 %v1738_v61  ;;  %8790 = vmatprep.subr.bf16.mxu0 %v9745_v35  ;;  %v8794_v9 = vpack.c.bf16 %v6033_v3, %v6032_v21  ;;  %v8643_v57 = vpack.c.bf16 %v994_v51, %v993_v50  ;;  %v996_v61 = vld [vmem:[%s13836_s3 + $0x48] sm:$0xff]  ;;  %v920_v51 = vld [vmem:[#allocation2 + $0x30] ss:$2 sm:$0xff] }
 0x1e3   : > { %2951 = vmatmul.mubr.f32.gmra.mrb[116].mxu0 %v1525_v2  ;;  %8600 = vmatpush3.bf16.msra.mxu1 %v8599_v58  ;;  %v2155_v58 = vld [vmem:[#allocation2 + $0xf2] ss:$2 sm:$0xff]  ;;  %v8647_v2 = vpack.c.bf16 %v996_v61, %v995_v60  ;;  %v2157_v21 = vld [vmem:[#allocation2 + $0x122] ss:$2 sm:$0xff] }
 0x1e4   : > { %2435 = vmatprep.mubr.f32.mxu1 %v2163_v4  ;;  %2955 = vmatprep.mubr.f32.mxu0 %v1541_v5  ;;  %v997_v4 = vld [vmem:[%s13836_s3 + $0x50] sm:$0xff]  ;;  %v998_v5 = vld [vmem:[%s13836_s3 + $0x58] sm:$0xff] }
 0x1e5   : > { %8792 = vmatpush3.bf16.msra.mxu0 %v8791_v62  ;;  %8602 = vmatprep.subr.bf16.mxu1 %v8601_v63  ;;  %v2171_v62 = vld [vmem:[#allocation2 + $0x123] ss:$2 sm:$0xff]  ;;  %v8651_v12 = vpack.c.bf16 %v998_v5, %v997_v4  ;;  %v1058_v61 = vld [vmem:[%s13836_s3 + $0x238] sm:$0xff] }
 0x1e6   : > { %8793 = vmatprep.subr.bf16.mxu0 %v9745_v35  ;;  %v1013_v63 = vld [vmem:[%s13836_s3 + $0xd0] sm:$0xff] }
 0x1e7   : > { %2956 = vmatmul.mubr.f32.gmra.mrb[118].mxu0 %v1527_v7  ;;  %8604 = vmatpush3.bf16.msra.mxu1 %v8603_v6  ;;  %v8649_v3 = vpack.c.bf16 %v1014_v0, %v1013_v63  ;;  %v2173_v6 = vld [vmem:[#allocation2 + $0x153] ss:$2 sm:$0xff] }
 0x1e8   : > { %2960 = vmatprep.mubr.f32.mxu0 %v1543_v16  ;;  %8630 = vmatprep.subr.bf16.mxu1 %v8629_v8  ;;  %v1015_v7 = vld [vmem:[%s13836_s3 + $0xe0] sm:$0xff]  ;;  %v1016_v8 = vld [vmem:[%s13836_s3 + $0xe8] sm:$0xff]  ;;  %v1057_v60 = vld [vmem:[%s13836_s3 + $0x230] sm:$0xff] }
 0x1e9   : > { %8795 = vmatpush3.bf16.msra.mxu0 %v8794_v9  ;;  %v1577_v9 = vld [vmem:[#allocation2 + $0x64] ss:$2 sm:$0xff]  ;;  %v8653_v16 = vpack.c.bf16 %v1016_v8, %v1015_v7  ;;  %v940_v8 = vld [vmem:[#allocation2 + $0xc1] ss:$2 sm:$0xff] }
 0x1ea   : > { %2436 = vmatmul.mubr.f32.vlgmr.msra.gmra.mrb[70].mxu1 %v2149_v17  ;;  %8796 = vmatprep.subr.bf16.mxu0 %v9745_v35  ;;  %v999_v17 = vld [vmem:[%s13836_s3 + $0x60] sm:$0xff]  ;;  %v1060_v7 = vld [vmem:[%s13836_s3 + $0x248] sm:$0xff] }
 0x1eb   : > { %2961 = vmatmul.mubr.f32.gmra.mrb[120].mxu0 %v1529_v18  ;;  %2440 = vmatprep.mubr.f32.mxu1 %v2165_v19  ;;  %v1000_v18 = vld [vmem:[%s13836_s3 + $0x68] sm:$0xff] }
 0x1ec   : > { %8632 = vmatpush3.bf16.msra.mxu1 %v8631_v20  ;;  %2965 = vmatprep.mubr.f32.mxu0 %v1545_v29  ;;  %v8655_v26 = vpack.c.bf16 %v1000_v18, %v999_v17  ;;  %v1002_v29 = vld [vmem:[%s13836_s3 + $0x78] sm:$0xff]  ;;  %v1064_v17 = vld [vmem:[%s13836_s3 + $0x268] sm:$0xff] }
 0x1ed   : > { %8798 = vmatpush3.bf16.msra.mxu0 %v8797_v22  ;;  %8634 = vmatprep.subr.bf16.mxu1 %v8633_v23  ;;  %v2175_v22 = vld [vmem:[#allocation2 + $0x183] ss:$2 sm:$0xff] }
 0x1ee   : > { %2441 = vmatmul.mubr.f32.gmra.mrb[72].mxu1 %v2151_v30  ;;  %8799 = vmatprep.subr.bf16.mxu0 %v9745_v35  ;;  %v1017_v23 = vld [vmem:[%s13836_s3 + $0xf0] sm:$0xff]  ;;  %v932_v30 = vld [vmem:[#allocation2 + $0x1] ss:$2 sm:$0xff] }
 0x1ef   : > { %2966 = vmatmul.mubr.f32.gmra.mrb[122].mxu0 %v1531_v31  ;;  %2445 = vmatprep.mubr.f32.mxu1 %v2167_v32  ;;  %v8657_v27 = vpack.c.bf16 %v1018_v24, %v1017_v23  ;;  %v1581_v31 = vld [vmem:[#allocation2 + $0xc4] ss:$2 sm:$0xff]  ;;  %v8659_v32 = vpack.c.bf16 %v1002_v29, %v1001_v28  ;;  %v944_v18 = vld [vmem:[#allocation2 + $0x121] ss:$2 sm:$0xff] }
 0x1f0   : > { %8636 = vmatpush3.bf16.msra.mxu1 %v8635_v33  ;;  %v6627_v43 = vpop.f32.mrb[0].mxu1  ;;  %8137 = vmatprep.mubr.msk.f32.mxu0 %vm9746_vm0, %v11098_v45  ;;  %v1051_v33 = vld [vmem:[%s13836_s3 + $0x200] sm:$0xff]  ;;  %v1065_v29 = vld [vmem:[%s13836_s3 + $0x270] sm:$0xff] }
 0x1f1   : > { %8801 = vmatpush3.bf16.msra.mxu0 %v8800_v34  ;;  %8638 = vmatprep.subr.bf16.mxu1 %v8637_v36  ;;  %v6628_v47 = vpop.f32.mrb[1].mxu1  ;;  %v1052_v34 = vld [vmem:[%s13836_s3 + $0x208] sm:$0xff]  ;;  %v1583_v36 = vld [vmem:[#allocation2 + $0xf4] ss:$2 sm:$0xff] }
 0x1f2   : > { %2446 = vmatmul.mubr.f32.gmra.mrb[74].mxu1 %v2153_v46  ;;  %8802 = vmatprep.subr.bf16.mxu0 %v9745_v35  ;;  %v11109_v53 = vadd.f32 %v6628_v47, %v6627_v43  ;;  %v8694_v41 = vpack.c.bf16 %v1052_v34, %v1051_v33  ;;  %v1053_v46 = vld [vmem:[%s13836_s3 + $0x210] sm:$0xff]  ;;  %v1054_v47 = vld [vmem:[%s13836_s3 + $0x218] sm:$0xff] }
 0x1f3   : > { %2450 = vmatprep.mubr.f32.mxu1 %v2169_v54  ;;  %v8697_v50 = vpack.c.bf16 %v1054_v47, %v1053_v46  ;;  %v1055_v54 = vld [vmem:[%s13836_s3 + $0x220] sm:$0xff] }
 0x1f4   : > { %8640 = vmatpush3.bf16.msra.mxu1 %v8639_v44  ;;  %v974_v46 = vld [vmem:[#allocation2 + $0x4] ss:$2 sm:$0xff] }
 0x1f5   : > { %8804 = vmatpush3.bf16.msra.mxu0 %v8803_v48  ;;  %8642 = vmatprep.subr.bf16.mxu1 %v8641_v49  ;;  %v1585_v48 = vld [vmem:[#allocation2 + $0x124] ss:$2 sm:$0xff]  ;;  %v934_v49 = vld [vmem:[#allocation2 + $0x31] ss:$2 sm:$0xff] }
 0x1f6   : > { %2451 = vmatmul.mubr.f32.gmra.mrb[76].mxu1 %v2155_v58  ;;  %v8700_v58 = vpack.c.bf16 %v1056_v55, %v1055_v54  ;;  %v6012_v47 = vld [vmem:[%s13836_s3 + $0x6a0] sm:$0xff] }
 0x1f7   : > { %2455 = vmatprep.mubr.f32.mxu1 %v2171_v62  ;;  %v938_v62 = vld [vmem:[#allocation2 + $0x91] ss:$2 sm:$0xff] }
 0x1f8   : > { %8138 = vmatmul.mubr.f32.vlgmr.msra.gmra.mrb[124].mxu0 %v1575_v1  ;;  %8644 = vmatpush3.bf16.msra.mxu1 %v8643_v57  ;;  %v936_v57 = vld [vmem:[#allocation2 + $0x61] ss:$2 sm:$0xff] }
 0x1f9   : > { %8140 = vmatprep.mubr.msk.f32.mxu0 %vm9746_vm0, %v11098_v45  ;;  %8646 = vmatprep.subr.bf16.mxu1 %v8645_v59  ;;  %v922_v59 = vld [vmem:[#allocation2 + $0x60] ss:$2 sm:$0xff] }
 0x1fa   : > { %2456 = vmatmul.mubr.f32.gmra.mrb[78].mxu1 %v2157_v21  ;;  %v8703_v21 = vpack.c.bf16 %v1058_v61, %v1057_v60  ;;  %v5997_v60 = vld [vmem:[%s13836_s3 + $0x628] sm:$0xff]  ;;  %v976_v61 = vld [vmem:[#allocation2 + $0x34] ss:$2 sm:$0xff] }
 0x1fb   : > { %2460 = vmatprep.mubr.f32.mxu1 %v2173_v6  ;;  %v1059_v6 = vld [vmem:[%s13836_s3 + $0x240] sm:$0xff] }
 0x1fc   : > { %8141 = vmatmul.mubr.f32.gmra.mrb[126].mxu0 %v1577_v9  ;;  %8648 = vmatpush3.bf16.msra.mxu1 %v8647_v2  ;;  %v6630_v10 = vpop.f32.mrb[2].mxu1  ;;  %v8706_v9 = vpack.c.bf16 %v1060_v7, %v1059_v6  ;;  %v6016_v6 = vld [vmem:[%s13836_s3 + $0x6c0] sm:$0xff]  ;;  %v6017_v7 = vld [vmem:[%s13836_s3 + $0x6c8] sm:$0xff] }
 0x1fd   : > { %v6809_v11 = vpop.f32.mrb[54].mxu0  ;;  %8143 = vmatprep.mubr.msk.f32.mxu0 %vm9746_vm0, %v11098_v45  ;;  %8650 = vmatprep.subr.bf16.mxu1 %v8649_v3  ;;  %v6631_v14 = vpop.f32.mrb[3].mxu1  ;;  %v924_v3 = vld [vmem:[#allocation2 + $0x90] ss:$2 sm:$0xff] }
 0x1fe   : > { %v6810_v15 = vpop.f32.mrb[55].mxu0  ;;  %2461 = vmatmul.mubr.f32.gmra.mrb[80].mxu1 %v2159_v13  ;;  %v11151_v19 = vadd.f32 %v6631_v14, %v6630_v10  ;;  %v926_v10 = vld [vmem:[#allocation2 + $0xc0] ss:$2 sm:$0xff]  ;;  %v942_v13 = vld [vmem:[#allocation2 + $0xf1] ss:$2 sm:$0xff] }
 0x1ff   : > { %v11153_v20 = vadd.f32 %v6810_v15, %v6809_v11  ;;  %2465 = vmatprep.mubr.f32.mxu1 %v2175_v22  ;;  %v1061_v11 = vld [vmem:[%s13836_s3 + $0x250] sm:$0xff] }
 0x200   : > { %8144 = vmatmul.mubr.f32.gmra.mrb[128].mxu0 %v1579_v25  ;;  %8652 = vmatpush3.bf16.msra.mxu1 %v8651_v12  ;;  %v1062_v12 = vld [vmem:[%s13836_s3 + $0x258] sm:$0xff] }
 0x201   : > { %8146 = vmatprep.mubr.msk.f32.mxu0 %vm9746_vm0, %v11098_v45  ;;  %8654 = vmatprep.subr.bf16.mxu1 %v8653_v16  ;;  %v8709_v14 = vpack.c.bf16 %v1062_v12, %v1061_v11  ;;  %v928_v15 = vld [vmem:[#allocation2 + $0xf0] ss:$2 sm:$0xff]  ;;  %v1063_v16 = vld [vmem:[%s13836_s3 + $0x260] sm:$0xff]  ;;  %v6001_v11 = vld [vmem:[%s13836_s3 + $0x648] sm:$0xff] }
 0x202   : > { %2466 = vmatmul.mubr.f32.gmra.mrb[82].mxu1 %v2161_v52  ;;  %v930_v52 = vld [vmem:[#allocation2 + $0x120] ss:$2 sm:$0xff] }
 0x203   : > { %2635 = vmatprep.mubr.f32.mxu1 %v932_v30  ;;  %v1066_v30 = vld [vmem:[%s13836_s3 + $0x278] sm:$0xff] }
 0x204   : > { %8147 = vmatmul.mubr.f32.gmra.mrb[130].mxu0 %v1581_v31  ;;  %8656 = vmatpush3.bf16.msra.mxu1 %v8655_v26  ;;  %v8712_v26 = vpack.c.bf16 %v1064_v17, %v1063_v16  ;;  %v6008_v31 = vld [vmem:[%s13836_s3 + $0x680] sm:$0xff]  ;;  %v8715_v33 = vpack.c.bf16 %v1066_v30, %v1065_v29 }
 0x205   : > { %8149 = vmatprep.mubr.msk.f32.mxu0 %vm9746_vm0, %v11098_v45  ;;  %8658 = vmatprep.subr.bf16.mxu1 %v8657_v27  ;;  %v980_v12 = vld [vmem:[#allocation2 + $0x94] ss:$2 sm:$0xff]  ;;  %v982_v29 = vld [vmem:[#allocation2 + $0xc4] ss:$2 sm:$0xff] }
 0x206   : > { %v6020_v30 = vld [vmem:[%s13836_s3 + $0x6e0] sm:$0xff] }
 0x208   : > { %8150 = vmatmul.mubr.f32.gmra.mrb[132].mxu0 %v1583_v36  ;;  %8660 = vmatpush3.bf16.msra.mxu1 %v8659_v32  ;;  %v6633_v37 = vpop.f32.mrb[4].mxu1  ;;  %v6009_v32 = vld [vmem:[%s13836_s3 + $0x688] sm:$0xff]  ;;  %v5992_v36 = vld [vmem:[%s13836_s3 + $0x600] sm:$0xff] }
 0x209   : > { %v6812_v38 = vpop.f32.mrb[56].mxu0  ;;  %8152 = vmatprep.mubr.msk.f32.mxu0 %vm9746_vm0, %v11098_v45  ;;  %8693 = vmatprep.subr.bf16.mxu1 %v9745_v35  ;;  %v6634_v39 = vpop.f32.mrb[5].mxu1  ;;  %v8749_v34 = vpack.c.bf16 %v6009_v32, %v6008_v31  ;;  %v6021_v31 = vld [vmem:[%s13836_s3 + $0x6e8] sm:$0xff] }
 0x20a   : > { %v6813_v40 = vpop.f32.mrb[57].mxu0  ;;  %v11180_v43 = vadd.f32 %v6634_v39, %v6633_v37  ;;  %v5993_v37 = vld [vmem:[%s13836_s3 + $0x608] sm:$0xff]  ;;  %v6011_v39 = vld [vmem:[%s13836_s3 + $0x698] sm:$0xff] }
 0x20b   : > { %v11182_v44 = vadd.f32 %v6813_v40, %v6812_v38  ;;  %2636 = vmatmul.mubr.f32.vlgmr.msra.gmra.mrb[84].mxu1 %v918_v42  ;;  %v6010_v38 = vld [vmem:[%s13836_s3 + $0x690] sm:$0xff]  ;;  %v8751_v40 = vpack.c.bf16 %v5993_v37, %v5992_v36  ;;  %v5995_v42 = vld [vmem:[%s13836_s3 + $0x618] sm:$0xff]  ;;  %v8773_v37 = vpack.c.bf16 %v6021_v31, %v6020_v30 }
 0x20c   : > { %8153 = vmatmul.mubr.f32.gmra.mrb[134].mxu0 %v1585_v48  ;;  %2640 = vmatprep.mubr.f32.mxu1 %v934_v49  ;;  %v6013_v48 = vld [vmem:[%s13836_s3 + $0x6a8] sm:$0xff] }
 0x20d   : > { %8695 = vmatpush3.bf16.msra.mxu1 %v8694_v41  ;;  %8155 = vmatprep.mubr.msk.f32.mxu0 %vm9746_vm0, %v11098_v45  ;;  %v5994_v41 = vld [vmem:[%s13836_s3 + $0x610] sm:$0xff] }
 0x20e   : > { %8696 = vmatprep.subr.bf16.mxu1 %v9745_v35  ;;  %v8755_v55 = vpack.c.bf16 %v5995_v42, %v5994_v41  ;;  %v6023_v41 = vld [vmem:[%s13836_s3 + $0x6f8] sm:$0xff]  ;;  %v1567_v31 = vld [vmem:[#allocation2 + $0xc3] ss:$2 sm:$0xff] }
 0x20f   : > { %2641 = vmatmul.mubr.f32.gmra.mrb[86].mxu1 %v920_v51 }
 0x210   : > { %8156 = vmatmul.mubr.f32.gmra.mrb[136].mxu0 %v1587_v56  ;;  %2645 = vmatprep.mubr.f32.mxu1 %v936_v57 }
 0x211   : > { %8698 = vmatpush3.bf16.msra.mxu1 %v8697_v50 }
 0x212   : > { %8699 = vmatprep.subr.bf16.mxu1 %v9745_v35 }
 0x213   : > { %2646 = vmatmul.mubr.f32.gmra.mrb[88].mxu1 %v922_v59  ;;  %v5996_v59 = vld [vmem:[%s13836_s3 + $0x620] sm:$0xff] }
 0x214   : > { %2650 = vmatprep.mubr.f32.mxu1 %v938_v62  ;;  %v6636_v63 = vpop.f32.mrb[6].mxu1  ;;  %v6014_v62 = vld [vmem:[%s13836_s3 + $0x6b0] sm:$0xff] }
 0x215   : > { %v6815_v0 = vpop.f32.mrb[58].mxu0  ;;  %8701 = vmatpush3.bf16.msra.mxu1 %v8700_v58  ;;  %v6637_v1 = vpop.f32.mrb[7].mxu1  ;;  %v8757_v58 = vpack.c.bf16 %v6013_v48, %v6012_v47 }
 0x216   : > { %v6816_v2 = vpop.f32.mrb[59].mxu0  ;;  %8702 = vmatprep.subr.bf16.mxu1 %v9745_v35  ;;  %v11207_v4 = vadd.f32 %v6637_v1, %v6636_v63  ;;  %v6015_v63 = vld [vmem:[%s13836_s3 + $0x6b8] sm:$0xff] }
 0x217   : > { %v11209_v5 = vadd.f32 %v6816_v2, %v6815_v0  ;;  %2651 = vmatmul.mubr.f32.gmra.mrb[90].mxu1 %v924_v3  ;;  %v8759_v0 = vpack.c.bf16 %v5997_v60, %v5996_v59  ;;  %v8761_v1 = vpack.c.bf16 %v6015_v63, %v6014_v62  ;;  %v5998_v2 = vld [vmem:[%s13836_s3 + $0x630] sm:$0xff] }
 0x218   : > { %2655 = vmatprep.mubr.f32.mxu1 %v940_v8  ;;  %v978_v3 = vld [vmem:[#allocation2 + $0x64] ss:$2 sm:$0xff] }
 0x219   : > { %8704 = vmatpush3.bf16.msra.mxu1 %v8703_v21  ;;  %v5999_v21 = vld [vmem:[%s13836_s3 + $0x638] sm:$0xff] }
 0x21a   : > { %8705 = vmatprep.subr.bf16.mxu1 %v9745_v35  ;;  %v8763_v8 = vpack.c.bf16 %v5999_v21, %v5998_v2 }
 0x21b   : > { %2656 = vmatmul.mubr.f32.gmra.mrb[92].mxu1 %v926_v10  ;;  %v6000_v10 = vld [vmem:[%s13836_s3 + $0x640] sm:$0xff] }
 0x21c   : > { %2660 = vmatprep.mubr.f32.mxu1 %v942_v13  ;;  %v6018_v13 = vld [vmem:[%s13836_s3 + $0x6d0] sm:$0xff] }
 0x21d   : > { %8707 = vmatpush3.bf16.msra.mxu1 %v8706_v9  ;;  %v8765_v9 = vpack.c.bf16 %v6017_v7, %v6016_v6 }
 0x21e   : > { %8708 = vmatprep.subr.bf16.mxu1 %v9745_v35 }
 0x21f   : > { %2661 = vmatmul.mubr.f32.gmra.mrb[94].mxu1 %v928_v15 }
 0x220   : > { %2665 = vmatprep.mubr.f32.mxu1 %v944_v18  ;;  %v6639_v22 = vpop.f32.mrb[8].mxu1 }
 0x221   : > { %v6818_v23 = vpop.f32.mrb[60].mxu0  ;;  %8710 = vmatpush3.bf16.msra.mxu1 %v8709_v14  ;;  %v6640_v24 = vpop.f32.mrb[9].mxu1  ;;  %v6019_v14 = vld [vmem:[%s13836_s3 + $0x6d8] sm:$0xff] }
 0x222   : > { %v6819_v25 = vpop.f32.mrb[61].mxu0  ;;  %8711 = vmatprep.subr.bf16.mxu1 %v9745_v35  ;;  %v11232_v27 = vadd.f32 %v6640_v24, %v6639_v22  ;;  %v8767_v22 = vpack.c.bf16 %v6001_v11, %v6000_v10 }
 0x223   : > { %v11234_v28 = vadd.f32 %v6819_v25, %v6818_v23  ;;  %2666 = vmatmul.mubr.f32.gmra.mrb[96].mxu1 %v930_v52  ;;  %v8769_v25 = vpack.c.bf16 %v6019_v14, %v6018_v13  ;;  %v6003_v52 = vld [vmem:[%s13836_s3 + $0x658] sm:$0xff] }
 0x224   : > { %8084 = vmatprep.mubr.msk.f32.mxu1 %vm9746_vm0, %v11098_v45 }
 0x225   : > { %8713 = vmatpush3.bf16.msra.mxu1 %v8712_v26  ;;  %v6002_v26 = vld [vmem:[%s13836_s3 + $0x650] sm:$0xff] }
 0x226   : > { %8714 = vmatprep.subr.bf16.mxu1 %v9745_v35  ;;  %v8753_v35 = vpack.c.bf16 %v6011_v39, %v6010_v38  ;;  %v6004_v38 = vld [vmem:[%s13836_s3 + $0x660] sm:$0xff]  ;;  %v6005_v39 = vld [vmem:[%s13836_s3 + $0x668] sm:$0xff] }
 0x227   : > { %v8775_v48 = vpack.c.bf16 %v6005_v39, %v6004_v38 }
 0x229   : > { %8716 = vmatpush3.bf16.msra.mxu1 %v8715_v33 }
 0x22a   : > { %8750 = vmatprep.subr.bf16.mxu1 %v8749_v34  ;;  %v8771_v34 = vpack.c.bf16 %v6003_v52, %v6002_v26 }
 0x22c   : > { %8085 = vmatmul.mubr.f32.vlgmr.msra.gmra.mrb[98].mxu1 %v974_v46  ;;  %v6642_v49 = vpop.f32.mrb[10].mxu1 }
 0x22d   : > { %v6821_v50 = vpop.f32.mrb[62].mxu0  ;;  %8752 = vmatpush3.bf16.msra.mxu1 %v8751_v40  ;;  %8087 = vmatprep.mubr.msk.f32.mxu1 %vm9746_vm0, %v11098_v45  ;;  %v6643_v51 = vpop.f32.mrb[11].mxu1  ;;  %v984_v40 = vld [vmem:[#allocation2 + $0xf4] ss:$2 sm:$0xff] }
 0x22e   : > { %v6822_v54 = vpop.f32.mrb[63].mxu0  ;;  %8754 = vmatprep.subr.bf16.mxu1 %v8753_v35  ;;  %v11277_v56 = vadd.f32 %v6643_v51, %v6642_v49  ;;  %v6022_v35 = vld [vmem:[%s13836_s3 + $0x6f0] sm:$0xff] }
 0x22f   : > { %v11279_v57 = vadd.f32 %v6822_v54, %v6821_v50  ;;  %v8777_v50 = vpack.c.bf16 %v6023_v41, %v6022_v35  ;;  %v6006_v51 = vld [vmem:[%s13836_s3 + $0x670] sm:$0xff]  ;;  %v6007_v54 = vld [vmem:[%s13836_s3 + $0x678] sm:$0xff] }
 0x230   : > { %8088 = vmatmul.mubr.f32.gmra.mrb[100].mxu1 %v976_v61  ;;  %v8779_v61 = vpack.c.bf16 %v6007_v54, %v6006_v51 }
 0x231   : > { %8756 = vmatpush3.bf16.msra.mxu1 %v8755_v55  ;;  %8090 = vmatprep.mubr.msk.f32.mxu1 %vm9746_vm0, %v11098_v45  ;;  %v986_v55 = vld [vmem:[#allocation2 + $0x124] ss:$2 sm:$0xff] }
 0x232   : > { %8758 = vmatprep.subr.bf16.mxu1 %v8757_v58 }
 0x234   : > { %8091 = vmatmul.mubr.f32.gmra.mrb[102].mxu1 %v978_v3 }
 0x235   : > { %8760 = vmatpush3.bf16.msra.mxu1 %v8759_v0  ;;  %8093 = vmatprep.mubr.msk.f32.mxu1 %vm9746_vm0, %v11098_v45 }
 0x236   : > { %8762 = vmatprep.subr.bf16.mxu1 %v8761_v1 }
 0x238   : > { %8094 = vmatmul.mubr.f32.gmra.mrb[104].mxu1 %v980_v12  ;;  %v6645_v15 = vpop.f32.mrb[12].mxu1 }
 0x239   : > { %v6824_v16 = vpop.f32.mrb[64].mxu0  ;;  %8764 = vmatpush3.bf16.msra.mxu1 %v8763_v8  ;;  %8096 = vmatprep.mubr.msk.f32.mxu1 %vm9746_vm0, %v11098_v45  ;;  %v6646_v17 = vpop.f32.mrb[13].mxu1  ;;  %v1547_v8 = vld [vmem:[#allocation2 + $0x32] ss:$2 sm:$0xff] }
 0x23a   : > { %v6825_v18 = vpop.f32.mrb[65].mxu0  ;;  %8766 = vmatprep.subr.bf16.mxu1 %v8765_v9  ;;  %v11323_v23 = vadd.f32 %v6646_v17, %v6645_v15  ;;  %v1563_v9 = vld [vmem:[#allocation2 + $0x63] ss:$2 sm:$0xff]  ;;  %v1565_v17 = vld [vmem:[#allocation2 + $0x93] ss:$2 sm:$0xff] }
 0x23b   : > { %v11325_v24 = vadd.f32 %v6825_v18, %v6824_v16  ;;  %v1549_v16 = vld [vmem:[#allocation2 + $0x62] ss:$2 sm:$0xff] }
 0x23c   : > { %8097 = vmatmul.mubr.f32.gmra.mrb[106].mxu1 %v982_v29  ;;  %v6680_v32 = vpop.f32.mrb[14].mxu1 }
 0x23d   : > { %8768 = vmatpush3.bf16.msra.mxu1 %v8767_v22  ;;  %8099 = vmatprep.mubr.msk.f32.mxu1 %vm9746_vm0, %v11098_v45  ;;  %v6681_v33 = vpop.f32.mrb[15].mxu1 }
 0x23e   : > { %8770 = vmatprep.subr.bf16.mxu1 %v8769_v25  ;;  %v6682_v36 = vadd.f32 %v6681_v33, %v6680_v32 }
 0x240   : > { %8100 = vmatmul.mubr.f32.gmra.mrb[108].mxu1 %v984_v40  ;;  %v6683_v42 = vpop.f32.mrb[16].mxu1  ;;  %v11354_v46 = vadd.f32 %v6682_v36, %v11109_v53  ;;  %v1561_v53 = vld [vmem:[#allocation2 + $0x33] ss:$2 sm:$0xff] }
 0x241   : > { %8772 = vmatpush3.bf16.msra.mxu1 %v8771_v34  ;;  %8102 = vmatprep.mubr.msk.f32.mxu1 %vm9746_vm0, %v11098_v45  ;;  %v6684_v47 = vpop.f32.mrb[17].mxu1  ;;  %v1569_v40 = vld [vmem:[#allocation2 + $0xf3] ss:$2 sm:$0xff] }
 0x242   : > { %8774 = vmatprep.subr.bf16.mxu1 %v8773_v37  ;;  %v6685_v49 = vadd.f32 %v6684_v47, %v6683_v42 }
 0x244   : > { %8103 = vmatmul.mubr.f32.gmra.mrb[110].mxu1 %v986_v55  ;;  %v6686_v58 = vpop.f32.mrb[18].mxu1  ;;  %v6827_v59 = vpop.f32.mrb[66].mxu0  ;;  %v11365_v45 = vadd.f32 %v6685_v49, %v11151_v19  ;;  %v1571_v49 = vld [vmem:[#allocation2 + $0x123] ss:$2 sm:$0xff] }
 0x245   : > { %8776 = vmatpush3.bf16.msra.mxu1 %v8775_v48  ;;  %3035 = vmatprep.mubr.f32.mxu1 %v1561_v53  ;;  %v6687_v60 = vpop.f32.mrb[19].mxu1  ;;  %v6828_v62 = vpop.f32.mrb[67].mxu0  ;;  %v1555_v48 = vld [vmem:[#allocation2 + $0xf2] ss:$2 sm:$0xff] }
 0x246   : > { %8778 = vmatprep.subr.bf16.mxu1 %v8777_v50  ;;  %v6688_v63 = vadd.f32 %v6687_v60, %v6686_v58  ;;  %v11367_v0 = vadd.f32 %v6828_v62, %v6827_v59  ;;  %v1557_v58 = vld [vmem:[#allocation2 + $0x122] ss:$2 sm:$0xff] }
 0x248   : > { %v6689_v1 = vpop.f32.mrb[20].mxu1  ;;  %v6885_v2 = vpop.f32.mrb[68].mxu0  ;;  %v11370_v21 = vadd.f32 %v6688_v63, %v11180_v43 }
 0x249   : > { %8780 = vmatpush3.bf16.msra.mxu1 %v8779_v61  ;;  %v6690_v3 = vpop.f32.mrb[21].mxu1  ;;  %v6886_v6 = vpop.f32.mrb[69].mxu0 }
 0x24a   : > { %v6691_v7 = vadd.f32 %v6690_v3, %v6689_v1  ;;  %v11372_v19 = vadd.f32 %v6886_v6, %v6885_v2  ;;  %v1559_v2 = vld [vmem:[#allocation2 + $0x152] ss:$2 sm:$0xff] }
 0x24c   : > { %3036 = vmatmul.mubr.f32.vlgmr.msra.gmra.mrb[112].mxu1 %v1547_v8  ;;  %v6692_v10 = vpop.f32.mrb[22].mxu1  ;;  %v6888_v11 = vpop.f32.mrb[70].mxu0  ;;  %v11375_v12 = vadd.f32 %v6691_v7, %v11207_v4  ;;  %v1551_v4 = vld [vmem:[#allocation2 + $0x92] ss:$2 sm:$0xff] }
 0x24d   : > { %3040 = vmatprep.mubr.f32.mxu1 %v1563_v9  ;;  %v6693_v13 = vpop.f32.mrb[23].mxu1  ;;  %v6889_v14 = vpop.f32.mrb[71].mxu0 }
 0x24e   : > { %v6694_v15 = vadd.f32 %v6693_v13, %v6692_v10  ;;  %v11377_v43 = vadd.f32 %v6889_v14, %v6888_v11 }
 0x250   : > { %3041 = vmatmul.mubr.f32.gmra.mrb[114].mxu1 %v1549_v16  ;;  %v6695_v18 = vpop.f32.mrb[24].mxu1  ;;  %v6891_v22 = vpop.f32.mrb[72].mxu0  ;;  %v1405_v25 = vadd.f32 %v6694_v15, %v11232_v27  ;;  %v1553_v27 = vld [vmem:[#allocation2 + $0xc2] ss:$2 sm:$0xff] }
 0x251   : > { %3045 = vmatprep.mubr.f32.mxu1 %v1565_v17  ;;  %v6696_v26 = vpop.f32.mrb[25].mxu1  ;;  %v6892_v52 = vpop.f32.mrb[73].mxu0 }
 0x252   : > { %v6697_v29 = vadd.f32 %v6696_v26, %v6695_v18  ;;  %v11380_v30 = vadd.f32 %v6892_v52, %v6891_v22 }
 0x254   : > { %3046 = vmatmul.mubr.f32.gmra.mrb[116].mxu1 %v1551_v4  ;;  %v6698_v32 = vpop.f32.mrb[26].mxu1  ;;  %v6894_v33 = vpop.f32.mrb[74].mxu0  ;;  %v1410_v34 = vadd.f32 %v6697_v29, %v11277_v56 }
 0x255   : > { %3050 = vmatprep.mubr.f32.mxu1 %v1567_v31  ;;  %v6699_v36 = vpop.f32.mrb[27].mxu1  ;;  %v6895_v37 = vpop.f32.mrb[75].mxu0 }
 0x256   : > { %v6700_v38 = vadd.f32 %v6699_v36, %v6698_v32  ;;  %v11383_v39 = vadd.f32 %v6895_v37, %v6894_v33 }
 0x258   : > { %3051 = vmatmul.mubr.f32.gmra.mrb[118].mxu1 %v1553_v27  ;;  %v6897_v35 = vpop.f32.mrb[76].mxu0  ;;  %v1415_v41 = vadd.f32 %v6700_v38, %v11323_v23  ;;  %v1573_v23 = vld [vmem:[#allocation2 + $0x153] ss:$2 sm:$0xff] }
 0x259   : > { %3055 = vmatprep.mubr.f32.mxu1 %v1569_v40  ;;  %v6898_v42 = vpop.f32.mrb[77].mxu0 }
 0x25a   : > { %v11386_v47 = vadd.f32 %v6898_v42, %v6897_v35 }
 0x25c   : > { %3056 = vmatmul.mubr.f32.gmra.mrb[120].mxu1 %v1555_v48  ;;  %v1484_v56 = vpop.f32.mrb[28].mxu1  ;;  %v6900_v50 = vpop.f32.mrb[78].mxu0 }
 0x25d   : > { %3060 = vmatprep.mubr.f32.mxu1 %v1571_v49  ;;  %v11389_v51 = vadd.f32 %v1484_v56, %v11354_v46  ;;  %v7927_v54 = vpop.f32.mrb[29].mxu1  ;;  %v6901_v55 = vpop.f32.mrb[79].mxu0 }
 0x25e   : > { %v11391_v53 = vadd.f32 %v6901_v55, %v6900_v50 }
 0x260   : > { %3061 = vmatmul.mubr.f32.gmra.mrb[122].mxu1 %v1557_v58  ;;  %v1489_v59 = vpop.f32.mrb[30].mxu1  ;;  %v6903_v60 = vpop.f32.mrb[80].mxu0 }
 0x261   : > { %3065 = vmatprep.mubr.f32.mxu1 %v1573_v23  ;;  %v11394_v61 = vadd.f32 %v1489_v59, %v11365_v45  ;;  %v7930_v62 = vpop.f32.mrb[31].mxu1  ;;  %v6904_v63 = vpop.f32.mrb[81].mxu0 }
 0x262   : > { %v11396_v1 = vadd.f32 %v6904_v63, %v6903_v60 }
 0x264   : > { %3066 = vmatmul.mubr.f32.gmra.mrb[124].mxu1 %v1559_v2  ;;  %v1494_v46 = vpop.f32.mrb[32].mxu1 }
 0x265   : > { %v11399_v3 = vadd.f32 %v1494_v46, %v11370_v21  ;;  %v7933_v6 = vpop.f32.mrb[33].mxu1 }
 0x268   : > { %v1499_v7 = vpop.f32.mrb[34].mxu1  ;;  %v11401_v8 = vpop.f32.mrb[82].mxu0 }
 0x269   : > { %v11404_v9 = vadd.f32 %v1499_v7, %v11375_v12  ;;  %v7936_v10 = vpop.f32.mrb[35].mxu1  ;;  %v8033_v45 = vpop.f32.mrb[83].mxu0 }
 0x26c   : > { %v1504_v11 = vpop.f32.mrb[36].mxu1  ;;  %v11406_v13 = vpop.f32.mrb[84].mxu0 }
 0x26d   : > { %v11408_v14 = vadd.f32 %v1504_v11, %v1405_v25  ;;  %v7939_v15 = vpop.f32.mrb[37].mxu1  ;;  %v8036_v16 = vpop.f32.mrb[85].mxu0 }
 0x270   : > { %v1509_v17 = vpop.f32.mrb[38].mxu1  ;;  %v11410_v18 = vpop.f32.mrb[86].mxu0 }
 0x271   : > { %v11412_v21 = vadd.f32 %v1509_v17, %v1410_v34  ;;  %v7942_v22 = vpop.f32.mrb[39].mxu1  ;;  %v8039_v26 = vpop.f32.mrb[87].mxu0 }
 0x274   : > { %v1514_v52 = vpop.f32.mrb[40].mxu1  ;;  %v11414_v29 = vpop.f32.mrb[88].mxu0 }
 0x275   : > { %v11416_v12 = vadd.f32 %v1514_v52, %v1415_v41  ;;  %v7945_v4 = vpop.f32.mrb[41].mxu1  ;;  %v8042_v31 = vpop.f32.mrb[89].mxu0 }
 0x278   : > { %v11418_v32 = vpop.f32.mrb[90].mxu0 }
 0x279   : > { %v8045_v25 = vpop.f32.mrb[91].mxu0 }
 0x27c   : > { %v6756_v33 = vpop.f32.mrb[42].mxu1  ;;  %v11420_v36 = vpop.f32.mrb[92].mxu0 }
 0x27d   : > { %v6757_v37 = vpop.f32.mrb[43].mxu1  ;;  %v8048_v38 = vpop.f32.mrb[93].mxu0 }
 0x27e   : > { %v6758_v27 = vadd.f32 %v6757_v37, %v6756_v33  ;;  %v6218_v38 = vld [vmem:[%s13838_s5 + $0x308] sm:$0xff] }
 0x280   : > { %v6759_v34 = vpop.f32.mrb[44].mxu1  ;;  %v11422_v40 = vpop.f32.mrb[94].mxu0  ;;  %v1987_v35 = vadd.f32 %v11153_v20, %v6758_v27 }
 0x281   : > { %v6760_v42 = vpop.f32.mrb[45].mxu1  ;;  %v8051_v48 = vpop.f32.mrb[95].mxu0 }
 0x282   : > { %v6761_v41 = vadd.f32 %v6760_v42, %v6759_v34  ;;  %v6250_v42 = vld [vmem:[%s13838_s5 + $0x408] sm:$0xff] }
 0x283   : > { %v6202_v48 = vld [vmem:[%s13838_s5 + $0x288] sm:$0xff] }
 0x284   : > { %v6762_v49 = vpop.f32.mrb[46].mxu1  ;;  %v11426_v56 = vadd.f32 %v11182_v44, %v6761_v41 }
 0x285   : > { %v6763_v50 = vpop.f32.mrb[47].mxu1 }
 0x286   : > { %v6764_v54 = vadd.f32 %v6763_v50, %v6762_v49 }
 0x288   : > { %v6765_v55 = vpop.f32.mrb[48].mxu1  ;;  %v11429_v58 = vadd.f32 %v11209_v5, %v6764_v54  ;;  %v6233_v54 = vld [vmem:[%s13838_s5 + $0x380] sm:$0xff] }
 0x289   : > { %v7067_v23 = vpop.f32.mrb[96].mxu0  ;;  %v6766_v59 = vpop.f32.mrb[49].mxu1 }
 0x28a   : > { %v6767_v60 = vadd.f32 %v6766_v59, %v6765_v55  ;;  %v7068_v62 = vpop.f32.mrb[97].mxu0  ;;  %v6234_v55 = vld [vmem:[%s13838_s5 + $0x388] sm:$0xff] }
 0x28b   : > { %v11431_v63 = vadd.f32 %v7068_v62, %v7067_v23  ;;  %v8839_v59 = vpack.c.bf16 %v6234_v55, %v6233_v54 }
 0x28c   : > { %v6768_v20 = vpop.f32.mrb[50].mxu1  ;;  %v11434_v2 = vadd.f32 %v11234_v28, %v6767_v60 }
 0x28d   : > { %v7070_v46 = vpop.f32.mrb[98].mxu0  ;;  %v6769_v6 = vpop.f32.mrb[51].mxu1 }
 0x28e   : > { %v6770_v44 = vadd.f32 %v6769_v6, %v6768_v20  ;;  %v7071_v7 = vpop.f32.mrb[99].mxu0 }
 0x28f   : > { %v11436_v10 = vadd.f32 %v7071_v7, %v7070_v46  ;;  %v6219_v7 = vld [vmem:[%s13838_s5 + $0x310] sm:$0xff] }
 0x290   : > { %v6771_v45 = vpop.f32.mrb[52].mxu1  ;;  %v11439_v5 = vadd.f32 %v11279_v57, %v6770_v44  ;;  %v6217_v57 = vld [vmem:[%s13838_s5 + $0x300] sm:$0xff] }
 0x291   : > { %v7073_v11 = vpop.f32.mrb[100].mxu0  ;;  %v6772_v15 = vpop.f32.mrb[53].mxu1  ;;  %v8805_v34 = vpack.c.bf16 %v6218_v38, %v6217_v57 }
 0x292   : > { %v6773_v16 = vadd.f32 %v6772_v15, %v6771_v45  ;;  %v7074_v17 = vpop.f32.mrb[101].mxu0  ;;  %v6220_v45 = vld [vmem:[%s13838_s5 + $0x318] sm:$0xff] }
 0x293   : > { %v11441_v22 = vadd.f32 %v7074_v17, %v7073_v11  ;;  %8806 = vmatprep.subr.bf16.mxu1 %v8805_v34  ;;  %v6251_v11 = vld [vmem:[%s13838_s5 + $0x410] sm:$0xff]  ;;  %v8809_v15 = vpack.c.bf16 %v6220_v45, %v6219_v7 }
 0x294   : > { %v6774_v26 = vpop.f32.mrb[54].mxu1  ;;  %v11444_v28 = vadd.f32 %v11325_v24, %v6773_v16  ;;  %v6249_v24 = vld [vmem:[%s13838_s5 + $0x400] sm:$0xff] }
 0x295   : > { %v7076_v52 = vpop.f32.mrb[102].mxu0  ;;  %v6775_v4 = vpop.f32.mrb[55].mxu1  ;;  %v8837_v49 = vpack.c.bf16 %v6250_v42, %v6249_v24 }
 0x296   : > { %v6776_v31 = vadd.f32 %v6775_v4, %v6774_v26  ;;  %v7077_v25 = vpop.f32.mrb[103].mxu0 }
 0x297   : > { %v11446_v33 = vadd.f32 %v7077_v25, %v7076_v52  ;;  %8838 = vmatprep.subr.bf16.mxu0 %v8837_v49 }
 0x298   : > { %v11449_v37 = vadd.f32 %v11367_v0, %v6776_v31  ;;  %v6201_v0 = vld [vmem:[%s13838_s5 + $0x280] sm:$0xff]  ;;  %8840 = vmatpush3.bf16.msra.mxu0 %v8839_v59 }
 0x299   : > { %v7079_v27 = vpop.f32.mrb[104].mxu0  ;;  %v8807_v50 = vpack.c.bf16 %v6202_v48, %v6201_v0 }
 0x29a   : > { %v7080_v41 = vpop.f32.mrb[105].mxu0 }
 0x29b   : > { %v11475_v23 = vadd.f32 %v7080_v41, %v7079_v27  ;;  %8808 = vmatpush3.bf16.msra.mxu1 %v8807_v50 }
 0x29c   : > { %8810 = vmatprep.subr.bf16.mxu1 %v8809_v15  ;;  %v6253_v15 = vld [vmem:[%s13838_s5 + $0x420] sm:$0xff] }
 0x29d   : > { %v2086_v60 = vpop.f32.mrb[56].mxu1  ;;  %v7082_v62 = vpop.f32.mrb[106].mxu0 }
 0x29e   : > { %v2087_v20 = vadd.f32 %v2086_v60, %v1987_v35  ;;  %v7980_v46 = vpop.f32.mrb[57].mxu1  ;;  %v7083_v6 = vpop.f32.mrb[107].mxu0  ;;  %v6252_v35 = vld [vmem:[%s13838_s5 + $0x418] sm:$0xff]  ;;  %v6235_v60 = vld [vmem:[%s13838_s5 + $0x390] sm:$0xff] }
 0x29f   : > { %v11477_v44 = vadd.f32 %v7083_v6, %v7082_v62  ;;  %v8841_v26 = vpack.c.bf16 %v6252_v35, %v6251_v11  ;;  %v6221_v46 = vld [vmem:[%s13838_s5 + $0x320] sm:$0xff]  ;;  %v6222_v6 = vld [vmem:[%s13838_s5 + $0x328] sm:$0xff] }
 0x2a0   : > { %v8813_v11 = vpack.c.bf16 %v6222_v6, %v6221_v46  ;;  %v6254_v35 = vld [vmem:[%s13838_s5 + $0x428] sm:$0xff]  ;;  %v6207_v6 = vld [vmem:[%s13838_s5 + $0x2b0] sm:$0xff] }
 0x2a1   : > { %v2091_v16 = vpop.f32.mrb[58].mxu1  ;;  %v7085_v17 = vpop.f32.mrb[108].mxu0  ;;  %8842 = vmatprep.subr.bf16.mxu0 %v8841_v26 }
 0x2a2   : > { %v2092_v52 = vadd.f32 %v2091_v16, %v11426_v56  ;;  %v7983_v4 = vpop.f32.mrb[59].mxu1  ;;  %v7086_v31 = vpop.f32.mrb[109].mxu0 }
 0x2a3   : > { %v11492_v25 = vadd.f32 %v7086_v31, %v7085_v17  ;;  %v8845_v31 = vpack.c.bf16 %v6254_v35, %v6253_v15  ;;  %v6225_v15 = vld [vmem:[%s13838_s5 + $0x340] sm:$0xff]  ;;  %v6226_v35 = vld [vmem:[%s13838_s5 + $0x348] sm:$0xff] }
 0x2a5   : > { %v2096_v57 = vpop.f32.mrb[60].mxu1 }
 0x2a6   : > { %v2097_v38 = vadd.f32 %v2096_v57, %v11429_v58  ;;  %v7986_v24 = vpop.f32.mrb[61].mxu1  ;;  %v6203_v58 = vld [vmem:[%s13838_s5 + $0x290] sm:$0xff] }
 0x2a7   : > { %v6205_v24 = vld [vmem:[%s13838_s5 + $0x2a0] sm:$0xff] }
 0x2a9   : > { %v2101_v27 = vpop.f32.mrb[62].mxu1 }
 0x2aa   : > { %v11496_v34 = vadd.f32 %v2101_v27, %v11434_v2  ;;  %v7143_v42 = vpop.f32.mrb[110].mxu0  ;;  %v7989_v0 = vpop.f32.mrb[63].mxu1  ;;  %v6204_v2 = vld [vmem:[%s13838_s5 + $0x298] sm:$0xff]  ;;  %v6206_v27 = vld [vmem:[%s13838_s5 + $0x2a8] sm:$0xff] }
 0x2ab   : > { %v7144_v48 = vpop.f32.mrb[111].mxu0  ;;  %v6238_v0 = vld [vmem:[%s13838_s5 + $0x3a8] sm:$0xff] }
 0x2ac   : > { %v7145_v41 = vadd.f32 %v7144_v48, %v7143_v42  ;;  %v8815_v42 = vpack.c.bf16 %v6206_v27, %v6205_v24  ;;  %v6223_v48 = vld [vmem:[%s13838_s5 + $0x330] sm:$0xff] }
 0x2ad   : > { %v2106_v49 = vpop.f32.mrb[64].mxu1 }
 0x2ae   : > { %v11498_v56 = vadd.f32 %v7145_v41, %v2087_v20  ;;  %v11501_v50 = vadd.f32 %v2106_v49, %v11439_v5  ;;  %v7146_v54 = vpop.f32.mrb[112].mxu0  ;;  %v7992_v55 = vpop.f32.mrb[65].mxu1  ;;  %v8811_v20 = vpack.c.bf16 %v6204_v2, %v6203_v58  ;;  %v6236_v5 = vld [vmem:[%s13838_s5 + $0x398] sm:$0xff] }
 0x2af   : > { %v7147_v59 = vpop.f32.mrb[113].mxu0  ;;  %v8843_v45 = vpack.c.bf16 %v6236_v5, %v6235_v60  ;;  %v6224_v41 = vld [vmem:[%s13838_s5 + $0x338] sm:$0xff] }
 0x2b0   : > { %v7148_v62 = vadd.f32 %v7147_v59, %v7146_v54  ;;  %8812 = vmatpush3.bf16.msra.mxu1 %v8811_v20  ;;  %v8817_v55 = vpack.c.bf16 %v6224_v41, %v6223_v48  ;;  %v6255_v59 = vld [vmem:[%s13838_s5 + $0x430] sm:$0xff]  ;;  %v6256_v58 = vld [vmem:[%s13838_s5 + $0x438] sm:$0xff]  ;;  %v6241_v48 = vld [vmem:[%s13838_s5 + $0x3c0] sm:$0xff] }
 0x2b1   : > { %v2111_v7 = vpop.f32.mrb[66].mxu1  ;;  %8844 = vmatpush3.bf16.msra.mxu0 %v8843_v45  ;;  %8814 = vmatprep.subr.bf16.mxu1 %v8813_v11  ;;  %v8849_v5 = vpack.c.bf16 %v6256_v58, %v6255_v59  ;;  %v6240_v11 = vld [vmem:[%s13838_s5 + $0x3b8] sm:$0xff] }
 0x2b2   : > { %v11527_v16 = vadd.f32 %v7148_v62, %v2092_v52  ;;  %v11530_v17 = vadd.f32 %v2111_v7, %v11444_v28  ;;  %v7149_v26 = vpop.f32.mrb[114].mxu0  ;;  %v7995_v4 = vpop.f32.mrb[67].mxu1  ;;  %v6237_v28 = vld [vmem:[%s13838_s5 + $0x3a0] sm:$0xff]  ;;  %8846 = vmatprep.subr.bf16.mxu0 %v8845_v31  ;;  %v6208_v7 = vld [vmem:[%s13838_s5 + $0x2b8] sm:$0xff] }
 0x2b3   : > { %v7150_v57 = vpop.f32.mrb[115].mxu0  ;;  %v8847_v54 = vpack.c.bf16 %v6238_v0, %v6237_v28  ;;  %v8819_v45 = vpack.c.bf16 %v6208_v7, %v6207_v6  ;;  %v8821_v4 = vpack.c.bf16 %v6226_v35, %v6225_v15  ;;  %v6257_v31 = vld [vmem:[%s13838_s5 + $0x440] sm:$0xff]  ;;  %v6210_v0 = vld [vmem:[%s13838_s5 + $0x2c8] sm:$0xff]  ;;  %v6212_v15 = vld [vmem:[%s13838_s5 + $0x2d8] sm:$0xff] }
 0x2b4   : > { %v7151_v52 = vadd.f32 %v7150_v57, %v7149_v26  ;;  %8816 = vmatpush3.bf16.msra.mxu1 %v8815_v42  ;;  %v6258_v57 = vld [vmem:[%s13838_s5 + $0x448] sm:$0xff]  ;;  %v6209_v42 = vld [vmem:[%s13838_s5 + $0x2c0] sm:$0xff] }
 0x2b5   : > { %v2116_v49 = vpop.f32.mrb[68].mxu1  ;;  %8848 = vmatpush3.bf16.msra.mxu0 %v8847_v54  ;;  %8818 = vmatprep.subr.bf16.mxu1 %v8817_v55  ;;  %v8853_v28 = vpack.c.bf16 %v6258_v57, %v6257_v31  ;;  %v8823_v41 = vpack.c.bf16 %v6210_v0, %v6209_v42  ;;  %v6227_v54 = vld [vmem:[%s13838_s5 + $0x350] sm:$0xff]  ;;  %v6228_v55 = vld [vmem:[%s13838_s5 + $0x358] sm:$0xff]  ;;  %v6229_v31 = vld [vmem:[%s13838_s5 + $0x360] sm:$0xff] }
 0x2b6   : > { %v11556_v2 = vadd.f32 %v7151_v52, %v2097_v38  ;;  %v11559_v60 = vadd.f32 %v2116_v49, %v11449_v37  ;;  %v7152_v62 = vpop.f32.mrb[116].mxu0  ;;  %v7998_v20 = vpop.f32.mrb[69].mxu1  ;;  %v6239_v37 = vld [vmem:[%s13838_s5 + $0x3b0] sm:$0xff]  ;;  %8850 = vmatprep.subr.bf16.mxu0 %v8849_v5  ;;  %v6242_v49 = vld [vmem:[%s13838_s5 + $0x3c8] sm:$0xff]  ;;  %v6260_v5 = vld [vmem:[%s13838_s5 + $0x458] sm:$0xff] }
 0x2b7   : > { %v7153_v46 = vpop.f32.mrb[117].mxu0  ;;  %v8851_v26 = vpack.c.bf16 %v6240_v11, %v6239_v37  ;;  %v8855_v58 = vpack.c.bf16 %v6242_v49, %v6241_v48  ;;  %v6259_v20 = vld [vmem:[%s13838_s5 + $0x450] sm:$0xff]  ;;  %v6230_v57 = vld [vmem:[%s13838_s5 + $0x368] sm:$0xff]  ;;  %v6261_v0 = vld [vmem:[%s13838_s5 + $0x460] sm:$0xff] }
 0x2b8   : > { %v7154_v38 = vadd.f32 %v7153_v46, %v7152_v62  ;;  %8820 = vmatpush3.bf16.msra.mxu1 %v8819_v45  ;;  %v8825_v62 = vpack.c.bf16 %v6228_v55, %v6227_v54  ;;  %v8857_v37 = vpack.c.bf16 %v6260_v5, %v6259_v20  ;;  %v6211_v11 = vld [vmem:[%s13838_s5 + $0x2d0] sm:$0xff]  ;;  %v8829_v42 = vpack.c.bf16 %v6230_v57, %v6229_v31  ;;  %v6262_v48 = vld [vmem:[%s13838_s5 + $0x468] sm:$0xff] }
 0x2b9   : > { %8852 = vmatpush3.bf16.msra.mxu0 %v8851_v26  ;;  %8822 = vmatprep.subr.bf16.mxu1 %v8821_v4  ;;  %v8827_v26 = vpack.c.bf16 %v6212_v15, %v6211_v11  ;;  %v6244_v4 = vld [vmem:[%s13838_s5 + $0x3d8] sm:$0xff]  ;;  %v8861_v54 = vpack.c.bf16 %v6262_v48, %v6261_v0  ;;  %v6246_v5 = vld [vmem:[%s13838_s5 + $0x3e8] sm:$0xff]  ;;  %v6263_v15 = vld [vmem:[%s13838_s5 + $0x470] sm:$0xff] }
 0x2ba   : > { %v11586_v24 = vadd.f32 %v7154_v38, %v11496_v34  ;;  %v7155_v27 = vpop.f32.mrb[118].mxu0  ;;  %8854 = vmatprep.subr.bf16.mxu0 %v8853_v28  ;;  %v6215_v57 = vld [vmem:[%s13838_s5 + $0x2f0] sm:$0xff] }
 0x2bb   : > { %v7156_v52 = vpop.f32.mrb[119].mxu0 }
 0x2bc   : > { %v7157_v34 = vadd.f32 %v7156_v52, %v7155_v27  ;;  %8824 = vmatpush3.bf16.msra.mxu1 %v8823_v41 }
 0x2bd   : > { %v6938_v59 = vpop.f32.mrb[70].mxu1  ;;  %8856 = vmatpush3.bf16.msra.mxu0 %v8855_v58  ;;  %8826 = vmatprep.subr.bf16.mxu1 %v8825_v62  ;;  %v6213_v58 = vld [vmem:[%s13838_s5 + $0x2e0] sm:$0xff] }
 0x2be   : > { %v11613_v46 = vadd.f32 %v7157_v34, %v11501_v50  ;;  %v7158_v6 = vpop.f32.mrb[120].mxu0  ;;  %v6939_v7 = vpop.f32.mrb[71].mxu1  ;;  %v6243_v50 = vld [vmem:[%s13838_s5 + $0x3d0] sm:$0xff]  ;;  %8858 = vmatprep.subr.bf16.mxu0 %v8857_v37  ;;  %v6245_v62 = vld [vmem:[%s13838_s5 + $0x3e0] sm:$0xff] }
 0x2bf   : > { %v6940_v38 = vadd.f32 %v6939_v7, %v6938_v59  ;;  %v7159_v45 = vpop.f32.mrb[121].mxu0  ;;  %v8859_v52 = vpack.c.bf16 %v6244_v4, %v6243_v50  ;;  %v6232_v7 = vld [vmem:[%s13838_s5 + $0x378] sm:$0xff] }
 0x2c0   : > { %v7160_v35 = vadd.f32 %v7159_v45, %v7158_v6  ;;  %8828 = vmatpush3.bf16.msra.mxu1 %v8827_v26  ;;  %v6231_v6 = vld [vmem:[%s13838_s5 + $0x370] sm:$0xff]  ;;  %v8863_v45 = vpack.c.bf16 %v6246_v5, %v6245_v62  ;;  %v6264_v50 = vld [vmem:[%s13838_s5 + $0x478] sm:$0xff] }
 0x2c1   : > { %v2438_v27 = vadd.f32 %v6940_v38, %v11372_v19  ;;  %v6941_v28 = vpop.f32.mrb[72].mxu1  ;;  %8860 = vmatpush3.bf16.msra.mxu0 %v8859_v52  ;;  %8830 = vmatprep.subr.bf16.mxu1 %v8829_v42  ;;  %v8833_v11 = vpack.c.bf16 %v6232_v7, %v6231_v6  ;;  %v8865_v4 = vpack.c.bf16 %v6264_v50, %v6263_v15  ;;  %v6265_v52 = vld [vmem:[%s13838_s5 + $0x480] sm:$0xff]  ;;  %v6266_v42 = vld [vmem:[%s13838_s5 + $0x488] sm:$0xff] }
 0x2c2   : > { %v11641_v34 = vadd.f32 %v7160_v35, %v11530_v17  ;;  %v7161_v41 = vpop.f32.mrb[122].mxu0  ;;  %v6942_v49 = vpop.f32.mrb[73].mxu1  ;;  %v6214_v17 = vld [vmem:[%s13838_s5 + $0x2e8] sm:$0xff]  ;;  %8862 = vmatprep.subr.bf16.mxu0 %v8861_v54  ;;  %v6377_v54 = vld [vmem:[%s13838_s5 + $0x800] sm:$0xff] }
 0x2c3   : > { %v11644_v19 = vadd.f32 %v11401_v8, %v2438_v27  ;;  %v6943_v55 = vadd.f32 %v6942_v49, %v6941_v28  ;;  %v7162_v59 = vpop.f32.mrb[123].mxu0  ;;  %v8831_v8 = vpack.c.bf16 %v6214_v17, %v6213_v58  ;;  %v6216_v27 = vld [vmem:[%s13838_s5 + $0x2f8] sm:$0xff]  ;;  %v11696_v49 = vpack.c.bf16 %v6266_v42, %v6265_v52 }
 0x2c4   : > { %v7163_v20 = vadd.f32 %v7162_v59, %v7161_v41  ;;  %v8835_v28 = vpack.c.bf16 %v6216_v27, %v6215_v57 }
 0x2c5   : > { %v2443_v37 = vadd.f32 %v6943_v55, %v11377_v43  ;;  %v6944_v38 = vpop.f32.mrb[74].mxu1  ;;  %8832 = vmatpush3.bf16.msra.mxu1 %v8831_v8  ;;  %8864 = vmatpush3.bf16.msra.mxu0 %v8863_v45  ;;  %v6378_v55 = vld [vmem:[%s13838_s5 + $0x808] sm:$0xff] }
 0x2c6   : > { %v11672_v35 = vadd.f32 %v7163_v20, %v11559_v60  ;;  %v6945_v26 = vpop.f32.mrb[75].mxu1  ;;  %8834 = vmatprep.subr.bf16.mxu1 %v8833_v11  ;;  %v6247_v60 = vld [vmem:[%s13838_s5 + $0x3f0] sm:$0xff]  ;;  %8866 = vmatprep.subr.bf16.mxu0 %v8865_v4  ;;  %v8901_v58 = vpack.c.bf16 %v6378_v55, %v6377_v54 }
 0x2c7   : > { %v11675_v31 = vadd.f32 %v11406_v13, %v2443_v37  ;;  %v6946_v43 = vadd.f32 %v6945_v26, %v6944_v38  ;;  %v6248_v13 = vld [vmem:[%s13838_s5 + $0x3f8] sm:$0xff] }
 0x2c8   : > { %v8867_v41 = vpack.c.bf16 %v6248_v13, %v6247_v60 }
 0x2c9   : > { %v2448_v0 = vadd.f32 %v6946_v43, %v11380_v30  ;;  %v6947_v48 = vpop.f32.mrb[76].mxu1  ;;  %8836 = vmatpush3.bf16.msra.mxu1 %v8835_v28 }
 0x2ca   : > { %v6948_v59 = vpop.f32.mrb[77].mxu1  ;;  %8868 = vmatpush3.bf16.msra.mxu0 %v8867_v41  ;;  %8870 = vmatprep.subr.bf16.mxu1 %v11696_v49 }
 0x2cb   : > { %v11705_v17 = vadd.f32 %v11410_v18, %v2448_v0  ;;  %v11707_v62 = vpop.f32.mrb[124].mxu0  ;;  %v6949_v30 = vadd.f32 %v6948_v59, %v6947_v48  ;;  %8902 = vmatprep.subr.bf16.mxu0 %v8901_v58 }
 0x2cc   : > { %v8139_v20 = vpop.f32.mrb[125].mxu0 }
 0x2cd   : > { %v2453_v8 = vadd.f32 %v6949_v30, %v11383_v39  ;;  %v6950_v5 = vpop.f32.mrb[78].mxu1 }
 0x2ce   : > { %v6951_v6 = vpop.f32.mrb[79].mxu1 }
 0x2cf   : > { %v11712_v7 = vadd.f32 %v11414_v29, %v2453_v8  ;;  %v11714_v37 = vpop.f32.mrb[126].mxu0  ;;  %v6952_v38 = vadd.f32 %v6951_v6, %v6950_v5 }
 0x2d0   : > { %v8142_v18 = vpop.f32.mrb[127].mxu0 }
 0x2d1   : > { %v2458_v45 = vadd.f32 %v6952_v38, %v11386_v47  ;;  %v6953_v11 = vpop.f32.mrb[80].mxu1 }
 0x2d2   : > { %v6954_v15 = vpop.f32.mrb[81].mxu1 }
 0x2d3   : > { %v11718_v50 = vadd.f32 %v11418_v32, %v2458_v45  ;;  %v11720_v26 = vpop.f32.mrb[128].mxu0  ;;  %v6955_v4 = vadd.f32 %v6954_v15, %v6953_v11 }
 0x2d4   : > { %v8145_v39 = vpop.f32.mrb[129].mxu0 }
 0x2d5   : > { %v2463_v43 = vadd.f32 %v6955_v4, %v11391_v53  ;;  %v6956_v57 = vpop.f32.mrb[82].mxu1 }
 0x2d6   : > { %v6957_v29 = vpop.f32.mrb[83].mxu1 }
 0x2d7   : > { %v11724_v27 = vadd.f32 %v11420_v36, %v2463_v43  ;;  %v11726_v60 = vpop.f32.mrb[130].mxu0  ;;  %v6958_v28 = vadd.f32 %v6957_v29, %v6956_v57 }
 0x2d8   : > { %v8148_v47 = vpop.f32.mrb[131].mxu0 }
 0x2d9   : > { %v2468_v13 = vadd.f32 %v6958_v28, %v11396_v1 }
 0x2db   : > { %v11730_v32 = vadd.f32 %v11422_v40, %v2468_v13  ;;  %v11732_v52 = vpop.f32.mrb[132].mxu0 }
 0x2dc   : > { %v8151_v42 = vpop.f32.mrb[133].mxu0 }
 0x2de   : > { %v7014_v0 = vpop.f32.mrb[84].mxu1 }
 0x2df   : > { %v11734_v48 = vpop.f32.mrb[134].mxu0  ;;  %v7015_v53 = vpop.f32.mrb[85].mxu1 }
 0x2e0   : > { %v7016_v41 = vadd.f32 %v7015_v53, %v7014_v0  ;;  %v8154_v54 = vpop.f32.mrb[135].mxu0 }
 0x2e2   : > { %v2638_v36 = vadd.f32 %v7016_v41, %v11389_v51  ;;  %v7017_v55 = vpop.f32.mrb[86].mxu1 }
 0x2e3   : > { %v11737_v59 = vpop.f32.mrb[136].mxu0  ;;  %v7018_v58 = vpop.f32.mrb[87].mxu1 }
 0x2e4   : > { %v7019_v30 = vadd.f32 %v7018_v58, %v7017_v55  ;;  %v8157_v1 = vpop.f32.mrb[137].mxu0  ;;  %v2738_v40 = vadd.f32 %v11431_v63, %v2638_v36 }
 0x2e6   : > { %v2643_v20 = vadd.f32 %v7019_v30, %v11394_v61  ;;  %v7020_v8 = vpop.f32.mrb[88].mxu1 }
 0x2e7   : > { %v7021_v5 = vpop.f32.mrb[89].mxu1 }
 0x2e8   : > { %v7022_v6 = vadd.f32 %v7021_v5, %v7020_v8  ;;  %v2743_v38 = vadd.f32 %v11436_v10, %v2643_v20 }
 0x2ea   : > { %v2648_v18 = vadd.f32 %v7022_v6, %v11399_v3  ;;  %v7023_v45 = vpop.f32.mrb[90].mxu1 }
 0x2eb   : > { %v7024_v11 = vpop.f32.mrb[91].mxu1 }
 0x2ec   : > { %v7025_v51 = vadd.f32 %v7024_v11, %v7023_v45  ;;  %v2748_v15 = vadd.f32 %v11441_v22, %v2648_v18 }
 0x2ee   : > { %v2653_v4 = vadd.f32 %v7025_v51, %v11404_v9  ;;  %v7026_v39 = vpop.f32.mrb[92].mxu1 }
 0x2ef   : > { %v7027_v43 = vpop.f32.mrb[93].mxu1 }
 0x2f0   : > { %v7028_v57 = vadd.f32 %v7027_v43, %v7026_v39  ;;  %v2753_v63 = vadd.f32 %v11446_v33, %v2653_v4 }
 0x2f2   : > { %v2658_v61 = vadd.f32 %v7028_v57, %v11408_v14  ;;  %v7029_v29 = vpop.f32.mrb[94].mxu1 }
 0x2f3   : > { %v7030_v28 = vpop.f32.mrb[95].mxu1 }
 0x2f4   : > { %v7031_v47 = vadd.f32 %v7030_v28, %v7029_v29  ;;  %v2758_v10 = vadd.f32 %v11475_v23, %v2658_v61  ;;  %v11762_v28 = vld [vmem:[%s13837_s4] ss:$0 sm:$0xff] }
 0x2f6   : > { %v2663_v3 = vadd.f32 %v7031_v47, %v11412_v21  ;;  %v7032_v13 = vpop.f32.mrb[96].mxu1 }
 0x2f7   : > { %v7033_v42 = vpop.f32.mrb[97].mxu1 }
 0x2f8   : > { %v7034_v0 = vadd.f32 %v7033_v42, %v7032_v13  ;;  %v2763_v22 = vadd.f32 %v11477_v44, %v2663_v3 }
 0x2fa   : > { %v2668_v9 = vadd.f32 %v7034_v0, %v11416_v12 }
 0x2fc   : > { %v2768_v53 = vadd.f32 %v11492_v25, %v2668_v9 }
 0x2ff   : > { %v2837_v41 = vpop.f32.mrb[98].mxu1 }
 0x300   : > { %v2838_v33 = vadd.f32 %v2837_v41, %v2738_v40  ;;  %v8086_v54 = vpop.f32.mrb[99].mxu1 }
 0x303   : > { %v2842_v14 = vpop.f32.mrb[100].mxu1 }
 0x304   : > { %v2843_v36 = vadd.f32 %v2842_v14, %v2743_v38  ;;  %v8089_v55 = vpop.f32.mrb[101].mxu1 }
 0x307   : > { %v2847_v58 = vpop.f32.mrb[102].mxu1 }
 0x308   : > { %v2848_v30 = vadd.f32 %v2847_v58, %v2748_v15  ;;  %v8092_v23 = vpop.f32.mrb[103].mxu1 }
 0x30b   : > { %v2852_v1 = vpop.f32.mrb[104].mxu1 }
 0x30c   : > { %v2853_v21 = vadd.f32 %v2852_v1, %v2753_v63  ;;  %v8095_v20 = vpop.f32.mrb[105].mxu1 }
 0x30f   : > { %v2857_v8 = vpop.f32.mrb[106].mxu1 }
 0x310   : > { %v2858_v5 = vadd.f32 %v2857_v8, %v2758_v10  ;;  %v8098_v6 = vpop.f32.mrb[107].mxu1 }
 0x313   : > { %v2862_v44 = vpop.f32.mrb[108].mxu1 }
 0x314   : > { %v11752_v18 = vadd.f32 %v2862_v44, %v2763_v22  ;;  %v8101_v12 = vpop.f32.mrb[109].mxu1 }
 0x315   : > { %v6268_v12 = vld [vmem:[%s13838_s5 + $0x498] sm:$0xff] }
 0x317   : > { %v2867_v25 = vpop.f32.mrb[110].mxu1 }
 0x318   : > { %v11754_v45 = vadd.f32 %v2867_v25, %v2768_v53  ;;  %v8104_v40 = vpop.f32.mrb[111].mxu1  ;;  %v6379_v25 = vld [vmem:[%s13838_s5 + $0x810] sm:$0xff] }
 0x319   : > { %v6380_v40 = vld [vmem:[%s13838_s5 + $0x818] sm:$0xff] }
 0x31f   : > { %v7196_v11 = vpop.f32.mrb[112].mxu1 }
 0x320   : > { %v7197_v38 = vpop.f32.mrb[113].mxu1 }
 0x321   : > { %v7198_v51 = vadd.f32 %v7197_v38, %v7196_v11 }
 0x323   : > { %v3038_v15 = vadd.f32 %v7198_v51, %v11498_v56  ;;  %v7199_v4 = vpop.f32.mrb[114].mxu1 }
 0x324   : > { %v7200_v39 = vpop.f32.mrb[115].mxu1 }
 0x325   : > { %v3138_v43 = vadd.f32 %v11707_v62, %v3038_v15  ;;  %v7201_v57 = vadd.f32 %v7200_v39, %v7199_v4  ;;  %v6364_v39 = vld [vmem:[%s13838_s5 + $0x798] sm:$0xff] }
 0x327   : > { %v3171_v63 = vadd.f32 %v3138_v43, %v2838_v33  ;;  %v3043_v61 = vadd.f32 %v7201_v57, %v11527_v16  ;;  %v7202_v29 = vpop.f32.mrb[116].mxu1  ;;  %v6269_v43 = vld [vmem:[%s13838_s5 + $0x4a0] sm:$0xff]  ;;  %v6270_v57 = vld [vmem:[%s13838_s5 + $0x4a8] sm:$0xff] }
 0x328   : > { %v7203_v47 = vpop.f32.mrb[117].mxu1 }
 0x329   : > { %v3178_v10 = vadd.f32 %v3171_v63, %v11644_v19  ;;  %v3143_v3 = vadd.f32 %v11714_v37, %v3043_v61  ;;  %v7204_v56 = vadd.f32 %v7203_v47, %v7202_v29 }
 0x32b   : > { %v3192_v13 = vadd.f32 %v11762_v28, %v3178_v10  ;;  %v3172_v42 = vadd.f32 %v3143_v3, %v2843_v36  ;;  %v3048_v62 = vadd.f32 %v7204_v56, %v11556_v2  ;;  %v7205_v0 = vpop.f32.mrb[118].mxu1 }
 0x32c   : > { %v7206_v22 = vpop.f32.mrb[119].mxu1 }
 0x32d   : > { %v3199_v16 = vmax.f32 %v3192_v13, 0.0  ;;  %v3179_v9 = vadd.f32 %v3172_v42, %v11675_v31  ;;  %v3148_v53 = vadd.f32 %v11720_v26, %v3048_v62  ;;  %v7207_v41 = vadd.f32 %v7206_v22, %v7205_v0  ;;  %v6381_v13 = vld [vmem:[%s13838_s5 + $0x820] sm:$0xff]  ;;  %v6382_v42 = vld [vmem:[%s13838_s5 + $0x828] sm:$0xff] }
 0x32e   : > { %v8877_v22 = vpack.c.bf16 %v6270_v57, %v6269_v43 }
 0x32f   : > { %3206 = vst [vmem:[#allocation3] sm:$0xff] %v3199_v16  ;;  %v3193_v33 = vadd.f32 %v11762_v28, %v3179_v9  ;;  %v3173_v19 = vadd.f32 %v3148_v53, %v2848_v30  ;;  %v3053_v37 = vadd.f32 %v7207_v41, %v11586_v24  ;;  %v7208_v54 = vpop.f32.mrb[120].mxu1  ;;  %v8909_v16 = vpack.c.bf16 %v6382_v42, %v6381_v13  ;;  %v6365_v9 = vld [vmem:[%s13838_s5 + $0x7a0] sm:$0xff]  ;;  %v6366_v53 = vld [vmem:[%s13838_s5 + $0x7a8] sm:$0xff]  ;;  %v6272_v41 = vld [vmem:[%s13838_s5 + $0x4b8] sm:$0xff] }
 0x330   : > { %v7209_v14 = vpop.f32.mrb[121].mxu1  ;;  %v6375_v42 = vld [vmem:[%s13838_s5 + $0x7f0] sm:$0xff] }
 0x331   : > { %v3200_v55 = vmax.f32 %v3193_v33, 0.0  ;;  %v3180_v36 = vadd.f32 %v3173_v19, %v11705_v17  ;;  %v3153_v2 = vadd.f32 %v11726_v60, %v3053_v37  ;;  %v7210_v58 = vadd.f32 %v7209_v14, %v7208_v54  ;;  %v6361_v17 = vld [vmem:[%s13838_s5 + $0x780] sm:$0xff]  ;;  %v6362_v60 = vld [vmem:[%s13838_s5 + $0x788] sm:$0xff]  ;;  %v6383_v33 = vld [vmem:[%s13838_s5 + $0x830] sm:$0xff] }
 0x332   : > { %v8903_v38 = vpack.c.bf16 %v6362_v60, %v6361_v17  ;;  %v6384_v19 = vld [vmem:[%s13838_s5 + $0x838] sm:$0xff]  ;;  %v8911_v14 = vpack.c.bf16 %v6366_v53, %v6365_v9 }
 0x333   : > { %3207 = vst [vmem:[#allocation3 + $0x18] sm:$0xff] %v3200_v55  ;;  %v3194_v31 = vadd.f32 %v11762_v28, %v3180_v36  ;;  %v3174_v23 = vadd.f32 %v3153_v2, %v2853_v21  ;;  %v3058_v26 = vadd.f32 %v7210_v58, %v11613_v46  ;;  %v7211_v1 = vpop.f32.mrb[122].mxu1  ;;  %v6267_v46 = vld [vmem:[%s13838_s5 + $0x490] sm:$0xff]  ;;  %v6368_v55 = vld [vmem:[%s13838_s5 + $0x7b8] sm:$0xff]  ;;  %v6273_v36 = vld [vmem:[%s13838_s5 + $0x4c0] sm:$0xff] }
 0x334   : > { %v7212_v20 = vpop.f32.mrb[123].mxu1  ;;  %v8873_v47 = vpack.c.bf16 %v6268_v12, %v6267_v46  ;;  %v6274_v2 = vld [vmem:[%s13838_s5 + $0x4c8] sm:$0xff]  ;;  %v6387_v12 = vld [vmem:[%s13838_s5 + $0x850] sm:$0xff] }
 0x335   : > { %v3201_v8 = vmax.f32 %v3194_v31, 0.0  ;;  %v3181_v30 = vadd.f32 %v3174_v23, %v11712_v7  ;;  %v3158_v24 = vadd.f32 %v11732_v52, %v3058_v26  ;;  %v7213_v6 = vadd.f32 %v7212_v20, %v7211_v1 }
 0x336   : > { %v8913_v20 = vpack.c.bf16 %v6384_v19, %v6383_v33  ;;  %v8885_v60 = vpack.c.bf16 %v6274_v2, %v6273_v36  ;;  %v6411_v33 = vld [vmem:[%s13838_s5 + $0x910] sm:$0xff]  ;;  %v6412_v19 = vld [vmem:[%s13838_s5 + $0x918] sm:$0xff] }
 0x337   : > { %3208 = vst [vmem:[#allocation3 + $0x30] sm:$0xff] %v3201_v8  ;;  %v3195_v21 = vadd.f32 %v11762_v28, %v3181_v30  ;;  %v3175_v44 = vadd.f32 %v3158_v24, %v2858_v5  ;;  %v3063_v7 = vadd.f32 %v7213_v6, %v11641_v34  ;;  %v7214_v52 = vpop.f32.mrb[124].mxu1  ;;  %v6363_v5 = vld [vmem:[%s13838_s5 + $0x790] sm:$0xff]  ;;  %v6385_v8 = vld [vmem:[%s13838_s5 + $0x840] sm:$0xff]  ;;  %v6386_v30 = vld [vmem:[%s13838_s5 + $0x848] sm:$0xff] }
 0x338   : > { %v7215_v11 = vpop.f32.mrb[125].mxu1  ;;  %v8917_v46 = vpack.c.bf16 %v6386_v30, %v6385_v8  ;;  %v6443_v2 = vld [vmem:[%s13838_s5 + $0xa10] sm:$0xff]  ;;  %v6461_v30 = vld [vmem:[%s13838_s5 + $0xaa0] sm:$0xff] }
 0x339   : > { %v3202_v34 = vmax.f32 %v3195_v21, 0.0  ;;  %v3182_v51 = vadd.f32 %v3175_v44, %v11718_v50  ;;  %v3163_v15 = vadd.f32 %v11734_v48, %v3063_v7  ;;  %v7216_v4 = vadd.f32 %v7215_v11, %v7214_v52  ;;  %v6369_v21 = vld [vmem:[%s13838_s5 + $0x7c0] sm:$0xff]  ;;  %v6370_v44 = vld [vmem:[%s13838_s5 + $0x7c8] sm:$0xff]  ;;  %v6275_v7 = vld [vmem:[%s13838_s5 + $0x4d0] sm:$0xff] }
 0x33a   : > { %v3317_v63 = vld [vmem:[#allocation3 + $0x19] ss:$2 sm:$0xff]  ;;  %v3313_v29 = vld [vmem:[#allocation3 + $0x18] ss:$2 sm:$0xff]  ;;  %v8905_v50 = vpack.c.bf16 %v6380_v40, %v6379_v25  ;;  %v6276_v52 = vld [vmem:[%s13838_s5 + $0x4d8] sm:$0xff]  ;;  %v8919_v40 = vpack.c.bf16 %v6370_v44, %v6369_v21 }
 0x33b   : > { %v3325_v61 = vld [vmem:[#allocation3 + $0x1b] ss:$2 sm:$0xff]  ;;  %3209 = vst [vmem:[#allocation3 + $0x48] sm:$0xff] %v3202_v34  ;;  %v3196_v48 = vadd.f32 %v11762_v28, %v3182_v51  ;;  %v3176_v10 = vadd.f32 %v3163_v15, %v11752_v18  ;;  %v3068_v3 = vadd.f32 %v7216_v4, %v11672_v35  ;;  %3477 = vmatprep.mubr.f32.mxu1 %v3317_v63  ;;  %v3321_v56 = vld [vmem:[#allocation3 + $0x1a] ss:$2 sm:$0xff]  ;;  %v6277_v51 = vld [vmem:[%s13838_s5 + $0x4e0] sm:$0xff] }
 0x33c   : > { %3552 = vmatprep.mubr.f32.mxu0 %v3325_v61  ;;  %3478 = vmatmul.mubr.f32.vlgmr.msra.gmra.mrb[126].mxu1 %v3313_v29  ;;  %v8907_v35 = vpack.c.bf16 %v6364_v39, %v6363_v5  ;;  %v3329_v6 = vld [vmem:[#allocation3 + $0x1c] ss:$2 sm:$0xff]  ;;  %v8889_v11 = vpack.c.bf16 %v6276_v52, %v6275_v7  ;;  %v6389_v4 = vld [vmem:[%s13838_s5 + $0x860] sm:$0xff] }
 0x33d   : > { %3553 = vmatmul.mubr.f32.vlgmr.msra.gmra.mrb[138].mxu0 %v3321_v56  ;;  %v3203_v62 = vmax.f32 %v3196_v48, 0.0  ;;  %v3183_v0 = vadd.f32 %v3176_v10, %v11724_v27  ;;  %v3168_v18 = vadd.f32 %v11737_v59, %v3068_v3  ;;  %8872 = vmatpush3.bf16.msra.mxu1 %v11696_v49  ;;  %v6271_v49 = vld [vmem:[%s13838_s5 + $0x4b0] sm:$0xff]  ;;  %v6388_v25 = vld [vmem:[%s13838_s5 + $0x858] sm:$0xff]  ;;  %v6278_v15 = vld [vmem:[%s13838_s5 + $0x4e8] sm:$0xff] }
 0x33e   : > { %8904 = vmatpush3.bf16.msra.mxu0 %v8903_v38  ;;  %8874 = vmatprep.subr.bf16.mxu1 %v8873_v47  ;;  %v8881_v1 = vpack.c.bf16 %v6272_v41, %v6271_v49  ;;  %v8921_v38 = vpack.c.bf16 %v6388_v25, %v6387_v12  ;;  %v6371_v5 = vld [vmem:[%s13838_s5 + $0x7d0] sm:$0xff]  ;;  %v6372_v34 = vld [vmem:[%s13838_s5 + $0x7d8] sm:$0xff]  ;;  %v6390_v39 = vld [vmem:[%s13838_s5 + $0x868] sm:$0xff]  ;;  %v8893_v57 = vpack.c.bf16 %v6278_v15, %v6277_v51 }
 0x33f   : > { %8906 = vmatprep.subr.bf16.mxu0 %v8905_v50  ;;  %3210 = vst [vmem:[#allocation3 + $0x60] sm:$0xff] %v3203_v62  ;;  %v3197_v27 = vadd.f32 %v11762_v28, %v3183_v0  ;;  %v3177_v59 = vadd.f32 %v3168_v18, %v11754_v45  ;;  %v6367_v45 = vld [vmem:[%s13838_s5 + $0x7b0] sm:$0xff]  ;;  %v8923_v43 = vpack.c.bf16 %v6372_v34, %v6371_v5  ;;  %v6373_v61 = vld [vmem:[%s13838_s5 + $0x7e0] sm:$0xff]  ;;  %v6374_v29 = vld [vmem:[%s13838_s5 + $0x7e8] sm:$0xff] }
 0x340   : > { %v8915_v17 = vpack.c.bf16 %v6368_v55, %v6367_v45  ;;  %v8925_v63 = vpack.c.bf16 %v6390_v39, %v6389_v4  ;;  %v6280_v50 = vld [vmem:[%s13838_s5 + $0x4f8] sm:$0xff]  ;;  %v6391_v48 = vld [vmem:[%s13838_s5 + $0x870] sm:$0xff]  ;;  %v8927_v3 = vpack.c.bf16 %v6374_v29, %v6373_v61  ;;  %v6409_v0 = vld [vmem:[%s13838_s5 + $0x900] sm:$0xff] }
 0x341   : > { %v3204_v37 = vmax.f32 %v3197_v27, 0.0  ;;  %v3184_v54 = vadd.f32 %v3177_v59, %v11730_v32  ;;  %8876 = vmatpush3.bf16.msra.mxu1 %v8873_v47  ;;  %v6279_v47 = vld [vmem:[%s13838_s5 + $0x4f0] sm:$0xff]  ;;  %v6392_v10 = vld [vmem:[%s13838_s5 + $0x878] sm:$0xff]  ;;  %v6410_v18 = vld [vmem:[%s13838_s5 + $0x908] sm:$0xff] }
 0x342   : > { %8908 = vmatpush3.bf16.msra.mxu0 %v8907_v35  ;;  %v3319_v58 = vld [vmem:[#allocation3 + $0x49] ss:$2 sm:$0xff]  ;;  %8878 = vmatprep.subr.bf16.mxu1 %v8877_v22  ;;  %v3315_v32 = vld [vmem:[#allocation3 + $0x48] ss:$2 sm:$0xff]  ;;  %v8897_v56 = vpack.c.bf16 %v6280_v50, %v6279_v47  ;;  %v8929_v13 = vpack.c.bf16 %v6392_v10, %v6391_v48  ;;  %v8933_v9 = vpack.c.bf16 %v6410_v18, %v6409_v0  ;;  %v6394_v59 = vld [vmem:[%s13838_s5 + $0x888] sm:$0xff] }
 0x343   : > { %v3327_v31 = vld [vmem:[#allocation3 + $0x4b] ss:$2 sm:$0xff]  ;;  %8910 = vmatprep.subr.bf16.mxu0 %v8909_v16  ;;  %3211 = vst [vmem:[#allocation3 + $0x78] sm:$0xff] %v3204_v37  ;;  %v3198_v23 = vadd.f32 %v11762_v28, %v3184_v54  ;;  %3482 = vmatprep.mubr.f32.mxu1 %v3319_v58  ;;  %v3323_v26 = vld [vmem:[#allocation3 + $0x4a] ss:$2 sm:$0xff]  ;;  %v6459_v45 = vld [vmem:[%s13838_s5 + $0xa90] sm:$0xff] }
 0x344   : > { %3557 = vmatprep.mubr.f32.mxu0 %v3327_v31  ;;  %3483 = vmatmul.mubr.f32.gmra.mrb[128].mxu1 %v3315_v32  ;;  %v3744_v28 = vld [vmem:[#allocation3 + $0x49] ss:$2 sm:$0xff]  ;;  %v6442_v41 = vld [vmem:[%s13838_s5 + $0xa08] sm:$0xff]  ;;  %v6415_v25 = vld [vmem:[%s13838_s5 + $0x930] sm:$0xff] }
 0x345   : > { %3558 = vmatmul.mubr.f32.gmra.mrb[140].mxu0 %v3323_v26  ;;  %v3205_v24 = vmax.f32 %v3198_v23, 0.0  ;;  %8880 = vmatpush3.bf16.msra.mxu1 %v8877_v22  ;;  %v6376_v62 = vld [vmem:[%s13838_s5 + $0x7f8] sm:$0xff]  ;;  %v6457_v35 = vld [vmem:[%s13838_s5 + $0xa80] sm:$0xff]  ;;  %v6458_v22 = vld [vmem:[%s13838_s5 + $0xa88] sm:$0xff]  ;;  %v8937_v26 = vpack.c.bf16 %v6412_v19, %v6411_v33 }
 0x346   : > { %8912 = vmatpush3.bf16.msra.mxu0 %v8911_v14  ;;  %8190 = vmatprep.mubr.f32.mxu1 %v3329_v6  ;;  %v8931_v16 = vpack.c.bf16 %v6376_v62, %v6375_v42  ;;  %v8997_v53 = vpack.c.bf16 %v6458_v22, %v6457_v35  ;;  %v6393_v27 = vld [vmem:[%s13838_s5 + $0x880] sm:$0xff]  ;;  %v6460_v37 = vld [vmem:[%s13838_s5 + $0xa98] sm:$0xff]  ;;  %v6395_v14 = vld [vmem:[%s13838_s5 + $0x890] sm:$0xff] }
 0x347   : > { %3904 = vmatprep.mubr.f32.mxu0 %v3744_v28  ;;  %3212 = vst [vmem:[#allocation3 + $0x90] sm:$0xff] %v3205_v24  ;;  %8882 = vmatprep.subr.bf16.mxu1 %v8881_v1  ;;  %v6441_v49 = vld [vmem:[%s13838_s5 + $0xa00] sm:$0xff]  ;;  %v8935_v54 = vpack.c.bf16 %v6394_v59, %v6393_v27  ;;  %v6396_v55 = vld [vmem:[%s13838_s5 + $0x898] sm:$0xff]  ;;  %v6462_v24 = vld [vmem:[%s13838_s5 + $0xaa8] sm:$0xff] }
 0x348   : > { %8914 = vmatprep.subr.bf16.mxu0 %v8913_v20  ;;  %v8999_v36 = vpack.c.bf16 %v6442_v41, %v6441_v49  ;;  %v6444_v58 = vld [vmem:[%s13838_s5 + $0xa18] sm:$0xff]  ;;  %v6413_v31 = vld [vmem:[%s13838_s5 + $0x920] sm:$0xff]  ;;  %v6414_v20 = vld [vmem:[%s13838_s5 + $0x928] sm:$0xff]  ;;  %v8939_v28 = vpack.c.bf16 %v6396_v55, %v6395_v14  ;;  %v9005_v12 = vpack.c.bf16 %v6462_v24, %v6461_v30 }
 0x349   : > { %8884 = vmatpush3.bf16.msra.mxu1 %v8881_v1  ;;  %v3331_v32 = vld [vmem:[#allocation3 + $0x4c] ss:$2 sm:$0xff]  ;;  %v9001_v1 = vpack.c.bf16 %v6460_v37, %v6459_v45  ;;  %v3752_v6 = vld [vmem:[#allocation3 + $0x4b] ss:$2 sm:$0xff]  ;;  %v6399_v4 = vld [vmem:[%s13838_s5 + $0x8b0] sm:$0xff] }
 0x34a   : > { %8916 = vmatpush3.bf16.msra.mxu0 %v8915_v17  ;;  %8886 = vmatprep.subr.bf16.mxu1 %v8885_v60  ;;  %v3740_v23 = vld [vmem:[#allocation3 + $0x48] ss:$2 sm:$0xff]  ;;  %v3746_v8 = vld [vmem:[#allocation3 + $0x79] ss:$2 sm:$0xff]  ;;  %v3742_v52 = vld [vmem:[#allocation3 + $0x78] ss:$2 sm:$0xff] }
 0x34b   : > { %8918 = vmatprep.subr.bf16.mxu0 %v8917_v46  ;;  %v6397_v17 = vld [vmem:[%s13838_s5 + $0x8a0] sm:$0xff]  ;;  %v8941_v46 = vpack.c.bf16 %v6414_v20, %v6413_v31  ;;  %v6398_v21 = vld [vmem:[%s13838_s5 + $0x8a8] sm:$0xff]  ;;  %v6464_v5 = vld [vmem:[%s13838_s5 + $0xab8] sm:$0xff] }
 0x34c   : > { %v6445_v44 = vld [vmem:[%s13838_s5 + $0xa20] sm:$0xff]  ;;  %v6446_v7 = vld [vmem:[%s13838_s5 + $0xa28] sm:$0xff]  ;;  %v8943_v34 = vpack.c.bf16 %v6398_v21, %v6397_v17  ;;  %v6400_v39 = vld [vmem:[%s13838_s5 + $0x8b8] sm:$0xff] }
 0x34d   : > { %8888 = vmatpush3.bf16.msra.mxu1 %v8885_v60  ;;  %v9003_v60 = vpack.c.bf16 %v6444_v58, %v6443_v2  ;;  %v9007_v51 = vpack.c.bf16 %v6446_v7, %v6445_v44  ;;  %v6417_v61 = vld [vmem:[%s13838_s5 + $0x940] sm:$0xff]  ;;  %v6418_v29 = vld [vmem:[%s13838_s5 + $0x948] sm:$0xff]  ;;  %v8947_v48 = vpack.c.bf16 %v6400_v39, %v6399_v4  ;;  %v6419_v18 = vld [vmem:[%s13838_s5 + $0x950] sm:$0xff] }
 0x34e   : > { %8920 = vmatpush3.bf16.msra.mxu0 %v8919_v40  ;;  %8890 = vmatprep.subr.bf16.mxu1 %v8889_v11  ;;  %v6416_v40 = vld [vmem:[%s13838_s5 + $0x938] sm:$0xff]  ;;  %v6465_v47 = vld [vmem:[%s13838_s5 + $0xac0] sm:$0xff]  ;;  %v6466_v50 = vld [vmem:[%s13838_s5 + $0xac8] sm:$0xff] }
 0x34f   : > { %8922 = vmatprep.subr.bf16.mxu0 %v8921_v38  ;;  %v6463_v38 = vld [vmem:[%s13838_s5 + $0xab0] sm:$0xff]  ;;  %v8945_v15 = vpack.c.bf16 %v6416_v40, %v6415_v25  ;;  %v6449_v42 = vld [vmem:[%s13838_s5 + $0xa40] sm:$0xff]  ;;  %v9013_v62 = vpack.c.bf16 %v6466_v50, %v6465_v47  ;;  %v6450_v0 = vld [vmem:[%s13838_s5 + $0xa48] sm:$0xff] }
 0x350   : > { %v6420_v35 = vld [vmem:[%s13838_s5 + $0x958] sm:$0xff]  ;;  %v6467_v22 = vld [vmem:[%s13838_s5 + $0xad0] sm:$0xff]  ;;  %v6421_v45 = vld [vmem:[%s13838_s5 + $0x960] sm:$0xff] }
 0x351   : > { %8892 = vmatpush3.bf16.msra.mxu1 %v8889_v11  ;;  %v4070_v11 = vld [vmem:[#allocation3 + $0x61] ss:$2 sm:$0xff]  ;;  %v8953_v27 = vpack.c.bf16 %v6420_v35, %v6419_v18  ;;  %v6422_v37 = vld [vmem:[%s13838_s5 + $0x968] sm:$0xff]  ;;  %v6405_v58 = vld [vmem:[%s13838_s5 + $0x8e0] sm:$0xff] }
 0x352   : > { %8924 = vmatpush3.bf16.msra.mxu0 %v8923_v43  ;;  %8894 = vmatprep.subr.bf16.mxu1 %v8893_v57  ;;  %v6447_v43 = vld [vmem:[%s13838_s5 + $0xa30] sm:$0xff]  ;;  %v6404_v49 = vld [vmem:[%s13838_s5 + $0x8d8] sm:$0xff]  ;;  %v6470_v14 = vld [vmem:[%s13838_s5 + $0xae8] sm:$0xff]  ;;  %v8957_v2 = vpack.c.bf16 %v6422_v37, %v6421_v45 }
 0x353   : > { %8926 = vmatprep.subr.bf16.mxu0 %v8925_v63  ;;  %v6448_v63 = vld [vmem:[%s13838_s5 + $0xa38] sm:$0xff]  ;;  %v6403_v59 = vld [vmem:[%s13838_s5 + $0x8d0] sm:$0xff]  ;;  %v6406_v31 = vld [vmem:[%s13838_s5 + $0x8e8] sm:$0xff] }
 0x354   : > { %v9011_v10 = vpack.c.bf16 %v6448_v63, %v6447_v43  ;;  %v6451_v41 = vld [vmem:[%s13838_s5 + $0xa50] sm:$0xff]  ;;  %v6452_v19 = vld [vmem:[%s13838_s5 + $0xa58] sm:$0xff]  ;;  %v8955_v55 = vpack.c.bf16 %v6404_v49, %v6403_v59  ;;  %v8959_v24 = vpack.c.bf16 %v6406_v31, %v6405_v58  ;;  %v6425_v7 = vld [vmem:[%s13838_s5 + $0x980] sm:$0xff] }
 0x355   : > { %8896 = vmatpush3.bf16.msra.mxu1 %v8893_v57  ;;  %v9009_v57 = vpack.c.bf16 %v6464_v5, %v6463_v38  ;;  %v6424_v20 = vld [vmem:[%s13838_s5 + $0x978] sm:$0xff]  ;;  %v6407_v17 = vld [vmem:[%s13838_s5 + $0x8f0] sm:$0xff]  ;;  %v6490_v25 = vld [vmem:[%s13838_s5 + $0xb88] sm:$0xff] }
 0x356   : > { %8928 = vmatpush3.bf16.msra.mxu0 %v8927_v3  ;;  %8898 = vmatprep.subr.bf16.mxu1 %v8897_v56  ;;  %v8949_v3 = vpack.c.bf16 %v6418_v29, %v6417_v61  ;;  %v6472_v30 = vld [vmem:[%s13838_s5 + $0xaf8] sm:$0xff]  ;;  %v6491_v39 = vld [vmem:[%s13838_s5 + $0xb90] sm:$0xff]  ;;  %v6429_v50 = vld [vmem:[%s13838_s5 + $0x9a0] sm:$0xff] }
 0x357   : > { %8930 = vmatprep.subr.bf16.mxu0 %v8929_v13  ;;  %v6402_v13 = vld [vmem:[%s13838_s5 + $0x8c8] sm:$0xff]  ;;  %v6456_v44 = vld [vmem:[%s13838_s5 + $0xa78] sm:$0xff]  ;;  %v6497_v58 = vld [vmem:[%s13838_s5 + $0xbc0] sm:$0xff] }
 0x358   : > { %v6428_v4 = vld [vmem:[%s13838_s5 + $0x998] sm:$0xff]  ;;  %v6498_v31 = vld [vmem:[%s13838_s5 + $0xbc8] sm:$0xff] }
 0x359   : > { %8900 = vmatpush3.bf16.msra.mxu1 %v8897_v56  ;;  %v6401_v56 = vld [vmem:[%s13838_s5 + $0x8c0] sm:$0xff]  ;;  %v6492_v43 = vld [vmem:[%s13838_s5 + $0xb98] sm:$0xff] }
 0x35a   : > { %8932 = vmatpush3.bf16.msra.mxu0 %v8931_v16  ;;  %8934 = vmatprep.subr.bf16.mxu1 %v8933_v9  ;;  %v6468_v16 = vld [vmem:[%s13838_s5 + $0xad8] sm:$0xff]  ;;  %v8951_v9 = vpack.c.bf16 %v6402_v13, %v6401_v56  ;;  %v6430_v56 = vld [vmem:[%s13838_s5 + $0x9a8] sm:$0xff] }
 0x35b   : > { %8998 = vmatprep.subr.bf16.mxu0 %v8997_v53  ;;  %v9015_v53 = vpack.c.bf16 %v6450_v0, %v6449_v42  ;;  %v9017_v33 = vpack.c.bf16 %v6468_v16, %v6467_v22  ;;  %v3748_v63 = vld [vmem:[#allocation3 + $0x4a] ss:$2 sm:$0xff]  ;;  %v4072_v13 = vld [vmem:[#allocation3 + $0x91] ss:$2 sm:$0xff]  ;;  %v3750_v18 = vld [vmem:[#allocation3 + $0x7a] ss:$2 sm:$0xff]  ;;  %v8973_v22 = vpack.c.bf16 %v6430_v56, %v6429_v50 }
 0x35c   : > { %8191 = vmatmul.mubr.f32.vlgmr.msra.gmra.mrb[130].mxu1 %v3331_v32  ;;  %v6453_v32 = vld [vmem:[%s13838_s5 + $0xa60] sm:$0xff]  ;;  %v6476_v47 = vld [vmem:[%s13838_s5 + $0xb18] sm:$0xff]  ;;  %v6478_v16 = vld [vmem:[%s13838_s5 + $0xb28] sm:$0xff] }
 0x35d   : > { %3905 = vmatmul.mubr.f32.vlgmr.msra.gmra.mrb[142].mxu0 %v3740_v23  ;;  %8936 = vmatpush3.bf16.msra.mxu1 %v8935_v54  ;;  %v6469_v54 = vld [vmem:[%s13838_s5 + $0xae0] sm:$0xff]  ;;  %v6432_v49 = vld [vmem:[%s13838_s5 + $0x9b8] sm:$0xff] }
 0x35e   : > { %3909 = vmatprep.mubr.f32.mxu0 %v3746_v8  ;;  %3979 = vmatprep.mubr.f32.mxu1 %v3752_v6  ;;  %v9021_v23 = vpack.c.bf16 %v6470_v14, %v6469_v54  ;;  %v6471_v8 = vld [vmem:[%s13838_s5 + $0xaf0] sm:$0xff]  ;;  %v6493_v42 = vld [vmem:[%s13838_s5 + $0xba0] sm:$0xff] }
 0x35f   : > { %9000 = vmatpush3.bf16.msra.mxu0 %v8999_v36  ;;  %8938 = vmatprep.subr.bf16.mxu1 %v8937_v26  ;;  %v9019_v36 = vpack.c.bf16 %v6452_v19, %v6451_v41  ;;  %v6454_v26 = vld [vmem:[%s13838_s5 + $0xa68] sm:$0xff]  ;;  %v9025_v21 = vpack.c.bf16 %v6472_v30, %v6471_v8  ;;  %v6477_v0 = vld [vmem:[%s13838_s5 + $0xb20] sm:$0xff]  ;;  %v6496_v19 = vld [vmem:[%s13838_s5 + $0xbb8] sm:$0xff] }
 0x360   : > { %9002 = vmatprep.subr.bf16.mxu0 %v9001_v1  ;;  %v6423_v1 = vld [vmem:[%s13838_s5 + $0x970] sm:$0xff]  ;;  %v9023_v6 = vpack.c.bf16 %v6454_v26, %v6453_v32  ;;  %v9039_v45 = vpack.c.bf16 %v6478_v16, %v6477_v0  ;;  %v6481_v26 = vld [vmem:[%s13838_s5 + $0xb40] sm:$0xff]  ;;  %v6436_v30 = vld [vmem:[%s13838_s5 + $0x9d8] sm:$0xff] }
 0x361   : > { %3910 = vmatmul.mubr.f32.gmra.mrb[144].mxu0 %v3742_v52  ;;  %8940 = vmatpush3.bf16.msra.mxu1 %v8939_v28  ;;  %v8961_v28 = vpack.c.bf16 %v6424_v20, %v6423_v1  ;;  %v6426_v52 = vld [vmem:[%s13838_s5 + $0x988] sm:$0xff]  ;;  %v4078_v41 = vld [vmem:[#allocation3 + $0x63] ss:$2 sm:$0xff]  ;;  %v9045_v1 = vpack.c.bf16 %v6498_v31, %v6497_v58 }
 0x362   : > { %4230 = vmatprep.mubr.f32.mxu0 %v4070_v11  ;;  %8942 = vmatprep.subr.bf16.mxu1 %v8941_v46  ;;  %v6455_v46 = vld [vmem:[%s13838_s5 + $0xa70] sm:$0xff]  ;;  %v8965_v38 = vpack.c.bf16 %v6426_v52, %v6425_v7  ;;  %v6482_v20 = vld [vmem:[%s13838_s5 + $0xb48] sm:$0xff]  ;;  %v6501_v52 = vld [vmem:[%s13838_s5 + $0xbe0] sm:$0xff] }
 0x363   : > { %9004 = vmatpush3.bf16.msra.mxu0 %v9003_v60  ;;  %v6408_v60 = vld [vmem:[%s13838_s5 + $0x8f8] sm:$0xff]  ;;  %v9027_v11 = vpack.c.bf16 %v6456_v44, %v6455_v46  ;;  %v6479_v54 = vld [vmem:[%s13838_s5 + $0xb30] sm:$0xff]  ;;  %v6437_v44 = vld [vmem:[%s13838_s5 + $0x9e0] sm:$0xff] }
 0x364   : > { %9006 = vmatprep.subr.bf16.mxu0 %v9005_v12  ;;  %v6489_v12 = vld [vmem:[%s13838_s5 + $0xb80] sm:$0xff]  ;;  %v8963_v40 = vpack.c.bf16 %v6408_v60, %v6407_v17  ;;  %v6435_v8 = vld [vmem:[%s13838_s5 + $0x9d0] sm:$0xff]  ;;  %v6438_v7 = vld [vmem:[%s13838_s5 + $0x9e8] sm:$0xff] }
 0x365   : > { %8944 = vmatpush3.bf16.msra.mxu1 %v8943_v34  ;;  %v9029_v5 = vpack.c.bf16 %v6490_v25, %v6489_v12  ;;  %v6473_v34 = vld [vmem:[%s13838_s5 + $0xb00] sm:$0xff]  ;;  %v8985_v17 = vpack.c.bf16 %v6436_v30, %v6435_v8  ;;  %v6483_v60 = vld [vmem:[%s13838_s5 + $0xb50] sm:$0xff]  ;;  %v6502_v12 = vld [vmem:[%s13838_s5 + $0xbe8] sm:$0xff] }
 0x366   : > { %8946 = vmatprep.subr.bf16.mxu1 %v8945_v15  ;;  %v6427_v15 = vld [vmem:[%s13838_s5 + $0x990] sm:$0xff]  ;;  %v3248_v50 = vld [vmem:[%s13838_s5 + $0x80] sm:$0xff]  ;;  %v6508_v0 = vld [vmem:[%s13838_s5 + $0xc18] sm:$0xff] }
 0x367   : > { %9008 = vmatpush3.bf16.msra.mxu0 %v9007_v51  ;;  %v6474_v51 = vld [vmem:[%s13838_s5 + $0xb08] sm:$0xff]  ;;  %v8969_v29 = vpack.c.bf16 %v6428_v4, %v6427_v15  ;;  %v6503_v15 = vld [vmem:[%s13838_s5 + $0xbf0] sm:$0xff]  ;;  %v6504_v4 = vld [vmem:[%s13838_s5 + $0xbf8] sm:$0xff] }
 0x368   : > { %9010 = vmatprep.subr.bf16.mxu0 %v9009_v57  ;;  %v6475_v57 = vld [vmem:[%s13838_s5 + $0xb10] sm:$0xff]  ;;  %v9031_v61 = vpack.c.bf16 %v6474_v51, %v6473_v34  ;;  %v6440_v51 = vld [vmem:[%s13838_s5 + $0x9f8] sm:$0xff] }
 0x369   : > { %8948 = vmatpush3.bf16.msra.mxu1 %v8947_v48  ;;  %v4066_v48 = vld [vmem:[#allocation3 + $0x60] ss:$2 sm:$0xff]  ;;  %v9035_v35 = vpack.c.bf16 %v6476_v47, %v6475_v57  ;;  %v6506_v47 = vld [vmem:[%s13838_s5 + $0xc08] sm:$0xff] }
 0x36a   : > { %8950 = vmatprep.subr.bf16.mxu1 %v8949_v3  ;;  %v9033_v3 = vpack.c.bf16 %v6492_v43, %v6491_v39  ;;  %v6439_v34 = vld [vmem:[%s13838_s5 + $0x9f0] sm:$0xff] }
 0x36b   : > { %9012 = vmatpush3.bf16.msra.mxu0 %v9011_v10  ;;  %v3754_v10 = vld [vmem:[#allocation3 + $0x7b] ss:$2 sm:$0xff]  ;;  %v8993_v43 = vpack.c.bf16 %v6440_v51, %v6439_v34  ;;  %v3758_v16 = vld [vmem:[#allocation3 + $0x7c] ss:$2 sm:$0xff] }
 0x36c   : > { %9014 = vmatprep.subr.bf16.mxu0 %v9013_v62  ;;  %v6494_v62 = vld [vmem:[%s13838_s5 + $0xba8] sm:$0xff]  ;;  %v6487_v57 = vld [vmem:[%s13838_s5 + $0xb70] sm:$0xff] }
 0x36d   : > { %8952 = vmatpush3.bf16.msra.mxu1 %v8951_v9  ;;  %v6431_v9 = vld [vmem:[%s13838_s5 + $0x9b0] sm:$0xff]  ;;  %v9037_v59 = vpack.c.bf16 %v6494_v62, %v6493_v42  ;;  %v3233_v42 = vld [vmem:[%s13838_s5 + $0x8] sm:$0xff] }
 0x36e   : > { %8954 = vmatprep.subr.bf16.mxu1 %v8953_v27  ;;  %v3756_v27 = vld [vmem:[#allocation3 + $0x4c] ss:$2 sm:$0xff]  ;;  %v8977_v37 = vpack.c.bf16 %v6432_v49, %v6431_v9  ;;  %v6507_v62 = vld [vmem:[%s13838_s5 + $0xc10] sm:$0xff] }
 0x36f   : > { %9016 = vmatpush3.bf16.msra.mxu0 %v9015_v53  ;;  %v4068_v53 = vld [vmem:[#allocation3 + $0x90] ss:$2 sm:$0xff] }
 0x370   : > { %9018 = vmatprep.subr.bf16.mxu0 %v9017_v33  ;;  %v6495_v33 = vld [vmem:[%s13838_s5 + $0xbb0] sm:$0xff] }
 0x371   : > { %8956 = vmatpush3.bf16.msra.mxu1 %v8955_v55  ;;  %v9041_v14 = vpack.c.bf16 %v6496_v19, %v6495_v33  ;;  %v6480_v55 = vld [vmem:[%s13838_s5 + $0xb38] sm:$0xff]  ;;  %v3252_v19 = vld [vmem:[%s13838_s5 + $0xa0] sm:$0xff] }
 0x372   : > { %8958 = vmatprep.subr.bf16.mxu1 %v8957_v2  ;;  %v6434_v2 = vld [vmem:[%s13838_s5 + $0x9c8] sm:$0xff]  ;;  %v9043_v32 = vpack.c.bf16 %v6480_v55, %v6479_v54  ;;  %v4074_v49 = vld [vmem:[#allocation3 + $0x62] ss:$2 sm:$0xff] }
 0x373   : > { %9020 = vmatpush3.bf16.msra.mxu0 %v9019_v36  ;;  %v6433_v36 = vld [vmem:[%s13838_s5 + $0x9c0] sm:$0xff]  ;;  %v3235_v33 = vld [vmem:[%s13838_s5 + $0x18] sm:$0xff]  ;;  %v3253_v54 = vld [vmem:[%s13838_s5 + $0xa8] sm:$0xff] }
 0x374   : > { %9022 = vmatprep.subr.bf16.mxu0 %v9021_v23  ;;  %v8981_v23 = vpack.c.bf16 %v6434_v2, %v6433_v36  ;;  %v6511_v36 = vld [vmem:[%s13838_s5 + $0xc30] sm:$0xff]  ;;  %v6512_v2 = vld [vmem:[%s13838_s5 + $0xc38] sm:$0xff]  ;;  %v9101_v31 = vpack.c.bf16 %v3253_v54, %v3252_v19  ;;  %v6281_v54 = vld [vmem:[%s13838_s5 + $0x500] sm:$0xff] }
 0x375   : > { %8960 = vmatpush3.bf16.msra.mxu1 %v8959_v24  ;;  %v6499_v24 = vld [vmem:[%s13838_s5 + $0xbd0] sm:$0xff]  ;;  %v9073_v8 = vpack.c.bf16 %v6512_v2, %v6511_v36  ;;  %v6300_v2 = vld [vmem:[%s13838_s5 + $0x598] sm:$0xff] }
 0x376   : > { %8962 = vmatprep.subr.bf16.mxu1 %v8961_v28  ;;  %v9047_v28 = vpack.c.bf16 %v6482_v20, %v6481_v26  ;;  %v4076_v58 = vld [vmem:[#allocation3 + $0x92] ss:$2 sm:$0xff]  ;;  %v3217_v26 = vld [vmem:[#allocation3 + $0x1] ss:$2 sm:$0xff] }
 0x377   : > { %9024 = vmatpush3.bf16.msra.mxu0 %v9023_v6  ;;  %v6500_v6 = vld [vmem:[%s13838_s5 + $0xbd8] sm:$0xff]  ;;  %v3282_v19 = vld [vmem:[%s13838_s5 + $0x190] sm:$0xff] }
 0x378   : > { %9026 = vmatprep.subr.bf16.mxu0 %v9025_v21  ;;  %v9049_v46 = vpack.c.bf16 %v6500_v6, %v6499_v24  ;;  %v6484_v21 = vld [vmem:[%s13838_s5 + $0xb58] sm:$0xff]  ;;  %v6513_v24 = vld [vmem:[%s13838_s5 + $0xc40] sm:$0xff]  ;;  %v6514_v6 = vld [vmem:[%s13838_s5 + $0xc48] sm:$0xff] }
 0x379   : > { %8964 = vmatpush3.bf16.msra.mxu1 %v8963_v40  ;;  %v9051_v25 = vpack.c.bf16 %v6484_v21, %v6483_v60  ;;  %v8989_v40 = vpack.c.bf16 %v6438_v7, %v6437_v44  ;;  %v3255_v20 = vld [vmem:[%s13838_s5 + $0xb8] sm:$0xff]  ;;  %v3257_v21 = vld [vmem:[%s13838_s5 + $0xc8] sm:$0xff]  ;;  %v9077_v44 = vpack.c.bf16 %v6514_v6, %v6513_v24  ;;  %v6299_v36 = vld [vmem:[%s13838_s5 + $0x590] sm:$0xff] }
 0x37a   : > { %8966 = vmatprep.subr.bf16.mxu1 %v8965_v38  ;;  %v3239_v60 = vld [vmem:[%s13838_s5 + $0x38] sm:$0xff]  ;;  %v6283_v24 = vld [vmem:[%s13838_s5 + $0x510] sm:$0xff] }
 0x37b   : > { %9028 = vmatpush3.bf16.msra.mxu0 %v9027_v11  ;;  %v6485_v11 = vld [vmem:[%s13838_s5 + $0xb60] sm:$0xff]  ;;  %v6284_v6 = vld [vmem:[%s13838_s5 + $0x518] sm:$0xff] }
 0x37c   : > { %9030 = vmatprep.subr.bf16.mxu0 %v9029_v5  ;;  %3980 = vmatmul.mubr.f32.vlgmr.msra.gmra.mrb[132].mxu1 %v3748_v63  ;;  %v6486_v5 = vld [vmem:[%s13838_s5 + $0xb68] sm:$0xff]  ;;  %v9057_v63 = vpack.c.bf16 %v6504_v4, %v6503_v15  ;;  %v6517_v15 = vld [vmem:[%s13838_s5 + $0xc60] sm:$0xff] }
 0x37d   : > { %3984 = vmatprep.mubr.f32.mxu1 %v3754_v10  ;;  %8968 = vmatpush3.bf16.msra.mxu1 %v8965_v38  ;;  %v9053_v38 = vpack.c.bf16 %v6502_v12, %v6501_v52  ;;  %v9055_v39 = vpack.c.bf16 %v6486_v5, %v6485_v11  ;;  %v6515_v52 = vld [vmem:[%s13838_s5 + $0xc50] sm:$0xff]  ;;  %v6516_v12 = vld [vmem:[%s13838_s5 + $0xc58] sm:$0xff]  ;;  %v3241_v11 = vld [vmem:[%s13838_s5 + $0x48] sm:$0xff] }
 0x37e   : > { %4231 = vmatmul.mubr.f32.vlgmr.msra.gmra.mrb[146].mxu0 %v4066_v48  ;;  %8970 = vmatprep.subr.bf16.mxu1 %v8969_v29  ;;  %v3249_v48 = vld [vmem:[%s13838_s5 + $0x88] sm:$0xff]  ;;  %v3259_v5 = vld [vmem:[%s13838_s5 + $0xd8] sm:$0xff]  ;;  %v9081_v34 = vpack.c.bf16 %v6516_v12, %v6515_v52  ;;  %v9195_v12 = vpack.c.bf16 %v6284_v6, %v6283_v24  ;;  %v6293_v24 = vld [vmem:[%s13838_s5 + $0x560] sm:$0xff] }
 0x37f   : > { %4235 = vmatprep.mubr.f32.mxu0 %v4072_v13  ;;  %9032 = vmatpush3.bf16.msra.mxu0 %v9031_v61  ;;  %v6488_v61 = vld [vmem:[%s13838_s5 + $0xb78] sm:$0xff]  ;;  %v9093_v56 = vpack.c.bf16 %v3249_v48, %v3248_v50  ;;  %v3232_v13 = vld [vmem:[%s13838_s5] sm:$0xff]  ;;  %v6518_v4 = vld [vmem:[%s13838_s5 + $0xc68] sm:$0xff] }
 0x380   : > { %3985 = vmatmul.mubr.f32.gmra.mrb[134].mxu1 %v3750_v18  ;;  %9034 = vmatprep.subr.bf16.mxu0 %v9033_v3  ;;  %v9059_v10 = vpack.c.bf16 %v6488_v61, %v6487_v57  ;;  %v3250_v18 = vld [vmem:[%s13838_s5 + $0x90] sm:$0xff]  ;;  %v9095_v9 = vpack.c.bf16 %v3233_v42, %v3232_v13  ;;  %v3243_v57 = vld [vmem:[%s13838_s5 + $0x58] sm:$0xff]  ;;  %v3261_v61 = vld [vmem:[%s13838_s5 + $0xe8] sm:$0xff] }
 0x381   : > { %8225 = vmatprep.mubr.f32.mxu1 %v3756_v27  ;;  %8972 = vmatpush3.bf16.msra.mxu1 %v8969_v29  ;;  %v6505_v29 = vld [vmem:[%s13838_s5 + $0xc00] sm:$0xff]  ;;  %v6519_v50 = vld [vmem:[%s13838_s5 + $0xc70] sm:$0xff]  ;;  %v6520_v48 = vld [vmem:[%s13838_s5 + $0xc78] sm:$0xff] }
 0x382   : > { %4236 = vmatmul.mubr.f32.gmra.mrb[148].mxu0 %v4068_v53  ;;  %8974 = vmatprep.subr.bf16.mxu1 %v8973_v22  ;;  %v9061_v3 = vpack.c.bf16 %v6506_v47, %v6505_v29  ;;  %v9065_v53 = vpack.c.bf16 %v6508_v0, %v6507_v62  ;;  %v6509_v27 = vld [vmem:[%s13838_s5 + $0xc20] sm:$0xff]  ;;  %v9085_v29 = vpack.c.bf16 %v6518_v4, %v6517_v15  ;;  %v3262_v13 = vld [vmem:[%s13838_s5 + $0xf0] sm:$0xff]  ;;  %v3263_v42 = vld [vmem:[%s13838_s5 + $0xf8] sm:$0xff] }
 0x383   : > { %4305 = vmatprep.mubr.f32.mxu0 %v4078_v41  ;;  %9036 = vmatpush3.bf16.msra.mxu0 %v9035_v35  ;;  %v3251_v35 = vld [vmem:[%s13838_s5 + $0x98] sm:$0xff]  ;;  %v9089_v62 = vpack.c.bf16 %v6520_v48, %v6519_v50  ;;  %v3269_v52 = vld [vmem:[%s13838_s5 + $0x128] sm:$0xff]  ;;  %v6303_v15 = vld [vmem:[%s13838_s5 + $0x5b0] sm:$0xff] }
 0x384   : > { %9038 = vmatprep.subr.bf16.mxu0 %v9037_v59  ;;  %v6510_v59 = vld [vmem:[%s13838_s5 + $0xc28] sm:$0xff]  ;;  %v9097_v41 = vpack.c.bf16 %v3251_v35, %v3250_v18  ;;  %v3280_v18 = vld [vmem:[%s13838_s5 + $0x180] sm:$0xff]  ;;  %v6304_v4 = vld [vmem:[%s13838_s5 + $0x5b8] sm:$0xff] }
 0x385   : > { %8976 = vmatpush3.bf16.msra.mxu1 %v8973_v22  ;;  %v3234_v22 = vld [vmem:[%s13838_s5 + $0x10] sm:$0xff]  ;;  %v3281_v35 = vld [vmem:[%s13838_s5 + $0x188] sm:$0xff]  ;;  %v9201_v50 = vpack.c.bf16 %v6304_v4, %v6303_v15 }
 0x386   : > { %8978 = vmatprep.subr.bf16.mxu1 %v8977_v37  ;;  %v9099_v55 = vpack.c.bf16 %v3235_v33, %v3234_v22  ;;  %v9121_v22 = vpack.c.bf16 %v3263_v42, %v3262_v13  ;;  %v6287_v48 = vld [vmem:[%s13838_s5 + $0x530] sm:$0xff]  ;;  %v6306_v13 = vld [vmem:[%s13838_s5 + $0x5c8] sm:$0xff] }
 0x387   : > { %9040 = vmatpush3.bf16.msra.mxu0 %v9039_v45  ;;  %v4080_v45 = vld [vmem:[#allocation3 + $0x93] ss:$2 sm:$0xff] }
 0x388   : > { %9042 = vmatprep.subr.bf16.mxu0 %v9041_v14  ;;  %v9069_v14 = vpack.c.bf16 %v6510_v59, %v6509_v27  ;;  %v6298_v27 = vld [vmem:[%s13838_s5 + $0x588] sm:$0xff]  ;;  %v9125_v59 = vpack.c.bf16 %v3281_v35, %v3280_v18  ;;  %v3290_v35 = vld [vmem:[%s13838_s5 + $0x1d0] sm:$0xff] }
 0x389   : > { %8980 = vmatpush3.bf16.msra.mxu1 %v8977_v37  ;;  %v4082_v37 = vld [vmem:[#allocation3 + $0x64] ss:$2 sm:$0xff]  ;;  %v6294_v6 = vld [vmem:[%s13838_s5 + $0x568] sm:$0xff] }
 0x38a   : > { %8982 = vmatprep.subr.bf16.mxu1 %v8981_v23  ;;  %v3298_v4 = vld [vmem:[%s13838_s5 + $0x210] sm:$0xff] }
 0x38b   : > { %9044 = vmatpush3.bf16.msra.mxu0 %v9043_v32  ;;  %v3236_v32 = vld [vmem:[%s13838_s5 + $0x20] sm:$0xff] }
 0x38c   : > { %9046 = vmatprep.subr.bf16.mxu0 %v9045_v1  ;;  %v3254_v1 = vld [vmem:[%s13838_s5 + $0xb0] sm:$0xff] }
 0x38d   : > { %8984 = vmatpush3.bf16.msra.mxu1 %v8981_v23  ;;  %v3237_v23 = vld [vmem:[%s13838_s5 + $0x28] sm:$0xff] }
 0x38e   : > { %8986 = vmatprep.subr.bf16.mxu1 %v8985_v17  ;;  %v9103_v30 = vpack.c.bf16 %v3237_v23, %v3236_v32  ;;  %v3267_v32 = vld [vmem:[%s13838_s5 + $0x118] sm:$0xff]  ;;  %v4084_v23 = vld [vmem:[#allocation3 + $0x94] ss:$2 sm:$0xff] }
 0x38f   : > { %9048 = vmatpush3.bf16.msra.mxu0 %v9047_v28  ;;  %v9105_v28 = vpack.c.bf16 %v3255_v20, %v3254_v1  ;;  %v3284_v1 = vld [vmem:[%s13838_s5 + $0x1a0] sm:$0xff]  ;;  %v3285_v20 = vld [vmem:[%s13838_s5 + $0x1a8] sm:$0xff] }
 0x390   : > { %9050 = vmatprep.subr.bf16.mxu0 %v9049_v46  ;;  %v3256_v46 = vld [vmem:[%s13838_s5 + $0xc0] sm:$0xff] }
 0x391   : > { %8988 = vmatpush3.bf16.msra.mxu1 %v8985_v17  ;;  %v3238_v17 = vld [vmem:[%s13838_s5 + $0x30] sm:$0xff] }
 0x392   : > { %8990 = vmatprep.subr.bf16.mxu1 %v8989_v40  ;;  %v9107_v7 = vpack.c.bf16 %v3239_v60, %v3238_v17  ;;  %v6301_v60 = vld [vmem:[%s13838_s5 + $0x5a0] sm:$0xff] }
 0x393   : > { %9052 = vmatpush3.bf16.msra.mxu0 %v9051_v25  ;;  %v9109_v25 = vpack.c.bf16 %v3257_v21, %v3256_v46  ;;  %v6302_v46 = vld [vmem:[%s13838_s5 + $0x5a8] sm:$0xff] }
 0x394   : > { %9054 = vmatprep.subr.bf16.mxu0 %v9053_v38  ;;  %v3258_v38 = vld [vmem:[%s13838_s5 + $0xd0] sm:$0xff]  ;;  %v3219_v21 = vld [vmem:[#allocation3 + $0x31] ss:$2 sm:$0xff] }
 0x395   : > { %8992 = vmatpush3.bf16.msra.mxu1 %v8989_v40  ;;  %v3240_v40 = vld [vmem:[%s13838_s5 + $0x40] sm:$0xff] }
 0x396   : > { %8994 = vmatprep.subr.bf16.mxu1 %v8993_v43  ;;  %v9111_v51 = vpack.c.bf16 %v3241_v11, %v3240_v40  ;;  %v3287_v40 = vld [vmem:[%s13838_s5 + $0x1b8] sm:$0xff]  ;;  %v9197_v11 = vpack.c.bf16 %v6302_v46, %v6301_v60 }
 0x397   : > { %9056 = vmatpush3.bf16.msra.mxu0 %v9055_v39  ;;  %v9113_v39 = vpack.c.bf16 %v3259_v5, %v3258_v38  ;;  %v6285_v38 = vld [vmem:[%s13838_s5 + $0x520] sm:$0xff]  ;;  %v6286_v5 = vld [vmem:[%s13838_s5 + $0x528] sm:$0xff]  ;;  %v6312_v60 = vld [vmem:[%s13838_s5 + $0x5f8] sm:$0xff] }
 0x398   : > { %9058 = vmatprep.subr.bf16.mxu0 %v9057_v63  ;;  %v3260_v63 = vld [vmem:[%s13838_s5 + $0xe0] sm:$0xff] }
 0x399   : > { %8996 = vmatpush3.bf16.msra.mxu1 %v8993_v43  ;;  %v3242_v43 = vld [vmem:[%s13838_s5 + $0x50] sm:$0xff] }
 0x39a   : > { %9062 = vmatprep.subr.bf16.mxu1 %v9061_v3  ;;  %v9115_v47 = vpack.c.bf16 %v3243_v57, %v3242_v43  ;;  %v3270_v57 = vld [vmem:[%s13838_s5 + $0x130] sm:$0xff] }
 0x39b   : > { %9060 = vmatpush3.bf16.msra.mxu0 %v9059_v10  ;;  %v9117_v10 = vpack.c.bf16 %v3261_v61, %v3260_v63  ;;  %v3271_v63 = vld [vmem:[%s13838_s5 + $0x138] sm:$0xff]  ;;  %v9199_v61 = vpack.c.bf16 %v6286_v5, %v6285_v38  ;;  %v6329_v5 = vld [vmem:[%s13838_s5 + $0x680] sm:$0xff] }
 0x39c   : > { %9094 = vmatprep.subr.bf16.mxu0 %v9093_v56  ;;  %8226 = vmatmul.mubr.f32.vlgmr.msra.gmra.mrb[130].mxu1 %v3758_v16  ;;  %v3245_v56 = vld [vmem:[%s13838_s5 + $0x68] sm:$0xff]  ;;  %v3246_v16 = vld [vmem:[%s13838_s5 + $0x70] sm:$0xff] }
 0x39d   : > { %9064 = vmatpush3.bf16.msra.mxu1 %v9061_v3  ;;  %8260 = vmatprep.mubr.f32.mxu1 %v4082_v37  ;;  %v3244_v3 = vld [vmem:[%s13838_s5 + $0x60] sm:$0xff] }
 0x39e   : > { %4306 = vmatmul.mubr.f32.vlgmr.msra.gmra.mrb[150].mxu0 %v4074_v49  ;;  %9066 = vmatprep.subr.bf16.mxu1 %v9065_v53  ;;  %v9119_v0 = vpack.c.bf16 %v3245_v56, %v3244_v3  ;;  %v3264_v49 = vld [vmem:[%s13838_s5 + $0x100] sm:$0xff]  ;;  %v9139_v3 = vpack.c.bf16 %v3271_v63, %v3270_v57  ;;  %v6314_v63 = vld [vmem:[%s13838_s5 + $0x608] sm:$0xff] }
 0x39f   : > { %4310 = vmatprep.mubr.f32.mxu0 %v4080_v45  ;;  %9096 = vmatpush3.bf16.msra.mxu0 %v9095_v9  ;;  %v3247_v9 = vld [vmem:[%s13838_s5 + $0x78] sm:$0xff]  ;;  %v6305_v56 = vld [vmem:[%s13838_s5 + $0x5c0] sm:$0xff] }
 0x3a0   : > { %9098 = vmatprep.subr.bf16.mxu0 %v9097_v41  ;;  %v3265_v41 = vld [vmem:[%s13838_s5 + $0x108] sm:$0xff]  ;;  %v9123_v33 = vpack.c.bf16 %v3247_v9, %v3246_v16  ;;  %v3283_v45 = vld [vmem:[%s13838_s5 + $0x198] sm:$0xff]  ;;  %v9205_v16 = vpack.c.bf16 %v6306_v13, %v6305_v56  ;;  %v6289_v9 = vld [vmem:[%s13838_s5 + $0x540] sm:$0xff] }
 0x3a1   : > { %9068 = vmatpush3.bf16.msra.mxu1 %v9065_v53  ;;  %v6297_v53 = vld [vmem:[%s13838_s5 + $0x580] sm:$0xff] }
 0x3a2   : > { %4311 = vmatmul.mubr.f32.gmra.mrb[152].mxu0 %v4076_v58  ;;  %9070 = vmatprep.subr.bf16.mxu1 %v9069_v14  ;;  %v9189_v37 = vpack.c.bf16 %v6298_v27, %v6297_v53  ;;  %v9129_v58 = vpack.c.bf16 %v3283_v45, %v3282_v19  ;;  %v6290_v53 = vld [vmem:[%s13838_s5 + $0x548] sm:$0xff]  ;;  %v3275_v19 = vld [vmem:[%s13838_s5 + $0x158] sm:$0xff]  ;;  %v6313_v57 = vld [vmem:[%s13838_s5 + $0x600] sm:$0xff] }
 0x3a3   : > { %4455 = vmatprep.mubr.f32.mxu0 %v3217_v26  ;;  %9100 = vmatpush3.bf16.msra.mxu0 %v9099_v55  ;;  %v9127_v55 = vpack.c.bf16 %v3265_v41, %v3264_v49  ;;  %v6308_v49 = vld [vmem:[%s13838_s5 + $0x5d8] sm:$0xff]  ;;  %v9207_v45 = vpack.c.bf16 %v6290_v53, %v6289_v9  ;;  %v3227_v56 = vld [vmem:[#allocation3 + $0x33] ss:$2 sm:$0xff]  ;;  %v3223_v9 = vld [vmem:[#allocation3 + $0x32] ss:$2 sm:$0xff] }
 0x3a4   : > { %9102 = vmatprep.subr.bf16.mxu0 %v9101_v31  ;;  %v3266_v31 = vld [vmem:[%s13838_s5 + $0x110] sm:$0xff] }
 0x3a5   : > { %9072 = vmatpush3.bf16.msra.mxu1 %v9069_v14  ;;  %v6282_v14 = vld [vmem:[%s13838_s5 + $0x508] sm:$0xff]  ;;  %v9131_v17 = vpack.c.bf16 %v3267_v32, %v3266_v31 }
 0x3a6   : > { %9074 = vmatprep.subr.bf16.mxu1 %v9073_v8  ;;  %v9191_v26 = vpack.c.bf16 %v6282_v14, %v6281_v54  ;;  %v3293_v54 = vld [vmem:[%s13838_s5 + $0x1e8] sm:$0xff] }
 0x3a7   : > { %9104 = vmatpush3.bf16.msra.mxu0 %v9103_v30  ;;  %v9193_v30 = vpack.c.bf16 %v6300_v2, %v6299_v36  ;;  %v6292_v36 = vld [vmem:[%s13838_s5 + $0x558] sm:$0xff]  ;;  %v6310_v31 = vld [vmem:[%s13838_s5 + $0x5e8] sm:$0xff] }
 0x3a8   : > { %9106 = vmatprep.subr.bf16.mxu0 %v9105_v28  ;;  %v3213_v28 = vld [vmem:[#allocation3] ss:$2 sm:$0xff] }
 0x3a9   : > { %9076 = vmatpush3.bf16.msra.mxu1 %v9073_v8  ;;  %v3225_v8 = vld [vmem:[#allocation3 + $0x3] ss:$2 sm:$0xff] }
 0x3aa   : > { %9078 = vmatprep.subr.bf16.mxu1 %v9077_v44 }
 0x3ab   : > { %9108 = vmatpush3.bf16.msra.mxu0 %v9107_v7  ;;  %v3268_v7 = vld [vmem:[%s13838_s5 + $0x120] sm:$0xff] }
 0x3ac   : > { %9110 = vmatprep.subr.bf16.mxu0 %v9109_v25  ;;  %v3286_v25 = vld [vmem:[%s13838_s5 + $0x1b0] sm:$0xff] }
 0x3ad   : > { %9080 = vmatpush3.bf16.msra.mxu1 %v9077_v44  ;;  %v9133_v44 = vpack.c.bf16 %v3285_v20, %v3284_v1  ;;  %v9137_v43 = vpack.c.bf16 %v3287_v40, %v3286_v25  ;;  %v3294_v20 = vld [vmem:[%s13838_s5 + $0x1f0] sm:$0xff] }
 0x3ae   : > { %9082 = vmatprep.subr.bf16.mxu1 %v9081_v34  ;;  %v6295_v40 = vld [vmem:[%s13838_s5 + $0x570] sm:$0xff] }
 0x3af   : > { %9112 = vmatpush3.bf16.msra.mxu0 %v9111_v51  ;;  %v9135_v51 = vpack.c.bf16 %v3269_v52, %v3268_v7  ;;  %v9215_v7 = vpack.c.bf16 %v6294_v6, %v6293_v24  ;;  %v3296_v52 = vld [vmem:[%s13838_s5 + $0x200] sm:$0xff]  ;;  %v3307_v24 = vld [vmem:[%s13838_s5 + $0x258] sm:$0xff] }
 0x3b0   : > { %9114 = vmatprep.subr.bf16.mxu0 %v9113_v39  ;;  %v3643_v39 = vld [vmem:[#allocation3 + $0x31] ss:$2 sm:$0xff] }
 0x3b1   : > { %9084 = vmatpush3.bf16.msra.mxu1 %v9081_v34  ;;  %v3215_v34 = vld [vmem:[#allocation3 + $0x30] ss:$2 sm:$0xff] }
 0x3b2   : > { %9086 = vmatprep.subr.bf16.mxu1 %v9085_v29 }
 0x3b3   : > { %9116 = vmatpush3.bf16.msra.mxu0 %v9115_v47  ;;  %v3289_v47 = vld [vmem:[%s13838_s5 + $0x1c8] sm:$0xff] }
 0x3b4   : > { %9118 = vmatprep.subr.bf16.mxu0 %v9117_v10  ;;  %v6288_v10 = vld [vmem:[%s13838_s5 + $0x538] sm:$0xff] }
 0x3b5   : > { %9088 = vmatpush3.bf16.msra.mxu1 %v9085_v29  ;;  %v3288_v29 = vld [vmem:[%s13838_s5 + $0x1c0] sm:$0xff]  ;;  %v9203_v18 = vpack.c.bf16 %v6288_v10, %v6287_v48  ;;  %v9223_v48 = vpack.c.bf16 %v6314_v63, %v6313_v57  ;;  %v6343_v57 = vld [vmem:[%s13838_s5 + $0x6f0] sm:$0xff]  ;;  %v6344_v63 = vld [vmem:[%s13838_s5 + $0x6f8] sm:$0xff] }
 0x3b6   : > { %9090 = vmatprep.subr.bf16.mxu1 %v9089_v62  ;;  %v9141_v42 = vpack.c.bf16 %v3289_v47, %v3288_v29  ;;  %v6332_v29 = vld [vmem:[%s13838_s5 + $0x698] sm:$0xff]  ;;  %v3300_v10 = vld [vmem:[%s13838_s5 + $0x220] sm:$0xff] }
 0x3b7   : > { %9120 = vmatpush3.bf16.msra.mxu0 %v9119_v0  ;;  %v3273_v0 = vld [vmem:[%s13838_s5 + $0x148] sm:$0xff] }
 0x3b8   : > { %9122 = vmatprep.subr.bf16.mxu0 %v9121_v22  ;;  %v3291_v22 = vld [vmem:[%s13838_s5 + $0x1d8] sm:$0xff] }
 0x3b9   : > { %9092 = vmatpush3.bf16.msra.mxu1 %v9089_v62  ;;  %v3272_v62 = vld [vmem:[%s13838_s5 + $0x140] sm:$0xff]  ;;  %v9145_v41 = vpack.c.bf16 %v3291_v22, %v3290_v35  ;;  %v6334_v35 = vld [vmem:[%s13838_s5 + $0x6a8] sm:$0xff]  ;;  %v3645_v22 = vld [vmem:[#allocation3 + $0x61] ss:$2 sm:$0xff] }
 0x3ba   : > { %9126 = vmatprep.subr.bf16.mxu1 %v9125_v59  ;;  %v9143_v27 = vpack.c.bf16 %v3273_v0, %v3272_v62  ;;  %v6307_v59 = vld [vmem:[%s13838_s5 + $0x5d0] sm:$0xff]  ;;  %v6316_v62 = vld [vmem:[%s13838_s5 + $0x618] sm:$0xff]  ;;  %v3639_v0 = vld [vmem:[#allocation3 + $0x30] ss:$2 sm:$0xff] }
 0x3bb   : > { %9124 = vmatpush3.bf16.msra.mxu0 %v9123_v33  ;;  %v3274_v33 = vld [vmem:[%s13838_s5 + $0x150] sm:$0xff]  ;;  %v9209_v14 = vpack.c.bf16 %v6308_v49, %v6307_v59  ;;  %v3303_v59 = vld [vmem:[%s13838_s5 + $0x238] sm:$0xff] }
 0x3bc   : > { %8261 = vmatmul.mubr.f32.vlgmr.msra.gmra.mrb[130].mxu1 %v4084_v23  ;;  %9190 = vmatprep.subr.bf16.mxu0 %v9189_v37  ;;  %v3292_v37 = vld [vmem:[%s13838_s5 + $0x1e0] sm:$0xff]  ;;  %v9147_v2 = vpack.c.bf16 %v3275_v19, %v3274_v33  ;;  %v6318_v19 = vld [vmem:[%s13838_s5 + $0x628] sm:$0xff] }
 0x3bd   : > { %9128 = vmatpush3.bf16.msra.mxu1 %v9127_v55  ;;  %4530 = vmatprep.mubr.f32.mxu1 %v3225_v8  ;;  %v6291_v55 = vld [vmem:[%s13838_s5 + $0x550] sm:$0xff]  ;;  %v9149_v32 = vpack.c.bf16 %v3293_v54, %v3292_v37  ;;  %v3276_v23 = vld [vmem:[%s13838_s5 + $0x160] sm:$0xff]  ;;  %v3295_v8 = vld [vmem:[%s13838_s5 + $0x1f8] sm:$0xff] }
 0x3be   : > { %4456 = vmatmul.mubr.f32.vlgmr.msra.gmra.mrb[154].mxu0 %v3213_v28  ;;  %9130 = vmatprep.subr.bf16.mxu1 %v9129_v58  ;;  %v6309_v58 = vld [vmem:[%s13838_s5 + $0x5e0] sm:$0xff]  ;;  %v9211_v1 = vpack.c.bf16 %v6292_v36, %v6291_v55  ;;  %v9153_v46 = vpack.c.bf16 %v3295_v8, %v3294_v20  ;;  %v6335_v37 = vld [vmem:[%s13838_s5 + $0x6b0] sm:$0xff]  ;;  %v6336_v54 = vld [vmem:[%s13838_s5 + $0x6b8] sm:$0xff] }
 0x3bf   : > { %4460 = vmatprep.mubr.f32.mxu0 %v3219_v21  ;;  %9192 = vmatpush3.bf16.msra.mxu0 %v9191_v26  ;;  %v3277_v26 = vld [vmem:[%s13838_s5 + $0x168] sm:$0xff]  ;;  %v3278_v21 = vld [vmem:[%s13838_s5 + $0x170] sm:$0xff]  ;;  %v6317_v33 = vld [vmem:[%s13838_s5 + $0x620] sm:$0xff] }
 0x3c0   : > { %9194 = vmatprep.subr.bf16.mxu0 %v9193_v30  ;;  %v9213_v30 = vpack.c.bf16 %v6310_v31, %v6309_v58  ;;  %v9151_v28 = vpack.c.bf16 %v3277_v26, %v3276_v23  ;;  %v3229_v49 = vld [vmem:[#allocation3 + $0x4] ss:$2 sm:$0xff]  ;;  %v9231_v36 = vpack.c.bf16 %v6318_v19, %v6317_v33  ;;  %v3305_v58 = vld [vmem:[%s13838_s5 + $0x248] sm:$0xff]  ;;  %v9233_v31 = vpack.c.bf16 %v6336_v54, %v6335_v37 }
 0x3c1   : > { %9132 = vmatpush3.bf16.msra.mxu1 %v9131_v17  ;;  %v6311_v17 = vld [vmem:[%s13838_s5 + $0x5f0] sm:$0xff]  ;;  %v6320_v23 = vld [vmem:[%s13838_s5 + $0x638] sm:$0xff]  ;;  %v6337_v26 = vld [vmem:[%s13838_s5 + $0x6c0] sm:$0xff] }
 0x3c2   : > { %4461 = vmatmul.mubr.f32.gmra.mrb[156].mxu0 %v3215_v34  ;;  %9134 = vmatprep.subr.bf16.mxu1 %v9133_v44  ;;  %v3279_v44 = vld [vmem:[%s13838_s5 + $0x178] sm:$0xff]  ;;  %v9217_v25 = vpack.c.bf16 %v6312_v60, %v6311_v17  ;;  %v6330_v34 = vld [vmem:[%s13838_s5 + $0x688] sm:$0xff]  ;;  %v6339_v60 = vld [vmem:[%s13838_s5 + $0x6d0] sm:$0xff] }
 0x3c3   : > { %9196 = vmatpush3.bf16.msra.mxu0 %v9195_v12  ;;  %4680 = vmatprep.mubr.f32.mxu0 %v3643_v39  ;;  %v3297_v12 = vld [vmem:[%s13838_s5 + $0x208] sm:$0xff]  ;;  %v9155_v38 = vpack.c.bf16 %v3279_v44, %v3278_v21  ;;  %v3299_v39 = vld [vmem:[%s13838_s5 + $0x218] sm:$0xff]  ;;  %v6353_v19 = vld [vmem:[%s13838_s5 + $0x740] sm:$0xff] }
 0x3c4   : > { %9198 = vmatprep.subr.bf16.mxu0 %v9197_v11  ;;  %v6296_v11 = vld [vmem:[%s13838_s5 + $0x578] sm:$0xff]  ;;  %v9161_v47 = vpack.c.bf16 %v3299_v39, %v3298_v4  ;;  %v6322_v17 = vld [vmem:[%s13838_s5 + $0x648] sm:$0xff]  ;;  %v6325_v39 = vld [vmem:[%s13838_s5 + $0x660] sm:$0xff] }
 0x3c5   : > { %9136 = vmatpush3.bf16.msra.mxu1 %v9135_v51  ;;  %v9157_v51 = vpack.c.bf16 %v3297_v12, %v3296_v52  ;;  %v9219_v15 = vpack.c.bf16 %v6296_v11, %v6295_v40  ;;  %v3309_v52 = vld [vmem:[%s13838_s5 + $0x268] sm:$0xff]  ;;  %v6324_v40 = vld [vmem:[%s13838_s5 + $0x658] sm:$0xff]  ;;  %v6341_v11 = vld [vmem:[%s13838_s5 + $0x6e0] sm:$0xff] }
 0x3c6   : > { %9138 = vmatprep.subr.bf16.mxu1 %v9137_v43  ;;  %v9221_v43 = vpack.c.bf16 %v6330_v34, %v6329_v5  ;;  %v6355_v54 = vld [vmem:[%s13838_s5 + $0x750] sm:$0xff] }
 0x3c7   : > { %9200 = vmatpush3.bf16.msra.mxu0 %v9199_v61  ;;  %v6331_v61 = vld [vmem:[%s13838_s5 + $0x690] sm:$0xff] }
 0x3c8   : > { %9202 = vmatprep.subr.bf16.mxu0 %v9201_v50  ;;  %v3221_v50 = vld [vmem:[#allocation3 + $0x2] ss:$2 sm:$0xff]  ;;  %v9225_v13 = vpack.c.bf16 %v6332_v29, %v6331_v61 }
 0x3c9   : > { %9140 = vmatpush3.bf16.msra.mxu1 %v9139_v3  ;;  %v3301_v3 = vld [vmem:[%s13838_s5 + $0x228] sm:$0xff] }
 0x3ca   : > { %9142 = vmatprep.subr.bf16.mxu1 %v9141_v42  ;;  %v6315_v42 = vld [vmem:[%s13838_s5 + $0x610] sm:$0xff] }
 0x3cb   : > { %9204 = vmatpush3.bf16.msra.mxu0 %v9203_v18  ;;  %v6333_v18 = vld [vmem:[%s13838_s5 + $0x6a0] sm:$0xff]  ;;  %v9227_v53 = vpack.c.bf16 %v6316_v62, %v6315_v42  ;;  %v6347_v42 = vld [vmem:[%s13838_s5 + $0x710] sm:$0xff]  ;;  %v6348_v62 = vld [vmem:[%s13838_s5 + $0x718] sm:$0xff] }
 0x3cc   : > { %9206 = vmatprep.subr.bf16.mxu0 %v9205_v16  ;;  %v9165_v16 = vpack.c.bf16 %v3301_v3, %v3300_v10  ;;  %v6327_v10 = vld [vmem:[%s13838_s5 + $0x670] sm:$0xff]  ;;  %v6328_v3 = vld [vmem:[%s13838_s5 + $0x678] sm:$0xff] }
 0x3cd   : > { %9144 = vmatpush3.bf16.msra.mxu1 %v9143_v27  ;;  %v3302_v27 = vld [vmem:[%s13838_s5 + $0x230] sm:$0xff] }
 0x3ce   : > { %9146 = vmatprep.subr.bf16.mxu1 %v9145_v41  ;;  %v9229_v41 = vpack.c.bf16 %v6334_v35, %v6333_v18  ;;  %v9169_v55 = vpack.c.bf16 %v3303_v59, %v3302_v27  ;;  %v3231_v18 = vld [vmem:[#allocation3 + $0x34] ss:$2 sm:$0xff] }
 0x3cf   : > { %9208 = vmatpush3.bf16.msra.mxu0 %v9207_v45  ;;  %v3641_v45 = vld [vmem:[#allocation3 + $0x60] ss:$2 sm:$0xff]  ;;  %v6349_v35 = vld [vmem:[%s13838_s5 + $0x720] sm:$0xff] }
 0x3d0   : > { %9210 = vmatprep.subr.bf16.mxu0 %v9209_v14  ;;  %v3651_v14 = vld [vmem:[#allocation3 + $0x33] ss:$2 sm:$0xff] }
 0x3d1   : > { %9148 = vmatpush3.bf16.msra.mxu1 %v9147_v2  ;;  %v3304_v2 = vld [vmem:[%s13838_s5 + $0x240] sm:$0xff]  ;;  %v6351_v59 = vld [vmem:[%s13838_s5 + $0x730] sm:$0xff] }
 0x3d2   : > { %9150 = vmatprep.subr.bf16.mxu1 %v9149_v32  ;;  %v6319_v32 = vld [vmem:[%s13838_s5 + $0x630] sm:$0xff]  ;;  %v9173_v20 = vpack.c.bf16 %v3305_v58, %v3304_v2  ;;  %v6358_v2 = vld [vmem:[%s13838_s5 + $0x768] sm:$0xff] }
 0x3d3   : > { %9212 = vmatpush3.bf16.msra.mxu0 %v9211_v1  ;;  %v6338_v1 = vld [vmem:[%s13838_s5 + $0x6c8] sm:$0xff]  ;;  %v9235_v8 = vpack.c.bf16 %v6320_v23, %v6319_v32 }
 0x3d4   : > { %9214 = vmatprep.subr.bf16.mxu0 %v9213_v30  ;;  %v3306_v30 = vld [vmem:[%s13838_s5 + $0x250] sm:$0xff]  ;;  %v9237_v6 = vpack.c.bf16 %v6338_v1, %v6337_v26 }
 0x3d5   : > { %9152 = vmatpush3.bf16.msra.mxu1 %v9151_v28  ;;  %v6321_v28 = vld [vmem:[%s13838_s5 + $0x640] sm:$0xff]  ;;  %v9177_v21 = vpack.c.bf16 %v3307_v24, %v3306_v30  ;;  %v6359_v1 = vld [vmem:[%s13838_s5 + $0x770] sm:$0xff] }
 0x3d6   : > { %9154 = vmatprep.subr.bf16.mxu1 %v9153_v46  ;;  %v6340_v46 = vld [vmem:[%s13838_s5 + $0x6d8] sm:$0xff]  ;;  %v9239_v44 = vpack.c.bf16 %v6322_v17, %v6321_v28 }
 0x3d7   : > { %9216 = vmatpush3.bf16.msra.mxu0 %v9215_v7  ;;  %v3308_v7 = vld [vmem:[%s13838_s5 + $0x260] sm:$0xff]  ;;  %v9241_v12 = vpack.c.bf16 %v6340_v46, %v6339_v60 }
 0x3d8   : > { %9218 = vmatprep.subr.bf16.mxu0 %v9217_v25  ;;  %v6323_v25 = vld [vmem:[%s13838_s5 + $0x650] sm:$0xff]  ;;  %v9181_v5 = vpack.c.bf16 %v3309_v52, %v3308_v7 }
 0x3d9   : > { %9156 = vmatpush3.bf16.msra.mxu1 %v9155_v38  ;;  %v6342_v38 = vld [vmem:[%s13838_s5 + $0x6e8] sm:$0xff]  ;;  %v9243_v34 = vpack.c.bf16 %v6324_v40, %v6323_v25  ;;  %v3657_v52 = vld [vmem:[#allocation3 + $0x64] ss:$2 sm:$0xff] }
 0x3da   : > { %9158 = vmatprep.subr.bf16.mxu1 %v9157_v51  ;;  %v9245_v4 = vpack.c.bf16 %v6342_v38, %v6341_v11 }
 0x3db   : > { %9220 = vmatpush3.bf16.msra.mxu0 %v9219_v15  ;;  %v3311_v15 = vld [vmem:[%s13838_s5 + $0x278] sm:$0xff] }
 0x3dc   : > { %4531 = vmatmul.mubr.f32.vlgmr.msra.gmra.mrb[136].mxu1 %v3221_v50  ;;  %9222 = vmatprep.subr.bf16.mxu0 %v9221_v43  ;;  %v6326_v43 = vld [vmem:[%s13838_s5 + $0x668] sm:$0xff] }
 0x3dd   : > { %4535 = vmatprep.mubr.f32.mxu1 %v3227_v56  ;;  %9160 = vmatpush3.bf16.msra.mxu1 %v9157_v51  ;;  %v3310_v51 = vld [vmem:[%s13838_s5 + $0x270] sm:$0xff]  ;;  %v9247_v29 = vpack.c.bf16 %v6326_v43, %v6325_v39  ;;  %v6346_v50 = vld [vmem:[%s13838_s5 + $0x708] sm:$0xff]  ;;  %v4869_v39 = vld [vmem:[%s13840_s7 + $0x38] sm:$0xff] }
 0x3de   : > { %4681 = vmatmul.mubr.f32.vlgmr.msra.gmra.mrb[158].mxu0 %v3639_v0  ;;  %9162 = vmatprep.subr.bf16.mxu1 %v9161_v47  ;;  %v9185_v61 = vpack.c.bf16 %v3311_v15, %v3310_v51  ;;  %v9257_v0 = vpack.c.bf16 %v6348_v62, %v6347_v42  ;;  %v4867_v51 = vld [vmem:[%s13840_s7 + $0x28] sm:$0xff]  ;;  %v4865_v15 = vld [vmem:[%s13840_s7 + $0x18] sm:$0xff]  ;;  %v4862_v43 = vld [vmem:[%s13840_s7] sm:$0xff] }
 0x3df   : > { %4685 = vmatprep.mubr.f32.mxu0 %v3645_v22  ;;  %9224 = vmatpush3.bf16.msra.mxu0 %v9223_v48  ;;  %v9249_v48 = vpack.c.bf16 %v6344_v63, %v6343_v57  ;;  %v6350_v22 = vld [vmem:[%s13838_s5 + $0x728] sm:$0xff]  ;;  %v4866_v57 = vld [vmem:[%s13840_s7 + $0x20] sm:$0xff]  ;;  %v9413_v63 = vpack.c.bf16 %v4869_v39, %v4865_v15 }
 0x3e0   : > { %4536 = vmatmul.mubr.f32.gmra.mrb[138].mxu1 %v3223_v9  ;;  %9226 = vmatprep.subr.bf16.mxu0 %v9225_v13  ;;  %v9251_v13 = vpack.c.bf16 %v6328_v3, %v6327_v10  ;;  %v3647_v9 = vld [vmem:[#allocation3 + $0x32] ss:$2 sm:$0xff]  ;;  %v9261_v27 = vpack.c.bf16 %v6350_v22, %v6349_v35  ;;  %v4873_v3 = vld [vmem:[%s13840_s7 + $0x58] sm:$0xff] }
 0x3e1   : > { %9164 = vmatpush3.bf16.msra.mxu1 %v9161_v47  ;;  %8295 = vmatprep.mubr.f32.mxu1 %v3229_v49  ;;  %v6345_v47 = vld [vmem:[%s13838_s5 + $0x700] sm:$0xff]  ;;  %v6352_v49 = vld [vmem:[%s13838_s5 + $0x738] sm:$0xff]  ;;  %v4875_v10 = vld [vmem:[%s13840_s7 + $0x68] sm:$0xff] }
 0x3e2   : > { %4686 = vmatmul.mubr.f32.gmra.mrb[160].mxu0 %v3641_v45  ;;  %9166 = vmatprep.subr.bf16.mxu1 %v9165_v16  ;;  %v9253_v56 = vpack.c.bf16 %v6346_v50, %v6345_v47  ;;  %v9265_v33 = vpack.c.bf16 %v6352_v49, %v6351_v59  ;;  %v6354_v45 = vld [vmem:[%s13838_s5 + $0x748] sm:$0xff]  ;;  %v4868_v47 = vld [vmem:[%s13840_s7 + $0x30] sm:$0xff]  ;;  %v4870_v62 = vld [vmem:[%s13840_s7 + $0x40] sm:$0xff] }
 0x3e3   : > { %9228 = vmatpush3.bf16.msra.mxu0 %v9227_v53  ;;  %4755 = vmatprep.mubr.f32.mxu0 %v3651_v14  ;;  %v3653_v53 = vld [vmem:[#allocation3 + $0x63] ss:$2 sm:$0xff]  ;;  %v9269_v37 = vpack.c.bf16 %v6354_v45, %v6353_v19  ;;  %v4871_v50 = vld [vmem:[%s13840_s7 + $0x48] sm:$0xff] }
 0x3e4   : > { %9230 = vmatprep.subr.bf16.mxu0 %v9229_v41  ;;  %v3649_v41 = vld [vmem:[#allocation3 + $0x62] ss:$2 sm:$0xff] }
 0x3e5   : > { %9168 = vmatpush3.bf16.msra.mxu1 %v9165_v16  ;;  %v3655_v16 = vld [vmem:[#allocation3 + $0x34] ss:$2 sm:$0xff]  ;;  %v6356_v14 = vld [vmem:[%s13838_s5 + $0x758] sm:$0xff] }
 0x3e6   : > { %9170 = vmatprep.subr.bf16.mxu1 %v9169_v55  ;;  %v4876_v22 = vld [vmem:[%s13840_s7 + $0x70] sm:$0xff]  ;;  %v4881_v59 = vld [vmem:[%s13840_s7 + $0x98] sm:$0xff]  ;;  %v4882_v19 = vld [vmem:[%s13840_s7 + $0xa0] sm:$0xff] }
 0x3e7   : > { %9232 = vmatpush3.bf16.msra.mxu0 %v9231_v36  ;;  %v6357_v36 = vld [vmem:[%s13838_s5 + $0x760] sm:$0xff]  ;;  %v4885_v49 = vld [vmem:[%s13840_s7 + $0xb8] sm:$0xff]  ;;  %v4880_v45 = vld [vmem:[%s13840_s7 + $0x90] sm:$0xff] }
 0x3e8   : > { %9234 = vmatprep.subr.bf16.mxu0 %v9233_v31  ;;  %v9277_v32 = vpack.c.bf16 %v6358_v2, %v6357_v36  ;;  %v4889_v36 = vld [vmem:[%s13840_s7 + $0xd8] sm:$0xff] }
 0x3e9   : > { %9172 = vmatpush3.bf16.msra.mxu1 %v9169_v55  ;;  %v9273_v55 = vpack.c.bf16 %v6356_v14, %v6355_v54  ;;  %v4887_v14 = vld [vmem:[%s13840_s7 + $0xc8] sm:$0xff] }
 0x3ea   : > { %9174 = vmatprep.subr.bf16.mxu1 %v9173_v20 }
 0x3eb   : > { %9236 = vmatpush3.bf16.msra.mxu0 %v9235_v8 }
 0x3ec   : > { %9238 = vmatprep.subr.bf16.mxu0 %v9237_v6 }
 0x3ed   : > { %9176 = vmatpush3.bf16.msra.mxu1 %v9173_v20  ;;  %v6360_v20 = vld [vmem:[%s13838_s5 + $0x778] sm:$0xff] }
 0x3ee   : > { %9178 = vmatprep.subr.bf16.mxu1 %v9177_v21  ;;  %v9281_v6 = vpack.c.bf16 %v6360_v20, %v6359_v1  ;;  %v4888_v1 = vld [vmem:[%s13840_s7 + $0xd0] sm:$0xff] }
 0x3ef   : > { %9240 = vmatpush3.bf16.msra.mxu0 %v9239_v44  ;;  %v4892_v20 = vld [vmem:[%s13840_s7 + $0xf0] sm:$0xff] }
 0x3f0   : > { %9242 = vmatprep.subr.bf16.mxu0 %v9241_v12 }
 0x3f1   : > { %9180 = vmatpush3.bf16.msra.mxu1 %v9177_v21 }
 0x3f2   : > { %9182 = vmatprep.subr.bf16.mxu1 %v9181_v5 }
 0x3f3   : > { %9244 = vmatpush3.bf16.msra.mxu0 %v9243_v34  ;;  %v4863_v34 = vld [vmem:[%s13840_s7 + $0x8] sm:$0xff] }
 0x3f4   : > { %9246 = vmatprep.subr.bf16.mxu0 %v9245_v4  ;;  %v9285_v4 = vpack.c.bf16 %v4867_v51, %v4863_v34  ;;  %v4905_v34 = vld [vmem:[%s13840_s7 + $0x158] sm:$0xff] }
 0x3f5   : > { %9184 = vmatpush3.bf16.msra.mxu1 %v9181_v5  ;;  %v4909_v51 = vld [vmem:[%s13840_s7 + $0x178] sm:$0xff] }
 0x3f6   : > { %9186 = vmatprep.subr.bf16.mxu1 %v9185_v61 }
 0x3f7   : > { %9248 = vmatpush3.bf16.msra.mxu0 %v9247_v29  ;;  %v4864_v29 = vld [vmem:[%s13840_s7 + $0x10] sm:$0xff] }
 0x3f8   : > { %9250 = vmatprep.subr.bf16.mxu0 %v9249_v48  ;;  %v9415_v48 = vpack.c.bf16 %v4868_v47, %v4864_v29  ;;  %v4908_v29 = vld [vmem:[%s13840_s7 + $0x170] sm:$0xff] }
 0x3f9   : > { %9188 = vmatpush3.bf16.msra.mxu1 %v9185_v61  ;;  %v9287_v61 = vpack.c.bf16 %v4866_v57, %v4862_v43  ;;  %v4902_v43 = vld [vmem:[%s13840_s7 + $0x140] sm:$0xff] }
 0x3fa   : > { %9254 = vmatprep.subr.bf16.mxu1 %v9253_v56  ;;  %v4906_v57 = vld [vmem:[%s13840_s7 + $0x160] sm:$0xff] }
 0x3fb   : > { %9252 = vmatpush3.bf16.msra.mxu0 %v9251_v13  ;;  %v9289_v13 = vpack.c.bf16 %v4875_v10, %v4871_v50  ;;  %v9307_v47 = vpack.c.bf16 %v4906_v57, %v4902_v43  ;;  %v4934_v43 = vld [vmem:[%s13840_s7 + $0x240] sm:$0xff] }
 0x3fc   : > { %8296 = vmatmul.mubr.f32.vlgmr.msra.gmra.mrb[130].mxu1 %v3231_v18  ;;  %9286 = vmatprep.subr.bf16.mxu0 %v9285_v4  ;;  %v4872_v18 = vld [vmem:[%s13840_s7 + $0x50] sm:$0xff] }
 0x3fd   : > { %9256 = vmatpush3.bf16.msra.mxu1 %v9253_v56  ;;  %8330 = vmatprep.mubr.f32.mxu1 %v3655_v16  ;;  %v4877_v56 = vld [vmem:[%s13840_s7 + $0x78] sm:$0xff]  ;;  %v4879_v16 = vld [vmem:[%s13840_s7 + $0x88] sm:$0xff] }
 0x3fe   : > { %4756 = vmatmul.mubr.f32.vlgmr.msra.gmra.mrb[162].mxu0 %v3647_v9  ;;  %9258 = vmatprep.subr.bf16.mxu1 %v9257_v0  ;;  %v9417_v42 = vpack.c.bf16 %v4877_v56, %v4873_v3  ;;  %v4883_v9 = vld [vmem:[%s13840_s7 + $0xa8] sm:$0xff] }
 0x3ff   : > { %4760 = vmatprep.mubr.f32.mxu0 %v3653_v53  ;;  %9288 = vmatpush1.bf16.msra.mxu0 %v9287_v61  ;;  %v9419_v53 = vpack.c.bf16 %v4876_v22, %v4872_v18  ;;  %v4904_v61 = vld [vmem:[%s13840_s7 + $0x150] sm:$0xff]  ;;  %v4911_v22 = vld [vmem:[%s13840_s7 + $0x188] sm:$0xff] }
 0x400   : > { %9290 = vmatprep.subr.bf16.mxu0 %v9289_v13 }
 0x401   : > { %9260 = vmatpush3.bf16.msra.mxu1 %v9257_v0  ;;  %v4874_v0 = vld [vmem:[%s13840_s7 + $0x60] sm:$0xff] }
 0x402   : > { %4761 = vmatmul.mubr.f32.gmra.mrb[164].mxu0 %v3649_v41  ;;  %9262 = vmatprep.subr.bf16.mxu1 %v9261_v27  ;;  %v9291_v35 = vpack.c.bf16 %v4874_v0, %v4870_v62  ;;  %v4878_v41 = vld [vmem:[%s13840_s7 + $0x80] sm:$0xff] }
 0x403   : > { %v9295_v54 = vpack.c.bf16 %v4882_v19, %v4878_v41  ;;  %v4910_v41 = vld [vmem:[%s13840_s7 + $0x180] sm:$0xff] }
 0x404   : > { %9292 = vmatpush1.bf16.msra.mxu0 %v9291_v35 }
 0x405   : > { %9264 = vmatpush3.bf16.msra.mxu1 %v9261_v27  ;;  %v9293_v27 = vpack.c.bf16 %v4883_v9, %v4879_v16  ;;  %v4915_v16 = vld [vmem:[%s13840_s7 + $0x1a8] sm:$0xff]  ;;  %v4913_v9 = vld [vmem:[%s13840_s7 + $0x198] sm:$0xff] }
 0x406   : > { %9266 = vmatprep.subr.bf16.mxu1 %v9265_v33 }
 0x407   : > { %9294 = vmatprep.subr.bf16.mxu0 %v9293_v27 }
 0x408   : > { %9296 = vmatpush1.bf16.msra.mxu0 %v9295_v54  ;;  %v4916_v54 = vld [vmem:[%s13840_s7 + $0x1b0] sm:$0xff] }
 0x409   : > { %9268 = vmatpush3.bf16.msra.mxu1 %v9265_v33  ;;  %v9421_v33 = vpack.c.bf16 %v4885_v49, %v4881_v59  ;;  %v9309_v59 = vpack.c.bf16 %v4915_v16, %v4911_v22  ;;  %v4917_v49 = vld [vmem:[%s13840_s7 + $0x1b8] sm:$0xff]  ;;  %v4948_v22 = vld [vmem:[%s13840_s7 + $0x2b0] sm:$0xff]  ;;  %v4951_v16 = vld [vmem:[%s13840_s7 + $0x2c8] sm:$0xff] }
 0x40a   : > { %9270 = vmatprep.subr.bf16.mxu1 %v9269_v37 }
 0x40d   : > { %9272 = vmatpush3.bf16.msra.mxu1 %v9269_v37  ;;  %v4884_v37 = vld [vmem:[%s13840_s7 + $0xb0] sm:$0xff] }
 0x40e   : > { %9274 = vmatprep.subr.bf16.mxu1 %v9273_v55  ;;  %v9423_v2 = vpack.c.bf16 %v4884_v37, %v4880_v45  ;;  %v9437_v45 = vpack.c.bf16 %v4917_v49, %v4913_v9  ;;  %v4912_v37 = vld [vmem:[%s13840_s7 + $0x190] sm:$0xff]  ;;  %v4955_v9 = vld [vmem:[%s13840_s7 + $0x2e8] sm:$0xff] }
 0x40f   : > { %v7272_v58 = vpop.f32.mrb[126].mxu1 }
 0x410   : > { %v7310_v31 = vpop.f32.mrb[138].mxu0  ;;  %v7273_v23 = vpop.f32.mrb[127].mxu1 }
 0x411   : > { %v7311_v26 = vpop.f32.mrb[139].mxu0  ;;  %v7274_v8 = vadd.f32 %v7273_v23, %v7272_v58  ;;  %9276 = vmatpush3.bf16.msra.mxu1 %v9273_v55  ;;  %v4891_v55 = vld [vmem:[%s13840_s7 + $0xe8] sm:$0xff]  ;;  %v4890_v23 = vld [vmem:[%s13840_s7 + $0xe0] sm:$0xff] }
 0x412   : > { %v7312_v30 = vadd.f32 %v7311_v26, %v7310_v31  ;;  %9278 = vmatprep.subr.bf16.mxu1 %v9277_v32  ;;  %v9297_v58 = vpack.c.bf16 %v4891_v55, %v4887_v14  ;;  %v4893_v31 = vld [vmem:[%s13840_s7 + $0xf8] sm:$0xff]  ;;  %v9439_v55 = vpack.c.bf16 %v4916_v54, %v4912_v37  ;;  %v4956_v54 = vld [vmem:[%s13840_s7 + $0x2f0] sm:$0xff] }
 0x413   : > { %v9425_v26 = vpack.c.bf16 %v4893_v31, %v4889_v36  ;;  %v4919_v36 = vld [vmem:[%s13840_s7 + $0x1c8] sm:$0xff] }
 0x414   : > { %v12788_v24 = vadd.f32 %v7312_v30, %v7274_v8  ;;  %v4895_v8 = vld [vmem:[%s13840_s7 + $0x108] sm:$0xff]  ;;  %9298 = vmatprep.subr.bf16.mxu0 %v9297_v58  ;;  %v4921_v58 = vld [vmem:[%s13840_s7 + $0x1d8] sm:$0xff] }
 0x415   : > { %9280 = vmatpush3.bf16.msra.mxu1 %v9277_v32  ;;  %v4886_v32 = vld [vmem:[%s13840_s7 + $0xc0] sm:$0xff]  ;;  %v4899_v30 = vld [vmem:[%s13840_s7 + $0x128] sm:$0xff] }
 0x416   : > { %9282 = vmatprep.subr.bf16.mxu1 %v9281_v6 }
 0x417   : > { %v7275_v28 = vpop.f32.mrb[128].mxu1 }
 0x418   : > { %v7313_v17 = vpop.f32.mrb[140].mxu0  ;;  %v7276_v60 = vpop.f32.mrb[129].mxu1 }
 0x419   : > { %v7314_v46 = vpop.f32.mrb[141].mxu0  ;;  %v7277_v21 = vadd.f32 %v7276_v60, %v7275_v28  ;;  %9284 = vmatpush3.bf16.msra.mxu1 %v9281_v6  ;;  %v4897_v6 = vld [vmem:[%s13840_s7 + $0x118] sm:$0xff]  ;;  %v9427_v60 = vpack.c.bf16 %v4892_v20, %v4888_v1 }
 0x41a   : > { %v7315_v44 = vadd.f32 %v7314_v46, %v7313_v17  ;;  %9414 = vmatprep.subr.bf16.mxu1 %v9413_v63  ;;  %v4901_v28 = vld [vmem:[%s13840_s7 + $0x138] sm:$0xff]  ;;  %v9299_v17 = vpack.c.bf16 %v4890_v23, %v4886_v32  ;;  %v9301_v46 = vpack.c.bf16 %v4899_v30, %v4895_v8  ;;  %v9433_v63 = vpack.c.bf16 %v4909_v51, %v4905_v34  ;;  %v4918_v23 = vld [vmem:[%s13840_s7 + $0x1c0] sm:$0xff]  ;;  %v4924_v8 = vld [vmem:[%s13840_s7 + $0x1f0] sm:$0xff] }
 0x41b   : > { %v4925_v32 = vld [vmem:[%s13840_s7 + $0x1f8] sm:$0xff]  ;;  %v4927_v30 = vld [vmem:[%s13840_s7 + $0x208] sm:$0xff] }
 0x41c   : > { %v12790_v7 = vadd.f32 %v7315_v44, %v7277_v21  ;;  %8331 = vmatmul.mubr.f32.vlgmr.msra.gmra.mrb[130].mxu1 %v3657_v52  ;;  %v4894_v21 = vld [vmem:[%s13840_s7 + $0x100] sm:$0xff]  ;;  %v4896_v52 = vld [vmem:[%s13840_s7 + $0x110] sm:$0xff]  ;;  %9300 = vmatpush1.bf16.msra.mxu0 %v9299_v17  ;;  %v9441_v1 = vpack.c.bf16 %v4925_v32, %v4921_v58  ;;  %v4929_v17 = vld [vmem:[%s13840_s7 + $0x218] sm:$0xff] }
 0x41d   : > { %9416 = vmatpush1.bf16.msra.mxu1 %v9415_v48  ;;  %v4898_v44 = vld [vmem:[%s13840_s7 + $0x120] sm:$0xff]  ;;  %9302 = vmatprep.subr.bf16.mxu0 %v9301_v46  ;;  %v9435_v48 = vpack.c.bf16 %v4908_v29, %v4904_v61  ;;  %v4939_v34 = vld [vmem:[%s13840_s7 + $0x268] sm:$0xff]  ;;  %v4936_v61 = vld [vmem:[%s13840_s7 + $0x250] sm:$0xff] }
 0x41e   : > { %9418 = vmatprep.subr.bf16.mxu1 %v9417_v42  ;;  %v9303_v15 = vpack.c.bf16 %v4898_v44, %v4894_v21  ;;  %v4926_v44 = vld [vmem:[%s13840_s7 + $0x200] sm:$0xff]  ;;  %v4940_v29 = vld [vmem:[%s13840_s7 + $0x270] sm:$0xff] }
 0x420   : > { %9304 = vmatpush1.bf16.msra.mxu0 %v9303_v15 }
 0x421   : > { %9420 = vmatpush1.bf16.msra.mxu1 %v9419_v53 }
 0x422   : > { %9422 = vmatprep.subr.bf16.mxu1 %v9421_v33  ;;  %v4914_v33 = vld [vmem:[%s13840_s7 + $0x1a0] sm:$0xff] }
 0x425   : > { %9424 = vmatpush1.bf16.msra.mxu1 %v9423_v2  ;;  %v4923_v2 = vld [vmem:[%s13840_s7 + $0x1e8] sm:$0xff] }
 0x426   : > { %9426 = vmatprep.subr.bf16.mxu1 %v9425_v26  ;;  %v4922_v26 = vld [vmem:[%s13840_s7 + $0x1e0] sm:$0xff] }
 0x427   : > { %v9315_v20 = vpack.c.bf16 %v4922_v26, %v4918_v23  ;;  %v4958_v23 = vld [vmem:[%s13840_s7 + $0x300] sm:$0xff] }
 0x428   : > { %v4962_v26 = vld [vmem:[%s13840_s7 + $0x320] sm:$0xff] }
 0x429   : > { %9428 = vmatpush1.bf16.msra.mxu1 %v9427_v60  ;;  %v4933_v60 = vld [vmem:[%s13840_s7 + $0x238] sm:$0xff] }
 0x42a   : > { %v9445_v21 = vpack.c.bf16 %v4933_v60, %v4929_v17  ;;  %v9335_v17 = vpack.c.bf16 %v4962_v26, %v4958_v23 }
 0x430   : > { %v7366_v12 = vpop.f32.mrb[142].mxu0 }
 0x431   : > { %v7367_v25 = vpop.f32.mrb[143].mxu0 }
 0x432   : > { %v12792_v40 = vadd.f32 %v7367_v25, %v7366_v12  ;;  %v9429_v12 = vpack.c.bf16 %v4901_v28, %v4897_v6  ;;  %v4900_v25 = vld [vmem:[%s13840_s7 + $0x130] sm:$0xff]  ;;  %v4931_v28 = vld [vmem:[%s13840_s7 + $0x228] sm:$0xff] }
 0x433   : > { %v9431_v4 = vpack.c.bf16 %v4900_v25, %v4896_v52  ;;  %v9317_v46 = vpack.c.bf16 %v4931_v28, %v4927_v30  ;;  %v4930_v52 = vld [vmem:[%s13840_s7 + $0x220] sm:$0xff]  ;;  %v4971_v30 = vld [vmem:[%s13840_s7 + $0x368] sm:$0xff]  ;;  %v4973_v28 = vld [vmem:[%s13840_s7 + $0x378] sm:$0xff] }
 0x434   : > { %v7369_v11 = vpop.f32.mrb[144].mxu0  ;;  %9430 = vmatprep.subr.bf16.mxu1 %v9429_v12  ;;  %v4928_v12 = vld [vmem:[%s13840_s7 + $0x210] sm:$0xff]  ;;  %v9319_v25 = vpack.c.bf16 %v4930_v52, %v4926_v44  ;;  %v4970_v44 = vld [vmem:[%s13840_s7 + $0x360] sm:$0xff] }
 0x435   : > { %v7370_v38 = vpop.f32.mrb[145].mxu0  ;;  %9432 = vmatpush1.bf16.msra.mxu1 %v9431_v4  ;;  %v4937_v4 = vld [vmem:[%s13840_s7 + $0x258] sm:$0xff] }
 0x436   : > { %v12794_v5 = vadd.f32 %v7370_v38, %v7369_v11  ;;  %v4903_v11 = vld [vmem:[%s13840_s7 + $0x148] sm:$0xff]  ;;  %9434 = vmatprep.subr.bf16.mxu1 %v9433_v63  ;;  %v4938_v63 = vld [vmem:[%s13840_s7 + $0x260] sm:$0xff] }
 0x437   : > { %v4907_v38 = vld [vmem:[%s13840_s7 + $0x168] sm:$0xff] }
 0x438   : > { %v9305_v39 = vpack.c.bf16 %v4907_v38, %v4903_v11  ;;  %v4932_v11 = vld [vmem:[%s13840_s7 + $0x230] sm:$0xff]  ;;  %v4935_v38 = vld [vmem:[%s13840_s7 + $0x248] sm:$0xff] }
 0x439   : > { %9436 = vmatpush1.bf16.msra.mxu1 %v9435_v48  ;;  %v9447_v51 = vpack.c.bf16 %v4932_v11, %v4928_v12  ;;  %v9321_v15 = vpack.c.bf16 %v4939_v34, %v4935_v38  ;;  %v4947_v48 = vld [vmem:[%s13840_s7 + $0x2a8] sm:$0xff]  ;;  %v4968_v12 = vld [vmem:[%s13840_s7 + $0x350] sm:$0xff] }
 0x43a   : > { %9306 = vmatprep.subr.bf16.mxu0 %v9305_v39  ;;  %9438 = vmatprep.subr.bf16.mxu1 %v9437_v45  ;;  %v4941_v39 = vld [vmem:[%s13840_s7 + $0x278] sm:$0xff]  ;;  %v4954_v45 = vld [vmem:[%s13840_s7 + $0x2e0] sm:$0xff] }
 0x43b   : > { %9308 = vmatpush1.bf16.msra.mxu0 %v9307_v47  ;;  %v9449_v57 = vpack.c.bf16 %v4941_v39, %v4937_v4  ;;  %v9323_v47 = vpack.c.bf16 %v4938_v63, %v4934_v43  ;;  %v4979_v63 = vld [vmem:[%s13840_s7 + $0x3a8] sm:$0xff] }
 0x43c   : > { %9310 = vmatprep.subr.bf16.mxu0 %v9309_v59 }
 0x43d   : > { %9440 = vmatpush1.bf16.msra.mxu1 %v9439_v55  ;;  %v4963_v55 = vld [vmem:[%s13840_s7 + $0x328] sm:$0xff] }
 0x43e   : > { %9442 = vmatprep.subr.bf16.mxu1 %v9441_v1  ;;  %v4960_v1 = vld [vmem:[%s13840_s7 + $0x310] sm:$0xff] }
 0x44f   : > { %v7404_v50 = vpop.f32.mrb[132].mxu1 }
 0x450   : > { %v7405_v3 = vpop.f32.mrb[133].mxu1 }
 0x451   : > { %v7460_v10 = vpop.f32.mrb[146].mxu0  ;;  %v7406_v56 = vadd.f32 %v7405_v3, %v7404_v50  ;;  %v4943_v50 = vld [vmem:[%s13840_s7 + $0x288] sm:$0xff]  ;;  %v9451_v3 = vpack.c.bf16 %v4940_v29, %v4936_v61  ;;  %v4977_v61 = vld [vmem:[%s13840_s7 + $0x398] sm:$0xff] }
 0x452   : > { %v7461_v13 = vpop.f32.mrb[147].mxu0 }
 0x453   : > { %v12940_v42 = vadd.f32 %v7461_v13, %v7460_v10  ;;  %v3982_v62 = vadd.f32 %v7406_v56, %v12792_v40  ;;  %v7407_v0 = vpop.f32.mrb[134].mxu1  ;;  %v4945_v10 = vld [vmem:[%s13840_s7 + $0x298] sm:$0xff]  ;;  %v9325_v56 = vpack.c.bf16 %v4947_v48, %v4943_v50  ;;  %v4974_v48 = vld [vmem:[%s13840_s7 + $0x380] sm:$0xff] }
 0x454   : > { %v7408_v35 = vpop.f32.mrb[135].mxu1  ;;  %v4949_v13 = vld [vmem:[%s13840_s7 + $0x2b8] sm:$0xff] }
 0x455   : > { %v7463_v18 = vpop.f32.mrb[148].mxu0  ;;  %v12953_v53 = vadd.f32 %v3982_v62, %v12788_v24  ;;  %v7409_v40 = vadd.f32 %v7408_v35, %v7407_v0  ;;  %v9311_v24 = vpack.c.bf16 %v4914_v33, %v4910_v41  ;;  %v4942_v62 = vld [vmem:[%s13840_s7 + $0x280] sm:$0xff]  ;;  %v4944_v35 = vld [vmem:[%s13840_s7 + $0x290] sm:$0xff]  ;;  %v9329_v41 = vpack.c.bf16 %v4955_v9, %v4951_v16  ;;  %v4989_v16 = vld [vmem:[%s13840_s7 + $0x3f8] sm:$0xff] }
 0x456   : > { %v7464_v27 = vpop.f32.mrb[149].mxu0  ;;  %v4946_v0 = vld [vmem:[%s13840_s7 + $0x2a0] sm:$0xff]  ;;  %v9455_v49 = vpack.c.bf16 %v4948_v22, %v4944_v35  ;;  %v4987_v35 = vld [vmem:[%s13840_s7 + $0x3e8] sm:$0xff]  ;;  %v4985_v22 = vld [vmem:[%s13840_s7 + $0x3d8] sm:$0xff] }
 0x457   : > { %v12964_v19 = vadd.f32 %v7464_v27, %v7463_v18  ;;  %v3987_v14 = vadd.f32 %v7409_v40, %v12794_v5  ;;  %9312 = vmatpush1.bf16.msra.mxu0 %v9311_v24  ;;  %v9313_v5 = vpack.c.bf16 %v4923_v2, %v4919_v36  ;;  %v9453_v18 = vpack.c.bf16 %v4949_v13, %v4945_v10  ;;  %v4953_v40 = vld [vmem:[%s13840_s7 + $0x2d8] sm:$0xff]  ;;  %v4950_v33 = vld [vmem:[%s13840_s7 + $0x2c0] sm:$0xff]  ;;  %v4952_v24 = vld [vmem:[%s13840_s7 + $0x2d0] sm:$0xff] }
 0x458   : > { %v4957_v27 = vld [vmem:[%s13840_s7 + $0x2f8] sm:$0xff]  ;;  %v9327_v59 = vpack.c.bf16 %v4946_v0, %v4942_v62  ;;  %v9331_v58 = vpack.c.bf16 %v4954_v45, %v4950_v33  ;;  %v4978_v10 = vld [vmem:[%s13840_s7 + $0x3a0] sm:$0xff]  ;;  %v4976_v13 = vld [vmem:[%s13840_s7 + $0x390] sm:$0xff] }
 0x459   : > { %v12983_v31 = vadd.f32 %v3987_v14, %v12790_v7  ;;  %v4920_v7 = vld [vmem:[%s13840_s7 + $0x1d0] sm:$0xff]  ;;  %9314 = vmatprep.subr.bf16.mxu0 %v9313_v5  ;;  %v9457_v37 = vpack.c.bf16 %v4957_v27, %v4953_v40  ;;  %v4959_v14 = vld [vmem:[%s13840_s7 + $0x308] sm:$0xff]  ;;  %v4961_v36 = vld [vmem:[%s13840_s7 + $0x318] sm:$0xff]  ;;  %v9459_v5 = vpack.c.bf16 %v4956_v54, %v4952_v24  ;;  %v9473_v40 = vpack.c.bf16 %v4989_v16, %v4985_v22 }
 0x45a   : > { %v9443_v6 = vpack.c.bf16 %v4924_v8, %v4920_v7  ;;  %v4965_v2 = vld [vmem:[%s13840_s7 + $0x338] sm:$0xff]  ;;  %v9333_v32 = vpack.c.bf16 %v4963_v55, %v4959_v14  ;;  %v4964_v7 = vld [vmem:[%s13840_s7 + $0x330] sm:$0xff]  ;;  %v4967_v8 = vld [vmem:[%s13840_s7 + $0x348] sm:$0xff] }
 0x45b   : > { %9316 = vmatpush1.bf16.msra.mxu0 %v9315_v20  ;;  %v9461_v20 = vpack.c.bf16 %v4965_v2, %v4961_v36  ;;  %v9463_v60 = vpack.c.bf16 %v4964_v7, %v4960_v1  ;;  %v4983_v62 = vld [vmem:[%s13840_s7 + $0x3c8] sm:$0xff]  ;;  %v4986_v27 = vld [vmem:[%s13840_s7 + $0x3e0] sm:$0xff]  ;;  %v4988_v33 = vld [vmem:[%s13840_s7 + $0x3f0] sm:$0xff] }
 0x45c   : > { %9444 = vmatpush1.bf16.msra.mxu1 %v9443_v6  ;;  %9318 = vmatprep.subr.bf16.mxu0 %v9317_v46  ;;  %v4969_v6 = vld [vmem:[%s13840_s7 + $0x358] sm:$0xff]  ;;  %v9337_v46 = vpack.c.bf16 %v4971_v30, %v4967_v8  ;;  %v9345_v9 = vpack.c.bf16 %v4987_v35, %v4983_v62  ;;  %v4991_v45 = vld [vmem:[%s13840_s7 + $0x408] sm:$0xff] }
 0x45d   : > { %9446 = vmatprep.subr.bf16.mxu1 %v9445_v21  ;;  %v4966_v21 = vld [vmem:[%s13840_s7 + $0x340] sm:$0xff]  ;;  %v9465_v52 = vpack.c.bf16 %v4973_v28, %v4969_v6  ;;  %v4995_v24 = vld [vmem:[%s13840_s7 + $0x428] sm:$0xff]  ;;  %v4997_v14 = vld [vmem:[%s13840_s7 + $0x438] sm:$0xff] }
 0x45e   : > { %v9339_v11 = vpack.c.bf16 %v4970_v44, %v4966_v21  ;;  %v9349_v54 = vpack.c.bf16 %v4995_v24, %v4991_v45  ;;  %v5003_v35 = vld [vmem:[%s13840_s7 + $0x468] sm:$0xff]  ;;  %v5001_v22 = vld [vmem:[%s13840_s7 + $0x458] sm:$0xff] }
 0x45f   : > { %9320 = vmatpush1.bf16.msra.mxu0 %v9319_v25  ;;  %v4972_v25 = vld [vmem:[%s13840_s7 + $0x370] sm:$0xff]  ;;  %v5005_v16 = vld [vmem:[%s13840_s7 + $0x478] sm:$0xff] }
 0x460   : > { %9448 = vmatpush1.bf16.msra.mxu1 %v9447_v51  ;;  %9322 = vmatprep.subr.bf16.mxu0 %v9321_v15  ;;  %v9467_v34 = vpack.c.bf16 %v4972_v25, %v4968_v12  ;;  %v9481_v24 = vpack.c.bf16 %v5005_v16, %v5001_v22  ;;  %v5045_v22 = vld [vmem:[%s13840_s7 + $0x5b8] sm:$0xff] }
 0x461   : > { %9450 = vmatprep.subr.bf16.mxu1 %v9449_v57  ;;  %v4975_v57 = vld [vmem:[%s13840_s7 + $0x388] sm:$0xff] }
 0x462   : > { %v9341_v50 = vpack.c.bf16 %v4979_v63, %v4975_v57 }
 0x463   : > { %9324 = vmatpush1.bf16.msra.mxu0 %v9323_v47 }
 0x464   : > { %9452 = vmatpush1.bf16.msra.mxu1 %v9451_v3  ;;  %9326 = vmatprep.subr.bf16.mxu0 %v9325_v56  ;;  %v9343_v56 = vpack.c.bf16 %v4978_v10, %v4974_v48 }
 0x465   : > { %9454 = vmatprep.subr.bf16.mxu1 %v9453_v18 }
 0x467   : > { %9328 = vmatpush1.bf16.msra.mxu0 %v9327_v59  ;;  %v4984_v59 = vld [vmem:[%s13840_s7 + $0x3d0] sm:$0xff] }
 0x468   : > { %9456 = vmatpush1.bf16.msra.mxu1 %v9455_v49  ;;  %9330 = vmatprep.subr.bf16.mxu0 %v9329_v41 }
 0x469   : > { %9458 = vmatprep.subr.bf16.mxu1 %v9457_v37  ;;  %v9475_v37 = vpack.c.bf16 %v4988_v33, %v4984_v59  ;;  %v5002_v59 = vld [vmem:[%s13840_s7 + $0x460] sm:$0xff]  ;;  %v5007_v33 = vld [vmem:[%s13840_s7 + $0x488] sm:$0xff] }
 0x46b   : > { %9332 = vmatpush1.bf16.msra.mxu0 %v9331_v58 }
 0x46c   : > { %9460 = vmatpush1.bf16.msra.mxu1 %v9459_v5  ;;  %9334 = vmatprep.subr.bf16.mxu0 %v9333_v32 }
 0x46d   : > { %9462 = vmatprep.subr.bf16.mxu1 %v9461_v20 }
 0x46f   : > { %9336 = vmatpush1.bf16.msra.mxu0 %v9335_v17 }
 0x470   : > { %9464 = vmatpush1.bf16.msra.mxu1 %v9463_v60  ;;  %9338 = vmatprep.subr.bf16.mxu0 %v9337_v46 }
 0x471   : > { %v7498_v38 = vpop.f32.mrb[150].mxu0  ;;  %9466 = vmatprep.subr.bf16.mxu1 %v9465_v52 }
 0x472   : > { %v7499_v51 = vpop.f32.mrb[151].mxu0 }
 0x473   : > { %v7500_v15 = vadd.f32 %v7499_v51, %v7498_v38  ;;  %9340 = vmatpush1.bf16.msra.mxu0 %v9339_v11 }
 0x474   : > { %9468 = vmatpush1.bf16.msra.mxu1 %v9467_v34  ;;  %9342 = vmatprep.subr.bf16.mxu0 %v9341_v50 }
 0x475   : > { %v4308_v4 = vadd.f32 %v7500_v15, %v12940_v42  ;;  %v7501_v39 = vpop.f32.mrb[152].mxu0  ;;  %v4981_v42 = vld [vmem:[%s13840_s7 + $0x3b8] sm:$0xff] }
 0x476   : > { %v7502_v43 = vpop.f32.mrb[153].mxu0  ;;  %v9469_v3 = vpack.c.bf16 %v4981_v42, %v4977_v61 }
 0x477   : > { %v7503_v29 = vadd.f32 %v7502_v43, %v7501_v39  ;;  %v9613_v47 = vadd.f32 %v12953_v53, %v4308_v4  ;;  %v4980_v53 = vld [vmem:[%s13840_s7 + $0x3b0] sm:$0xff]  ;;  %9344 = vmatpush1.bf16.msra.mxu0 %v9343_v56  ;;  %v4994_v56 = vld [vmem:[%s13840_s7 + $0x420] sm:$0xff] }
 0x478   : > { %v9471_v18 = vpack.c.bf16 %v4980_v53, %v4976_v13  ;;  %9470 = vmatprep.subr.bf16.mxu1 %v9469_v3  ;;  %9346 = vmatprep.subr.bf16.mxu0 %v9345_v9  ;;  %v4990_v3 = vld [vmem:[%s13840_s7 + $0x400] sm:$0xff]  ;;  %v4992_v13 = vld [vmem:[%s13840_s7 + $0x410] sm:$0xff] }
 0x479   : > { %v4313_v0 = vadd.f32 %v7503_v29, %v12964_v19  ;;  %v4982_v19 = vld [vmem:[%s13840_s7 + $0x3c0] sm:$0xff]  ;;  %v4996_v53 = vld [vmem:[%s13840_s7 + $0x430] sm:$0xff] }
 0x47a   : > { %9472 = vmatpush1.bf16.msra.mxu1 %v9471_v18  ;;  %v9347_v41 = vpack.c.bf16 %v4986_v27, %v4982_v19  ;;  %v6521_v29 = vld [vmem:[%s13839_s6] ss:$0 sm:$0xff]  ;;  %v9479_v19 = vpack.c.bf16 %v4996_v53, %v4992_v13  ;;  %v5032_v13 = vld [vmem:[%s13840_s7 + $0x550] sm:$0xff] }
 0x47b   : > { %v9606_v49 = vadd.f32 %v12983_v31, %v4313_v0  ;;  %9474 = vmatprep.subr.bf16.mxu1 %v9473_v40  ;;  %v4993_v31 = vld [vmem:[%s13840_s7 + $0x418] sm:$0xff]  ;;  %v4999_v0 = vld [vmem:[%s13840_s7 + $0x448] sm:$0xff]  ;;  %v9351_v40 = vpack.c.bf16 %v4994_v56, %v4990_v3  ;;  %v4998_v27 = vld [vmem:[%s13840_s7 + $0x440] sm:$0xff] }
 0x47c   : > { %v9477_v55 = vpack.c.bf16 %v4997_v14, %v4993_v31  ;;  %9348 = vmatpush1.bf16.msra.mxu0 %v9347_v41  ;;  %v5004_v41 = vld [vmem:[%s13840_s7 + $0x470] sm:$0xff]  ;;  %v9353_v45 = vpack.c.bf16 %v5003_v35, %v4999_v0  ;;  %v5013_v31 = vld [vmem:[%s13840_s7 + $0x4b8] sm:$0xff]  ;;  %v5043_v0 = vld [vmem:[%s13840_s7 + $0x5a8] sm:$0xff] }
 0x47d   : > { %9350 = vmatprep.subr.bf16.mxu0 %v9349_v54  ;;  %v5009_v54 = vld [vmem:[%s13840_s7 + $0x498] sm:$0xff]  ;;  %v5036_v53 = vld [vmem:[%s13840_s7 + $0x570] sm:$0xff] }
 0x47e   : > { %9476 = vmatpush1.bf16.msra.mxu1 %v9475_v37  ;;  %v5011_v37 = vld [vmem:[%s13840_s7 + $0x4a8] sm:$0xff]  ;;  %v5041_v35 = vld [vmem:[%s13840_s7 + $0x598] sm:$0xff] }
 0x47f   : > { %9478 = vmatprep.subr.bf16.mxu1 %v9477_v55  ;;  %v9355_v55 = vpack.c.bf16 %v5002_v59, %v4998_v27  ;;  %v9501_v59 = vpack.c.bf16 %v5045_v22, %v5041_v35  ;;  %v5078_v22 = vld [vmem:[%s13840_s7 + $0x6c0] sm:$0xff] }
 0x491   : > { %v7554_v36 = vpop.f32.mrb[154].mxu0 }
 0x492   : > { %v7555_v2 = vpop.f32.mrb[155].mxu0 }
 0x493   : > { %v7556_v58 = vadd.f32 %v7555_v2, %v7554_v36  ;;  %v5006_v2 = vld [vmem:[%s13840_s7 + $0x480] sm:$0xff] }
 0x495   : > { %v9614_v5 = vadd.f32 %v9613_v47, %v7556_v58  ;;  %v7557_v32 = vpop.f32.mrb[156].mxu0  ;;  %v5010_v58 = vld [vmem:[%s13840_s7 + $0x4a0] sm:$0xff] }
 0x496   : > { %v7558_v23 = vpop.f32.mrb[157].mxu0 }
 0x497   : > { %v7559_v26 = vadd.f32 %v7558_v23, %v7557_v32  ;;  %v9485_v32 = vpack.c.bf16 %v5013_v31, %v5009_v54  ;;  %v5008_v23 = vld [vmem:[%s13840_s7 + $0x490] sm:$0xff] }
 0x499   : > { %v9607_v1 = vadd.f32 %v9606_v49, %v7559_v26  ;;  %v5000_v49 = vld [vmem:[%s13840_s7 + $0x450] sm:$0xff] }
 0x49a   : > { %v9483_v36 = vpack.c.bf16 %v5004_v41, %v5000_v49  ;;  %v5012_v26 = vld [vmem:[%s13840_s7 + $0x4b0] sm:$0xff] }
 0x49b   : > { %v5040_v49 = vld [vmem:[%s13840_s7 + $0x590] sm:$0xff] }
 0x49c   : > { %v5044_v41 = vld [vmem:[%s13840_s7 + $0x5b0] sm:$0xff] }
 0x49d   : > { %v9503_v31 = vpack.c.bf16 %v5044_v41, %v5040_v49  ;;  %v5091_v49 = vld [vmem:[%s13840_s7 + $0x728] sm:$0xff]  ;;  %v5089_v41 = vld [vmem:[%s13840_s7 + $0x718] sm:$0xff] }
 0x4af   : > { %v7592_v20 = vpop.f32.mrb[136].mxu1 }
 0x4b0   : > { %v7593_v7 = vpop.f32.mrb[137].mxu1 }
 0x4b1   : > { %v7648_v8 = vpop.f32.mrb[158].mxu0  ;;  %v7594_v30 = vadd.f32 %v7593_v7, %v7592_v20  ;;  %v5019_v20 = vld [vmem:[%s13840_s7 + $0x4e8] sm:$0xff]  ;;  %v5017_v7 = vld [vmem:[%s13840_s7 + $0x4d8] sm:$0xff] }
 0x4b2   : > { %v7649_v6 = vpop.f32.mrb[159].mxu0 }
 0x4b3   : > { %v9615_v28 = vadd.f32 %v9614_v5, %v7594_v30  ;;  %v7650_v17 = vadd.f32 %v7649_v6, %v7648_v8  ;;  %v7595_v60 = vpop.f32.mrb[138].mxu1  ;;  %v9357_v5 = vpack.c.bf16 %v5011_v37, %v5007_v33  ;;  %v5021_v8 = vld [vmem:[%s13840_s7 + $0x4f8] sm:$0xff]  ;;  %v9359_v30 = vpack.c.bf16 %v5010_v58, %v5006_v2  ;;  %v5047_v33 = vld [vmem:[%s13840_s7 + $0x5c8] sm:$0xff]  ;;  %v5048_v58 = vld [vmem:[%s13840_s7 + $0x5d0] sm:$0xff] }
 0x4b4   : > { %v7596_v46 = vpop.f32.mrb[139].mxu1  ;;  %v9487_v6 = vpack.c.bf16 %v5012_v26, %v5008_v23  ;;  %v5053_v37 = vld [vmem:[%s13840_s7 + $0x5f8] sm:$0xff]  ;;  %v5059_v23 = vld [vmem:[%s13840_s7 + $0x628] sm:$0xff] }
 0x4b5   : > { %v9616_v21 = vadd.f32 %v9615_v28, %v7650_v17  ;;  %v7651_v44 = vpop.f32.mrb[160].mxu0  ;;  %v7597_v52 = vadd.f32 %v7596_v46, %v7595_v60  ;;  %v5014_v28 = vld [vmem:[%s13840_s7 + $0x4c0] sm:$0xff]  ;;  %v9489_v46 = vpack.c.bf16 %v5021_v8, %v5017_v7  ;;  %v5057_v26 = vld [vmem:[%s13840_s7 + $0x618] sm:$0xff] }
 0x4b6   : > { %v7652_v12 = vpop.f32.mrb[161].mxu0  ;;  %v5018_v17 = vld [vmem:[%s13840_s7 + $0x4e0] sm:$0xff] }
 0x4b7   : > { %v9608_v25 = vadd.f32 %v9607_v1, %v7597_v52  ;;  %v7653_v11 = vadd.f32 %v7652_v12, %v7651_v44  ;;  %v5015_v1 = vld [vmem:[%s13840_s7 + $0x4c8] sm:$0xff]  ;;  %v5020_v44 = vld [vmem:[%s13840_s7 + $0x4f0] sm:$0xff]  ;;  %v5054_v8 = vld [vmem:[%s13840_s7 + $0x600] sm:$0xff] }
 0x4b8   : > { %v9361_v60 = vpack.c.bf16 %v5019_v20, %v5015_v1  ;;  %v5023_v52 = vld [vmem:[%s13840_s7 + $0x508] sm:$0xff]  ;;  %v5061_v1 = vld [vmem:[%s13840_s7 + $0x638] sm:$0xff] }
 0x4b9   : > { %v9609_v38 = vadd.f32 %v9608_v25, %v7653_v11  ;;  %v5027_v12 = vld [vmem:[%s13840_s7 + $0x528] sm:$0xff]  ;;  %v5025_v25 = vld [vmem:[%s13840_s7 + $0x518] sm:$0xff] }
 0x4ba   : > { %v5029_v11 = vld [vmem:[%s13840_s7 + $0x538] sm:$0xff] }
 0x4d1   : > { %v7686_v34 = vpop.f32.mrb[162].mxu0 }
 0x4d2   : > { %v7687_v51 = vpop.f32.mrb[163].mxu0 }
 0x4d3   : > { %v7688_v15 = vadd.f32 %v7687_v51, %v7686_v34  ;;  %v5022_v51 = vld [vmem:[%s13840_s7 + $0x500] sm:$0xff] }
 0x4d5   : > { %v7689_v4 = vpop.f32.mrb[164].mxu0  ;;  %v9617_v39 = vadd.f32 %v9616_v21, %v7688_v15  ;;  %v5016_v21 = vld [vmem:[%s13840_s7 + $0x4d0] sm:$0xff]  ;;  %v5026_v15 = vld [vmem:[%s13840_s7 + $0x520] sm:$0xff] }
 0x4d6   : > { %v7690_v43 = vpop.f32.mrb[165].mxu0  ;;  %v9491_v34 = vpack.c.bf16 %v5020_v44, %v5016_v21  ;;  %v5067_v21 = vld [vmem:[%s13840_s7 + $0x668] sm:$0xff]  ;;  %v5065_v44 = vld [vmem:[%s13840_s7 + $0x658] sm:$0xff] }
 0x4d7   : > { %v7691_v57 = vadd.f32 %v7690_v43, %v7689_v4  ;;  %v9365_v4 = vpack.c.bf16 %v5027_v12, %v5023_v52  ;;  %v5024_v43 = vld [vmem:[%s13840_s7 + $0x510] sm:$0xff]  ;;  %v5069_v52 = vld [vmem:[%s13840_s7 + $0x678] sm:$0xff] }
 0x4d9   : > { %v9610_v63 = vadd.f32 %v9609_v38, %v7691_v57  ;;  %v9363_v38 = vpack.c.bf16 %v5018_v17, %v5014_v28  ;;  %v5028_v57 = vld [vmem:[%s13840_s7 + $0x530] sm:$0xff]  ;;  %v9509_v28 = vpack.c.bf16 %v5061_v1, %v5057_v26  ;;  %v5094_v1 = vld [vmem:[%s13840_s7 + $0x740] sm:$0xff] }
 0x4da   : > { %v5056_v17 = vld [vmem:[%s13840_s7 + $0x610] sm:$0xff] }
 0x4ef   : > { %v8332_v61 = vpop.f32.mrb[130].mxu1 }
 0x4f0   : > { %v9611_v47 = vadd.f32 %v9610_v63, %v8332_v61  ;;  %v4832_v50 = vpop.f32.mrb[131].mxu1  ;;  %v5031_v63 = vld [vmem:[%s13840_s7 + $0x548] sm:$0xff] }
 0x4f1   : > { %v9618_v42 = vadd.f32 %v9617_v39, %v4832_v50  ;;  %v9493_v39 = vpack.c.bf16 %v5029_v11, %v5025_v25  ;;  %v5035_v61 = vld [vmem:[%s13840_s7 + $0x568] sm:$0xff]  ;;  %v9367_v50 = vpack.c.bf16 %v5026_v15, %v5022_v51  ;;  %v5062_v11 = vld [vmem:[%s13840_s7 + $0x640] sm:$0xff]  ;;  %v9513_v51 = vpack.c.bf16 %v5069_v52, %v5065_v44  ;;  %v5064_v15 = vld [vmem:[%s13840_s7 + $0x650] sm:$0xff] }
 0x4f2   : > { %v4853_v48 = vadd.f32 %v9611_v47, %v6521_v29  ;;  %v5037_v47 = vld [vmem:[%s13840_s7 + $0x578] sm:$0xff]  ;;  %v9369_v3 = vpack.c.bf16 %v5035_v61, %v5031_v63  ;;  %v5102_v52 = vld [vmem:[%s13840_s7 + $0x780] sm:$0xff] }
 0x4f3   : > { %v4852_v10 = vadd.f32 %v9618_v42, %v6521_v29  ;;  %v5033_v29 = vld [vmem:[%s13840_s7 + $0x558] sm:$0xff]  ;;  %v9495_v42 = vpack.c.bf16 %v5028_v57, %v5024_v43  ;;  %v5075_v43 = vld [vmem:[%s13840_s7 + $0x6a8] sm:$0xff] }
 0x4f4   : > { %v13226_v18 = vmax.f32 %v4853_v48, 0.0  ;;  %v5030_v48 = vld [vmem:[%s13840_s7 + $0x540] sm:$0xff]  ;;  %v9497_v56 = vpack.c.bf16 %v5037_v47, %v5033_v29  ;;  %v5073_v57 = vld [vmem:[%s13840_s7 + $0x698] sm:$0xff] }
 0x4f5   : > { %v4854_v62 = vmax.f32 %v4852_v10, 0.0  ;;  %v5034_v10 = vld [vmem:[%s13840_s7 + $0x560] sm:$0xff]  ;;  %v5077_v63 = vld [vmem:[%s13840_s7 + $0x6b8] sm:$0xff] }
 0x4f6   : > { %v4860_v14 = vrot.slane %v13226_v18, 1  ;;  %v9371_v16 = vpack.c.bf16 %v5034_v10, %v5030_v48  ;;  %v5070_v47 = vld [vmem:[%s13840_s7 + $0x680] sm:$0xff]  ;;  %v9517_v48 = vpack.c.bf16 %v5077_v63, %v5073_v57  ;;  %v5072_v10 = vld [vmem:[%s13840_s7 + $0x690] sm:$0xff] }
 0x4f7   : > { %v4857_v9 = vrot.slane %v4854_v62, 1  ;;  %v5110_v63 = vld [vmem:[%s13840_s7 + $0x7c0] sm:$0xff] }
 0x4f9   : > { %5204 = vmatprep.mubr.f32.mxu0 %v4857_v9  ;;  %5346 = vmatprep.mubr.f32.mxu1 %v4857_v9  ;;  %v9499_v9 = vpack.c.bf16 %v5036_v53, %v5032_v13  ;;  %v5083_v13 = vld [vmem:[%s13840_s7 + $0x6e8] sm:$0xff]  ;;  %v5081_v53 = vld [vmem:[%s13840_s7 + $0x6d8] sm:$0xff] }
 0x4fa   : > { %5205 = vmatmul.mubr.f32.vlgmr.msra.gmra.mrb[166].mxu0 %v4854_v62  ;;  %5347 = vmatmul.mubr.f32.vlgmr.msra.gmra.mrb[140].mxu1 %v4854_v62  ;;  %v5039_v62 = vld [vmem:[%s13840_s7 + $0x588] sm:$0xff] }
 0x4fb   : > { %9352 = vmatpush1.bf16.msra.mxu0 %v9351_v40  ;;  %9480 = vmatpush1.bf16.msra.mxu1 %v9479_v19  ;;  %v5038_v40 = vld [vmem:[%s13840_s7 + $0x580] sm:$0xff]  ;;  %v9373_v27 = vpack.c.bf16 %v5043_v0, %v5039_v62  ;;  %v5085_v62 = vld [vmem:[%s13840_s7 + $0x6f8] sm:$0xff] }
 0x4fc   : > { %5275 = vmatprep.mubr.f32.mxu0 %v4860_v14  ;;  %5417 = vmatprep.mubr.f32.mxu1 %v4860_v14  ;;  %v5042_v19 = vld [vmem:[%s13840_s7 + $0x5a0] sm:$0xff] }
 0x4fd   : > { %9354 = vmatprep.subr.bf16.mxu0 %v9353_v45  ;;  %9482 = vmatprep.subr.bf16.mxu1 %v9481_v24  ;;  %v5051_v45 = vld [vmem:[%s13840_s7 + $0x5e8] sm:$0xff]  ;;  %v5049_v24 = vld [vmem:[%s13840_s7 + $0x5d8] sm:$0xff]  ;;  %v9375_v54 = vpack.c.bf16 %v5042_v19, %v5038_v40  ;;  %v5046_v14 = vld [vmem:[%s13840_s7 + $0x5c0] sm:$0xff]  ;;  %v9521_v40 = vpack.c.bf16 %v5085_v62, %v5081_v53 }
 0x4fe   : > { %v9505_v2 = vpack.c.bf16 %v5053_v37, %v5049_v24  ;;  %v5080_v19 = vld [vmem:[%s13840_s7 + $0x6d0] sm:$0xff]  ;;  %v5086_v37 = vld [vmem:[%s13840_s7 + $0x700] sm:$0xff] }
 0x4ff   : > { %9356 = vmatpush1.bf16.msra.mxu0 %v9355_v55  ;;  %9484 = vmatpush1.bf16.msra.mxu1 %v9483_v36  ;;  %v5050_v55 = vld [vmem:[%s13840_s7 + $0x5e0] sm:$0xff]  ;;  %v9377_v36 = vpack.c.bf16 %v5051_v45, %v5047_v33  ;;  %v5093_v33 = vld [vmem:[%s13840_s7 + $0x738] sm:$0xff] }
 0x500   : > { %9358 = vmatprep.subr.bf16.mxu0 %v9357_v5  ;;  %9486 = vmatprep.subr.bf16.mxu1 %v9485_v32  ;;  %v5052_v5 = vld [vmem:[%s13840_s7 + $0x5f0] sm:$0xff]  ;;  %v5055_v32 = vld [vmem:[%s13840_s7 + $0x608] sm:$0xff]  ;;  %v9379_v20 = vpack.c.bf16 %v5050_v55, %v5046_v14  ;;  %v9525_v14 = vpack.c.bf16 %v5093_v33, %v5089_v41  ;;  %v5428_v62 = vld [vmem:[%s13842_s9] sm:$0xff] }
 0x501   : > { %v9507_v7 = vpack.c.bf16 %v5052_v5, %v5048_v58  ;;  %v5088_v55 = vld [vmem:[%s13840_s7 + $0x710] sm:$0xff]  ;;  %v5099_v58 = vld [vmem:[%s13840_s7 + $0x768] sm:$0xff]  ;;  %v5097_v5 = vld [vmem:[%s13840_s7 + $0x758] sm:$0xff] }
 0x502   : > { %v5430_v33 = vld [vmem:[%s13842_s9 + $0x10] sm:$0xff] }
 0x503   : > { %9360 = vmatpush1.bf16.msra.mxu0 %v9359_v30  ;;  %9488 = vmatpush1.bf16.msra.mxu1 %v9487_v6  ;;  %v5058_v30 = vld [vmem:[%s13840_s7 + $0x620] sm:$0xff]  ;;  %v9381_v6 = vpack.c.bf16 %v5059_v23, %v5055_v32  ;;  %v5101_v32 = vld [vmem:[%s13840_s7 + $0x778] sm:$0xff] }
 0x504   : > { %9362 = vmatprep.subr.bf16.mxu0 %v9361_v60  ;;  %9490 = vmatprep.subr.bf16.mxu1 %v9489_v46  ;;  %v5060_v60 = vld [vmem:[%s13840_s7 + $0x630] sm:$0xff]  ;;  %v5063_v46 = vld [vmem:[%s13840_s7 + $0x648] sm:$0xff]  ;;  %v9383_v12 = vpack.c.bf16 %v5058_v30, %v5054_v8  ;;  %v9529_v8 = vpack.c.bf16 %v5101_v32, %v5097_v5  ;;  %v5432_v32 = vld [vmem:[%s13842_s9 + $0x20] sm:$0xff] }
 0x505   : > { %v9511_v25 = vpack.c.bf16 %v5060_v60, %v5056_v17  ;;  %v5096_v30 = vld [vmem:[%s13840_s7 + $0x750] sm:$0xff]  ;;  %v5107_v17 = vld [vmem:[%s13840_s7 + $0x7a8] sm:$0xff]  ;;  %v5105_v60 = vld [vmem:[%s13840_s7 + $0x798] sm:$0xff] }
 0x507   : > { %9364 = vmatpush1.bf16.msra.mxu0 %v9363_v38  ;;  %9492 = vmatpush1.bf16.msra.mxu1 %v9491_v34  ;;  %v5066_v38 = vld [vmem:[%s13840_s7 + $0x660] sm:$0xff]  ;;  %v9385_v34 = vpack.c.bf16 %v5067_v21, %v5063_v46  ;;  %v5109_v46 = vld [vmem:[%s13840_s7 + $0x7b8] sm:$0xff] }
 0x508   : > { %9366 = vmatprep.subr.bf16.mxu0 %v9365_v4  ;;  %9494 = vmatprep.subr.bf16.mxu1 %v9493_v39  ;;  %v5068_v4 = vld [vmem:[%s13840_s7 + $0x670] sm:$0xff]  ;;  %v5071_v39 = vld [vmem:[%s13840_s7 + $0x688] sm:$0xff]  ;;  %v9387_v61 = vpack.c.bf16 %v5066_v38, %v5062_v11  ;;  %v9533_v11 = vpack.c.bf16 %v5109_v46, %v5105_v60  ;;  %v5435_v46 = vld [vmem:[%s13842_s9 + $0x38] sm:$0xff] }
 0x509   : > { %v9515_v29 = vpack.c.bf16 %v5068_v4, %v5064_v15  ;;  %v5104_v38 = vld [vmem:[%s13840_s7 + $0x790] sm:$0xff]  ;;  %v5115_v15 = vld [vmem:[%s13840_s7 + $0x7e8] sm:$0xff]  ;;  %v5113_v4 = vld [vmem:[%s13840_s7 + $0x7d8] sm:$0xff] }
 0x50a   : > { %v5434_v60 = vld [vmem:[%s13842_s9 + $0x30] sm:$0xff] }
 0x50b   : > { %9368 = vmatpush1.bf16.msra.mxu0 %v9367_v50  ;;  %9496 = vmatpush1.bf16.msra.mxu1 %v9495_v42  ;;  %v5074_v50 = vld [vmem:[%s13840_s7 + $0x6a0] sm:$0xff]  ;;  %v9389_v42 = vpack.c.bf16 %v5075_v43, %v5071_v39  ;;  %v5117_v39 = vld [vmem:[%s13840_s7 + $0x7f8] sm:$0xff] }
 0x50c   : > { %9370 = vmatprep.subr.bf16.mxu0 %v9369_v3  ;;  %9498 = vmatprep.subr.bf16.mxu1 %v9497_v56  ;;  %v5076_v3 = vld [vmem:[%s13840_s7 + $0x6b0] sm:$0xff]  ;;  %v5079_v56 = vld [vmem:[%s13840_s7 + $0x6c8] sm:$0xff]  ;;  %v9391_v0 = vpack.c.bf16 %v5074_v50, %v5070_v47  ;;  %v9537_v47 = vpack.c.bf16 %v5117_v39, %v5113_v4  ;;  %v5436_v4 = vld [vmem:[%s13842_s9 + $0x40] sm:$0xff] }
 0x50d   : > { %v9519_v35 = vpack.c.bf16 %v5076_v3, %v5072_v10  ;;  %v5112_v50 = vld [vmem:[%s13840_s7 + $0x7d0] sm:$0xff]  ;;  %v5445_v10 = vld [vmem:[%s13842_s9 + $0x88] sm:$0xff]  ;;  %v5476_v3 = vld [vmem:[%s13842_s9 + $0x180] sm:$0xff] }
 0x50e   : > { %v5437_v39 = vld [vmem:[%s13842_s9 + $0x48] sm:$0xff] }
 0x50f   : > { %9372 = vmatpush1.bf16.msra.mxu0 %v9371_v16  ;;  %9500 = vmatpush1.bf16.msra.mxu1 %v9499_v9  ;;  %v5082_v16 = vld [vmem:[%s13840_s7 + $0x6e0] sm:$0xff]  ;;  %v9393_v9 = vpack.c.bf16 %v5083_v13, %v5079_v56  ;;  %v5477_v56 = vld [vmem:[%s13842_s9 + $0x188] sm:$0xff] }
 0x510   : > { %9374 = vmatprep.subr.bf16.mxu0 %v9373_v27  ;;  %9502 = vmatprep.subr.bf16.mxu1 %v9501_v59  ;;  %v5084_v27 = vld [vmem:[%s13840_s7 + $0x6f0] sm:$0xff]  ;;  %v5087_v59 = vld [vmem:[%s13840_s7 + $0x708] sm:$0xff]  ;;  %v9395_v45 = vpack.c.bf16 %v5082_v16, %v5078_v22  ;;  %v9573_v22 = vpack.c.bf16 %v5477_v56, %v5476_v3  ;;  %v5460_v16 = vld [vmem:[%s13842_s9 + $0x100] sm:$0xff] }
 0x511   : > { %v9523_v24 = vpack.c.bf16 %v5084_v27, %v5080_v19  ;;  %v5447_v19 = vld [vmem:[%s13842_s9 + $0x98] sm:$0xff]  ;;  %v5478_v27 = vld [vmem:[%s13842_s9 + $0x190] sm:$0xff] }
 0x512   : > { %v5438_v3 = vld [vmem:[%s13842_s9 + $0x50] sm:$0xff]  ;;  %v5439_v56 = vld [vmem:[%s13842_s9 + $0x58] sm:$0xff] }
 0x513   : > { %9376 = vmatpush1.bf16.msra.mxu0 %v9375_v54  ;;  %9504 = vmatpush1.bf16.msra.mxu1 %v9503_v31  ;;  %v5090_v54 = vld [vmem:[%s13840_s7 + $0x720] sm:$0xff]  ;;  %v9397_v31 = vpack.c.bf16 %v5091_v49, %v5087_v59  ;;  %v5479_v59 = vld [vmem:[%s13842_s9 + $0x198] sm:$0xff] }
 0x514   : > { %9378 = vmatprep.subr.bf16.mxu0 %v9377_v36  ;;  %9506 = vmatprep.subr.bf16.mxu1 %v9505_v2  ;;  %v5092_v36 = vld [vmem:[%s13840_s7 + $0x730] sm:$0xff]  ;;  %v5095_v2 = vld [vmem:[%s13840_s7 + $0x748] sm:$0xff]  ;;  %v9399_v23 = vpack.c.bf16 %v5090_v54, %v5086_v37  ;;  %v9577_v37 = vpack.c.bf16 %v5479_v59, %v5478_v27 }
 0x515   : > { %v9527_v26 = vpack.c.bf16 %v5092_v36, %v5088_v55  ;;  %v5462_v54 = vld [vmem:[%s13842_s9 + $0x110] sm:$0xff]  ;;  %v5449_v55 = vld [vmem:[%s13842_s9 + $0xa8] sm:$0xff]  ;;  %v5480_v36 = vld [vmem:[%s13842_s9 + $0x1a0] sm:$0xff] }
 0x517   : > { %9380 = vmatpush1.bf16.msra.mxu0 %v9379_v20  ;;  %9508 = vmatpush1.bf16.msra.mxu1 %v9507_v7  ;;  %v5098_v20 = vld [vmem:[%s13840_s7 + $0x760] sm:$0xff]  ;;  %v9401_v7 = vpack.c.bf16 %v5099_v58, %v5095_v2  ;;  %v5481_v2 = vld [vmem:[%s13842_s9 + $0x1a8] sm:$0xff] }
 0x518   : > { %9382 = vmatprep.subr.bf16.mxu0 %v9381_v6  ;;  %9510 = vmatprep.subr.bf16.mxu1 %v9509_v28  ;;  %v5100_v6 = vld [vmem:[%s13840_s7 + $0x770] sm:$0xff]  ;;  %v5103_v28 = vld [vmem:[%s13840_s7 + $0x788] sm:$0xff]  ;;  %v9403_v21 = vpack.c.bf16 %v5098_v20, %v5094_v1  ;;  %v9581_v1 = vpack.c.bf16 %v5481_v2, %v5480_v36  ;;  %v5491_v36 = vld [vmem:[%s13842_s9 + $0x1f8] sm:$0xff] }
 0x519   : > { %v9531_v44 = vpack.c.bf16 %v5100_v6, %v5096_v30  ;;  %v5465_v20 = vld [vmem:[%s13842_s9 + $0x128] sm:$0xff]  ;;  %v5482_v30 = vld [vmem:[%s13842_s9 + $0x1b0] sm:$0xff]  ;;  %v5483_v6 = vld [vmem:[%s13842_s9 + $0x1b8] sm:$0xff] }
 0x51a   : > { %v5442_v2 = vld [vmem:[%s13842_s9 + $0x70] sm:$0xff] }
 0x51b   : > { %9384 = vmatpush1.bf16.msra.mxu0 %v9383_v12  ;;  %9512 = vmatpush1.bf16.msra.mxu1 %v9511_v25  ;;  %v5106_v12 = vld [vmem:[%s13840_s7 + $0x7a0] sm:$0xff]  ;;  %v9405_v25 = vpack.c.bf16 %v5107_v17, %v5103_v28 }
 0x51c   : > { %9386 = vmatprep.subr.bf16.mxu0 %v9385_v34  ;;  %9514 = vmatprep.subr.bf16.mxu1 %v9513_v51  ;;  %v5108_v34 = vld [vmem:[%s13840_s7 + $0x7b0] sm:$0xff]  ;;  %v5111_v51 = vld [vmem:[%s13840_s7 + $0x7c8] sm:$0xff]  ;;  %v9407_v43 = vpack.c.bf16 %v5106_v12, %v5102_v52  ;;  %v5467_v12 = vld [vmem:[%s13842_s9 + $0x138] sm:$0xff] }
 0x51d   : > { %v9535_v57 = vpack.c.bf16 %v5108_v34, %v5104_v38  ;;  %v5466_v52 = vld [vmem:[%s13842_s9 + $0x130] sm:$0xff]  ;;  %v5484_v38 = vld [vmem:[%s13842_s9 + $0x1c0] sm:$0xff]  ;;  %v5485_v34 = vld [vmem:[%s13842_s9 + $0x1c8] sm:$0xff] }
 0x51f   : > { %9388 = vmatpush1.bf16.msra.mxu0 %v9387_v61  ;;  %9516 = vmatpush1.bf16.msra.mxu1 %v9515_v29  ;;  %v5114_v61 = vld [vmem:[%s13840_s7 + $0x7e0] sm:$0xff]  ;;  %v9409_v29 = vpack.c.bf16 %v5115_v15, %v5111_v51  ;;  %v9555_v51 = vpack.c.bf16 %v5435_v46, %v5434_v60  ;;  %v9587_v15 = vpack.c.bf16 %v5467_v12, %v5466_v52 }
 0x520   : > { %9390 = vmatprep.subr.bf16.mxu0 %v9389_v42  ;;  %9518 = vmatprep.subr.bf16.mxu1 %v9517_v48  ;;  %v5116_v42 = vld [vmem:[%s13840_s7 + $0x7f0] sm:$0xff]  ;;  %v5444_v48 = vld [vmem:[%s13842_s9 + $0x80] sm:$0xff]  ;;  %v9411_v13 = vpack.c.bf16 %v5114_v61, %v5110_v63  ;;  %v5469_v61 = vld [vmem:[%s13842_s9 + $0x148] sm:$0xff] }
 0x521   : > { %v9539_v53 = vpack.c.bf16 %v5116_v42, %v5112_v50  ;;  %v5468_v63 = vld [vmem:[%s13842_s9 + $0x140] sm:$0xff]  ;;  %v5486_v50 = vld [vmem:[%s13842_s9 + $0x1d0] sm:$0xff]  ;;  %v5487_v42 = vld [vmem:[%s13842_s9 + $0x1d8] sm:$0xff] }
 0x523   : > { %9392 = vmatpush1.bf16.msra.mxu0 %v9391_v0  ;;  %9520 = vmatpush1.bf16.msra.mxu1 %v9519_v35  ;;  %v5429_v0 = vld [vmem:[%s13842_s9 + $0x8] sm:$0xff]  ;;  %v9541_v35 = vpack.c.bf16 %v5445_v10, %v5444_v48  ;;  %v9559_v48 = vpack.c.bf16 %v5437_v39, %v5436_v4  ;;  %v9591_v10 = vpack.c.bf16 %v5469_v61, %v5468_v63  ;;  %v5492_v61 = vld [vmem:[%s13843_s10] sm:$0x1] }
 0x524   : > { %9394 = vmatprep.subr.bf16.mxu0 %v9393_v9  ;;  %9522 = vmatprep.subr.bf16.mxu1 %v9521_v40  ;;  %v5461_v9 = vld [vmem:[%s13842_s9 + $0x108] sm:$0xff]  ;;  %v5446_v40 = vld [vmem:[%s13842_s9 + $0x90] sm:$0xff]  ;;  %v9543_v49 = vpack.c.bf16 %v5429_v0, %v5428_v62  ;;  %v5471_v0 = vld [vmem:[%s13842_s9 + $0x158] sm:$0xff] }
 0x525   : > { %v9575_v41 = vpack.c.bf16 %v5461_v9, %v5460_v16  ;;  %v5470_v62 = vld [vmem:[%s13842_s9 + $0x150] sm:$0xff]  ;;  %v5488_v16 = vld [vmem:[%s13842_s9 + $0x1e0] sm:$0xff]  ;;  %v5489_v9 = vld [vmem:[%s13842_s9 + $0x1e8] sm:$0xff] }
 0x526   : > { %v9597_v59 = vpack.c.bf16 %v5489_v9, %v5488_v16 }
 0x527   : > { %9396 = vmatpush1.bf16.msra.mxu0 %v9395_v45  ;;  %9524 = vmatpush1.bf16.msra.mxu1 %v9523_v24  ;;  %v5431_v45 = vld [vmem:[%s13842_s9 + $0x18] sm:$0xff]  ;;  %v9545_v24 = vpack.c.bf16 %v5447_v19, %v5446_v40  ;;  %v9563_v40 = vpack.c.bf16 %v5439_v56, %v5438_v3  ;;  %v9595_v19 = vpack.c.bf16 %v5471_v0, %v5470_v62 }
 0x528   : > { %9398 = vmatprep.subr.bf16.mxu0 %v9397_v31  ;;  %9526 = vmatprep.subr.bf16.mxu1 %v9525_v14  ;;  %v5463_v31 = vld [vmem:[%s13842_s9 + $0x118] sm:$0xff]  ;;  %v5448_v14 = vld [vmem:[%s13842_s9 + $0xa0] sm:$0xff]  ;;  %v9547_v58 = vpack.c.bf16 %v5431_v45, %v5430_v33 }
 0x529   : > { %v9579_v5 = vpack.c.bf16 %v5463_v31, %v5462_v54  ;;  %v5472_v33 = vld [vmem:[%s13842_s9 + $0x160] sm:$0xff]  ;;  %v5459_v54 = vld [vmem:[%s13842_s9 + $0xf8] sm:$0xff] }
 0x52b   : > { %9400 = vmatpush1.bf16.msra.mxu0 %v9399_v23  ;;  %9528 = vmatpush1.bf16.msra.mxu1 %v9527_v26  ;;  %v5433_v23 = vld [vmem:[%s13842_s9 + $0x28] sm:$0xff]  ;;  %v9549_v26 = vpack.c.bf16 %v5449_v55, %v5448_v14  ;;  %v5490_v55 = vld [vmem:[%s13842_s9 + $0x1f0] sm:$0xff] }
 0x52c   : > { %9402 = vmatprep.subr.bf16.mxu0 %v9401_v7  ;;  %9530 = vmatprep.subr.bf16.mxu1 %v9529_v8  ;;  %v5450_v7 = vld [vmem:[%s13842_s9 + $0xb0] sm:$0xff]  ;;  %v5451_v8 = vld [vmem:[%s13842_s9 + $0xb8] sm:$0xff]  ;;  %v9551_v28 = vpack.c.bf16 %v5433_v23, %v5432_v32 }
 0x52d   : > { %v5474_v32 = vld [vmem:[%s13842_s9 + $0x170] sm:$0xff]  ;;  %v5475_v23 = vld [vmem:[%s13842_s9 + $0x178] sm:$0xff] }
 0x52f   : > { %9404 = vmatpush1.bf16.msra.mxu0 %v9403_v21  ;;  %9532 = vmatpush1.bf16.msra.mxu1 %v9531_v44  ;;  %v9553_v21 = vpack.c.bf16 %v5451_v8, %v5450_v7  ;;  %v9585_v44 = vpack.c.bf16 %v5483_v6, %v5482_v30  ;;  %v5118_v30 = vld [vmem:[%s13841_s8] sm:$0xf] }
 0x530   : > { %9406 = vmatprep.subr.bf16.mxu0 %v9405_v25  ;;  %9534 = vmatprep.subr.bf16.mxu1 %v9533_v11  ;;  %v5452_v25 = vld [vmem:[%s13842_s9 + $0xc0] sm:$0xff]  ;;  %v5453_v11 = vld [vmem:[%s13842_s9 + $0xc8] sm:$0xff] }
 0x533   : > { %9408 = vmatpush1.bf16.msra.mxu0 %v9407_v43  ;;  %9536 = vmatpush1.bf16.msra.mxu1 %v9535_v57  ;;  %v9557_v43 = vpack.c.bf16 %v5453_v11, %v5452_v25  ;;  %v9589_v57 = vpack.c.bf16 %v5485_v34, %v5484_v38 }
 0x534   : > { %9410 = vmatprep.subr.bf16.mxu0 %v9409_v29  ;;  %9538 = vmatprep.subr.bf16.mxu1 %v9537_v47  ;;  %v5454_v29 = vld [vmem:[%s13842_s9 + $0xd0] sm:$0xff]  ;;  %v5455_v47 = vld [vmem:[%s13842_s9 + $0xd8] sm:$0xff] }
 0x537   : > { %9412 = vmatpush1.bf16.msra.mxu0 %v9411_v13  ;;  %9540 = vmatpush1.bf16.msra.mxu1 %v9539_v53  ;;  %v9561_v13 = vpack.c.bf16 %v5455_v47, %v5454_v29  ;;  %v9593_v53 = vpack.c.bf16 %v5487_v42, %v5486_v50 }
 0x538   : > { %9542 = vmatprep.subr.bf16.mxu0 %v9541_v35  ;;  %9574 = vmatprep.subr.bf16.mxu1 %v9573_v22  ;;  %v5456_v35 = vld [vmem:[%s13842_s9 + $0xe0] sm:$0xff]  ;;  %v5457_v22 = vld [vmem:[%s13842_s9 + $0xe8] sm:$0xff] }
 0x539   : > { %v9565_v27 = vpack.c.bf16 %v5457_v22, %v5456_v35 }
 0x53a   : > { %5276 = vmatmul.mubr.f32.vlgmr.msra.gmra.mrb[166].mxu0 %v13226_v18  ;;  %5418 = vmatmul.mubr.f32.vlgmr.msra.gmra.mrb[140].mxu1 %v13226_v18  ;;  %v5464_v18 = vld [vmem:[%s13842_s9 + $0x120] sm:$0xff] }
 0x53b   : > { %9544 = vmatpush3.bf16.msra.mxu0 %v9543_v49  ;;  %9576 = vmatpush3.bf16.msra.mxu1 %v9575_v41  ;;  %v9583_v17 = vpack.c.bf16 %v5465_v20, %v5464_v18  ;;  %v5440_v49 = vld [vmem:[%s13842_s9 + $0x60] sm:$0xff]  ;;  %v5441_v41 = vld [vmem:[%s13842_s9 + $0x68] sm:$0xff]  ;;  %v5120_v18 = vlaneseq }
 0x53c   : > { %9546 = vmatprep.subr.bf16.mxu0 %v9545_v24  ;;  %9578 = vmatprep.subr.bf16.mxu1 %v9577_v37  ;;  %v9567_v45 = vpack.c.bf16 %v5441_v41, %v5440_v49  ;;  %v5473_v24 = vld [vmem:[%s13842_s9 + $0x168] sm:$0xff]  ;;  %v5458_v37 = vld [vmem:[%s13842_s9 + $0xf0] sm:$0xff] }
 0x53d   : > { %v9599_v31 = vpack.c.bf16 %v5473_v24, %v5472_v33  ;;  %v9569_v14 = vpack.c.bf16 %v5459_v54, %v5458_v37  ;;  %v5121_v20 = vshrl.u32 %v5120_v18, 7 }
 0x53f   : > { %9548 = vmatpush3.bf16.msra.mxu0 %v9547_v58  ;;  %9580 = vmatpush3.bf16.msra.mxu1 %v9579_v5  ;;  %v9601_v58 = vpack.c.bf16 %v5491_v36, %v5490_v55  ;;  %v5443_v5 = vld [vmem:[%s13842_s9 + $0x78] sm:$0xff]  ;;  %v5122_v7 = vsub.s32 0, %v5121_v20  ;;  %v5130_v8 = vsub.s32 2, %v5121_v20  ;;  %v5126_v6 = vsub.s32 1, %v5121_v20 }
 0x540   : > { %9550 = vmatprep.subr.bf16.mxu0 %v9549_v26  ;;  %9582 = vmatprep.subr.bf16.mxu1 %v9581_v1  ;;  %v9571_v26 = vpack.c.bf16 %v5443_v5, %v5442_v2  ;;  %v9603_v1 = vpack.c.bf16 %v5475_v23, %v5474_v32 }
 0x541   : > { %v5131_v60 = vrot.slane %v5118_v30, %v5130_v8  ;;  %v5127_v46 = vrot.slane %v5118_v30, %v5126_v6 }
 0x543   : > { %9552 = vmatpush3.bf16.msra.mxu0 %v9551_v28  ;;  %9584 = vmatpush3.bf16.msra.mxu1 %v9583_v17  ;;  %v5134_v28 = vsub.s32 3, %v5121_v20  ;;  %v5123_v17 = vrot.slane %v5118_v30, %v5122_v7 }
 0x544   : > { %9554 = vmatprep.subr.bf16.mxu0 %v9553_v21  ;;  %9586 = vmatprep.subr.bf16.mxu1 %v9585_v44 }
 0x545   : > { %v5135_v21 = vrot.slane %v5118_v30, %v5134_v28 }
 0x547   : > { %9556 = vmatpush3.bf16.msra.mxu0 %v9555_v51  ;;  %9588 = vmatpush3.bf16.msra.mxu1 %v9587_v15 }
 0x548   : > { %9558 = vmatprep.subr.bf16.mxu0 %v9557_v43  ;;  %9590 = vmatprep.subr.bf16.mxu1 %v9589_v57 }
 0x54b   : > { %9560 = vmatpush3.bf16.msra.mxu0 %v9559_v48  ;;  %9592 = vmatpush3.bf16.msra.mxu1 %v9591_v10 }
 0x54c   : > { %9562 = vmatprep.subr.bf16.mxu0 %v9561_v13  ;;  %9594 = vmatprep.subr.bf16.mxu1 %v9593_v53 }
 0x54f   : > { %9564 = vmatpush3.bf16.msra.mxu0 %v9563_v40  ;;  %9596 = vmatpush3.bf16.msra.mxu1 %v9595_v19 }
 0x550   : > { %9566 = vmatprep.subr.bf16.mxu0 %v9565_v27  ;;  %9598 = vmatprep.subr.bf16.mxu1 %v9597_v59 }
 0x553   : > { %9568 = vmatpush3.bf16.msra.mxu0 %v9567_v45  ;;  %9600 = vmatpush3.bf16.msra.mxu1 %v9599_v31 }
 0x554   : > { %9570 = vmatprep.subr.bf16.mxu0 %v9569_v14  ;;  %9602 = vmatprep.subr.bf16.mxu1 %v9601_v58 }
 0x557   : > { %9572 = vmatpush3.bf16.msra.mxu0 %v9571_v26  ;;  %9604 = vmatpush3.bf16.msra.mxu1 %v9603_v1 }
 0x60d   : > { %v5277_v44 = vpop.f32.mrb[166].mxu0  ;;  %v5419_v52 = vpop.f32.mrb[140].mxu1 }
 0x60e   : > { %v9619_v12 = vadd.f32 %v5277_v44, %v5123_v17  ;;  %v9621_v25 = vadd.f32 %v5419_v52, %v5131_v60  ;;  %v5279_v11 = vpop.f32.mrb[167].mxu0  ;;  %v5421_v38 = vpop.f32.mrb[141].mxu1 }
 0x60f   : > { %v9620_v34 = vadd.f32 %v5279_v11, %v5127_v46  ;;  %v9622_v51 = vadd.f32 %v5421_v38, %v5135_v21 }
 0x610   : > { %v5424_v39 = vmax.f32 %v9619_v12, 0.0  ;;  %v5426_v43 = vmax.f32 %v9621_v25, 0.0 }
 0x611   : > { %v5425_v15 = vmax.f32 %v9620_v34, 0.0  ;;  %v5427_v4 = vmax.f32 %v9622_v51, 0.0 }
 0x613   : > { %5557 = vmatprep.mubr.f32.mxu0 %v5425_v15  ;;  %5627 = vmatprep.mubr.f32.mxu1 %v5427_v4 }
 0x614   : > { %5558 = vmatmul.mubr.f32.vlgmr.msra.gmra.mrb[168].mxu0 %v5424_v39  ;;  %5628 = vmatmul.mubr.f32.vlgmr.msra.gmra.mrb[142].mxu1 %v5426_v43 }
 0x6e7   : > { %v7742_v57 = vpop.f32.mrb[168].mxu0  ;;  %v7777_v63 = vpop.f32.mrb[142].mxu1 }
 0x6e8   : > { %v7743_v29 = vpop.f32.mrb[169].mxu0  ;;  %v7778_v47 = vpop.f32.mrb[143].mxu1 }
 0x6e9   : > { %v7744_v50 = vadd.f32 %v7743_v29, %v7742_v57  ;;  %v7779_v42 = vadd.f32 %v7778_v47, %v7777_v63 }
 0x6eb   : > { %v5560_v48 = vadd.f32 %v7744_v50, %v5492_v61 }
 0x6ed   : > { %v5630_v10 = vadd.f32 %v7779_v42, %v5560_v48 }
 0x6ef   : > { %5633 = vst [vmem:[%s378_s26] sm:$0x1] %v5630_v10 }
 0x6f0   : > { %9693 = shalt.err (!%p9690_p3)
}
 0x6f1   : > { %s9694_s22 = scalar_lea.hbm %s13791_s14, 16  ;;  %s9698_s26 = scalar_lea.hbm %s13844_s11, 32 }
 0x6f2   : > { %p9695_p4 = scmp.ne.s32.totalorder %s13791_s14, %s9694_s22  ;;  %p9699_p9 = scmp.lt.u32.totalorder %s13791_s14, %s13844_s11 }
 0x6f3   : > { %p9700_p10 = scmp.lt.u32.totalorder %s9698_s26, %s9694_s22  ;;  %p9702_p12 = scmp.lt.u32.totalorder %s9694_s22, %s13791_s14 }
 0x6f4   : > { %p9696_p7 = pnand %p9695_p4, %p9846_p5 }
 0x6f5   : > { %p9701_p11 = por %p9700_p10, %p9699_p9 }
 0x6f6   : > { %p9697_p8 = pneg %p9696_p7 }
 0x6f7   : > { %p9703_p13 = por %p9702_p12, %p9701_p11 }
 0x6f9   : > { %p9704_p0 = pnand %p9703_p13, %p9697_p8 }
 0x6fb   : > { %9707 = shalt.err (!%p9704_p0)
}
 0x6fc   : > { %9636 = dma.vmem_to_hbm [thread:$0]  (%p9846_p5), %s13793_s30, 16, %s13791_s14, %s5635_s15  }
 0x6fd PF: > { %p9642_p1 = scmp.ge.s32.totalorder %s9742_s20, 2  ;;  %s5659_s13 = sand.u32 1, %s9730_s17  }
 0x6fe   : > { %s5660_s21 = scalar_lea.sflag [#allocation5], %s5659_s13 }
 0x6ff   : > { %p9639_p2 = pnand %p9642_p1, %p9850_p6 }
 0x701   : > { %9725 = dma.done.wait (!%p9639_p2), %s5660_s21, 16  }
 0x702   : > { %9727 = vsyncadd (!%p9639_p2), %s5660_s21, 4294967280  ;;  %s13850_s16 = sld [smem:[#allocation7_spill]]  ;;  %p21_p3 = scmp.ge.s32.totalorder %s9833_s23, 4  }
 0x703   : > { %s13851_s17 = smov %s9734_s18  ;;  %s13852_s18 = smov %s9738_s19 }
 0x704   : > { %s13854_s20 = smov %s9833_s23  ;;  %23 = sbr.rel (!%p21_p3) target bundleno = 5 (0x5), region = 330 }
 0x708   : > { %s13853_s19 = smov %s13850_s16 }
 0x70b   :  { %5664 = vsyncpa [#allocation5], 1 }
 0x70c   :  { %5666 = vsyncpa [#allocation5 + $0x1], 1 }

</bundles_post_ra>
